<compile_context>
chip_gen: v6e
topology: v6e:2x2x1
jax: 0.10.0
libtpu: 0.0.40
codegen_flags: <defaults>
</compile_context>

<pallas_src>
import math
import functools

import jax
import jax.numpy as jnp
from jax import lax
from jax.experimental import pallas as pl
from jax.experimental.pallas import tpu as pltpu


# ----------------------------- small math helpers (f32) -----------------------------

def _layer_norm(x, gamma, beta, eps=1e-5):
    mu = jnp.mean(x, axis=-1, keepdims=True)
    var = jnp.mean((x - mu) ** 2, axis=-1, keepdims=True)
    return (x - mu) * lax.rsqrt(var + eps) * gamma + beta


def _gelu_tanh(x):
    # tanh-form GELU: one EUP tanh instead of a long VALU erf polynomial.
    # Max deviation from the exact (erf) GELU is ~1e-3 — well inside the test tolerance.
    c = math.sqrt(2.0 / math.pi)
    return 0.5 * x * (1.0 + jnp.tanh(c * (x + 0.044715 * x * x * x)))


# -------------------------- kernel 1: K/V projection (once) --------------------------

def kv_proj_kernel(x_ref, wk_ref, bk_ref, wv_ref, bv_ref, k_ref, v_ref):
    x = x_ref[0].astype(jnp.bfloat16)                                     # (TS, D)
    k = jnp.dot(x, wk_ref[...], preferred_element_type=jnp.float32) + bk_ref[...]
    v = jnp.dot(x, wv_ref[...], preferred_element_type=jnp.float32) + bv_ref[...]
    k_ref[0] = k.astype(k_ref.dtype)                                      # bf16, head-blocked lanes
    v_ref[0] = v.astype(v_ref.dtype)


# ----------------------- kernel 2: fused encoder layer (flash) -----------------------

def encoder_layer_kernel(
    x_q_ref, k_ref, v_ref,
    wq_ref, bq_ref, wo_ref, bo_ref,
    g1_ref, be1_ref,
    w1_ref, b1_ref, w2_ref, b2_ref,
    g2_ref, be2_ref,
    o_ref,
    q_scr, acc_scr, m_scr, l_scr,
    *, heads,
):
    kv = pl.program_id(2)
    n_kv = pl.num_programs(2)
    D = x_q_ref.shape[-1]
    dh = D // heads
    bf16 = jnp.bfloat16
    f32 = jnp.float32

    # ---- first KV step for this (batch, q-tile): full-width Q proj + reset softmax state ----
    @pl.when(kv == 0)
    def _init():
        xq = x_q_ref[0].astype(bf16)                                      # (TQ, D)
        # 1/sqrt(dh) already folded into Wq / bq at trace time.
        q = jnp.dot(xq, wq_ref[...], preferred_element_type=f32) + bq_ref[...]
        q_scr[...] = q.astype(bf16)                                       # (TQ, D), head-blocked lanes
        m_scr[...] = jnp.full(m_scr.shape, -jnp.inf, f32)
        l_scr[...] = jnp.zeros(l_scr.shape, f32)
        acc_scr[...] = jnp.zeros(acc_scr.shape, f32)

    # ---- every KV step: online-softmax update per head (K/V already projected, bf16) ----
    for h in range(heads):                         # static unroll; heads is small here
        sl = slice(h * dh, (h + 1) * dh)           # 128-aligned static lane slice when dh % 128 == 0
        qh = q_scr[:, sl]                          # (TQ, dh) bf16
        kh = k_ref[0, :, sl]                       # (TK, dh) bf16
        vh = v_ref[0, :, sl]                       # (TK, dh) bf16
        # q @ k^T without an explicit transpose: contract the last dims of both.
        s = lax.dot_general(qh, kh,
                            dimension_numbers=(((1,), (1,)), ((), ())),
                            preferred_element_type=f32)                   # (TQ, TK) f32
        m_prev = m_scr[h]                                                 # (TQ, 1)
        m_new = jnp.maximum(m_prev, jnp.max(s, axis=-1, keepdims=True))
        alpha = jnp.exp(m_prev - m_new)
        p = jnp.exp(s - m_new)
        l_scr[h] = alpha * l_scr[h] + jnp.sum(p, axis=-1, keepdims=True)
        acc_scr[:, sl] = alpha * acc_scr[:, sl] + jnp.dot(
            p.astype(bf16), vh, preferred_element_type=f32)               # (TQ, dh)
        m_scr[h] = m_new

    # ---- last KV step: finalize attention, full-width out-proj, residuals, LN1, FFN, LN2 ----
    @pl.when(kv == n_kv - 1)
    def _finalize():
        x0 = x_q_ref[0]                                                   # (TQ, D) f32
        for h in range(heads):
            sl = slice(h * dh, (h + 1) * dh)
            inv_l = pl.reciprocal(l_scr[h], approx=True)                  # EUP slot
            acc_scr[:, sl] = acc_scr[:, sl] * inv_l
        attn = jnp.dot(acc_scr[...].astype(bf16), wo_ref[...],
                       preferred_element_type=f32) + bo_ref[...]          # (TQ, D) full-width

        x1 = _layer_norm(x0 + attn, g1_ref[...], be1_ref[...])

        h1 = jnp.dot(x1.astype(bf16), w1_ref[...],
                     preferred_element_type=f32) + b1_ref[...]
        h1 = _gelu_tanh(h1)
        ff = jnp.dot(h1.astype(bf16), w2_ref[...],
                     preferred_element_type=f32) + b2_ref[...]

        out = _layer_norm(x1 + ff, g2_ref[...], be2_ref[...])
        o_ref[0] = out.astype(o_ref.dtype)


# ------------------------------------ wrapper ----------------------------------------

def _pick_tile(s, cap):
    """Largest multiple-of-8 divisor of s that is <= cap (prefers >=128 when s allows)."""
    cap = min(cap, s)
    t = cap - (cap % 8)
    while t >= 8:
        if s % t == 0:
            return t
        t -= 8
    # TODO(synk): pad + mask awkward sequence lengths instead of a full-extent tile.
    return s


def _physical_vmem_bytes():
    try:
        return int(pltpu.get_tpu_info().vmem_capacity_bytes)
    except Exception:
        return 64 << 20            # conservative: v7x per-TensorCore VMEM


def _vmem_limit(need_bytes):
    phys = _physical_vmem_bytes()
    return int(max(32 << 20, min(int(need_bytes), phys - (8 << 20))))


def _kv_project(x, wk, bk, wv, bv, *, ts=512):
    """K = x@Wk+bk, V = x@Wv+bv as bf16 (B, S, D), head-blocked along the lane dim."""
    B, S, D = x.shape
    TS = _pick_tile(S, ts)
    ns = S // TS

    need = int(1.25 * (2 * (TS * D * 4 + 2 * TS * D * 2)          # x in, k/v out (dbl-buffered)
                       + 2 * (2 * D * D * 2 + 2 * D * 4)          # Wk/Wv + biases
                       + 4 * TS * D * 4))                         # compiler temporaries
    return pl.pallas_call(
        kv_proj_kernel,
        out_shape=(jax.ShapeDtypeStruct((B, S, D), jnp.bfloat16),
                   jax.ShapeDtypeStruct((B, S, D), jnp.bfloat16)),
        grid_spec=pltpu.PrefetchScalarGridSpec(
            num_scalar_prefetch=0,
            grid=(B, ns),
            in_specs=[
                pl.BlockSpec((1, TS, D), lambda b, i: (b, i, 0)),   # x
                pl.BlockSpec((D, D), lambda b, i: (0, 0)),          # Wk
                pl.BlockSpec((1, D), lambda b, i: (0, 0)),          # bk
                pl.BlockSpec((D, D), lambda b, i: (0, 0)),          # Wv
                pl.BlockSpec((1, D), lambda b, i: (0, 0)),          # bv
            ],
            out_specs=[
                pl.BlockSpec((1, TS, D), lambda b, i: (b, i, 0)),   # K
                pl.BlockSpec((1, TS, D), lambda b, i: (b, i, 0)),   # V
            ],
        ),
        compiler_params=pltpu.CompilerParams(
            dimension_semantics=("parallel", "parallel"),
            vmem_limit_bytes=_vmem_limit(need),
        ),
    )(x, wk, bk, wv, bv)


def encoder_layer(x, params, *, heads, tq=256, tk=512):
    B, S, D = x.shape
    assert D % heads == 0, "model dim must be divisible by heads"
    dh = D // heads
    Dff = params["w1"].shape[1]
    TQ = _pick_tile(S, tq)
    TK = _pick_tile(S, tk)
    nq = S // TQ
    nk = S // TK
    scale = 1.0 / math.sqrt(dh)

    bf16 = jnp.bfloat16
    f32 = jnp.float32

    # Attention scale folded into Wq / bq at trace time; weights as bf16 MXU operands.
    wq_s = (params["wq"] * scale).astype(bf16)
    bq_s = (params["bq"] * scale).astype(f32)
    wo = params["wo"].astype(bf16)
    bo = params["bo"].astype(f32)
    w1 = params["w1"].astype(bf16)
    w2 = params["w2"].astype(bf16)

    # Hoisted K/V projection (done ONCE per token, not once per query tile).
    k_bf16, v_bf16 = _kv_project(
        x, params["wk"].astype(bf16), params["bk"].astype(f32),
        params["wv"].astype(bf16), params["bv"].astype(f32))

    def const_spec(shape):
        zeros = (0,) * len(shape)
        return pl.BlockSpec(shape, lambda b, i, j: zeros)

    in_specs = [
        pl.BlockSpec((1, TQ, D), lambda b, i, j: (b, i, 0)),   # x (query rows, f32)
        pl.BlockSpec((1, TK, D), lambda b, i, j: (b, j, 0)),   # K (bf16, streamed per kv step)
        pl.BlockSpec((1, TK, D), lambda b, i, j: (b, j, 0)),   # V (bf16, streamed per kv step)
        const_spec((D, D)), const_spec((1, D)),                # Wq (scaled), bq (scaled)
        const_spec((D, D)), const_spec((1, D)),                # Wo, bo
        const_spec((1, D)), const_spec((1, D)),                # LN1 gamma, beta
        const_spec((D, Dff)), const_spec((1, Dff)),            # FFN W1, b1
        const_spec((Dff, D)), const_spec((1, D)),              # FFN W2, b2
        const_spec((1, D)), const_spec((1, D)),                # LN2 gamma, beta
    ]
    out_spec = pl.BlockSpec((1, TQ, D), lambda b, i, j: (b, i, 0))

    # Generation-aware VMEM budget (with headroom) instead of a hard-coded limit.
    io = 2 * (TQ * D * 4 + 2 * TK * D * 2 + TQ * D * 4)
    consts = 2 * (2 * D * D * 2 + 2 * D * Dff * 2 + (7 * D + Dff) * 4)
    scratch = TQ * D * (2 + 4) + 2 * heads * TQ * 128 * 4
    temps = 3 * TQ * TK * 4 + 2 * TQ * Dff * 4 + 6 * TQ * D * 4
    need = int(1.25 * (io + consts + scratch + temps))

    kernel = functools.partial(encoder_layer_kernel, heads=heads)

    return pl.pallas_call(
        kernel,
        out_shape=jax.ShapeDtypeStruct((B, S, D), jnp.float32),
        grid_spec=pltpu.PrefetchScalarGridSpec(
            num_scalar_prefetch=0,
            grid=(B, nq, nk),
            in_specs=in_specs,
            out_specs=out_spec,
            scratch_shapes=[
                pltpu.VMEM((TQ, D), bf16),             # scaled Q, head-blocked lanes
                pltpu.VMEM((TQ, D), jnp.float32),      # attention accumulator, head-blocked lanes
                pltpu.VMEM((heads, TQ, 1), jnp.float32),  # running max m
                pltpu.VMEM((heads, TQ, 1), jnp.float32),  # running denom l
            ],
        ),
        compiler_params=pltpu.CompilerParams(
            dimension_semantics=("parallel", "parallel", "arbitrary"),
            vmem_limit_bytes=_vmem_limit(need),
        ),
    )(
        x, k_bf16, v_bf16,
        wq_s, bq_s, wo, bo,
        params["g1"], params["be1"],
        w1, params["b1"], w2, params["b2"],
        params["g2"], params["be2"],
    )


# -------------------------------- pure-JAX reference --------------------------------

def encoder_layer_ref(x, p, heads):
    """Exact (all-f32) semantics of the PyTorch EncoderLayer in eval mode."""
    B, S, D = x.shape
    dh = D // heads
    q = x @ p["wq"] + p["bq"]
    k = x @ p["wk"] + p["bk"]
    v = x @ p["wv"] + p["bv"]
    q = q.reshape(B, S, heads, dh).transpose(0, 2, 1, 3)
    k = k.reshape(B, S, heads, dh).transpose(0, 2, 1, 3)
    v = v.reshape(B, S, heads, dh).transpose(0, 2, 1, 3)
    s = jnp.einsum("bhqd,bhkd->bhqk", q, k) / math.sqrt(dh)
    pr = jax.nn.softmax(s, axis=-1)
    a = jnp.einsum("bhqk,bhkd->bhqd", pr, v).transpose(0, 2, 1, 3).reshape(B, S, D)
    a = a @ p["wo"] + p["bo"]

    def ln(y, g, b, eps=1e-5):
        mu = jnp.mean(y, axis=-1, keepdims=True)
        var = jnp.mean((y - mu) ** 2, axis=-1, keepdims=True)
        return (y - mu) / jnp.sqrt(var + eps) * g + b

    x1 = ln(x + a, p["g1"], p["be1"])
    h = jax.nn.gelu(x1 @ p["w1"] + p["b1"], approximate=False)
    ff = h @ p["w2"] + p["b2"]
    return ln(x1 + ff, p["g2"], p["be2"])


def init_params(key, dim, mult=4):
    ks = jax.random.split(key, 16)
    sc = 0.05
    dff = dim * mult
    n = lambda k, shp: sc * jax.random.normal(k, shp, jnp.float32)
    return {
        "wq": n(ks[0], (dim, dim)), "wk": n(ks[1], (dim, dim)),
        "wv": n(ks[2], (dim, dim)), "wo": n(ks[3], (dim, dim)),
        "bq": n(ks[4], (1, dim)), "bk": n(ks[5], (1, dim)),
        "bv": n(ks[6], (1, dim)), "bo": n(ks[7], (1, dim)),
        "g1": 1.0 + n(ks[8], (1, dim)), "be1": n(ks[9], (1, dim)),
        "w1": n(ks[10], (dim, dff)), "b1": n(ks[11], (1, dff)),
        "w2": n(ks[12], (dff, dim)), "b2": n(ks[13], (1, dim)),
        "g2": 1.0 + n(ks[14], (1, dim)), "be2": n(ks[15], (1, dim)),
    }


if __name__ == "__main__":
    # Small but lane-dense shapes: D and dh are multiples of 128, and S=256 with
    # tq=tk=128 exercises multiple query tiles AND the multi-step online softmax.
    B, S, D, H = 2, 256, 256, 2            # dh = 128
    key = jax.random.PRNGKey(0)
    kx, kp = jax.random.split(key)
    x = jax.random.normal(kx, (B, S, D), jnp.float32)
    params = init_params(kp, D)

    run = jax.jit(functools.partial(encoder_layer, heads=H, tq=128, tk=128))
    out = jax.block_until_ready(run(x, params))

    ref = encoder_layer_ref(x, params, heads=H)
    assert out.shape == (B, S, D)
    # Kernel uses bf16 MXU operands (f32 accumulation) + tanh GELU; compare vs all-f32 exact ref.
    err = float(jnp.max(jnp.abs(out - ref)))
    assert jnp.allclose(out, ref, rtol=5e-2, atol=5e-2), f"mismatch vs JAX reference, max_abs_err={err}"
    print("KERNEL_OK")
</pallas_src>

<mosaic_0001>
module attributes {stable_mosaic.version = 11 : i64} {
  func.func @kv_proj_kernel(%arg0: i32, %arg1: i32, %arg2: memref<1x256x256xf32, #tpu.memory_space<vmem>>, %arg3: memref<256x256xbf16, #tpu.memory_space<vmem>>, %arg4: memref<1x256xf32, #tpu.memory_space<vmem>>, %arg5: memref<256x256xbf16, #tpu.memory_space<vmem>>, %arg6: memref<1x256xf32, #tpu.memory_space<vmem>>, %arg7: memref<1x256x256xbf16, #tpu.memory_space<vmem>>, %arg8: memref<1x256x256xbf16, #tpu.memory_space<vmem>>) attributes {dimension_semantics = [#tpu.dimension_semantics<parallel>, #tpu.dimension_semantics<parallel>], iteration_bounds = array<i64: 2, 1>, scalar_prefetch = 0 : i64, scratch_operands = 0 : i64, tpu.core_type = #tpu.core_type<tc>, window_params = [{transform_indices = @transform_0, window_bounds = array<i64: 1, 256, 256>}, {pipeline_mode = #tpu.pipeline_mode<synchronous>, transform_indices = @transform_1, window_bounds = array<i64: 256, 256>}, {pipeline_mode = #tpu.pipeline_mode<synchronous>, transform_indices = @transform_2, window_bounds = array<i64: 1, 256>}, {pipeline_mode = #tpu.pipeline_mode<synchronous>, transform_indices = @transform_3, window_bounds = array<i64: 256, 256>}, {pipeline_mode = #tpu.pipeline_mode<synchronous>, transform_indices = @transform_4, window_bounds = array<i64: 1, 256>}, {transform_indices = @transform_5, window_bounds = array<i64: 1, 256, 256>}, {transform_indices = @transform_6, window_bounds = array<i64: 1, 256, 256>}]} {
    %c0 = arith.constant 0 : index
    %c0_0 = arith.constant 0 : index
    %c0_1 = arith.constant 0 : index
    %0 = vector.load %arg2[%c0, %c0_0, %c0_1] : memref<1x256x256xf32, #tpu.memory_space<vmem>>, vector<1x256x256xf32>
    %1 = vector.shape_cast %0 : vector<1x256x256xf32> to vector<256x256xf32>
    %2 = arith.truncf %1 : vector<256x256xf32> to vector<256x256xbf16>
    %c0_2 = arith.constant 0 : index
    %c0_3 = arith.constant 0 : index
    %3 = vector.load %arg3[%c0_2, %c0_3] : memref<256x256xbf16, #tpu.memory_space<vmem>>, vector<256x256xbf16>
    %cst = arith.constant dense<0.000000e+00> : vector<256x256xf32>
    %4 = tpu.matmul %2, %3, %cst {dimension_numbers = #tpu.dot_dimension_numbers<[1], [0], [0], [1], [0, 0, 1, 1], [], []>} : vector<256x256xbf16>, vector<256x256xbf16>, vector<256x256xf32> -> vector<256x256xf32>
    %c0_4 = arith.constant 0 : index
    %c0_5 = arith.constant 0 : index
    %5 = vector.load %arg4[%c0_4, %c0_5] : memref<1x256xf32, #tpu.memory_space<vmem>>, vector<1x256xf32>
    %6 = vector.broadcast %5 : vector<1x256xf32> to vector<256x256xf32>
    %7 = arith.addf %4, %6 : vector<256x256xf32>
    %c0_6 = arith.constant 0 : index
    %c0_7 = arith.constant 0 : index
    %8 = vector.load %arg5[%c0_6, %c0_7] : memref<256x256xbf16, #tpu.memory_space<vmem>>, vector<256x256xbf16>
    %cst_8 = arith.constant dense<0.000000e+00> : vector<256x256xf32>
    %9 = tpu.matmul %2, %8, %cst_8 {dimension_numbers = #tpu.dot_dimension_numbers<[1], [0], [0], [1], [0, 0, 1, 1], [], []>} : vector<256x256xbf16>, vector<256x256xbf16>, vector<256x256xf32> -> vector<256x256xf32>
    %c0_9 = arith.constant 0 : index
    %c0_10 = arith.constant 0 : index
    %10 = vector.load %arg6[%c0_9, %c0_10] : memref<1x256xf32, #tpu.memory_space<vmem>>, vector<1x256xf32>
    %11 = vector.broadcast %10 : vector<1x256xf32> to vector<256x256xf32>
    %12 = arith.addf %9, %11 : vector<256x256xf32>
    %13 = arith.truncf %7 : vector<256x256xf32> to vector<256x256xbf16>
    %c0_11 = arith.constant 0 : index
    %c0_12 = arith.constant 0 : index
    %c0_13 = arith.constant 0 : index
    %14 = vector.load %arg7[%c0_11, %c0_12, %c0_13] : memref<1x256x256xbf16, #tpu.memory_space<vmem>>, vector<1x256x256xbf16>
    %15 = vector.shape_cast %14 : vector<1x256x256xbf16> to vector<256x256xbf16>
    %16 = vector.shape_cast %13 : vector<256x256xbf16> to vector<1x256x256xbf16>
    tpu.vector_store %arg7[%c0_11, %c0_12, %c0_13], %16 {strides = array<i32>} : memref<1x256x256xbf16, #tpu.memory_space<vmem>>, vector<1x256x256xbf16>,
    %17 = arith.truncf %12 : vector<256x256xf32> to vector<256x256xbf16>
    %c0_14 = arith.constant 0 : index
    %c0_15 = arith.constant 0 : index
    %c0_16 = arith.constant 0 : index
    %18 = vector.load %arg8[%c0_14, %c0_15, %c0_16] : memref<1x256x256xbf16, #tpu.memory_space<vmem>>, vector<1x256x256xbf16>
    %19 = vector.shape_cast %18 : vector<1x256x256xbf16> to vector<256x256xbf16>
    %20 = vector.shape_cast %17 : vector<256x256xbf16> to vector<1x256x256xbf16>
    tpu.vector_store %arg8[%c0_14, %c0_15, %c0_16], %20 {strides = array<i32>} : memref<1x256x256xbf16, #tpu.memory_space<vmem>>, vector<1x256x256xbf16>,
    return
  }
  func.func @transform_0(%arg0: i32, %arg1: i32) -> (i32, i32, i32) {
    %c0_i32 = arith.constant 0 : i32
    %c0_i32_0 = arith.constant 0 : i32
    return %arg0, %arg1, %c0_i32 : i32, i32, i32
  }
  func.func @transform_1(%arg0: i32, %arg1: i32) -> (i32, i32) {
    %c0_i32 = arith.constant 0 : i32
    %c0_i32_0 = arith.constant 0 : i32
    %c0_i32_1 = arith.constant 0 : i32
    return %c0_i32, %c0_i32_0 : i32, i32
  }
  func.func @transform_2(%arg0: i32, %arg1: i32) -> (i32, i32) {
    %c0_i32 = arith.constant 0 : i32
    %c0_i32_0 = arith.constant 0 : i32
    %c0_i32_1 = arith.constant 0 : i32
    return %c0_i32, %c0_i32_0 : i32, i32
  }
  func.func @transform_3(%arg0: i32, %arg1: i32) -> (i32, i32) {
    %c0_i32 = arith.constant 0 : i32
    %c0_i32_0 = arith.constant 0 : i32
    %c0_i32_1 = arith.constant 0 : i32
    return %c0_i32, %c0_i32_0 : i32, i32
  }
  func.func @transform_4(%arg0: i32, %arg1: i32) -> (i32, i32) {
    %c0_i32 = arith.constant 0 : i32
    %c0_i32_0 = arith.constant 0 : i32
    %c0_i32_1 = arith.constant 0 : i32
    return %c0_i32, %c0_i32_0 : i32, i32
  }
  func.func @transform_5(%arg0: i32, %arg1: i32) -> (i32, i32, i32) {
    %c0_i32 = arith.constant 0 : i32
    %c0_i32_0 = arith.constant 0 : i32
    return %arg0, %arg1, %c0_i32 : i32, i32, i32
  }
  func.func @transform_6(%arg0: i32, %arg1: i32) -> (i32, i32, i32) {
    %c0_i32 = arith.constant 0 : i32
    %c0_i32_0 = arith.constant 0 : i32
    return %arg0, %arg1, %c0_i32 : i32, i32, i32
  }
}

module attributes {stable_mosaic.version = 11 : i64} {
  func.func @encoder_layer_kernel(%arg0: i32, %arg1: i32, %arg2: i32, %arg3: memref<1x128x256xf32, #tpu.memory_space<vmem>>, %arg4: memref<1x128x256xbf16, #tpu.memory_space<vmem>>, %arg5: memref<1x128x256xbf16, #tpu.memory_space<vmem>>, %arg6: memref<256x256xbf16, #tpu.memory_space<vmem>>, %arg7: memref<1x256xf32, #tpu.memory_space<vmem>>, %arg8: memref<256x256xbf16, #tpu.memory_space<vmem>>, %arg9: memref<1x256xf32, #tpu.memory_space<vmem>>, %arg10: memref<1x256xf32, #tpu.memory_space<vmem>>, %arg11: memref<1x256xf32, #tpu.memory_space<vmem>>, %arg12: memref<256x1024xbf16, #tpu.memory_space<vmem>>, %arg13: memref<1x1024xf32, #tpu.memory_space<vmem>>, %arg14: memref<1024x256xbf16, #tpu.memory_space<vmem>>, %arg15: memref<1x256xf32, #tpu.memory_space<vmem>>, %arg16: memref<1x256xf32, #tpu.memory_space<vmem>>, %arg17: memref<1x256xf32, #tpu.memory_space<vmem>>, %arg18: memref<1x128x256xf32, #tpu.memory_space<vmem>>, %arg19: memref<128x256xbf16, #tpu.memory_space<vmem>>, %arg20: memref<128x256xf32, #tpu.memory_space<vmem>>, %arg21: memref<2x128x1xf32, #tpu.memory_space<vmem>>, %arg22: memref<2x128x1xf32, #tpu.memory_space<vmem>>) attributes {dimension_semantics = [#tpu.dimension_semantics<parallel>, #tpu.dimension_semantics<parallel>, #tpu.dimension_semantics<arbitrary>], iteration_bounds = array<i64: 2, 2, 2>, scalar_prefetch = 0 : i64, scratch_operands = 4 : i64, tpu.core_type = #tpu.core_type<tc>, window_params = [{transform_indices = @transform_0, window_bounds = array<i64: 1, 128, 256>}, {transform_indices = @transform_1, window_bounds = array<i64: 1, 128, 256>}, {transform_indices = @transform_2, window_bounds = array<i64: 1, 128, 256>}, {pipeline_mode = #tpu.pipeline_mode<synchronous>, transform_indices = @transform_3, window_bounds = array<i64: 256, 256>}, {pipeline_mode = #tpu.pipeline_mode<synchronous>, transform_indices = @transform_4, window_bounds = array<i64: 1, 256>}, {pipeline_mode = #tpu.pipeline_mode<synchronous>, transform_indices = @transform_5, window_bounds = array<i64: 256, 256>}, {pipeline_mode = #tpu.pipeline_mode<synchronous>, transform_indices = @transform_6, window_bounds = array<i64: 1, 256>}, {pipeline_mode = #tpu.pipeline_mode<synchronous>, transform_indices = @transform_7, window_bounds = array<i64: 1, 256>}, {pipeline_mode = #tpu.pipeline_mode<synchronous>, transform_indices = @transform_8, window_bounds = array<i64: 1, 256>}, {pipeline_mode = #tpu.pipeline_mode<synchronous>, transform_indices = @transform_9, window_bounds = array<i64: 256, 1024>}, {pipeline_mode = #tpu.pipeline_mode<synchronous>, transform_indices = @transform_10, window_bounds = array<i64: 1, 1024>}, {pipeline_mode = #tpu.pipeline_mode<synchronous>, transform_indices = @transform_11, window_bounds = array<i64: 1024, 256>}, {pipeline_mode = #tpu.pipeline_mode<synchronous>, transform_indices = @transform_12, window_bounds = array<i64: 1, 256>}, {pipeline_mode = #tpu.pipeline_mode<synchronous>, transform_indices = @transform_13, window_bounds = array<i64: 1, 256>}, {pipeline_mode = #tpu.pipeline_mode<synchronous>, transform_indices = @transform_14, window_bounds = array<i64: 1, 256>}, {transform_indices = @transform_15, window_bounds = array<i64: 1, 128, 256>}]} {
    %c0_i32 = arith.constant 0 : i32
    %0 = arith.cmpi eq, %arg2, %c0_i32 : i32
    %1 = arith.extui %0 : i1 to i32
    %c0_i32_0 = arith.constant 0 : i32
    %2 = arith.cmpi ne, %1, %c0_i32_0 : i32
    scf.if %2 {
      %c0_54 = arith.constant 0 : index
      %c0_55 = arith.constant 0 : index
      %c0_56 = arith.constant 0 : index
      %76 = vector.load %arg3[%c0_54, %c0_55, %c0_56] : memref<1x128x256xf32, #tpu.memory_space<vmem>>, vector<1x128x256xf32>
      %77 = vector.shape_cast %76 : vector<1x128x256xf32> to vector<128x256xf32>
      %78 = arith.truncf %77 : vector<128x256xf32> to vector<128x256xbf16>
      %c0_57 = arith.constant 0 : index
      %c0_58 = arith.constant 0 : index
      %79 = vector.load %arg6[%c0_57, %c0_58] : memref<256x256xbf16, #tpu.memory_space<vmem>>, vector<256x256xbf16>
      %cst_59 = arith.constant dense<0.000000e+00> : vector<128x256xf32>
      %80 = tpu.matmul %78, %79, %cst_59 {dimension_numbers = #tpu.dot_dimension_numbers<[1], [0], [0], [1], [0, 0, 1, 1], [], []>} : vector<128x256xbf16>, vector<256x256xbf16>, vector<128x256xf32> -> vector<128x256xf32>
      %c0_60 = arith.constant 0 : index
      %c0_61 = arith.constant 0 : index
      %81 = vector.load %arg7[%c0_60, %c0_61] : memref<1x256xf32, #tpu.memory_space<vmem>>, vector<1x256xf32>
      %82 = vector.broadcast %81 : vector<1x256xf32> to vector<128x256xf32>
      %83 = arith.addf %80, %82 : vector<128x256xf32>
      %84 = arith.truncf %83 : vector<128x256xf32> to vector<128x256xbf16>
      %c0_62 = arith.constant 0 : index
      %c0_63 = arith.constant 0 : index
      %85 = vector.load %arg19[%c0_62, %c0_63] : memref<128x256xbf16, #tpu.memory_space<vmem>>, vector<128x256xbf16>
      tpu.vector_store %arg19[%c0_62, %c0_63], %84 {strides = array<i32>} : memref<128x256xbf16, #tpu.memory_space<vmem>>, vector<128x256xbf16>,
      %cst_64 = arith.constant 0xFF800000 : f32
      %86 = vector.broadcast %cst_64 : f32 to vector<2x128x1xf32>
      %c0_65 = arith.constant 0 : index
      %c0_66 = arith.constant 0 : index
      %c0_67 = arith.constant 0 : index
      %87 = vector.load %arg21[%c0_65, %c0_66, %c0_67] : memref<2x128x1xf32, #tpu.memory_space<vmem>>, vector<2x128x1xf32>
      tpu.vector_store %arg21[%c0_65, %c0_66, %c0_67], %86 {strides = array<i32>} : memref<2x128x1xf32, #tpu.memory_space<vmem>>, vector<2x128x1xf32>,
      %cst_68 = arith.constant 0.000000e+00 : f32
      %88 = vector.broadcast %cst_68 : f32 to vector<2x128x1xf32>
      %c0_69 = arith.constant 0 : index
      %c0_70 = arith.constant 0 : index
      %c0_71 = arith.constant 0 : index
      %89 = vector.load %arg22[%c0_69, %c0_70, %c0_71] : memref<2x128x1xf32, #tpu.memory_space<vmem>>, vector<2x128x1xf32>
      tpu.vector_store %arg22[%c0_69, %c0_70, %c0_71], %88 {strides = array<i32>} : memref<2x128x1xf32, #tpu.memory_space<vmem>>, vector<2x128x1xf32>,
      %cst_72 = arith.constant 0.000000e+00 : f32
      %90 = vector.broadcast %cst_72 : f32 to vector<128x256xf32>
      %c0_73 = arith.constant 0 : index
      %c0_74 = arith.constant 0 : index
      %91 = vector.load %arg20[%c0_73, %c0_74] : memref<128x256xf32, #tpu.memory_space<vmem>>, vector<128x256xf32>
      tpu.vector_store %arg20[%c0_73, %c0_74], %90 {strides = array<i32>} : memref<128x256xf32, #tpu.memory_space<vmem>>, vector<128x256xf32>,
    } else {
    }
    %c0 = arith.constant 0 : index
    %c0_1 = arith.constant 0 : index
    %3 = vector.load %arg19[%c0, %c0_1] : memref<128x256xbf16, #tpu.memory_space<vmem>>, vector<128x128xbf16>
    %c0_2 = arith.constant 0 : index
    %c0_3 = arith.constant 0 : index
    %c0_4 = arith.constant 0 : index
    %4 = vector.load %arg4[%c0_2, %c0_3, %c0_4] : memref<1x128x256xbf16, #tpu.memory_space<vmem>>, vector<1x128x128xbf16>
    %5 = vector.shape_cast %4 : vector<1x128x128xbf16> to vector<128x128xbf16>
    %c0_5 = arith.constant 0 : index
    %c0_6 = arith.constant 0 : index
    %c0_7 = arith.constant 0 : index
    %6 = vector.load %arg5[%c0_5, %c0_6, %c0_7] : memref<1x128x256xbf16, #tpu.memory_space<vmem>>, vector<1x128x128xbf16>
    %7 = vector.shape_cast %6 : vector<1x128x128xbf16> to vector<128x128xbf16>
    %cst = arith.constant dense<0.000000e+00> : vector<128x128xf32>
    %8 = tpu.matmul %3, %5, %cst {dimension_numbers = #tpu.dot_dimension_numbers<[1], [1], [0], [0], [0, 0, 1, 0], [], []>} : vector<128x128xbf16>, vector<128x128xbf16>, vector<128x128xf32> -> vector<128x128xf32>
    %c0_8 = arith.constant 0 : index
    %c0_9 = arith.constant 0 : index
    %c0_10 = arith.constant 0 : index
    %9 = vector.load %arg21[%c0_8, %c0_9, %c0_10] : memref<2x128x1xf32, #tpu.memory_space<vmem>>, vector<1x128x1xf32>
    %10 = vector.shape_cast %9 : vector<1x128x1xf32> to vector<128x1xf32>
    %cst_11 = arith.constant dense<0xFF800000> : vector<128xf32>
    %11 = vector.multi_reduction <maximumf>, %8, %cst_11 [1] : vector<128x128xf32> to vector<128xf32>
    %12 = vector.shape_cast %11 : vector<128xf32> to vector<128x1xf32>
    %13 = arith.maximumf %10, %12 : vector<128x1xf32>
    %14 = arith.subf %10, %13 : vector<128x1xf32>
    %15 = math.exp %14 : vector<128x1xf32>
    %16 = vector.broadcast %13 : vector<128x1xf32> to vector<128x128xf32>
    %17 = arith.subf %8, %16 : vector<128x128xf32>
    %18 = math.exp %17 : vector<128x128xf32>
    %c0_12 = arith.constant 0 : index
    %c0_13 = arith.constant 0 : index
    %c0_14 = arith.constant 0 : index
    %19 = vector.load %arg22[%c0_12, %c0_13, %c0_14] : memref<2x128x1xf32, #tpu.memory_space<vmem>>, vector<1x128x1xf32>
    %20 = vector.shape_cast %19 : vector<1x128x1xf32> to vector<128x1xf32>
    %21 = arith.mulf %15, %20 : vector<128x1xf32>
    %cst_15 = arith.constant dense<0.000000e+00> : vector<128xf32>
    %22 = vector.multi_reduction <add>, %18, %cst_15 [1] : vector<128x128xf32> to vector<128xf32>
    %23 = vector.shape_cast %22 : vector<128xf32> to vector<128x1xf32>
    %24 = arith.addf %21, %23 : vector<128x1xf32>
    %c0_16 = arith.constant 0 : index
    %c0_17 = arith.constant 0 : index
    %c0_18 = arith.constant 0 : index
    %25 = vector.load %arg22[%c0_16, %c0_17, %c0_18] : memref<2x128x1xf32, #tpu.memory_space<vmem>>, vector<1x128x1xf32>
    %26 = vector.shape_cast %25 : vector<1x128x1xf32> to vector<128x1xf32>
    %27 = vector.shape_cast %24 : vector<128x1xf32> to vector<1x128x1xf32>
    tpu.vector_store %arg22[%c0_16, %c0_17, %c0_18], %27 {strides = array<i32>} : memref<2x128x1xf32, #tpu.memory_space<vmem>>, vector<1x128x1xf32>,
    %c0_19 = arith.constant 0 : index
    %c0_20 = arith.constant 0 : index
    %28 = vector.load %arg20[%c0_19, %c0_20] : memref<128x256xf32, #tpu.memory_space<vmem>>, vector<128x128xf32>
    %29 = vector.broadcast %15 : vector<128x1xf32> to vector<128x128xf32>
    %30 = arith.mulf %29, %28 : vector<128x128xf32>
    %31 = arith.truncf %18 : vector<128x128xf32> to vector<128x128xbf16>
    %cst_21 = arith.constant dense<0.000000e+00> : vector<128x128xf32>
    %32 = tpu.matmul %31, %7, %cst_21 {dimension_numbers = #tpu.dot_dimension_numbers<[1], [0], [0], [1], [0, 0, 1, 1], [], []>} : vector<128x128xbf16>, vector<128x128xbf16>, vector<128x128xf32> -> vector<128x128xf32>
    %33 = arith.addf %30, %32 : vector<128x128xf32>
    %c0_22 = arith.constant 0 : index
    %c0_23 = arith.constant 0 : index
    %34 = vector.load %arg20[%c0_22, %c0_23] : memref<128x256xf32, #tpu.memory_space<vmem>>, vector<128x128xf32>
    tpu.vector_store %arg20[%c0_22, %c0_23], %33 {strides = array<i32>} : memref<128x256xf32, #tpu.memory_space<vmem>>, vector<128x128xf32>,
    %c0_24 = arith.constant 0 : index
    %c0_25 = arith.constant 0 : index
    %c0_26 = arith.constant 0 : index
    %35 = vector.load %arg21[%c0_24, %c0_25, %c0_26] : memref<2x128x1xf32, #tpu.memory_space<vmem>>, vector<1x128x1xf32>
    %36 = vector.shape_cast %35 : vector<1x128x1xf32> to vector<128x1xf32>
    %37 = vector.shape_cast %13 : vector<128x1xf32> to vector<1x128x1xf32>
    tpu.vector_store %arg21[%c0_24, %c0_25, %c0_26], %37 {strides = array<i32>} : memref<2x128x1xf32, #tpu.memory_space<vmem>>, vector<1x128x1xf32>,
    %c0_27 = arith.constant 0 : index
    %c128 = arith.constant 128 : index
    %38 = vector.load %arg19[%c0_27, %c128] : memref<128x256xbf16, #tpu.memory_space<vmem>>, vector<128x128xbf16>
    %c0_28 = arith.constant 0 : index
    %c0_29 = arith.constant 0 : index
    %c128_30 = arith.constant 128 : index
    %39 = vector.load %arg4[%c0_28, %c0_29, %c128_30] : memref<1x128x256xbf16, #tpu.memory_space<vmem>>, vector<1x128x128xbf16>
    %40 = vector.shape_cast %39 : vector<1x128x128xbf16> to vector<128x128xbf16>
    %c0_31 = arith.constant 0 : index
    %c0_32 = arith.constant 0 : index
    %c128_33 = arith.constant 128 : index
    %41 = vector.load %arg5[%c0_31, %c0_32, %c128_33] : memref<1x128x256xbf16, #tpu.memory_space<vmem>>, vector<1x128x128xbf16>
    %42 = vector.shape_cast %41 : vector<1x128x128xbf16> to vector<128x128xbf16>
    %cst_34 = arith.constant dense<0.000000e+00> : vector<128x128xf32>
    %43 = tpu.matmul %38, %40, %cst_34 {dimension_numbers = #tpu.dot_dimension_numbers<[1], [1], [0], [0], [0, 0, 1, 0], [], []>} : vector<128x128xbf16>, vector<128x128xbf16>, vector<128x128xf32> -> vector<128x128xf32>
    %c1 = arith.constant 1 : index
    %c0_35 = arith.constant 0 : index
    %c0_36 = arith.constant 0 : index
    %44 = vector.load %arg21[%c1, %c0_35, %c0_36] : memref<2x128x1xf32, #tpu.memory_space<vmem>>, vector<1x128x1xf32>
    %45 = vector.shape_cast %44 : vector<1x128x1xf32> to vector<128x1xf32>
    %cst_37 = arith.constant dense<0xFF800000> : vector<128xf32>
    %46 = vector.multi_reduction <maximumf>, %43, %cst_37 [1] : vector<128x128xf32> to vector<128xf32>
    %47 = vector.shape_cast %46 : vector<128xf32> to vector<128x1xf32>
    %48 = arith.maximumf %45, %47 : vector<128x1xf32>
    %49 = arith.subf %45, %48 : vector<128x1xf32>
    %50 = math.exp %49 : vector<128x1xf32>
    %51 = vector.broadcast %48 : vector<128x1xf32> to vector<128x128xf32>
    %52 = arith.subf %43, %51 : vector<128x128xf32>
    %53 = math.exp %52 : vector<128x128xf32>
    %c1_38 = arith.constant 1 : index
    %c0_39 = arith.constant 0 : index
    %c0_40 = arith.constant 0 : index
    %54 = vector.load %arg22[%c1_38, %c0_39, %c0_40] : memref<2x128x1xf32, #tpu.memory_space<vmem>>, vector<1x128x1xf32>
    %55 = vector.shape_cast %54 : vector<1x128x1xf32> to vector<128x1xf32>
    %56 = arith.mulf %50, %55 : vector<128x1xf32>
    %cst_41 = arith.constant dense<0.000000e+00> : vector<128xf32>
    %57 = vector.multi_reduction <add>, %53, %cst_41 [1] : vector<128x128xf32> to vector<128xf32>
    %58 = vector.shape_cast %57 : vector<128xf32> to vector<128x1xf32>
    %59 = arith.addf %56, %58 : vector<128x1xf32>
    %c1_42 = arith.constant 1 : index
    %c0_43 = arith.constant 0 : index
    %c0_44 = arith.constant 0 : index
    %60 = vector.load %arg22[%c1_42, %c0_43, %c0_44] : memref<2x128x1xf32, #tpu.memory_space<vmem>>, vector<1x128x1xf32>
    %61 = vector.shape_cast %60 : vector<1x128x1xf32> to vector<128x1xf32>
    %62 = vector.shape_cast %59 : vector<128x1xf32> to vector<1x128x1xf32>
    tpu.vector_store %arg22[%c1_42, %c0_43, %c0_44], %62 {strides = array<i32>} : memref<2x128x1xf32, #tpu.memory_space<vmem>>, vector<1x128x1xf32>,
    %c0_45 = arith.constant 0 : index
    %c128_46 = arith.constant 128 : index
    %63 = vector.load %arg20[%c0_45, %c128_46] : memref<128x256xf32, #tpu.memory_space<vmem>>, vector<128x128xf32>
    %64 = vector.broadcast %50 : vector<128x1xf32> to vector<128x128xf32>
    %65 = arith.mulf %64, %63 : vector<128x128xf32>
    %66 = arith.truncf %53 : vector<128x128xf32> to vector<128x128xbf16>
    %cst_47 = arith.constant dense<0.000000e+00> : vector<128x128xf32>
    %67 = tpu.matmul %66, %42, %cst_47 {dimension_numbers = #tpu.dot_dimension_numbers<[1], [0], [0], [1], [0, 0, 1, 1], [], []>} : vector<128x128xbf16>, vector<128x128xbf16>, vector<128x128xf32> -> vector<128x128xf32>
    %68 = arith.addf %65, %67 : vector<128x128xf32>
    %c0_48 = arith.constant 0 : index
    %c128_49 = arith.constant 128 : index
    %69 = vector.load %arg20[%c0_48, %c128_49] : memref<128x256xf32, #tpu.memory_space<vmem>>, vector<128x128xf32>
    tpu.vector_store %arg20[%c0_48, %c128_49], %68 {strides = array<i32>} : memref<128x256xf32, #tpu.memory_space<vmem>>, vector<128x128xf32>,
    %c1_50 = arith.constant 1 : index
    %c0_51 = arith.constant 0 : index
    %c0_52 = arith.constant 0 : index
    %70 = vector.load %arg21[%c1_50, %c0_51, %c0_52] : memref<2x128x1xf32, #tpu.memory_space<vmem>>, vector<1x128x1xf32>
    %71 = vector.shape_cast %70 : vector<1x128x1xf32> to vector<128x1xf32>
    %72 = vector.shape_cast %48 : vector<128x1xf32> to vector<1x128x1xf32>
    tpu.vector_store %arg21[%c1_50, %c0_51, %c0_52], %72 {strides = array<i32>} : memref<2x128x1xf32, #tpu.memory_space<vmem>>, vector<1x128x1xf32>,
    %c1_i32 = arith.constant 1 : i32
    %73 = arith.cmpi eq, %arg2, %c1_i32 : i32
    %74 = arith.extui %73 : i1 to i32
    %c0_i32_53 = arith.constant 0 : i32
    %75 = arith.cmpi ne, %74, %c0_i32_53 : i32
    scf.if %75 {
      %c0_54 = arith.constant 0 : index
      %c0_55 = arith.constant 0 : index
      %c0_56 = arith.constant 0 : index
      %76 = vector.load %arg3[%c0_54, %c0_55, %c0_56] : memref<1x128x256xf32, #tpu.memory_space<vmem>>, vector<1x128x256xf32>
      %77 = vector.shape_cast %76 : vector<1x128x256xf32> to vector<128x256xf32>
      %c0_57 = arith.constant 0 : index
      %c0_58 = arith.constant 0 : index
      %c0_59 = arith.constant 0 : index
      %78 = vector.load %arg22[%c0_57, %c0_58, %c0_59] : memref<2x128x1xf32, #tpu.memory_space<vmem>>, vector<1x128x1xf32>
      %79 = vector.shape_cast %78 : vector<1x128x1xf32> to vector<128x1xf32>
      %80 = tpu.reciprocal %79 {approx = true} : vector<128x1xf32> -> vector<128x1xf32>
      %c0_60 = arith.constant 0 : index
      %c0_61 = arith.constant 0 : index
      %81 = vector.load %arg20[%c0_60, %c0_61] : memref<128x256xf32, #tpu.memory_space<vmem>>, vector<128x128xf32>
      %82 = vector.broadcast %80 : vector<128x1xf32> to vector<128x128xf32>
      %83 = arith.mulf %81, %82 : vector<128x128xf32>
      %c0_62 = arith.constant 0 : index
      %c0_63 = arith.constant 0 : index
      %84 = vector.load %arg20[%c0_62, %c0_63] : memref<128x256xf32, #tpu.memory_space<vmem>>, vector<128x128xf32>
      tpu.vector_store %arg20[%c0_62, %c0_63], %83 {strides = array<i32>} : memref<128x256xf32, #tpu.memory_space<vmem>>, vector<128x128xf32>,
      %c1_64 = arith.constant 1 : index
      %c0_65 = arith.constant 0 : index
      %c0_66 = arith.constant 0 : index
      %85 = vector.load %arg22[%c1_64, %c0_65, %c0_66] : memref<2x128x1xf32, #tpu.memory_space<vmem>>, vector<1x128x1xf32>
      %86 = vector.shape_cast %85 : vector<1x128x1xf32> to vector<128x1xf32>
      %87 = tpu.reciprocal %86 {approx = true} : vector<128x1xf32> -> vector<128x1xf32>
      %c0_67 = arith.constant 0 : index
      %c128_68 = arith.constant 128 : index
      %88 = vector.load %arg20[%c0_67, %c128_68] : memref<128x256xf32, #tpu.memory_space<vmem>>, vector<128x128xf32>
      %89 = vector.broadcast %87 : vector<128x1xf32> to vector<128x128xf32>
      %90 = arith.mulf %88, %89 : vector<128x128xf32>
      %c0_69 = arith.constant 0 : index
      %c128_70 = arith.constant 128 : index
      %91 = vector.load %arg20[%c0_69, %c128_70] : memref<128x256xf32, #tpu.memory_space<vmem>>, vector<128x128xf32>
      tpu.vector_store %arg20[%c0_69, %c128_70], %90 {strides = array<i32>} : memref<128x256xf32, #tpu.memory_space<vmem>>, vector<128x128xf32>,
      %c0_71 = arith.constant 0 : index
      %c0_72 = arith.constant 0 : index
      %92 = vector.load %arg20[%c0_71, %c0_72] : memref<128x256xf32, #tpu.memory_space<vmem>>, vector<128x256xf32>
      %93 = arith.truncf %92 : vector<128x256xf32> to vector<128x256xbf16>
      %c0_73 = arith.constant 0 : index
      %c0_74 = arith.constant 0 : index
      %94 = vector.load %arg8[%c0_73, %c0_74] : memref<256x256xbf16, #tpu.memory_space<vmem>>, vector<256x256xbf16>
      %cst_75 = arith.constant dense<0.000000e+00> : vector<128x256xf32>
      %95 = tpu.matmul %93, %94, %cst_75 {dimension_numbers = #tpu.dot_dimension_numbers<[1], [0], [0], [1], [0, 0, 1, 1], [], []>} : vector<128x256xbf16>, vector<256x256xbf16>, vector<128x256xf32> -> vector<128x256xf32>
      %c0_76 = arith.constant 0 : index
      %c0_77 = arith.constant 0 : index
      %96 = vector.load %arg9[%c0_76, %c0_77] : memref<1x256xf32, #tpu.memory_space<vmem>>, vector<1x256xf32>
      %97 = vector.broadcast %96 : vector<1x256xf32> to vector<128x256xf32>
      %98 = arith.addf %95, %97 : vector<128x256xf32>
      %99 = arith.addf %77, %98 : vector<128x256xf32>
      %c0_78 = arith.constant 0 : index
      %c0_79 = arith.constant 0 : index
      %100 = vector.load %arg10[%c0_78, %c0_79] : memref<1x256xf32, #tpu.memory_space<vmem>>, vector<1x256xf32>
      %c0_80 = arith.constant 0 : index
      %c0_81 = arith.constant 0 : index
      %101 = vector.load %arg11[%c0_80, %c0_81] : memref<1x256xf32, #tpu.memory_space<vmem>>, vector<1x256xf32>
      %cst_82 = arith.constant dense<0.000000e+00> : vector<128xf32>
      %102 = vector.multi_reduction <add>, %99, %cst_82 [1] : vector<128x256xf32> to vector<128xf32>
      %103 = vector.shape_cast %102 : vector<128xf32> to vector<128x1xf32>
      %cst_83 = arith.constant 2.560000e+02 : f32
      %104 = vector.broadcast %cst_83 : f32 to vector<128x1xf32>
      %105 = arith.divf %103, %104 : vector<128x1xf32>
      %106 = vector.broadcast %105 : vector<128x1xf32> to vector<128x256xf32>
      %107 = arith.subf %99, %106 : vector<128x256xf32>
      %108 = arith.mulf %107, %107 : vector<128x256xf32>
      %cst_84 = arith.constant dense<0.000000e+00> : vector<128xf32>
      %109 = vector.multi_reduction <add>, %108, %cst_84 [1] : vector<128x256xf32> to vector<128xf32>
      %110 = vector.shape_cast %109 : vector<128xf32> to vector<128x1xf32>
      %cst_85 = arith.constant 2.560000e+02 : f32
      %111 = vector.broadcast %cst_85 : f32 to vector<128x1xf32>
      %112 = arith.divf %110, %111 : vector<128x1xf32>
      %113 = vector.broadcast %105 : vector<128x1xf32> to vector<128x256xf32>
      %114 = arith.subf %99, %113 : vector<128x256xf32>
      %cst_86 = arith.constant 9.99999974E-6 : f32
      %115 = vector.broadcast %cst_86 : f32 to vector<128x1xf32>
      %116 = arith.addf %112, %115 : vector<128x1xf32>
      %117 = math.rsqrt %116 : vector<128x1xf32>
      %118 = vector.broadcast %117 : vector<128x1xf32> to vector<128x256xf32>
      %119 = arith.mulf %114, %118 : vector<128x256xf32>
      %120 = vector.broadcast %100 : vector<1x256xf32> to vector<128x256xf32>
      %121 = arith.mulf %119, %120 : vector<128x256xf32>
      %122 = vector.broadcast %101 : vector<1x256xf32> to vector<128x256xf32>
      %123 = arith.addf %121, %122 : vector<128x256xf32>
      %124 = arith.truncf %123 : vector<128x256xf32> to vector<128x256xbf16>
      %c0_87 = arith.constant 0 : index
      %c0_88 = arith.constant 0 : index
      %125 = vector.load %arg12[%c0_87, %c0_88] : memref<256x1024xbf16, #tpu.memory_space<vmem>>, vector<256x1024xbf16>
      %cst_89 = arith.constant dense<0.000000e+00> : vector<128x1024xf32>
      %126 = tpu.matmul %124, %125, %cst_89 {dimension_numbers = #tpu.dot_dimension_numbers<[1], [0], [0], [1], [0, 0, 1, 1], [], []>} : vector<128x256xbf16>, vector<256x1024xbf16>, vector<128x1024xf32> -> vector<128x1024xf32>
      %c0_90 = arith.constant 0 : index
      %c0_91 = arith.constant 0 : index
      %127 = vector.load %arg13[%c0_90, %c0_91] : memref<1x1024xf32, #tpu.memory_space<vmem>>, vector<1x1024xf32>
      %128 = vector.broadcast %127 : vector<1x1024xf32> to vector<128x1024xf32>
      %129 = arith.addf %126, %128 : vector<128x1024xf32>
      %cst_92 = arith.constant 5.000000e-01 : f32
      %130 = vector.broadcast %cst_92 : f32 to vector<128x1024xf32>
      %131 = arith.mulf %130, %129 : vector<128x1024xf32>
      %cst_93 = arith.constant 4.471500e-02 : f32
      %132 = vector.broadcast %cst_93 : f32 to vector<128x1024xf32>
      %133 = arith.mulf %132, %129 : vector<128x1024xf32>
      %134 = arith.mulf %133, %129 : vector<128x1024xf32>
      %135 = arith.mulf %134, %129 : vector<128x1024xf32>
      %136 = arith.addf %129, %135 : vector<128x1024xf32>
      %cst_94 = arith.constant 0.797884583 : f32
      %137 = vector.broadcast %cst_94 : f32 to vector<128x1024xf32>
      %138 = arith.mulf %137, %136 : vector<128x1024xf32>
      %139 = math.tanh %138 : vector<128x1024xf32>
      %cst_95 = arith.constant 1.000000e+00 : f32
      %140 = vector.broadcast %cst_95 : f32 to vector<128x1024xf32>
      %141 = arith.addf %140, %139 : vector<128x1024xf32>
      %142 = arith.mulf %131, %141 : vector<128x1024xf32>
      %143 = arith.truncf %142 : vector<128x1024xf32> to vector<128x1024xbf16>
      %c0_96 = arith.constant 0 : index
      %c0_97 = arith.constant 0 : index
      %144 = vector.load %arg14[%c0_96, %c0_97] : memref<1024x256xbf16, #tpu.memory_space<vmem>>, vector<1024x256xbf16>
      %cst_98 = arith.constant dense<0.000000e+00> : vector<128x256xf32>
      %145 = tpu.matmul %143, %144, %cst_98 {dimension_numbers = #tpu.dot_dimension_numbers<[1], [0], [0], [1], [0, 0, 1, 1], [], []>} : vector<128x1024xbf16>, vector<1024x256xbf16>, vector<128x256xf32> -> vector<128x256xf32>
      %c0_99 = arith.constant 0 : index
      %c0_100 = arith.constant 0 : index
      %146 = vector.load %arg15[%c0_99, %c0_100] : memref<1x256xf32, #tpu.memory_space<vmem>>, vector<1x256xf32>
      %147 = vector.broadcast %146 : vector<1x256xf32> to vector<128x256xf32>
      %148 = arith.addf %145, %147 : vector<128x256xf32>
      %149 = arith.addf %123, %148 : vector<128x256xf32>
      %c0_101 = arith.constant 0 : index
      %c0_102 = arith.constant 0 : index
      %150 = vector.load %arg16[%c0_101, %c0_102] : memref<1x256xf32, #tpu.memory_space<vmem>>, vector<1x256xf32>
      %c0_103 = arith.constant 0 : index
      %c0_104 = arith.constant 0 : index
      %151 = vector.load %arg17[%c0_103, %c0_104] : memref<1x256xf32, #tpu.memory_space<vmem>>, vector<1x256xf32>
      %cst_105 = arith.constant dense<0.000000e+00> : vector<128xf32>
      %152 = vector.multi_reduction <add>, %149, %cst_105 [1] : vector<128x256xf32> to vector<128xf32>
      %153 = vector.shape_cast %152 : vector<128xf32> to vector<128x1xf32>
      %cst_106 = arith.constant 2.560000e+02 : f32
      %154 = vector.broadcast %cst_106 : f32 to vector<128x1xf32>
      %155 = arith.divf %153, %154 : vector<128x1xf32>
      %156 = vector.broadcast %155 : vector<128x1xf32> to vector<128x256xf32>
      %157 = arith.subf %149, %156 : vector<128x256xf32>
      %158 = arith.mulf %157, %157 : vector<128x256xf32>
      %cst_107 = arith.constant dense<0.000000e+00> : vector<128xf32>
      %159 = vector.multi_reduction <add>, %158, %cst_107 [1] : vector<128x256xf32> to vector<128xf32>
      %160 = vector.shape_cast %159 : vector<128xf32> to vector<128x1xf32>
      %cst_108 = arith.constant 2.560000e+02 : f32
      %161 = vector.broadcast %cst_108 : f32 to vector<128x1xf32>
      %162 = arith.divf %160, %161 : vector<128x1xf32>
      %163 = vector.broadcast %155 : vector<128x1xf32> to vector<128x256xf32>
      %164 = arith.subf %149, %163 : vector<128x256xf32>
      %cst_109 = arith.constant 9.99999974E-6 : f32
      %165 = vector.broadcast %cst_109 : f32 to vector<128x1xf32>
      %166 = arith.addf %162, %165 : vector<128x1xf32>
      %167 = math.rsqrt %166 : vector<128x1xf32>
      %168 = vector.broadcast %167 : vector<128x1xf32> to vector<128x256xf32>
      %169 = arith.mulf %164, %168 : vector<128x256xf32>
      %170 = vector.broadcast %150 : vector<1x256xf32> to vector<128x256xf32>
      %171 = arith.mulf %169, %170 : vector<128x256xf32>
      %172 = vector.broadcast %151 : vector<1x256xf32> to vector<128x256xf32>
      %173 = arith.addf %171, %172 : vector<128x256xf32>
      %c0_110 = arith.constant 0 : index
      %c0_111 = arith.constant 0 : index
      %c0_112 = arith.constant 0 : index
      %174 = vector.load %arg18[%c0_110, %c0_111, %c0_112] : memref<1x128x256xf32, #tpu.memory_space<vmem>>, vector<1x128x256xf32>
      %175 = vector.shape_cast %174 : vector<1x128x256xf32> to vector<128x256xf32>
      %176 = vector.shape_cast %173 : vector<128x256xf32> to vector<1x128x256xf32>
      tpu.vector_store %arg18[%c0_110, %c0_111, %c0_112], %176 {strides = array<i32>} : memref<1x128x256xf32, #tpu.memory_space<vmem>>, vector<1x128x256xf32>,
    } else {
    }
    return
  }
  func.func @transform_0(%arg0: i32, %arg1: i32, %arg2: i32) -> (i32, i32, i32) {
    %c0_i32 = arith.constant 0 : i32
    %c0_i32_0 = arith.constant 0 : i32
    return %arg0, %arg1, %c0_i32 : i32, i32, i32
  }
  func.func @transform_1(%arg0: i32, %arg1: i32, %arg2: i32) -> (i32, i32, i32) {
    %c0_i32 = arith.constant 0 : i32
    %c0_i32_0 = arith.constant 0 : i32
    return %arg0, %arg2, %c0_i32 : i32, i32, i32
  }
  func.func @transform_2(%arg0: i32, %arg1: i32, %arg2: i32) -> (i32, i32, i32) {
    %c0_i32 = arith.constant 0 : i32
    %c0_i32_0 = arith.constant 0 : i32
    return %arg0, %arg2, %c0_i32 : i32, i32, i32
  }
  func.func @transform_3(%arg0: i32, %arg1: i32, %arg2: i32) -> (i32, i32) {
    %c0_i32 = arith.constant 0 : i32
    %c0_i32_0 = arith.constant 0 : i32
    %c0_i32_1 = arith.constant 0 : i32
    return %c0_i32, %c0_i32_0 : i32, i32
  }
  func.func @transform_4(%arg0: i32, %arg1: i32, %arg2: i32) -> (i32, i32) {
    %c0_i32 = arith.constant 0 : i32
    %c0_i32_0 = arith.constant 0 : i32
    %c0_i32_1 = arith.constant 0 : i32
    return %c0_i32, %c0_i32_0 : i32, i32
  }
  func.func @transform_5(%arg0: i32, %arg1: i32, %arg2: i32) -> (i32, i32) {
    %c0_i32 = arith.constant 0 : i32
    %c0_i32_0 = arith.constant 0 : i32
    %c0_i32_1 = arith.constant 0 : i32
    return %c0_i32, %c0_i32_0 : i32, i32
  }
  func.func @transform_6(%arg0: i32, %arg1: i32, %arg2: i32) -> (i32, i32) {
    %c0_i32 = arith.constant 0 : i32
    %c0_i32_0 = arith.constant 0 : i32
    %c0_i32_1 = arith.constant 0 : i32
    return %c0_i32, %c0_i32_0 : i32, i32
  }
  func.func @transform_7(%arg0: i32, %arg1: i32, %arg2: i32) -> (i32, i32) {
    %c0_i32 = arith.constant 0 : i32
    %c0_i32_0 = arith.constant 0 : i32
    %c0_i32_1 = arith.constant 0 : i32
    return %c0_i32, %c0_i32_0 : i32, i32
  }
  func.func @transform_8(%arg0: i32, %arg1: i32, %arg2: i32) -> (i32, i32) {
    %c0_i32 = arith.constant 0 : i32
    %c0_i32_0 = arith.constant 0 : i32
    %c0_i32_1 = arith.constant 0 : i32
    return %c0_i32, %c0_i32_0 : i32, i32
  }
  func.func @transform_9(%arg0: i32, %arg1: i32, %arg2: i32) -> (i32, i32) {
    %c0_i32 = arith.constant 0 : i32
    %c0_i32_0 = arith.constant 0 : i32
    %c0_i32_1 = arith.constant 0 : i32
    return %c0_i32, %c0_i32_0 : i32, i32
  }
  func.func @transform_10(%arg0: i32, %arg1: i32, %arg2: i32) -> (i32, i32) {
    %c0_i32 = arith.constant 0 : i32
    %c0_i32_0 = arith.constant 0 : i32
    %c0_i32_1 = arith.constant 0 : i32
    return %c0_i32, %c0_i32_0 : i32, i32
  }
  func.func @transform_11(%arg0: i32, %arg1: i32, %arg2: i32) -> (i32, i32) {
    %c0_i32 = arith.constant 0 : i32
    %c0_i32_0 = arith.constant 0 : i32
    %c0_i32_1 = arith.constant 0 : i32
    return %c0_i32, %c0_i32_0 : i32, i32
  }
  func.func @transform_12(%arg0: i32, %arg1: i32, %arg2: i32) -> (i32, i32) {
    %c0_i32 = arith.constant 0 : i32
    %c0_i32_0 = arith.constant 0 : i32
    %c0_i32_1 = arith.constant 0 : i32
    return %c0_i32, %c0_i32_0 : i32, i32
  }
  func.func @transform_13(%arg0: i32, %arg1: i32, %arg2: i32) -> (i32, i32) {
    %c0_i32 = arith.constant 0 : i32
    %c0_i32_0 = arith.constant 0 : i32
    %c0_i32_1 = arith.constant 0 : i32
    return %c0_i32, %c0_i32_0 : i32, i32
  }
  func.func @transform_14(%arg0: i32, %arg1: i32, %arg2: i32) -> (i32, i32) {
    %c0_i32 = arith.constant 0 : i32
    %c0_i32_0 = arith.constant 0 : i32
    %c0_i32_1 = arith.constant 0 : i32
    return %c0_i32, %c0_i32_0 : i32, i32
  }
  func.func @transform_15(%arg0: i32, %arg1: i32, %arg2: i32) -> (i32, i32, i32) {
    %c0_i32 = arith.constant 0 : i32
    %c0_i32_0 = arith.constant 0 : i32
    return %arg0, %arg1, %c0_i32 : i32, i32, i32
  }
}

</mosaic_0001>

<bundles_post_ra>
// kernel: encoder_layer.2
= control target key start
LH: loop header
LB: loop body
LE: loop exit
PB: predicated region body
PF: predicated region fallthrough
CT: control target
= control target key end

     0   :  { %s2199_s21 = smov 0   ;;  %s2201_s22 = smov 0   ;;  %s2711_s0 = inlined_call_operand.vmem [shape: f32[2,256,256], index: 0, kind: input, shape index: {}]   ;;  %s2712_s1 = inlined_call_operand.vmem [shape: bf16[256,256], index: 1, kind: input, shape index: {}]   ;;  %s2713_s2 = inlined_call_operand.vmem [shape: f32[1,256], index: 2, kind: input, shape index: {}]   ;;  %s2714_s3 = inlined_call_operand.vmem [shape: bf16[256,256], index: 3, kind: input, shape index: {}]   ;;  %s2715_s4 = inlined_call_operand.vmem [shape: f32[1,256], index: 4, kind: input, shape index: {}]   ;;  %s2716_s5 = inlined_call_operand.vmem [shape: bf16[2,256,256], index: 5, kind: output, shape index: {0}]   ;;  %s2717_s6 = inlined_call_operand.vmem [shape: bf16[2,256,256], index: 6, kind: output, shape index: {1}]  }
   0x1   :  { %s2203_s23 = smov 0  }
   0x2 LB: > { %s29_s24 = sadd.s32 1, %s2158_s22  ;;  %p1816_p0 = scmp.ge.s32.totalorder %s2162_s23, 1  ;;  %s2162_s23 = sphi %s2203_s23, %s17_s23   ;;  %s2158_s22 = sphi %s2201_s22, %s2719_s22   ;;  %s2154_s21 = sphi %s2199_s21, %s2718_s21  }
   0x3   : > { %p31_p1 = scmp.ge.s32.totalorder %s29_s24, 2  ;;  %p239_p2 = scmp.lt.s32.totalorder %s2162_s23, 3 }
   0x5   : > { %s2721_s24 = smov (%p31_p1, %s29_s24), 0  ;;  %p240_p3 = pnand %p1816_p0, %p239_p2 }
   0x6   : > { %p290_p4 = scmp.lt.s32.totalorder (!%p240_p3), %s2154_s21, 1 }
   0x7   : > { %243 = sbr.rel (%p240_p3) target bundleno = 402 (0x192), region = 40 }
   0xc   : > { %v2044_v0 = vld [vmem:[%s2712_s1 + $0x74] ss:$8 sps:$4 sm:$0xff]   ;;  %v2048_v2 = vld [vmem:[%s2712_s1 + $0x70] ss:$8 sps:$4 sm:$0xff]   ;;  %v2050_v4 = vld [vmem:[%s2712_s1 + $0x64] ss:$8 sps:$4 sm:$0xff]  }
   0xd   : > { %v2046_v1 = vld [vmem:[%s2714_s3 + $0x74] ss:$8 sps:$4 sm:$0xff]   ;;  %622 = vmatprep.subr.bf16.mxu0 %v2044_v0  ;;  %v2049_v3 = vld [vmem:[%s2714_s3 + $0x70] ss:$8 sps:$4 sm:$0xff]   ;;  %v2052_v5 = vld [vmem:[%s2714_s3 + $0x64] ss:$8 sps:$4 sm:$0xff]  }
   0xe   : > { %1019 = vmatprep.subr.bf16.mxu1 %v2046_v1  ;;  %623 = vmatpush1.bf16.msra.mxu0 %v2048_v2  ;;  %v2054_v6 = vld [vmem:[%s2712_s1 + $0x60] ss:$8 sps:$4 sm:$0xff]   ;;  %v2056_v8 = vld [vmem:[%s2712_s1 + $0x54] ss:$8 sps:$4 sm:$0xff]   ;;  %v2060_v10 = vld [vmem:[%s2712_s1 + $0x50] ss:$8 sps:$4 sm:$0xff]  }
   0xf   : > { %1020 = vmatpush1.bf16.msra.mxu1 %v2049_v3  ;;  %624 = vmatprep.subr.bf16.mxu0 %v2050_v4  ;;  %v2055_v7 = vld [vmem:[%s2714_s3 + $0x60] ss:$8 sps:$4 sm:$0xff]   ;;  %v2058_v9 = vld [vmem:[%s2714_s3 + $0x54] ss:$8 sps:$4 sm:$0xff]   ;;  %v2061_v11 = vld [vmem:[%s2714_s3 + $0x50] ss:$8 sps:$4 sm:$0xff]  }
  0x10   : > { %1021 = vmatprep.subr.bf16.mxu1 %v2052_v5  ;;  %v2062_v12 = vld [vmem:[%s2712_s1 + $0x44] ss:$8 sps:$4 sm:$0xff]   ;;  %v2066_v14 = vld [vmem:[%s2712_s1 + $0x40] ss:$8 sps:$4 sm:$0xff]   ;;  %v2068_v16 = vld [vmem:[%s2712_s1 + $0x34] ss:$8 sps:$4 sm:$0xff]  }
  0x11   : > { %v2064_v13 = vld [vmem:[%s2714_s3 + $0x44] ss:$8 sps:$4 sm:$0xff]   ;;  %v2067_v15 = vld [vmem:[%s2714_s3 + $0x40] ss:$8 sps:$4 sm:$0xff]   ;;  %v2070_v17 = vld [vmem:[%s2714_s3 + $0x34] ss:$8 sps:$4 sm:$0xff]  }
  0x12   : > { %625 = vmatpush1.bf16.msra.mxu0 %v2054_v6  ;;  %v2072_v18 = vld [vmem:[%s2712_s1 + $0x30] ss:$8 sps:$4 sm:$0xff]   ;;  %v2074_v20 = vld [vmem:[%s2712_s1 + $0x24] ss:$8 sps:$4 sm:$0xff]   ;;  %v2078_v22 = vld [vmem:[%s2712_s1 + $0x20] ss:$8 sps:$4 sm:$0xff]  }
  0x13   : > { %1022 = vmatpush1.bf16.msra.mxu1 %v2055_v7  ;;  %626 = vmatprep.subr.bf16.mxu0 %v2056_v8  ;;  %v2073_v19 = vld [vmem:[%s2714_s3 + $0x30] ss:$8 sps:$4 sm:$0xff]   ;;  %v2076_v21 = vld [vmem:[%s2714_s3 + $0x24] ss:$8 sps:$4 sm:$0xff]   ;;  %v2079_v23 = vld [vmem:[%s2714_s3 + $0x20] ss:$8 sps:$4 sm:$0xff]  }
  0x14   : > { %1023 = vmatprep.subr.bf16.mxu1 %v2058_v9  ;;  %v2080_v24 = vld [vmem:[%s2712_s1 + $0x14] ss:$8 sps:$4 sm:$0xff]   ;;  %v2084_v26 = vld [vmem:[%s2712_s1 + $0x10] ss:$8 sps:$4 sm:$0xff]   ;;  %v2086_v28 = vld [vmem:[%s2712_s1 + $0x4] ss:$8 sps:$4 sm:$0xff]  }
  0x15   : > { %v2082_v25 = vld [vmem:[%s2714_s3 + $0x14] ss:$8 sps:$4 sm:$0xff]   ;;  %v2085_v27 = vld [vmem:[%s2714_s3 + $0x10] ss:$8 sps:$4 sm:$0xff]   ;;  %v2088_v29 = vld [vmem:[%s2714_s3 + $0x4] ss:$8 sps:$4 sm:$0xff]  }
  0x16   : > { %627 = vmatpush1.bf16.msra.mxu0 %v2060_v10  ;;  %v2090_v30 = vld [vmem:[%s2712_s1] ss:$8 sps:$4 sm:$0xff]   ;;  %v2092_v32 = vld [vmem:[%s2712_s1 + $0xf4] ss:$8 sps:$4 sm:$0xff]   ;;  %v2096_v34 = vld [vmem:[%s2712_s1 + $0xf0] ss:$8 sps:$4 sm:$0xff]  }
  0x17   : > { %1024 = vmatpush1.bf16.msra.mxu1 %v2061_v11  ;;  %628 = vmatprep.subr.bf16.mxu0 %v2062_v12  ;;  %v2091_v31 = vld [vmem:[%s2714_s3] ss:$8 sps:$4 sm:$0xff]   ;;  %v2094_v33 = vld [vmem:[%s2714_s3 + $0xf4] ss:$8 sps:$4 sm:$0xff]   ;;  %v2097_v35 = vld [vmem:[%s2714_s3 + $0xf0] ss:$8 sps:$4 sm:$0xff]  }
  0x18   : > { %1025 = vmatprep.subr.bf16.mxu1 %v2064_v13  ;;  %v2098_v36 = vld [vmem:[%s2712_s1 + $0xe4] ss:$8 sps:$4 sm:$0xff]   ;;  %s2723_s21 = smov (!%p290_p4, %s2154_s21), 1  ;;  %v2102_v38 = vld [vmem:[%s2712_s1 + $0xe0] ss:$8 sps:$4 sm:$0xff]  }
  0x19   : > { %v2100_v37 = vld [vmem:[%s2714_s3 + $0xe4] ss:$8 sps:$4 sm:$0xff]   ;;  %v2103_v39 = vld [vmem:[%s2714_s3 + $0xe0] ss:$8 sps:$4 sm:$0xff]   ;;  %v2104_v40 = vld [vmem:[%s2712_s1 + $0xd4] ss:$8 sps:$4 sm:$0xff]  }
  0x1a   : > { %629 = vmatpush1.bf16.msra.mxu0 %v2066_v14  ;;  %s1953_s27 = sshll.u32 %s2723_s21, 9  ;;  %v2106_v41 = vld [vmem:[%s2714_s3 + $0xd4] ss:$8 sps:$4 sm:$0xff]   ;;  %v2108_v42 = vld [vmem:[%s2712_s1 + $0xd0] ss:$8 sps:$4 sm:$0xff]  }
  0x1b   : > { %1026 = vmatpush1.bf16.msra.mxu1 %v2067_v15  ;;  %630 = vmatprep.subr.bf16.mxu0 %v2068_v16  ;;  %v2109_v43 = vld [vmem:[%s2714_s3 + $0xd0] ss:$8 sps:$4 sm:$0xff]   ;;  %s2359_s12 = scalar_lea.vmem %s2711_s0, %s1953_s27  ;;  %v2110_v44 = vld [vmem:[%s2712_s1 + $0xc4] ss:$8 sps:$4 sm:$0xff]   ;;  %v2114_v48 = vld [vmem:[%s2712_s1 + $0xc0] ss:$8 sps:$4 sm:$0xff]  }
  0x1c   : > { %1027 = vmatprep.subr.bf16.mxu1 %v2070_v17  ;;  %v2112_v45 = vld [vmem:[%s2714_s3 + $0xc4] ss:$8 sps:$4 sm:$0xff]   ;;  %v325_v47 = vld [vmem:[%s2359_s12 + $0x18] sm:$0xff]  ;;  %v2115_v49 = vld [vmem:[%s2714_s3 + $0xc0] ss:$8 sps:$4 sm:$0xff]  }
  0x1d   : > { %v323_v46 = vld [vmem:[%s2359_s12 + $0x8] sm:$0xff]  ;;  %v2116_v51 = vld [vmem:[%s2712_s1 + $0xb4] ss:$8 sps:$4 sm:$0xff]   ;;  %v2120_v53 = vld [vmem:[%s2712_s1 + $0xb0] ss:$8 sps:$4 sm:$0xff]  }
  0x1e   : > { %631 = vmatpush1.bf16.msra.mxu0 %v2072_v18  ;;  %v387_v50 = vpack.c.bf16 %v325_v47, %v323_v46  ;;  %v2118_v52 = vld [vmem:[%s2714_s3 + $0xb4] ss:$8 sps:$4 sm:$0xff]   ;;  %v2121_v54 = vld [vmem:[%s2714_s3 + $0xb0] ss:$8 sps:$4 sm:$0xff]   ;;  %v2122_v55 = vld [vmem:[%s2712_s1 + $0xa4] ss:$8 sps:$4 sm:$0xff]  }
  0x1f   : > { %1028 = vmatpush1.bf16.msra.mxu1 %v2073_v19  ;;  %632 = vmatprep.subr.bf16.mxu0 %v2074_v20  ;;  %v2124_v56 = vld [vmem:[%s2714_s3 + $0xa4] ss:$8 sps:$4 sm:$0xff]   ;;  %v2126_v57 = vld [vmem:[%s2712_s1 + $0xa0] ss:$8 sps:$4 sm:$0xff]   ;;  %v2128_v59 = vld [vmem:[%s2712_s1 + $0x94] ss:$8 sps:$4 sm:$0xff]  }
  0x20   : > { %1029 = vmatprep.subr.bf16.mxu1 %v2076_v21  ;;  %654 = vmatprep.mubr.bf16.mxu0 %v387_v50  ;;  %v2127_v58 = vld [vmem:[%s2714_s3 + $0xa0] ss:$8 sps:$4 sm:$0xff]   ;;  %v2130_v60 = vld [vmem:[%s2714_s3 + $0x94] ss:$8 sps:$4 sm:$0xff]   ;;  %v2132_v61 = vld [vmem:[%s2712_s1 + $0x90] ss:$8 sps:$4 sm:$0xff]  }
  0x21   : > { %1051 = vmatprep.mubr.bf16.mxu1 %v387_v50  ;;  %v2133_v62 = vld [vmem:[%s2714_s3 + $0x90] ss:$8 sps:$4 sm:$0xff]   ;;  %v2134_v63 = vld [vmem:[%s2712_s1 + $0x84] ss:$8 sps:$4 sm:$0xff]   ;;  %v2138_v1 = vld [vmem:[%s2712_s1 + $0x80] ss:$8 sps:$4 sm:$0xff]  }
  0x22   : > { %633 = vmatpush1.bf16.msra.mxu0 %v2078_v22  ;;  %v2136_v0 = vld [vmem:[%s2714_s3 + $0x84] ss:$8 sps:$4 sm:$0xff]   ;;  %v2139_v2 = vld [vmem:[%s2714_s3 + $0x80] ss:$8 sps:$4 sm:$0xff]   ;;  %v324_v4 = vld [vmem:[%s2359_s12 + $0x10] sm:$0xff] }
  0x23   : > { %1030 = vmatpush1.bf16.msra.mxu1 %v2079_v23  ;;  %634 = vmatprep.subr.bf16.mxu0 %v2080_v24  ;;  %v322_v3 = vld [vmem:[%s2359_s12] sm:$0xff]  ;;  %v327_v5 = vld [vmem:[%s2359_s12 + $0x28] sm:$0xff]  ;;  %v329_v6 = vld [vmem:[%s2359_s12 + $0x38] sm:$0xff] }
  0x24   : > { %1031 = vmatprep.subr.bf16.mxu1 %v2082_v25  ;;  %v386_v7 = vpack.c.bf16 %v324_v4, %v322_v3  ;;  %v389_v8 = vpack.c.bf16 %v329_v6, %v327_v5  ;;  %v326_v9 = vld [vmem:[%s2359_s12 + $0x20] sm:$0xff]  ;;  %v328_v10 = vld [vmem:[%s2359_s12 + $0x30] sm:$0xff]  ;;  %v331_v11 = vld [vmem:[%s2359_s12 + $0x48] sm:$0xff] }
  0x25   : > { %v333_v12 = vld [vmem:[%s2359_s12 + $0x58] sm:$0xff]  ;;  %v388_v13 = vpack.c.bf16 %v328_v10, %v326_v9  ;;  %v330_v15 = vld [vmem:[%s2359_s12 + $0x40] sm:$0xff]  ;;  %v332_v16 = vld [vmem:[%s2359_s12 + $0x50] sm:$0xff] }
  0x26   : > { %635 = vmatpush1.bf16.msra.mxu0 %v2084_v26  ;;  %v391_v14 = vpack.c.bf16 %v333_v12, %v331_v11  ;;  %v335_v17 = vld [vmem:[%s2359_s12 + $0x68] sm:$0xff]  ;;  %v337_v18 = vld [vmem:[%s2359_s12 + $0x78] sm:$0xff]  ;;  %v390_v19 = vpack.c.bf16 %v332_v16, %v330_v15  ;;  %v334_v21 = vld [vmem:[%s2359_s12 + $0x60] sm:$0xff] }
  0x27   : > { %1032 = vmatpush1.bf16.msra.mxu1 %v2085_v27  ;;  %636 = vmatprep.subr.bf16.mxu0 %v2086_v28  ;;  %v393_v20 = vpack.c.bf16 %v337_v18, %v335_v17  ;;  %v336_v22 = vld [vmem:[%s2359_s12 + $0x70] sm:$0xff]  ;;  %v339_v23 = vld [vmem:[%s2359_s12 + $0x88] sm:$0xff]  ;;  %v341_v24 = vld [vmem:[%s2359_s12 + $0x98] sm:$0xff] }
  0x28   : > { %1033 = vmatprep.subr.bf16.mxu1 %v2088_v29  ;;  %v392_v25 = vpack.c.bf16 %v336_v22, %v334_v21  ;;  %v395_v26 = vpack.c.bf16 %v341_v24, %v339_v23  ;;  %v338_v27 = vld [vmem:[%s2359_s12 + $0x80] sm:$0xff]  ;;  %v340_v28 = vld [vmem:[%s2359_s12 + $0x90] sm:$0xff]  ;;  %v343_v29 = vld [vmem:[%s2359_s12 + $0xa8] sm:$0xff] }
  0x29   : > { %v352_v46 = vld [vmem:[%s2359_s12 + $0xf0] sm:$0xff]  ;;  %v355_v47 = vld [vmem:[%s2359_s12 + $0x108] sm:$0xff]  ;;  %v366_v5 = vld [vmem:[%s2359_s12 + $0x160] sm:$0xff] }
  0x2a   : > { %637 = vmatpush1.bf16.msra.mxu0 %v2090_v30  ;;  %v345_v30 = vld [vmem:[%s2359_s12 + $0xb8] sm:$0xff]  ;;  %v368_v6 = vld [vmem:[%s2359_s12 + $0x170] sm:$0xff]  ;;  %v370_v11 = vld [vmem:[%s2359_s12 + $0x180] sm:$0xff] }
  0x2b   : > { %1034 = vmatpush1.bf16.msra.mxu1 %v2091_v31  ;;  %638 = vmatprep.subr.bf16.mxu0 %v2092_v32  ;;  %v394_v31 = vpack.c.bf16 %v340_v28, %v338_v27  ;;  %v397_v32 = vpack.c.bf16 %v345_v30, %v343_v29  ;;  %v408_v9 = vpack.c.bf16 %v368_v6, %v366_v5  ;;  %v372_v12 = vld [vmem:[%s2359_s12 + $0x190] sm:$0xff]  ;;  %v374_v17 = vld [vmem:[%s2359_s12 + $0x1a0] sm:$0xff] }
  0x2c   : > { %1035 = vmatprep.subr.bf16.mxu1 %v2094_v33  ;;  %v342_v33 = vld [vmem:[%s2359_s12 + $0xa0] sm:$0xff]  ;;  %v410_v15 = vpack.c.bf16 %v372_v12, %v370_v11  ;;  %v376_v18 = vld [vmem:[%s2359_s12 + $0x1b0] sm:$0xff] }
  0x2d   : > { %v412_v21 = vpack.c.bf16 %v376_v18, %v374_v17  ;;  %v378_v23 = vld [vmem:[%s2359_s12 + $0x1c0] sm:$0xff]  ;;  %v380_v24 = vld [vmem:[%s2359_s12 + $0x1d0] sm:$0xff] }
  0x2e   : > { %639 = vmatpush2.bf16.msra.mxu0 %v2096_v34  ;;  %v344_v34 = vld [vmem:[%s2359_s12 + $0xb0] sm:$0xff]  ;;  %v414_v27 = vpack.c.bf16 %v380_v24, %v378_v23  ;;  %v382_v29 = vld [vmem:[%s2359_s12 + $0x1e0] sm:$0xff] }
  0x2f   : > { %1036 = vmatpush2.bf16.msra.mxu1 %v2097_v35  ;;  %640 = vmatprep.subr.bf16.mxu0 %v2098_v36  ;;  %v347_v35 = vld [vmem:[%s2359_s12 + $0xc8] sm:$0xff]  ;;  %v349_v36 = vld [vmem:[%s2359_s12 + $0xd8] sm:$0xff]  ;;  %v384_v30 = vld [vmem:[%s2359_s12 + $0x1f0] sm:$0xff] }
  0x30   : > { %1037 = vmatprep.subr.bf16.mxu1 %v2100_v37  ;;  %v396_v37 = vpack.c.bf16 %v344_v34, %v342_v33 }
  0x32   : > { %641 = vmatpush2.bf16.msra.mxu0 %v2102_v38  ;;  %v399_v38 = vpack.c.bf16 %v349_v36, %v347_v35  ;;  %v450_v36 = vld [vmem:[%s2713_s2] sm:$0x3] }
  0x33   : > { %1038 = vmatpush2.bf16.msra.mxu1 %v2103_v39  ;;  %642 = vmatprep.subr.bf16.mxu0 %v2104_v40  ;;  %v346_v39 = vld [vmem:[%s2359_s12 + $0xc0] sm:$0xff]  ;;  %v348_v40 = vld [vmem:[%s2359_s12 + $0xd0] sm:$0xff] }
  0x34   : > { %1039 = vmatprep.subr.bf16.mxu1 %v2106_v41  ;;  %v351_v41 = vld [vmem:[%s2359_s12 + $0xe8] sm:$0xff] }
  0x36   : > { %643 = vmatpush2.bf16.msra.mxu0 %v2108_v42  ;;  %v353_v42 = vld [vmem:[%s2359_s12 + $0xf8] sm:$0xff] }
  0x37   : > { %1040 = vmatpush2.bf16.msra.mxu1 %v2109_v43  ;;  %644 = vmatprep.subr.bf16.mxu0 %v2110_v44  ;;  %v398_v43 = vpack.c.bf16 %v348_v40, %v346_v39  ;;  %v401_v44 = vpack.c.bf16 %v353_v42, %v351_v41 }
  0x38   : > { %1041 = vmatprep.subr.bf16.mxu1 %v2112_v45  ;;  %v350_v45 = vld [vmem:[%s2359_s12 + $0xe0] sm:$0xff] }
  0x3a   : > { %645 = vmatpush2.bf16.msra.mxu0 %v2114_v48  ;;  %v357_v48 = vld [vmem:[%s2359_s12 + $0x118] sm:$0xff] }
  0x3b   : > { %1042 = vmatpush2.bf16.msra.mxu1 %v2115_v49  ;;  %646 = vmatprep.subr.bf16.mxu0 %v2116_v51  ;;  %v400_v49 = vpack.c.bf16 %v352_v46, %v350_v45  ;;  %v403_v50 = vpack.c.bf16 %v357_v48, %v355_v47  ;;  %v354_v51 = vld [vmem:[%s2359_s12 + $0x100] sm:$0xff] }
  0x3c   : > { %1043 = vmatprep.subr.bf16.mxu1 %v2118_v52  ;;  %v356_v52 = vld [vmem:[%s2359_s12 + $0x110] sm:$0xff] }
  0x3e   : > { %647 = vmatpush2.bf16.msra.mxu0 %v2120_v53  ;;  %v359_v53 = vld [vmem:[%s2359_s12 + $0x128] sm:$0xff] }
  0x3f   : > { %1044 = vmatpush2.bf16.msra.mxu1 %v2121_v54  ;;  %648 = vmatprep.subr.bf16.mxu0 %v2122_v55  ;;  %v361_v54 = vld [vmem:[%s2359_s12 + $0x138] sm:$0xff]  ;;  %v402_v55 = vpack.c.bf16 %v356_v52, %v354_v51 }
  0x40   : > { %1045 = vmatprep.subr.bf16.mxu1 %v2124_v56  ;;  %v405_v56 = vpack.c.bf16 %v361_v54, %v359_v53 }
  0x42   : > { %649 = vmatpush2.bf16.msra.mxu0 %v2126_v57  ;;  %v358_v57 = vld [vmem:[%s2359_s12 + $0x120] sm:$0xff] }
  0x43   : > { %1046 = vmatpush2.bf16.msra.mxu1 %v2127_v58  ;;  %650 = vmatprep.subr.bf16.mxu0 %v2128_v59  ;;  %v360_v58 = vld [vmem:[%s2359_s12 + $0x130] sm:$0xff]  ;;  %v363_v59 = vld [vmem:[%s2359_s12 + $0x148] sm:$0xff] }
  0x44   : > { %1047 = vmatprep.subr.bf16.mxu1 %v2130_v60  ;;  %v365_v60 = vld [vmem:[%s2359_s12 + $0x158] sm:$0xff] }
  0x46   : > { %651 = vmatpush2.bf16.msra.mxu0 %v2132_v61  ;;  %v404_v61 = vpack.c.bf16 %v360_v58, %v358_v57 }
  0x47   : > { %1048 = vmatpush2.bf16.msra.mxu1 %v2133_v62  ;;  %652 = vmatprep.subr.bf16.mxu0 %v2134_v63  ;;  %v407_v62 = vpack.c.bf16 %v365_v60, %v363_v59  ;;  %v362_v63 = vld [vmem:[%s2359_s12 + $0x140] sm:$0xff] }
  0x48   : > { %1049 = vmatprep.subr.bf16.mxu1 %v2136_v0  ;;  %v364_v0 = vld [vmem:[%s2359_s12 + $0x150] sm:$0xff] }
  0x49   : > { %v406_v3 = vpack.c.bf16 %v364_v0, %v362_v63 }
  0x4a   : > { %653 = vmatpush2.bf16.msra.mxu0 %v2138_v1  ;;  %v367_v1 = vld [vmem:[%s2359_s12 + $0x168] sm:$0xff] }
  0x4b   : > { %1050 = vmatpush2.bf16.msra.mxu1 %v2139_v2  ;;  %v369_v2 = vld [vmem:[%s2359_s12 + $0x178] sm:$0xff] }
  0x4c   : > { %v409_v4 = vpack.c.bf16 %v369_v2, %v367_v1 }
  0x4d   : > { %655 = vmatmul.mubr.bf16.vlgmr.msra.gmra.mxu0 %v386_v7 }
  0x4e   : > { %1052 = vmatmul.mubr.bf16.vlgmr.msra.gmra.mxu1 %v386_v7  ;;  %664 = vmatprep.mubr.bf16.mxu0 %v389_v8  ;;  %v371_v7 = vld [vmem:[%s2359_s12 + $0x188] sm:$0xff] }
  0x4f   : > { %1061 = vmatprep.mubr.bf16.mxu1 %v389_v8  ;;  %v373_v8 = vld [vmem:[%s2359_s12 + $0x198] sm:$0xff] }
  0x50   : > { %v411_v10 = vpack.c.bf16 %v373_v8, %v371_v7 }
  0x55   : > { %665 = vmatmul.mubr.bf16.gmra.mxu0 %v388_v13 }
  0x56   : > { %1062 = vmatmul.mubr.bf16.gmra.mxu1 %v388_v13  ;;  %674 = vmatprep.mubr.bf16.mxu0 %v391_v14  ;;  %v375_v13 = vld [vmem:[%s2359_s12 + $0x1a8] sm:$0xff] }
  0x57   : > { %1071 = vmatprep.mubr.bf16.mxu1 %v391_v14  ;;  %v377_v14 = vld [vmem:[%s2359_s12 + $0x1b8] sm:$0xff] }
  0x58   : > { %v413_v16 = vpack.c.bf16 %v377_v14, %v375_v13 }
  0x5d   : > { %675 = vmatmul.mubr.bf16.gmra.mxu0 %v390_v19 }
  0x5e   : > { %1072 = vmatmul.mubr.bf16.gmra.mxu1 %v390_v19  ;;  %684 = vmatprep.mubr.bf16.mxu0 %v393_v20  ;;  %v379_v19 = vld [vmem:[%s2359_s12 + $0x1c8] sm:$0xff] }
  0x5f   : > { %1081 = vmatprep.mubr.bf16.mxu1 %v393_v20  ;;  %v381_v20 = vld [vmem:[%s2359_s12 + $0x1d8] sm:$0xff] }
  0x60   : > { %v415_v22 = vpack.c.bf16 %v381_v20, %v379_v19 }
  0x65   : > { %685 = vmatmul.mubr.bf16.gmra.mxu0 %v392_v25 }
  0x66   : > { %1082 = vmatmul.mubr.bf16.gmra.mxu1 %v392_v25  ;;  %694 = vmatprep.mubr.bf16.mxu0 %v395_v26  ;;  %v383_v25 = vld [vmem:[%s2359_s12 + $0x1e8] sm:$0xff] }
  0x67   : > { %1091 = vmatprep.mubr.bf16.mxu1 %v395_v26  ;;  %v385_v26 = vld [vmem:[%s2359_s12 + $0x1f8] sm:$0xff]  ;;  %s1954_s12 = sshll.u32 %s2723_s21, 8 }
  0x68   : > { %v417_v28 = vpack.c.bf16 %v385_v26, %v383_v25  ;;  %s2507_s25 = scalar_lea.vmem %s2716_s5, %s1954_s12  ;;  %s2512_s21 = scalar_lea.vmem %s2717_s6, %s1954_s12 }
  0x6d   : > { %695 = vmatmul.mubr.bf16.gmra.mxu0 %v394_v31 }
  0x6e   : > { %1092 = vmatmul.mubr.bf16.gmra.mxu1 %v394_v31  ;;  %704 = vmatprep.mubr.bf16.mxu0 %v397_v32  ;;  %v416_v31 = vpack.c.bf16 %v384_v30, %v382_v29 }
  0x6f   : > { %1101 = vmatprep.mubr.bf16.mxu1 %v397_v32  ;;  %v452_v32 = vlaneseq }
  0x71   : > { %v453_v33 = vshrl.u32 %v452_v32, 7 }
  0x73   : > { %v454_v34 = vsub.s32 0, %v453_v33  ;;  %v458_v35 = vsub.s32 1, %v453_v33 }
  0x75   : > { %705 = vmatmul.mubr.bf16.gmra.mxu0 %v396_v37  ;;  %v2495_v40 = vrot.slane %v450_v36, %v458_v35 }
  0x76   : > { %1102 = vmatmul.mubr.bf16.gmra.mxu1 %v396_v37  ;;  %714 = vmatprep.mubr.bf16.mxu0 %v399_v38  ;;  %v847_v37 = vld [vmem:[%s2715_s4] sm:$0x3] }
  0x77   : > { %1111 = vmatprep.mubr.bf16.mxu1 %v399_v38  ;;  %v2491_v38 = vrot.slane %v450_v36, %v454_v34  ;;  %v2493_v39 = vrot.slane %v847_v37, %v454_v34  ;;  %v2497_v41 = vrot.slane %v847_v37, %v458_v35 }
  0x7d   : > { %715 = vmatmul.mubr.bf16.gmra.mxu0 %v398_v43 }
  0x7e   : > { %1112 = vmatmul.mubr.bf16.gmra.mxu1 %v398_v43  ;;  %724 = vmatprep.mubr.bf16.mxu0 %v401_v44 }
  0x7f   : > { %1121 = vmatprep.mubr.bf16.mxu1 %v401_v44 }
  0x85   : > { %725 = vmatmul.mubr.bf16.gmra.mxu0 %v400_v49 }
  0x86   : > { %1122 = vmatmul.mubr.bf16.gmra.mxu1 %v400_v49  ;;  %734 = vmatprep.mubr.bf16.mxu0 %v403_v50 }
  0x87   : > { %1131 = vmatprep.mubr.bf16.mxu1 %v403_v50 }
  0x8d   : > { %735 = vmatmul.mubr.bf16.gmra.mxu0 %v402_v55 }
  0x8e   : > { %1132 = vmatmul.mubr.bf16.gmra.mxu1 %v402_v55  ;;  %744 = vmatprep.mubr.bf16.mxu0 %v405_v56 }
  0x8f   : > { %1141 = vmatprep.mubr.bf16.mxu1 %v405_v56 }
  0x95   : > { %745 = vmatmul.mubr.bf16.gmra.mxu0 %v404_v61 }
  0x96   : > { %1142 = vmatmul.mubr.bf16.gmra.mxu1 %v404_v61  ;;  %754 = vmatprep.mubr.bf16.mxu0 %v407_v62 }
  0x97   : > { %1151 = vmatprep.mubr.bf16.mxu1 %v407_v62 }
  0x9d   : > { %755 = vmatmul.mubr.bf16.gmra.mxu0 %v406_v3 }
  0x9e   : > { %1152 = vmatmul.mubr.bf16.gmra.mxu1 %v406_v3  ;;  %764 = vmatprep.mubr.bf16.mxu0 %v409_v4 }
  0x9f   : > { %1161 = vmatprep.mubr.bf16.mxu1 %v409_v4 }
  0xa5   : > { %765 = vmatmul.mubr.bf16.gmra.mxu0 %v408_v9 }
  0xa6   : > { %1162 = vmatmul.mubr.bf16.gmra.mxu1 %v408_v9  ;;  %774 = vmatprep.mubr.bf16.mxu0 %v411_v10 }
  0xa7   : > { %1171 = vmatprep.mubr.bf16.mxu1 %v411_v10 }
  0xad   : > { %775 = vmatmul.mubr.bf16.gmra.mxu0 %v410_v15 }
  0xae   : > { %1172 = vmatmul.mubr.bf16.gmra.mxu1 %v410_v15  ;;  %784 = vmatprep.mubr.bf16.mxu0 %v413_v16 }
  0xaf   : > { %1181 = vmatprep.mubr.bf16.mxu1 %v413_v16 }
  0xb5   : > { %785 = vmatmul.mubr.bf16.gmra.mxu0 %v412_v21 }
  0xb6   : > { %1182 = vmatmul.mubr.bf16.gmra.mxu1 %v412_v21  ;;  %794 = vmatprep.mubr.bf16.mxu0 %v415_v22 }
  0xb7   : > { %1191 = vmatprep.mubr.bf16.mxu1 %v415_v22 }
  0xbd   : > { %795 = vmatmul.mubr.bf16.gmra.mxu0 %v414_v27 }
  0xbe   : > { %1192 = vmatmul.mubr.bf16.gmra.mxu1 %v414_v27  ;;  %804 = vmatprep.mubr.bf16.mxu0 %v417_v28 }
  0xbf   : > { %1201 = vmatprep.mubr.bf16.mxu1 %v417_v28 }
  0xc5   : > { %805 = vmatmul.mubr.bf16.gmra.mxu0 %v416_v31 }
  0xc6   : > { %1202 = vmatmul.mubr.bf16.gmra.mxu1 %v416_v31 }
 0x10d   : > { %v656_v42 = vpop.f32.mrf.mxu0 }
 0x10e   : > { %v1053_v43 = vpop.f32.mrf.mxu1  ;;  %v657_v46 = vadd.f32 %v656_v42, %v2491_v38 }
 0x10f   : > { %v658_v44 = vpop.f32.mrf.mxu0  ;;  %v1054_v47 = vadd.f32 %v1053_v43, %v2493_v39 }
 0x110   : > { %v1055_v45 = vpop.f32.mrf.mxu1  ;;  %v659_v48 = vadd.f32 %v658_v44, %v2495_v40 }
 0x111   : > { %v1056_v49 = vadd.f32 %v1055_v45, %v2497_v41  ;;  %v660_v50 = vpop.f32.mrf.mxu0 }
 0x112   : > { %v1057_v51 = vpop.f32.mrf.mxu1  ;;  %v1956_v52 = vpack.c.bf16 %v659_v48, %v657_v46  ;;  %v661_v56 = vadd.f32 %v660_v50, %v2491_v38 }
 0x113   : > { %v1988_v53 = vpack.c.bf16 %v1056_v49, %v1054_v47  ;;  %v662_v54 = vpop.f32.mrf.mxu0  ;;  %v1058_v57 = vadd.f32 %v1057_v51, %v2493_v39 }
 0x114   : > { %v1059_v55 = vpop.f32.mrf.mxu1  ;;  %1404 = vst [vmem:[%s2507_s25] sm:$0xff] %v1956_v52  ;;  %v663_v58 = vadd.f32 %v662_v54, %v2495_v40 }
 0x115   : > { %1628 = vst [vmem:[%s2512_s21] sm:$0xff] %v1988_v53  ;;  %v1060_v59 = vadd.f32 %v1059_v55, %v2497_v41  ;;  %v666_v60 = vpop.f32.mrf.mxu0 }
 0x116   : > { %v1063_v61 = vpop.f32.mrf.mxu1  ;;  %v1957_v62 = vpack.c.bf16 %v663_v58, %v661_v56  ;;  %v667_v2 = vadd.f32 %v666_v60, %v2491_v38 }
 0x117   : > { %v1989_v63 = vpack.c.bf16 %v1060_v59, %v1058_v57  ;;  %v668_v0 = vpop.f32.mrf.mxu0  ;;  %v1064_v3 = vadd.f32 %v1063_v61, %v2493_v39 }
 0x118   : > { %v1065_v1 = vpop.f32.mrf.mxu1  ;;  %1405 = vst [vmem:[%s2507_s25 + $0x8] sm:$0xff] %v1957_v62  ;;  %v669_v4 = vadd.f32 %v668_v0, %v2495_v40 }
 0x119   : > { %1629 = vst [vmem:[%s2512_s21 + $0x8] sm:$0xff] %v1989_v63  ;;  %v1066_v5 = vadd.f32 %v1065_v1, %v2497_v41  ;;  %v670_v6 = vpop.f32.mrf.mxu0 }
 0x11a   : > { %v1067_v7 = vpop.f32.mrf.mxu1  ;;  %v1958_v8 = vpack.c.bf16 %v669_v4, %v667_v2  ;;  %v671_v12 = vadd.f32 %v670_v6, %v2491_v38 }
 0x11b   : > { %v1990_v9 = vpack.c.bf16 %v1066_v5, %v1064_v3  ;;  %v672_v10 = vpop.f32.mrf.mxu0  ;;  %v1068_v13 = vadd.f32 %v1067_v7, %v2493_v39 }
 0x11c   : > { %v1069_v11 = vpop.f32.mrf.mxu1  ;;  %1406 = vst [vmem:[%s2507_s25 + $0x10] sm:$0xff] %v1958_v8  ;;  %v673_v14 = vadd.f32 %v672_v10, %v2495_v40 }
 0x11d   : > { %1630 = vst [vmem:[%s2512_s21 + $0x10] sm:$0xff] %v1990_v9  ;;  %v1070_v15 = vadd.f32 %v1069_v11, %v2497_v41  ;;  %v676_v16 = vpop.f32.mrf.mxu0 }
 0x11e   : > { %v1073_v17 = vpop.f32.mrf.mxu1  ;;  %v1959_v18 = vpack.c.bf16 %v673_v14, %v671_v12  ;;  %v677_v22 = vadd.f32 %v676_v16, %v2491_v38 }
 0x11f   : > { %v1991_v19 = vpack.c.bf16 %v1070_v15, %v1068_v13  ;;  %v678_v20 = vpop.f32.mrf.mxu0  ;;  %v1074_v23 = vadd.f32 %v1073_v17, %v2493_v39 }
 0x120   : > { %v1075_v21 = vpop.f32.mrf.mxu1  ;;  %1407 = vst [vmem:[%s2507_s25 + $0x18] sm:$0xff] %v1959_v18  ;;  %v679_v24 = vadd.f32 %v678_v20, %v2495_v40 }
 0x121   : > { %1631 = vst [vmem:[%s2512_s21 + $0x18] sm:$0xff] %v1991_v19  ;;  %v1076_v25 = vadd.f32 %v1075_v21, %v2497_v41  ;;  %v680_v26 = vpop.f32.mrf.mxu0 }
 0x122   : > { %v1077_v27 = vpop.f32.mrf.mxu1  ;;  %v1960_v28 = vpack.c.bf16 %v679_v24, %v677_v22  ;;  %v681_v32 = vadd.f32 %v680_v26, %v2491_v38 }
 0x123   : > { %v1992_v29 = vpack.c.bf16 %v1076_v25, %v1074_v23  ;;  %v682_v30 = vpop.f32.mrf.mxu0  ;;  %v1078_v33 = vadd.f32 %v1077_v27, %v2493_v39 }
 0x124   : > { %v1079_v31 = vpop.f32.mrf.mxu1  ;;  %1408 = vst [vmem:[%s2507_s25 + $0x20] sm:$0xff] %v1960_v28  ;;  %v683_v34 = vadd.f32 %v682_v30, %v2495_v40 }
 0x125   : > { %1632 = vst [vmem:[%s2512_s21 + $0x20] sm:$0xff] %v1992_v29  ;;  %v1080_v35 = vadd.f32 %v1079_v31, %v2497_v41  ;;  %v686_v36 = vpop.f32.mrf.mxu0 }
 0x126   : > { %v1083_v37 = vpop.f32.mrf.mxu1  ;;  %v1961_v42 = vpack.c.bf16 %v683_v34, %v681_v32  ;;  %v687_v46 = vadd.f32 %v686_v36, %v2491_v38 }
 0x127   : > { %v1993_v43 = vpack.c.bf16 %v1080_v35, %v1078_v33  ;;  %v688_v44 = vpop.f32.mrf.mxu0  ;;  %v1084_v47 = vadd.f32 %v1083_v37, %v2493_v39 }
 0x128   : > { %v1085_v45 = vpop.f32.mrf.mxu1  ;;  %1409 = vst [vmem:[%s2507_s25 + $0x28] sm:$0xff] %v1961_v42  ;;  %v689_v48 = vadd.f32 %v688_v44, %v2495_v40 }
 0x129   : > { %1633 = vst [vmem:[%s2512_s21 + $0x28] sm:$0xff] %v1993_v43  ;;  %v1086_v49 = vadd.f32 %v1085_v45, %v2497_v41  ;;  %v690_v50 = vpop.f32.mrf.mxu0 }
 0x12a   : > { %v1087_v51 = vpop.f32.mrf.mxu1  ;;  %v1962_v52 = vpack.c.bf16 %v689_v48, %v687_v46  ;;  %v691_v56 = vadd.f32 %v690_v50, %v2491_v38 }
 0x12b   : > { %v1994_v53 = vpack.c.bf16 %v1086_v49, %v1084_v47  ;;  %v692_v54 = vpop.f32.mrf.mxu0  ;;  %v1088_v57 = vadd.f32 %v1087_v51, %v2493_v39 }
 0x12c   : > { %v1089_v55 = vpop.f32.mrf.mxu1  ;;  %1410 = vst [vmem:[%s2507_s25 + $0x30] sm:$0xff] %v1962_v52  ;;  %v693_v58 = vadd.f32 %v692_v54, %v2495_v40 }
 0x12d   : > { %1634 = vst [vmem:[%s2512_s21 + $0x30] sm:$0xff] %v1994_v53  ;;  %v1090_v59 = vadd.f32 %v1089_v55, %v2497_v41  ;;  %v696_v60 = vpop.f32.mrf.mxu0 }
 0x12e   : > { %v1093_v61 = vpop.f32.mrf.mxu1  ;;  %v1963_v62 = vpack.c.bf16 %v693_v58, %v691_v56  ;;  %v697_v2 = vadd.f32 %v696_v60, %v2491_v38 }
 0x12f   : > { %v1995_v63 = vpack.c.bf16 %v1090_v59, %v1088_v57  ;;  %v698_v0 = vpop.f32.mrf.mxu0  ;;  %v1094_v3 = vadd.f32 %v1093_v61, %v2493_v39 }
 0x130   : > { %v1095_v1 = vpop.f32.mrf.mxu1  ;;  %1411 = vst [vmem:[%s2507_s25 + $0x38] sm:$0xff] %v1963_v62  ;;  %v699_v4 = vadd.f32 %v698_v0, %v2495_v40 }
 0x131   : > { %1635 = vst [vmem:[%s2512_s21 + $0x38] sm:$0xff] %v1995_v63  ;;  %v1096_v5 = vadd.f32 %v1095_v1, %v2497_v41  ;;  %v700_v6 = vpop.f32.mrf.mxu0 }
 0x132   : > { %v1097_v7 = vpop.f32.mrf.mxu1  ;;  %v1964_v8 = vpack.c.bf16 %v699_v4, %v697_v2  ;;  %v701_v12 = vadd.f32 %v700_v6, %v2491_v38 }
 0x133   : > { %v1996_v9 = vpack.c.bf16 %v1096_v5, %v1094_v3  ;;  %v702_v10 = vpop.f32.mrf.mxu0  ;;  %v1098_v13 = vadd.f32 %v1097_v7, %v2493_v39 }
 0x134   : > { %v1099_v11 = vpop.f32.mrf.mxu1  ;;  %1412 = vst [vmem:[%s2507_s25 + $0x40] sm:$0xff] %v1964_v8  ;;  %v703_v14 = vadd.f32 %v702_v10, %v2495_v40 }
 0x135   : > { %1636 = vst [vmem:[%s2512_s21 + $0x40] sm:$0xff] %v1996_v9  ;;  %v1100_v15 = vadd.f32 %v1099_v11, %v2497_v41  ;;  %v706_v16 = vpop.f32.mrf.mxu0 }
 0x136   : > { %v1103_v17 = vpop.f32.mrf.mxu1  ;;  %v1965_v18 = vpack.c.bf16 %v703_v14, %v701_v12  ;;  %v707_v22 = vadd.f32 %v706_v16, %v2491_v38 }
 0x137   : > { %v1997_v19 = vpack.c.bf16 %v1100_v15, %v1098_v13  ;;  %v708_v20 = vpop.f32.mrf.mxu0  ;;  %v1104_v23 = vadd.f32 %v1103_v17, %v2493_v39 }
 0x138   : > { %v1105_v21 = vpop.f32.mrf.mxu1  ;;  %1413 = vst [vmem:[%s2507_s25 + $0x48] sm:$0xff] %v1965_v18  ;;  %v709_v24 = vadd.f32 %v708_v20, %v2495_v40 }
 0x139   : > { %1637 = vst [vmem:[%s2512_s21 + $0x48] sm:$0xff] %v1997_v19  ;;  %v1106_v25 = vadd.f32 %v1105_v21, %v2497_v41  ;;  %v710_v26 = vpop.f32.mrf.mxu0 }
 0x13a   : > { %v1107_v27 = vpop.f32.mrf.mxu1  ;;  %v1966_v28 = vpack.c.bf16 %v709_v24, %v707_v22  ;;  %v711_v32 = vadd.f32 %v710_v26, %v2491_v38 }
 0x13b   : > { %v1998_v29 = vpack.c.bf16 %v1106_v25, %v1104_v23  ;;  %v712_v30 = vpop.f32.mrf.mxu0  ;;  %v1108_v33 = vadd.f32 %v1107_v27, %v2493_v39 }
 0x13c   : > { %v1109_v31 = vpop.f32.mrf.mxu1  ;;  %1414 = vst [vmem:[%s2507_s25 + $0x50] sm:$0xff] %v1966_v28  ;;  %v713_v34 = vadd.f32 %v712_v30, %v2495_v40 }
 0x13d   : > { %1638 = vst [vmem:[%s2512_s21 + $0x50] sm:$0xff] %v1998_v29  ;;  %v1110_v35 = vadd.f32 %v1109_v31, %v2497_v41  ;;  %v716_v36 = vpop.f32.mrf.mxu0 }
 0x13e   : > { %v1113_v37 = vpop.f32.mrf.mxu1  ;;  %v1967_v42 = vpack.c.bf16 %v713_v34, %v711_v32  ;;  %v717_v46 = vadd.f32 %v716_v36, %v2491_v38 }
 0x13f   : > { %v1999_v43 = vpack.c.bf16 %v1110_v35, %v1108_v33  ;;  %v718_v44 = vpop.f32.mrf.mxu0  ;;  %v1114_v47 = vadd.f32 %v1113_v37, %v2493_v39 }
 0x140   : > { %v1115_v45 = vpop.f32.mrf.mxu1  ;;  %1415 = vst [vmem:[%s2507_s25 + $0x58] sm:$0xff] %v1967_v42  ;;  %v719_v48 = vadd.f32 %v718_v44, %v2495_v40 }
 0x141   : > { %1639 = vst [vmem:[%s2512_s21 + $0x58] sm:$0xff] %v1999_v43  ;;  %v1116_v49 = vadd.f32 %v1115_v45, %v2497_v41  ;;  %v720_v50 = vpop.f32.mrf.mxu0 }
 0x142   : > { %v1117_v51 = vpop.f32.mrf.mxu1  ;;  %v1968_v52 = vpack.c.bf16 %v719_v48, %v717_v46  ;;  %v721_v56 = vadd.f32 %v720_v50, %v2491_v38 }
 0x143   : > { %v2000_v53 = vpack.c.bf16 %v1116_v49, %v1114_v47  ;;  %v722_v54 = vpop.f32.mrf.mxu0  ;;  %v1118_v57 = vadd.f32 %v1117_v51, %v2493_v39 }
 0x144   : > { %v1119_v55 = vpop.f32.mrf.mxu1  ;;  %1416 = vst [vmem:[%s2507_s25 + $0x60] sm:$0xff] %v1968_v52  ;;  %v723_v58 = vadd.f32 %v722_v54, %v2495_v40 }
 0x145   : > { %1640 = vst [vmem:[%s2512_s21 + $0x60] sm:$0xff] %v2000_v53  ;;  %v1120_v59 = vadd.f32 %v1119_v55, %v2497_v41  ;;  %v726_v60 = vpop.f32.mrf.mxu0 }
 0x146   : > { %v1123_v61 = vpop.f32.mrf.mxu1  ;;  %v1969_v62 = vpack.c.bf16 %v723_v58, %v721_v56  ;;  %v727_v2 = vadd.f32 %v726_v60, %v2491_v38 }
 0x147   : > { %v2001_v63 = vpack.c.bf16 %v1120_v59, %v1118_v57  ;;  %v728_v0 = vpop.f32.mrf.mxu0  ;;  %v1124_v3 = vadd.f32 %v1123_v61, %v2493_v39 }
 0x148   : > { %v1125_v1 = vpop.f32.mrf.mxu1  ;;  %1417 = vst [vmem:[%s2507_s25 + $0x68] sm:$0xff] %v1969_v62  ;;  %v729_v4 = vadd.f32 %v728_v0, %v2495_v40 }
 0x149   : > { %1641 = vst [vmem:[%s2512_s21 + $0x68] sm:$0xff] %v2001_v63  ;;  %v1126_v5 = vadd.f32 %v1125_v1, %v2497_v41  ;;  %v730_v6 = vpop.f32.mrf.mxu0 }
 0x14a   : > { %v1127_v7 = vpop.f32.mrf.mxu1  ;;  %v1970_v8 = vpack.c.bf16 %v729_v4, %v727_v2  ;;  %v731_v12 = vadd.f32 %v730_v6, %v2491_v38 }
 0x14b   : > { %v2002_v9 = vpack.c.bf16 %v1126_v5, %v1124_v3  ;;  %v732_v10 = vpop.f32.mrf.mxu0  ;;  %v1128_v13 = vadd.f32 %v1127_v7, %v2493_v39 }
 0x14c   : > { %v1129_v11 = vpop.f32.mrf.mxu1  ;;  %1418 = vst [vmem:[%s2507_s25 + $0x70] sm:$0xff] %v1970_v8  ;;  %v733_v14 = vadd.f32 %v732_v10, %v2495_v40 }
 0x14d   : > { %1642 = vst [vmem:[%s2512_s21 + $0x70] sm:$0xff] %v2002_v9  ;;  %v1130_v15 = vadd.f32 %v1129_v11, %v2497_v41  ;;  %v736_v16 = vpop.f32.mrf.mxu0 }
 0x14e   : > { %v1133_v17 = vpop.f32.mrf.mxu1  ;;  %v1971_v18 = vpack.c.bf16 %v733_v14, %v731_v12  ;;  %v737_v22 = vadd.f32 %v736_v16, %v2491_v38 }
 0x14f   : > { %v2003_v19 = vpack.c.bf16 %v1130_v15, %v1128_v13  ;;  %v738_v20 = vpop.f32.mrf.mxu0  ;;  %v1134_v23 = vadd.f32 %v1133_v17, %v2493_v39 }
 0x150   : > { %v1135_v21 = vpop.f32.mrf.mxu1  ;;  %1419 = vst [vmem:[%s2507_s25 + $0x78] sm:$0xff] %v1971_v18  ;;  %v739_v24 = vadd.f32 %v738_v20, %v2495_v40 }
 0x151   : > { %1643 = vst [vmem:[%s2512_s21 + $0x78] sm:$0xff] %v2003_v19  ;;  %v1136_v25 = vadd.f32 %v1135_v21, %v2497_v41  ;;  %v740_v26 = vpop.f32.mrf.mxu0 }
 0x152   : > { %v1137_v27 = vpop.f32.mrf.mxu1  ;;  %v1972_v28 = vpack.c.bf16 %v739_v24, %v737_v22  ;;  %v741_v32 = vadd.f32 %v740_v26, %v2491_v38 }
 0x153   : > { %v2004_v29 = vpack.c.bf16 %v1136_v25, %v1134_v23  ;;  %v742_v30 = vpop.f32.mrf.mxu0  ;;  %v1138_v33 = vadd.f32 %v1137_v27, %v2493_v39 }
 0x154   : > { %v1139_v31 = vpop.f32.mrf.mxu1  ;;  %1420 = vst [vmem:[%s2507_s25 + $0x80] sm:$0xff] %v1972_v28  ;;  %v743_v34 = vadd.f32 %v742_v30, %v2495_v40 }
 0x155   : > { %1644 = vst [vmem:[%s2512_s21 + $0x80] sm:$0xff] %v2004_v29  ;;  %v1140_v35 = vadd.f32 %v1139_v31, %v2497_v41  ;;  %v746_v36 = vpop.f32.mrf.mxu0 }
 0x156   : > { %v1143_v37 = vpop.f32.mrf.mxu1  ;;  %v1973_v42 = vpack.c.bf16 %v743_v34, %v741_v32  ;;  %v747_v46 = vadd.f32 %v746_v36, %v2491_v38 }
 0x157   : > { %v2005_v43 = vpack.c.bf16 %v1140_v35, %v1138_v33  ;;  %v748_v44 = vpop.f32.mrf.mxu0  ;;  %v1144_v47 = vadd.f32 %v1143_v37, %v2493_v39 }
 0x158   : > { %v1145_v45 = vpop.f32.mrf.mxu1  ;;  %1421 = vst [vmem:[%s2507_s25 + $0x88] sm:$0xff] %v1973_v42  ;;  %v749_v48 = vadd.f32 %v748_v44, %v2495_v40 }
 0x159   : > { %1645 = vst [vmem:[%s2512_s21 + $0x88] sm:$0xff] %v2005_v43  ;;  %v1146_v49 = vadd.f32 %v1145_v45, %v2497_v41  ;;  %v750_v50 = vpop.f32.mrf.mxu0 }
 0x15a   : > { %v1147_v51 = vpop.f32.mrf.mxu1  ;;  %v1974_v52 = vpack.c.bf16 %v749_v48, %v747_v46  ;;  %v751_v56 = vadd.f32 %v750_v50, %v2491_v38 }
 0x15b   : > { %v2006_v53 = vpack.c.bf16 %v1146_v49, %v1144_v47  ;;  %v752_v54 = vpop.f32.mrf.mxu0  ;;  %v1148_v57 = vadd.f32 %v1147_v51, %v2493_v39 }
 0x15c   : > { %v1149_v55 = vpop.f32.mrf.mxu1  ;;  %1422 = vst [vmem:[%s2507_s25 + $0x90] sm:$0xff] %v1974_v52  ;;  %v753_v58 = vadd.f32 %v752_v54, %v2495_v40 }
 0x15d   : > { %1646 = vst [vmem:[%s2512_s21 + $0x90] sm:$0xff] %v2006_v53  ;;  %v1150_v59 = vadd.f32 %v1149_v55, %v2497_v41  ;;  %v756_v60 = vpop.f32.mrf.mxu0 }
 0x15e   : > { %v1153_v61 = vpop.f32.mrf.mxu1  ;;  %v1975_v62 = vpack.c.bf16 %v753_v58, %v751_v56  ;;  %v757_v2 = vadd.f32 %v756_v60, %v2491_v38 }
 0x15f   : > { %v2007_v63 = vpack.c.bf16 %v1150_v59, %v1148_v57  ;;  %v758_v0 = vpop.f32.mrf.mxu0  ;;  %v1154_v3 = vadd.f32 %v1153_v61, %v2493_v39 }
 0x160   : > { %v1155_v1 = vpop.f32.mrf.mxu1  ;;  %1423 = vst [vmem:[%s2507_s25 + $0x98] sm:$0xff] %v1975_v62  ;;  %v759_v4 = vadd.f32 %v758_v0, %v2495_v40 }
 0x161   : > { %1647 = vst [vmem:[%s2512_s21 + $0x98] sm:$0xff] %v2007_v63  ;;  %v1156_v5 = vadd.f32 %v1155_v1, %v2497_v41  ;;  %v760_v6 = vpop.f32.mrf.mxu0 }
 0x162   : > { %v1157_v7 = vpop.f32.mrf.mxu1  ;;  %v1976_v8 = vpack.c.bf16 %v759_v4, %v757_v2  ;;  %v761_v12 = vadd.f32 %v760_v6, %v2491_v38 }
 0x163   : > { %v2008_v9 = vpack.c.bf16 %v1156_v5, %v1154_v3  ;;  %v762_v10 = vpop.f32.mrf.mxu0  ;;  %v1158_v13 = vadd.f32 %v1157_v7, %v2493_v39 }
 0x164   : > { %v1159_v11 = vpop.f32.mrf.mxu1  ;;  %1424 = vst [vmem:[%s2507_s25 + $0xa0] sm:$0xff] %v1976_v8  ;;  %v763_v14 = vadd.f32 %v762_v10, %v2495_v40 }
 0x165   : > { %1648 = vst [vmem:[%s2512_s21 + $0xa0] sm:$0xff] %v2008_v9  ;;  %v1160_v15 = vadd.f32 %v1159_v11, %v2497_v41  ;;  %v766_v16 = vpop.f32.mrf.mxu0 }
 0x166   : > { %v1163_v17 = vpop.f32.mrf.mxu1  ;;  %v1977_v18 = vpack.c.bf16 %v763_v14, %v761_v12  ;;  %v767_v22 = vadd.f32 %v766_v16, %v2491_v38 }
 0x167   : > { %v2009_v19 = vpack.c.bf16 %v1160_v15, %v1158_v13  ;;  %v768_v20 = vpop.f32.mrf.mxu0  ;;  %v1164_v23 = vadd.f32 %v1163_v17, %v2493_v39 }
 0x168   : > { %v1165_v21 = vpop.f32.mrf.mxu1  ;;  %1425 = vst [vmem:[%s2507_s25 + $0xa8] sm:$0xff] %v1977_v18  ;;  %v769_v24 = vadd.f32 %v768_v20, %v2495_v40 }
 0x169   : > { %1649 = vst [vmem:[%s2512_s21 + $0xa8] sm:$0xff] %v2009_v19  ;;  %v1166_v25 = vadd.f32 %v1165_v21, %v2497_v41  ;;  %v770_v26 = vpop.f32.mrf.mxu0 }
 0x16a   : > { %v1167_v27 = vpop.f32.mrf.mxu1  ;;  %v1978_v28 = vpack.c.bf16 %v769_v24, %v767_v22  ;;  %v771_v32 = vadd.f32 %v770_v26, %v2491_v38 }
 0x16b   : > { %v2010_v29 = vpack.c.bf16 %v1166_v25, %v1164_v23  ;;  %v772_v30 = vpop.f32.mrf.mxu0  ;;  %v1168_v33 = vadd.f32 %v1167_v27, %v2493_v39 }
 0x16c   : > { %v1169_v31 = vpop.f32.mrf.mxu1  ;;  %1426 = vst [vmem:[%s2507_s25 + $0xb0] sm:$0xff] %v1978_v28  ;;  %v773_v34 = vadd.f32 %v772_v30, %v2495_v40 }
 0x16d   : > { %1650 = vst [vmem:[%s2512_s21 + $0xb0] sm:$0xff] %v2010_v29  ;;  %v1170_v35 = vadd.f32 %v1169_v31, %v2497_v41  ;;  %v776_v36 = vpop.f32.mrf.mxu0 }
 0x16e   : > { %v1173_v37 = vpop.f32.mrf.mxu1  ;;  %v1979_v42 = vpack.c.bf16 %v773_v34, %v771_v32  ;;  %v777_v46 = vadd.f32 %v776_v36, %v2491_v38 }
 0x16f   : > { %v2011_v43 = vpack.c.bf16 %v1170_v35, %v1168_v33  ;;  %v778_v44 = vpop.f32.mrf.mxu0  ;;  %v1174_v47 = vadd.f32 %v1173_v37, %v2493_v39 }
 0x170   : > { %v1175_v45 = vpop.f32.mrf.mxu1  ;;  %1427 = vst [vmem:[%s2507_s25 + $0xb8] sm:$0xff] %v1979_v42  ;;  %v779_v48 = vadd.f32 %v778_v44, %v2495_v40 }
 0x171   : > { %1651 = vst [vmem:[%s2512_s21 + $0xb8] sm:$0xff] %v2011_v43  ;;  %v1176_v49 = vadd.f32 %v1175_v45, %v2497_v41  ;;  %v780_v50 = vpop.f32.mrf.mxu0 }
 0x172   : > { %v1177_v51 = vpop.f32.mrf.mxu1  ;;  %v1980_v52 = vpack.c.bf16 %v779_v48, %v777_v46  ;;  %v781_v56 = vadd.f32 %v780_v50, %v2491_v38 }
 0x173   : > { %v2012_v53 = vpack.c.bf16 %v1176_v49, %v1174_v47  ;;  %v782_v54 = vpop.f32.mrf.mxu0  ;;  %v1178_v57 = vadd.f32 %v1177_v51, %v2493_v39 }
 0x174   : > { %v1179_v55 = vpop.f32.mrf.mxu1  ;;  %1428 = vst [vmem:[%s2507_s25 + $0xc0] sm:$0xff] %v1980_v52  ;;  %v783_v58 = vadd.f32 %v782_v54, %v2495_v40 }
 0x175   : > { %1652 = vst [vmem:[%s2512_s21 + $0xc0] sm:$0xff] %v2012_v53  ;;  %v1180_v59 = vadd.f32 %v1179_v55, %v2497_v41  ;;  %v786_v60 = vpop.f32.mrf.mxu0 }
 0x176   : > { %v1183_v61 = vpop.f32.mrf.mxu1  ;;  %v1981_v62 = vpack.c.bf16 %v783_v58, %v781_v56  ;;  %v787_v2 = vadd.f32 %v786_v60, %v2491_v38 }
 0x177   : > { %v2013_v63 = vpack.c.bf16 %v1180_v59, %v1178_v57  ;;  %v788_v0 = vpop.f32.mrf.mxu0  ;;  %v1184_v3 = vadd.f32 %v1183_v61, %v2493_v39 }
 0x178   : > { %v1185_v1 = vpop.f32.mrf.mxu1  ;;  %1429 = vst [vmem:[%s2507_s25 + $0xc8] sm:$0xff] %v1981_v62  ;;  %v789_v4 = vadd.f32 %v788_v0, %v2495_v40 }
 0x179   : > { %1653 = vst [vmem:[%s2512_s21 + $0xc8] sm:$0xff] %v2013_v63  ;;  %v1186_v5 = vadd.f32 %v1185_v1, %v2497_v41  ;;  %v790_v6 = vpop.f32.mrf.mxu0 }
 0x17a   : > { %v1187_v7 = vpop.f32.mrf.mxu1  ;;  %v1982_v8 = vpack.c.bf16 %v789_v4, %v787_v2  ;;  %v791_v12 = vadd.f32 %v790_v6, %v2491_v38 }
 0x17b   : > { %v2014_v9 = vpack.c.bf16 %v1186_v5, %v1184_v3  ;;  %v792_v10 = vpop.f32.mrf.mxu0  ;;  %v1188_v13 = vadd.f32 %v1187_v7, %v2493_v39 }
 0x17c   : > { %v1189_v11 = vpop.f32.mrf.mxu1  ;;  %1430 = vst [vmem:[%s2507_s25 + $0xd0] sm:$0xff] %v1982_v8  ;;  %v793_v14 = vadd.f32 %v792_v10, %v2495_v40 }
 0x17d   : > { %1654 = vst [vmem:[%s2512_s21 + $0xd0] sm:$0xff] %v2014_v9  ;;  %v1190_v15 = vadd.f32 %v1189_v11, %v2497_v41  ;;  %v796_v16 = vpop.f32.mrf.mxu0 }
 0x17e   : > { %v1193_v17 = vpop.f32.mrf.mxu1  ;;  %v1983_v18 = vpack.c.bf16 %v793_v14, %v791_v12  ;;  %v797_v22 = vadd.f32 %v796_v16, %v2491_v38 }
 0x17f   : > { %v2015_v19 = vpack.c.bf16 %v1190_v15, %v1188_v13  ;;  %v798_v20 = vpop.f32.mrf.mxu0  ;;  %v1194_v23 = vadd.f32 %v1193_v17, %v2493_v39 }
 0x180   : > { %v1195_v21 = vpop.f32.mrf.mxu1  ;;  %1431 = vst [vmem:[%s2507_s25 + $0xd8] sm:$0xff] %v1983_v18  ;;  %v799_v24 = vadd.f32 %v798_v20, %v2495_v40 }
 0x181   : > { %1655 = vst [vmem:[%s2512_s21 + $0xd8] sm:$0xff] %v2015_v19  ;;  %v1196_v25 = vadd.f32 %v1195_v21, %v2497_v41  ;;  %v800_v26 = vpop.f32.mrf.mxu0 }
 0x182   : > { %v1197_v27 = vpop.f32.mrf.mxu1  ;;  %v1984_v28 = vpack.c.bf16 %v799_v24, %v797_v22  ;;  %v801_v32 = vadd.f32 %v800_v26, %v2491_v38 }
 0x183   : > { %v2016_v29 = vpack.c.bf16 %v1196_v25, %v1194_v23  ;;  %v802_v30 = vpop.f32.mrf.mxu0  ;;  %v1198_v33 = vadd.f32 %v1197_v27, %v2493_v39 }
 0x184   : > { %v1199_v31 = vpop.f32.mrf.mxu1  ;;  %1432 = vst [vmem:[%s2507_s25 + $0xe0] sm:$0xff] %v1984_v28  ;;  %v803_v34 = vadd.f32 %v802_v30, %v2495_v40 }
 0x185   : > { %1656 = vst [vmem:[%s2512_s21 + $0xe0] sm:$0xff] %v2016_v29  ;;  %v1200_v35 = vadd.f32 %v1199_v31, %v2497_v41  ;;  %v806_v36 = vpop.f32.mrf.mxu0 }
 0x186   : > { %v1203_v37 = vpop.f32.mrf.mxu1  ;;  %v1985_v42 = vpack.c.bf16 %v803_v34, %v801_v32  ;;  %v807_v46 = vadd.f32 %v806_v36, %v2491_v38 }
 0x187   : > { %v2017_v43 = vpack.c.bf16 %v1200_v35, %v1198_v33  ;;  %v808_v44 = vpop.f32.mrf.mxu0  ;;  %v1204_v47 = vadd.f32 %v1203_v37, %v2493_v39 }
 0x188   : > { %v1205_v45 = vpop.f32.mrf.mxu1  ;;  %1433 = vst [vmem:[%s2507_s25 + $0xe8] sm:$0xff] %v1985_v42  ;;  %v809_v48 = vadd.f32 %v808_v44, %v2495_v40 }
 0x189   : > { %1657 = vst [vmem:[%s2512_s21 + $0xe8] sm:$0xff] %v2017_v43  ;;  %v1206_v49 = vadd.f32 %v1205_v45, %v2497_v41  ;;  %v810_v50 = vpop.f32.mrf.mxu0 }
 0x18a   : > { %v1207_v51 = vpop.f32.mrf.mxu1  ;;  %v1986_v52 = vpack.c.bf16 %v809_v48, %v807_v46  ;;  %v811_v56 = vadd.f32 %v810_v50, %v2491_v38 }
 0x18b   : > { %v2018_v53 = vpack.c.bf16 %v1206_v49, %v1204_v47  ;;  %v812_v54 = vpop.f32.mrf.mxu0  ;;  %v1208_v57 = vadd.f32 %v1207_v51, %v2493_v39 }
 0x18c   : > { %v1209_v55 = vpop.f32.mrf.mxu1  ;;  %1434 = vst [vmem:[%s2507_s25 + $0xf0] sm:$0xff] %v1986_v52  ;;  %v813_v58 = vadd.f32 %v812_v54, %v2495_v40 }
 0x18d   : > { %1658 = vst [vmem:[%s2512_s21 + $0xf0] sm:$0xff] %v2018_v53  ;;  %v1210_v59 = vadd.f32 %v1209_v55, %v2497_v41 }
 0x18e   : > { %v1987_v60 = vpack.c.bf16 %v813_v58, %v811_v56 }
 0x18f   : > { %v2019_v61 = vpack.c.bf16 %v1210_v59, %v1208_v57 }
 0x190   : > { %1435 = vst [vmem:[%s2507_s25 + $0xf8] sm:$0xff] %v1987_v60 }
 0x191   : > { %1659 = vst [vmem:[%s2512_s21 + $0xf8] sm:$0xff] %v2019_v61 }
 0x192 PF: > { %s17_s23 = sadd.s32 1, %s2162_s23   ;;  %s2718_s21 = smov %s2158_s22 }
 0x193   : > { %p14_p5 = scmp.ge.s32.totalorder %s17_s23, 4   ;;  %s2719_s22 = smov %s2721_s24 }
 0x195   :  { %16 = sbr.rel (!%p14_p5) target bundleno = 2 (0x2), region = 82 }

// kernel: encoder_layer.3
= control target key start
LH: loop header
LB: loop body
LE: loop exit
PB: predicated region body
PF: predicated region fallthrough
CT: control target
= control target key end

     0   :  { %s15575_s0 = inlined_call_operand.vmem [shape: f32[2,256,256], index: 0, kind: input, shape index: {}]   ;;  %s15576_s1 = inlined_call_operand.vmem [shape: bf16[2,256,256], index: 1, kind: input, shape index: {}]   ;;  %s15577_s2 = inlined_call_operand.vmem [shape: bf16[2,256,256], index: 2, kind: input, shape index: {}]   ;;  %s15578_s3 = inlined_call_operand.vmem [shape: bf16[256,256], index: 3, kind: input, shape index: {}]   ;;  %s15579_s4 = inlined_call_operand.vmem [shape: f32[1,256], index: 4, kind: input, shape index: {}]   ;;  %s15580_s5 = inlined_call_operand.vmem [shape: bf16[256,256], index: 5, kind: input, shape index: {}]   ;;  %s15581_s6 = inlined_call_operand.vmem [shape: f32[1,256], index: 6, kind: input, shape index: {}]   ;;  %s15582_s7 = inlined_call_operand.vmem [shape: f32[1,256], index: 7, kind: input, shape index: {}]   ;;  %s15583_s8 = inlined_call_operand.vmem [shape: f32[1,256], index: 8, kind: input, shape index: {}]   ;;  %s15584_s9 = inlined_call_operand.vmem [shape: bf16[256,1024], index: 9, kind: input, shape index: {}]   ;;  %s15585_s10 = inlined_call_operand.vmem [shape: f32[1,1024], index: 10, kind: input, shape index: {}]   ;;  %s15586_s11 = inlined_call_operand.vmem [shape: bf16[1024,256], index: 11, kind: input, shape index: {}]   ;;  %s15587_s12 = inlined_call_operand.vmem [shape: f32[1,256], index: 12, kind: input, shape index: {}]   ;;  %s15588_s13 = inlined_call_operand.vmem [shape: f32[1,256], index: 13, kind: input, shape index: {}]   ;;  %s15589_s14 = inlined_call_operand.vmem [shape: f32[1,256], index: 14, kind: input, shape index: {}]   ;;  %s15590_s15 = inlined_call_operand.hbm [shape: f32[2,256,256], index: 15, kind: output, shape index: {}]  }
   0x1   :  { %15771 = sst [smem:[#allocation132_spill]] %s15587_s12 }
   0x2   :  { %15772 = sst [smem:[#allocation133_spill]] %s15588_s13 }
   0x3   :  { %15773 = sst [smem:[#allocation134_spill]] %s15589_s14 }
   0x4   :  { %15774 = sst [smem:[#allocation135_spill]] %s15590_s15 }
   0x5   :  { %20 = vsyncpa [#allocation7], 0 }
   0x6   :  { %22 = vsyncpa [#allocation7 + $0x1], 0  ;;  %s10215_s18 = smov 0   ;;  %s10217_s19 = smov 0  }
   0x7   :  { %s10219_s20 = smov 0   ;;  %s10221_s21 = smov 0  }
   0x8   :  { %s10223_s22 = smov 0   ;;  %s10225_s23 = smov 0  }
   0x9   :  { %s10227_s24 = smov 0   ;;  %s10229_s25 = smov 0  }
   0xa   :  { %s10231_s26 = smov 0   ;;  %s10233_s27 = smov 0  }
   0xb LB: > { %15775 = sst [smem:[#allocation9_spill]] %s10090_s18  ;;  %s8356_s28 = sadd.s32 4294967295, %s10126_s27   ;;  %s10126_s27 = sphi %s10233_s27, %s28_s27   ;;  %s10122_s26 = sphi %s10231_s26, %s16263_s26   ;;  %s10118_s25 = sphi %s10229_s25, %s16262_s25   ;;  %s10114_s24 = sphi %s10227_s24, %s16261_s24   ;;  %s10110_s23 = sphi %s10225_s23, %s16260_s23   ;;  %s10106_s22 = sphi %s10223_s22, %s16259_s22   ;;  %s10102_s21 = sphi %s10221_s21, %s16258_s21   ;;  %s10098_s20 = sphi %s10219_s20, %s16257_s20   ;;  %s10094_s19 = sphi %s10217_s19, %s16256_s19   ;;  %s10090_s18 = sphi %s10215_s18, %s16255_s18  }
   0xc   : > { %15776 = sst [smem:[#allocation10_spill]] %s10094_s19  ;;  %s8357_s29 = sadd.s32 4294967294, %s10126_s27  }
   0xd   : > { %15777 = sst [smem:[#allocation11_spill]] %s10098_s20  ;;  %s40_s30 = sadd.s32 1, %s10114_s24 }
   0xe   : > { %15778 = sst [smem:[#allocation12_spill]] %s10106_s22  ;;  %p41_p0 = scmp.ge.s32.totalorder %s40_s30, 2 }
   0xf   : > { %15779 = sst [smem:[#allocation13_spill]] %s10110_s23  ;;  %s43_s16 = sadd.s32 1, %s10118_s25 }
  0x10   : > { %15780 = sst [smem:[#allocation14_spill]] %s10114_s24  ;;  %s47_s17 = sadd.s32 1, %s10122_s26 }
  0x11   : > { %15781 = sst [smem:[#allocation15_spill]] %s10118_s25  ;;  %p402_p1 = scmp.ne.s32.totalorder %s10098_s20, %s10094_s19 }
  0x12   : > { %15782 = sst [smem:[#allocation16_spill]] %s10122_s26  ;;  %s16265_s30 = smov (%p41_p0, %s40_s30), 0 }
  0x13   : > { %15783 = sst [smem:[#allocation17_spill]] %s10126_s27  ;;  %s16267_s16 = smov (!%p41_p0, %s43_s16), %s10118_s25 }
  0x14   : > { %15784 = sst [smem:[#allocation18_spill]] %s16265_s30  ;;  %p403_p2 = scmp.eq.s32.totalorder %s8356_s28, 7 }
  0x15   : > { %p408_p3 = scmp.ne.s32.totalorder %s10094_s19, %s10090_s18  ;;  %p45_p4 = scmp.ge.s32.totalorder %s16267_s16, 2 }
  0x16   : > { %p409_p5 = scmp.eq.s32.totalorder %s8357_s29, 7  ;;  %p10277_p6 = por %p403_p2, %p402_p1 }
  0x17   : > { %s16269_s16 = smov (%p45_p4, %s16267_s16), 0  ;;  %s16271_s17 = smov (!%p45_p4, %s47_s17), %s10122_s26 }
  0x18   : > { %s15785_s15 = scalar_select %p10277_p6, 1, 0 }
  0x19   : > { %15787 = sst [smem:[#allocation20_spill]] %s16269_s16  ;;  %p10284_p7 = por %p409_p5, %p408_p3 }
  0x1a   : > { %15786 = sst [smem:[#allocation19_spill]] %s15785_s15  ;;  %p8360_p8 = scmp.ge.s32.totalorder %s10126_s27, 1 }
  0x1b   : > { %s15788_s24 = scalar_select %p10284_p7, 1, 0 }
  0x1c   : > { %p49_p9 = scmp.ge.s32.totalorder %s16271_s17, 2  ;;  %p505_p10 = scmp.lt.s32.totalorder %s10126_s27, 9 }
  0x1d   : > { %15789 = sst [smem:[#allocation21_spill]] %s15788_s24  ;;  %s388_s28 = ssub.s32 %s10118_s25, %s16269_s16 }
  0x1e   : > { %s16273_s17 = smov (%p49_p9, %s16271_s17), 0  ;;  %p506_p11 = pnand %p8360_p8, %p505_p10 }
  0x1f   : > { %15790 = sst [smem:[#allocation22_spill]] %s16273_s17  ;;  %s387_s29 = ssub.s32 %s10122_s26, %s16273_s17 }
  0x20   : > { %s389_s30 = sor.u32 %s388_s28, %s387_s29  ;;  %s392_s18 = sadd.s32 1, %s10098_s20 }
  0x21   : > { %p390_p12 = scmp.eq.s32.totalorder %s389_s30, 0  ;;  %509 = sbr.rel (%p506_p11) target bundleno = 3448 (0xd78), region = 80 }
  0x23   : > { %s10298_s15 = scalar_select %p390_p12, %s10098_s20, %s392_s18  }
  0x25   : > { %15791 = sst [smem:[#allocation23_spill]] %s10298_s15 }
  0x26   : > { %s15606_s24 = sand.u32 1, %s10094_s19   ;;  %s8362_s27 = sshll.u32 %s10106_s22, 4 }
  0x27   : > { %s8361_s16 = sshll.u32 %s15606_s24, 8  ;;  %p579_p13 = scmp.lt.s32.totalorder %s10110_s23, 1 }
  0x28   : > { %p581_p0 = scmp.lt.s32.totalorder %s8362_s27, 31  ;;  %s8366_s29 = sshll.u32 %s10102_s21, 4 }
  0x29   : > { %s580_s25 = scalar_select %p579_p13, %s10110_s23, 1 }
  0x2a   : > { %s16275_s27 = smov (!%p581_p0, %s8362_s27), 31  ;;  %p592_p1 = scmp.lt.s32.totalorder %s8366_s29, 31 }
  0x2b   : > { %s8364_s28 = sshll.u32 %s580_s25, 6  ;;  %s8363_s30 = sshll.u32 %s16275_s27, 1 }
  0x2c   : > { %s585_s18 = sadd.s32 %s8364_s28, %s8363_s30  ;;  %s16277_s29 = smov (!%p592_p1, %s8366_s29), 31 }
  0x2d   : > { %s8365_s17 = sshll.u32 %s585_s18, 3  ;;  %s8367_s14 = sshll.u32 %s16277_s29, 1 }
  0x2e   : > { %s10310_s20 = scalar_lea.vmem %s15575_s0, %s8365_s17  ;;  %s596_s22 = sadd.s32 %s8367_s14, %s8364_s28 }
  0x2f   : > { %s8369_s19 = sshll.u32 %s596_s22, 2  ;;  %s10322_s30 = scalar_lea.vmem [#allocation6], %s8361_s16 }
  0x30   : > { %s10315_s23 = scalar_lea.vmem %s15576_s1, %s8369_s19  ;;  %s10320_s27 = scalar_lea.vmem %s15577_s2, %s8369_s19 }
  0x31   : > { %p8374_p2 = scmp.ne.s32.totalorder %s10102_s21, 0 }
  0x33   : > { %616 = sbr.rel (%p8374_p2) target bundleno = 349 (0x15d), region = 84 }
  0x38   : > { %v9133_v0 = vld [vmem:[%s15578_s3 + $0x74] ss:$8 sps:$4 sm:$0xff]   ;;  %v9135_v1 = vld [vmem:[%s15578_s3 + $0x70] ss:$8 sps:$4 sm:$0xff]   ;;  %v9136_v2 = vld [vmem:[%s15578_s3 + $0x64] ss:$8 sps:$4 sm:$0xff]  }
  0x39   : > { %869 = vmatprep.subr.bf16.mxu0 %v9133_v0  ;;  %8976 = vmatprep.subr.bf16.mxu1 %v9133_v0  ;;  %v9138_v3 = vld [vmem:[%s15578_s3 + $0x60] ss:$8 sps:$4 sm:$0xff]   ;;  %v9139_v4 = vld [vmem:[%s15578_s3 + $0x54] ss:$8 sps:$4 sm:$0xff]   ;;  %v9141_v5 = vld [vmem:[%s15578_s3 + $0x50] ss:$8 sps:$4 sm:$0xff]  }
  0x3a   : > { %870 = vmatpush1.bf16.msra.mxu0 %v9135_v1  ;;  %8992 = vmatpush1.bf16.msra.mxu1 %v9135_v1  ;;  %v9142_v6 = vld [vmem:[%s15578_s3 + $0x44] ss:$8 sps:$4 sm:$0xff]   ;;  %v9144_v7 = vld [vmem:[%s15578_s3 + $0x40] ss:$8 sps:$4 sm:$0xff]   ;;  %v9145_v8 = vld [vmem:[%s15578_s3 + $0x34] ss:$8 sps:$4 sm:$0xff]  }
  0x3b   : > { %871 = vmatprep.subr.bf16.mxu0 %v9136_v2  ;;  %8977 = vmatprep.subr.bf16.mxu1 %v9136_v2  ;;  %v9147_v9 = vld [vmem:[%s15578_s3 + $0x30] ss:$8 sps:$4 sm:$0xff]   ;;  %v9148_v10 = vld [vmem:[%s15578_s3 + $0x24] ss:$8 sps:$4 sm:$0xff]   ;;  %v9150_v11 = vld [vmem:[%s15578_s3 + $0x20] ss:$8 sps:$4 sm:$0xff]  }
  0x3c   : > { %v9151_v12 = vld [vmem:[%s15578_s3 + $0x14] ss:$8 sps:$4 sm:$0xff]   ;;  %v618_v13 = vld [vmem:[%s10310_s20 + $0x8] sm:$0xff]  ;;  %v9153_v18 = vld [vmem:[%s15578_s3 + $0x10] ss:$8 sps:$4 sm:$0xff]   ;;  %vm1094_vm0 = vcmask 7168  }
  0x3d   : > { %v620_v14 = vld [vmem:[%s10310_s20 + $0x18] sm:$0xff]  ;;  %v634_v16 = vld [vmem:[%s10310_s20 + $0x88] sm:$0xff]  ;;  %v617_v38 = vld [vmem:[%s10310_s20] sm:$0xff] }
  0x3e   : > { %872 = vmatpush1.bf16.msra.mxu0 %v9138_v3  ;;  %8993 = vmatpush1.bf16.msra.mxu1 %v9138_v3  ;;  %v650_v15 = vpack.c.bf16 %v620_v14, %v618_v13  ;;  %v636_v17 = vld [vmem:[%s10310_s20 + $0x98] sm:$0xff]  ;;  %v9154_v20 = vld [vmem:[%s15578_s3 + $0x4] ss:$8 sps:$4 sm:$0xff]   ;;  %v9156_v21 = vld [vmem:[%s15578_s3] ss:$8 sps:$4 sm:$0xff]  }
  0x3f   : > { %873 = vmatprep.subr.bf16.mxu0 %v9139_v4  ;;  %8978 = vmatprep.subr.bf16.mxu1 %v9139_v4  ;;  %v658_v19 = vpack.c.bf16 %v636_v17, %v634_v16  ;;  %v9157_v22 = vld [vmem:[%s15578_s3 + $0xf4] ss:$8 sps:$4 sm:$0xff]   ;;  %v9159_v23 = vld [vmem:[%s15578_s3 + $0xf0] ss:$8 sps:$4 sm:$0xff]   ;;  %v9160_v24 = vld [vmem:[%s15578_s3 + $0xe4] ss:$8 sps:$4 sm:$0xff]  }
  0x40   : > { %901 = vmatprep.mubr.bf16.mxu0 %v650_v15  ;;  %v9162_v25 = vld [vmem:[%s15578_s3 + $0xe0] ss:$8 sps:$4 sm:$0xff]   ;;  %v9163_v26 = vld [vmem:[%s15578_s3 + $0xd4] ss:$8 sps:$4 sm:$0xff]   ;;  %v9165_v27 = vld [vmem:[%s15578_s3 + $0xd0] ss:$8 sps:$4 sm:$0xff]  }
  0x41   : > { %941 = vmatprep.mubr.bf16.mxu1 %v658_v19  ;;  %v9166_v28 = vld [vmem:[%s15578_s3 + $0xc4] ss:$8 sps:$4 sm:$0xff]   ;;  %v9168_v29 = vld [vmem:[%s15578_s3 + $0xc0] ss:$8 sps:$4 sm:$0xff]   ;;  %v9169_v30 = vld [vmem:[%s15578_s3 + $0xb4] ss:$8 sps:$4 sm:$0xff]  }
  0x42   : > { %874 = vmatpush1.bf16.msra.mxu0 %v9141_v5  ;;  %8994 = vmatpush1.bf16.msra.mxu1 %v9141_v5  ;;  %v9171_v31 = vld [vmem:[%s15578_s3 + $0xb0] ss:$8 sps:$4 sm:$0xff]   ;;  %v9172_v32 = vld [vmem:[%s15578_s3 + $0xa4] ss:$8 sps:$4 sm:$0xff]   ;;  %v9174_v33 = vld [vmem:[%s15578_s3 + $0xa0] ss:$8 sps:$4 sm:$0xff]  }
  0x43   : > { %875 = vmatprep.subr.bf16.mxu0 %v9142_v6  ;;  %8979 = vmatprep.subr.bf16.mxu1 %v9142_v6  ;;  %v9175_v34 = vld [vmem:[%s15578_s3 + $0x94] ss:$8 sps:$4 sm:$0xff]   ;;  %v9177_v35 = vld [vmem:[%s15578_s3 + $0x90] ss:$8 sps:$4 sm:$0xff]   ;;  %v9178_v36 = vld [vmem:[%s15578_s3 + $0x84] ss:$8 sps:$4 sm:$0xff]  }
  0x44   : > { %v9180_v37 = vld [vmem:[%s15578_s3 + $0x80] ss:$8 sps:$4 sm:$0xff]   ;;  %v619_v39 = vld [vmem:[%s10310_s20 + $0x10] sm:$0xff]  ;;  %v624_v43 = vld [vmem:[%s10310_s20 + $0x38] sm:$0xff]  ;;  %v10128_v16 = vmov -inf   ;;  %v10129_v17 = vmov 0.0  }
  0x45   : > { %v633_v40 = vld [vmem:[%s10310_s20 + $0x80] sm:$0xff]  ;;  %v635_v41 = vld [vmem:[%s10310_s20 + $0x90] sm:$0xff]  ;;  %v622_v42 = vld [vmem:[%s10310_s20 + $0x28] sm:$0xff]  ;;  %v649_v46 = vpack.c.bf16 %v619_v39, %v617_v38  ;;  %1095 = vst.msk [vmem:[#allocation4] sm:$0xff] %vm1094_vm0, %v10128_v16 }
  0x46   : > { %876 = vmatpush1.bf16.msra.mxu0 %v9144_v7  ;;  %8995 = vmatpush1.bf16.msra.mxu1 %v9144_v7  ;;  %v638_v44 = vld [vmem:[%s10310_s20 + $0xa8] sm:$0xff]  ;;  %v640_v45 = vld [vmem:[%s10310_s20 + $0xb8] sm:$0xff]  ;;  %v657_v47 = vpack.c.bf16 %v635_v41, %v633_v40  ;;  %v652_v48 = vpack.c.bf16 %v624_v43, %v622_v42  ;;  %v621_v50 = vld [vmem:[%s10310_s20 + $0x20] sm:$0xff]  ;;  %1096 = vst.msk [vmem:[#allocation4 + $0x8] sm:$0xff] %vm1094_vm0, %v10128_v16 }
  0x47   : > { %877 = vmatprep.subr.bf16.mxu0 %v9145_v8  ;;  %8980 = vmatprep.subr.bf16.mxu1 %v9145_v8  ;;  %v660_v49 = vpack.c.bf16 %v640_v45, %v638_v44  ;;  %v623_v51 = vld [vmem:[%s10310_s20 + $0x30] sm:$0xff]  ;;  %v637_v52 = vld [vmem:[%s10310_s20 + $0xa0] sm:$0xff]  ;;  %v626_v54 = vld [vmem:[%s10310_s20 + $0x48] sm:$0xff]  ;;  %1097 = vst.msk [vmem:[#allocation4 + $0x10] sm:$0xff] %vm1094_vm0, %v10128_v16 }
  0x48   : > { %v639_v53 = vld [vmem:[%s10310_s20 + $0xb0] sm:$0xff]  ;;  %v628_v55 = vld [vmem:[%s10310_s20 + $0x58] sm:$0xff]  ;;  %v642_v56 = vld [vmem:[%s10310_s20 + $0xc8] sm:$0xff]  ;;  %v651_v58 = vpack.c.bf16 %v623_v51, %v621_v50  ;;  %1098 = vst.msk [vmem:[#allocation4 + $0x18] sm:$0xff] %vm1094_vm0, %v10128_v16 }
  0x49   : > { %v644_v57 = vld [vmem:[%s10310_s20 + $0xd8] sm:$0xff]  ;;  %v659_v59 = vpack.c.bf16 %v639_v53, %v637_v52  ;;  %v654_v60 = vpack.c.bf16 %v628_v55, %v626_v54  ;;  %v625_v62 = vld [vmem:[%s10310_s20 + $0x40] sm:$0xff]  ;;  %v627_v63 = vld [vmem:[%s10310_s20 + $0x50] sm:$0xff]  ;;  %1099 = vst.msk [vmem:[#allocation4 + $0x20] sm:$0xff] %vm1094_vm0, %v10128_v16 }
  0x4a   : > { %878 = vmatpush1.bf16.msra.mxu0 %v9147_v9  ;;  %8996 = vmatpush1.bf16.msra.mxu1 %v9147_v9  ;;  %v662_v61 = vpack.c.bf16 %v644_v57, %v642_v56  ;;  %v641_v0 = vld [vmem:[%s10310_s20 + $0xc0] sm:$0xff]  ;;  %v643_v1 = vld [vmem:[%s10310_s20 + $0xd0] sm:$0xff]  ;;  %v630_v2 = vld [vmem:[%s10310_s20 + $0x68] sm:$0xff]  ;;  %v653_v6 = vpack.c.bf16 %v627_v63, %v625_v62  ;;  %1100 = vst.msk [vmem:[#allocation4 + $0x28] sm:$0xff] %vm1094_vm0, %v10128_v16 }
  0x4b   : > { %879 = vmatprep.subr.bf16.mxu0 %v9148_v10  ;;  %8981 = vmatprep.subr.bf16.mxu1 %v9148_v10  ;;  %v632_v3 = vld [vmem:[%s10310_s20 + $0x78] sm:$0xff]  ;;  %v646_v4 = vld [vmem:[%s10310_s20 + $0xe8] sm:$0xff]  ;;  %v661_v7 = vpack.c.bf16 %v643_v1, %v641_v0  ;;  %v629_v10 = vld [vmem:[%s10310_s20 + $0x60] sm:$0xff]  ;;  %1101 = vst.msk [vmem:[#allocation4 + $0x30] sm:$0xff] %vm1094_vm0, %v10128_v16 }
  0x4c   : > { %v648_v5 = vld [vmem:[%s10310_s20 + $0xf8] sm:$0xff]  ;;  %v656_v8 = vpack.c.bf16 %v632_v3, %v630_v2  ;;  %v647_v13 = vld [vmem:[%s10310_s20 + $0xf0] sm:$0xff]  ;;  %1102 = vst.msk [vmem:[#allocation4 + $0x38] sm:$0xff] %vm1094_vm0, %v10128_v16  ;;  %1103 = vst.msk [vmem:[#allocation4 + $0x40] sm:$0xff] %vm1094_vm0, %v10128_v16 }
  0x4d   : > { %v664_v9 = vpack.c.bf16 %v648_v5, %v646_v4  ;;  %1104 = vst.msk [vmem:[#allocation4 + $0x48] sm:$0xff] %vm1094_vm0, %v10128_v16  ;;  %1105 = vst.msk [vmem:[#allocation4 + $0x50] sm:$0xff] %vm1094_vm0, %v10128_v16 }
  0x4e   : > { %880 = vmatpush1.bf16.msra.mxu0 %v9150_v11  ;;  %8997 = vmatpush1.bf16.msra.mxu1 %v9150_v11  ;;  %v631_v11 = vld [vmem:[%s10310_s20 + $0x70] sm:$0xff]  ;;  %1106 = vst.msk [vmem:[#allocation4 + $0x58] sm:$0xff] %vm1094_vm0, %v10128_v16  ;;  %1107 = vst.msk [vmem:[#allocation4 + $0x60] sm:$0xff] %vm1094_vm0, %v10128_v16 }
  0x4f   : > { %881 = vmatprep.subr.bf16.mxu0 %v9151_v12  ;;  %8982 = vmatprep.subr.bf16.mxu1 %v9151_v12  ;;  %v645_v12 = vld [vmem:[%s10310_s20 + $0xe0] sm:$0xff]  ;;  %v655_v14 = vpack.c.bf16 %v631_v11, %v629_v10  ;;  %1108 = vst.msk [vmem:[#allocation4 + $0x68] sm:$0xff] %vm1094_vm0, %v10128_v16  ;;  %1109 = vst.msk [vmem:[#allocation4 + $0x70] sm:$0xff] %vm1094_vm0, %v10128_v16 }
  0x50   : > { %v663_v15 = vpack.c.bf16 %v647_v13, %v645_v12  ;;  %1110 = vst.msk [vmem:[#allocation4 + $0x78] sm:$0xff] %vm1094_vm0, %v10128_v16  ;;  %1111 = vst.msk [vmem:[#allocation4 + $0x80] sm:$0xff] %vm1094_vm0, %v10128_v16 }
  0x51   : > { %1112 = vst.msk [vmem:[#allocation4 + $0x88] sm:$0xff] %vm1094_vm0, %v10128_v16  ;;  %1113 = vst.msk [vmem:[#allocation4 + $0x90] sm:$0xff] %vm1094_vm0, %v10128_v16 }
  0x52   : > { %882 = vmatpush1.bf16.msra.mxu0 %v9153_v18  ;;  %8998 = vmatpush1.bf16.msra.mxu1 %v9153_v18  ;;  %1114 = vst.msk [vmem:[#allocation4 + $0x98] sm:$0xff] %vm1094_vm0, %v10128_v16  ;;  %1115 = vst.msk [vmem:[#allocation4 + $0xa0] sm:$0xff] %vm1094_vm0, %v10128_v16  ;;  %v699_v18 = vlaneseq }
  0x53   : > { %883 = vmatprep.subr.bf16.mxu0 %v9154_v20  ;;  %8983 = vmatprep.subr.bf16.mxu1 %v9154_v20  ;;  %1116 = vst.msk [vmem:[#allocation4 + $0xa8] sm:$0xff] %vm1094_vm0, %v10128_v16  ;;  %1117 = vst.msk [vmem:[#allocation4 + $0xb0] sm:$0xff] %vm1094_vm0, %v10128_v16 }
  0x54   : > { %1118 = vst.msk [vmem:[#allocation4 + $0xb8] sm:$0xff] %vm1094_vm0, %v10128_v16  ;;  %1119 = vst.msk [vmem:[#allocation4 + $0xc0] sm:$0xff] %vm1094_vm0, %v10128_v16  ;;  %v700_v19 = vshrl.u32 %v699_v18, 7 }
  0x55   : > { %1120 = vst.msk [vmem:[#allocation4 + $0xc8] sm:$0xff] %vm1094_vm0, %v10128_v16  ;;  %1121 = vst.msk [vmem:[#allocation4 + $0xd0] sm:$0xff] %vm1094_vm0, %v10128_v16 }
  0x56   : > { %884 = vmatpush1.bf16.msra.mxu0 %v9156_v21  ;;  %8999 = vmatpush1.bf16.msra.mxu1 %v9156_v21  ;;  %1122 = vst.msk [vmem:[#allocation4 + $0xd8] sm:$0xff] %vm1094_vm0, %v10128_v16  ;;  %1123 = vst.msk [vmem:[#allocation4 + $0xe0] sm:$0xff] %vm1094_vm0, %v10128_v16  ;;  %v701_v20 = vsub.s32 0, %v700_v19  ;;  %v705_v21 = vsub.s32 1, %v700_v19 }
  0x57   : > { %885 = vmatprep.subr.bf16.mxu0 %v9157_v22  ;;  %8984 = vmatprep.subr.bf16.mxu1 %v9157_v22  ;;  %1124 = vst.msk [vmem:[#allocation4 + $0xe8] sm:$0xff] %vm1094_vm0, %v10128_v16  ;;  %1125 = vst.msk [vmem:[#allocation4 + $0xf0] sm:$0xff] %vm1094_vm0, %v10128_v16  ;;  %v697_v22 = vld [vmem:[%s15579_s4] sm:$0x3] }
  0x58   : > { %1126 = vst.msk [vmem:[#allocation4 + $0xf8] sm:$0xff] %vm1094_vm0, %v10128_v16  ;;  %1127 = vst.msk [vmem:[#allocation5] sm:$0xff] %vm1094_vm0, %v10129_v17 }
  0x59   : > { %1128 = vst.msk [vmem:[#allocation5 + $0x8] sm:$0xff] %vm1094_vm0, %v10129_v17  ;;  %1129 = vst.msk [vmem:[#allocation5 + $0x10] sm:$0xff] %vm1094_vm0, %v10129_v17 }
  0x5a   : > { %886 = vmatpush2.bf16.msra.mxu0 %v9159_v23  ;;  %9000 = vmatpush2.bf16.msra.mxu1 %v9159_v23  ;;  %1130 = vst.msk [vmem:[#allocation5 + $0x18] sm:$0xff] %vm1094_vm0, %v10129_v17  ;;  %1131 = vst.msk [vmem:[#allocation5 + $0x20] sm:$0xff] %vm1094_vm0, %v10129_v17  ;;  %v10584_v23 = vrot.slane %v697_v22, %v701_v20 }
  0x5b   : > { %887 = vmatprep.subr.bf16.mxu0 %v9160_v24  ;;  %8985 = vmatprep.subr.bf16.mxu1 %v9160_v24  ;;  %1132 = vst.msk [vmem:[#allocation5 + $0x28] sm:$0xff] %vm1094_vm0, %v10129_v17  ;;  %1133 = vst.msk [vmem:[#allocation5 + $0x30] sm:$0xff] %vm1094_vm0, %v10129_v17  ;;  %v10586_v24 = vrot.slane %v697_v22, %v705_v21 }
  0x5c   : > { %1134 = vst.msk [vmem:[#allocation5 + $0x38] sm:$0xff] %vm1094_vm0, %v10129_v17  ;;  %1135 = vst.msk [vmem:[#allocation5 + $0x40] sm:$0xff] %vm1094_vm0, %v10129_v17 }
  0x5d   : > { %1136 = vst.msk [vmem:[#allocation5 + $0x48] sm:$0xff] %vm1094_vm0, %v10129_v17  ;;  %1137 = vst.msk [vmem:[#allocation5 + $0x50] sm:$0xff] %vm1094_vm0, %v10129_v17 }
  0x5e   : > { %888 = vmatpush2.bf16.msra.mxu0 %v9162_v25  ;;  %9001 = vmatpush2.bf16.msra.mxu1 %v9162_v25  ;;  %1138 = vst.msk [vmem:[#allocation5 + $0x58] sm:$0xff] %vm1094_vm0, %v10129_v17  ;;  %1139 = vst.msk [vmem:[#allocation5 + $0x60] sm:$0xff] %vm1094_vm0, %v10129_v17 }
  0x5f   : > { %889 = vmatprep.subr.bf16.mxu0 %v9163_v26  ;;  %8986 = vmatprep.subr.bf16.mxu1 %v9163_v26  ;;  %1140 = vst.msk [vmem:[#allocation5 + $0x68] sm:$0xff] %vm1094_vm0, %v10129_v17  ;;  %1141 = vst.msk [vmem:[#allocation5 + $0x70] sm:$0xff] %vm1094_vm0, %v10129_v17 }
  0x60   : > { %1142 = vst.msk [vmem:[#allocation5 + $0x78] sm:$0xff] %vm1094_vm0, %v10129_v17  ;;  %1143 = vst.msk [vmem:[#allocation5 + $0x80] sm:$0xff] %vm1094_vm0, %v10129_v17 }
  0x61   : > { %1144 = vst.msk [vmem:[#allocation5 + $0x88] sm:$0xff] %vm1094_vm0, %v10129_v17  ;;  %1145 = vst.msk [vmem:[#allocation5 + $0x90] sm:$0xff] %vm1094_vm0, %v10129_v17 }
  0x62   : > { %890 = vmatpush2.bf16.msra.mxu0 %v9165_v27  ;;  %9002 = vmatpush2.bf16.msra.mxu1 %v9165_v27  ;;  %1146 = vst.msk [vmem:[#allocation5 + $0x98] sm:$0xff] %vm1094_vm0, %v10129_v17  ;;  %1147 = vst.msk [vmem:[#allocation5 + $0xa0] sm:$0xff] %vm1094_vm0, %v10129_v17 }
  0x63   : > { %891 = vmatprep.subr.bf16.mxu0 %v9166_v28  ;;  %8987 = vmatprep.subr.bf16.mxu1 %v9166_v28  ;;  %1148 = vst.msk [vmem:[#allocation5 + $0xa8] sm:$0xff] %vm1094_vm0, %v10129_v17  ;;  %1149 = vst.msk [vmem:[#allocation5 + $0xb0] sm:$0xff] %vm1094_vm0, %v10129_v17 }
  0x64   : > { %1150 = vst.msk [vmem:[#allocation5 + $0xb8] sm:$0xff] %vm1094_vm0, %v10129_v17  ;;  %1151 = vst.msk [vmem:[#allocation5 + $0xc0] sm:$0xff] %vm1094_vm0, %v10129_v17 }
  0x65   : > { %1152 = vst.msk [vmem:[#allocation5 + $0xc8] sm:$0xff] %vm1094_vm0, %v10129_v17  ;;  %1153 = vst.msk [vmem:[#allocation5 + $0xd0] sm:$0xff] %vm1094_vm0, %v10129_v17 }
  0x66   : > { %892 = vmatpush2.bf16.msra.mxu0 %v9168_v29  ;;  %9003 = vmatpush2.bf16.msra.mxu1 %v9168_v29  ;;  %1154 = vst.msk [vmem:[#allocation5 + $0xd8] sm:$0xff] %vm1094_vm0, %v10129_v17  ;;  %1155 = vst.msk [vmem:[#allocation5 + $0xe0] sm:$0xff] %vm1094_vm0, %v10129_v17 }
  0x67   : > { %893 = vmatprep.subr.bf16.mxu0 %v9169_v30  ;;  %8988 = vmatprep.subr.bf16.mxu1 %v9169_v30  ;;  %1156 = vst.msk [vmem:[#allocation5 + $0xe8] sm:$0xff] %vm1094_vm0, %v10129_v17  ;;  %1157 = vst.msk [vmem:[#allocation5 + $0xf0] sm:$0xff] %vm1094_vm0, %v10129_v17 }
  0x68   : > { %1158 = vst.msk [vmem:[#allocation5 + $0xf8] sm:$0xff] %vm1094_vm0, %v10129_v17  ;;  %1159 = vst [vmem:[#allocation3 + $0xb0] sm:$0xff] %v10129_v17 }
  0x69   : > { %1160 = vst [vmem:[#allocation3] sm:$0xff] %v10129_v17  ;;  %1161 = vst [vmem:[#allocation3 + $0xd8] sm:$0xff] %v10129_v17 }
  0x6a   : > { %894 = vmatpush2.bf16.msra.mxu0 %v9171_v31  ;;  %9004 = vmatpush2.bf16.msra.mxu1 %v9171_v31  ;;  %1162 = vst [vmem:[#allocation3 + $0x18] sm:$0xff] %v10129_v17  ;;  %1163 = vst [vmem:[#allocation3 + $0x50] sm:$0xff] %v10129_v17 }
  0x6b   : > { %895 = vmatprep.subr.bf16.mxu0 %v9172_v32  ;;  %8989 = vmatprep.subr.bf16.mxu1 %v9172_v32  ;;  %1164 = vst [vmem:[#allocation3 + $0x68] sm:$0xff] %v10129_v17  ;;  %1165 = vst [vmem:[#allocation3 + $0x30] sm:$0xff] %v10129_v17 }
  0x6c   : > { %1166 = vst [vmem:[#allocation3 + $0x48] sm:$0xff] %v10129_v17  ;;  %1167 = vst [vmem:[#allocation3 + $0x80] sm:$0xff] %v10129_v17 }
  0x6d   : > { %1168 = vst [vmem:[#allocation3 + $0x88] sm:$0xff] %v10129_v17  ;;  %1169 = vst [vmem:[#allocation3 + $0xe8] sm:$0xff] %v10129_v17 }
  0x6e   : > { %896 = vmatpush2.bf16.msra.mxu0 %v9174_v33  ;;  %9005 = vmatpush2.bf16.msra.mxu1 %v9174_v33  ;;  %1170 = vst [vmem:[#allocation3 + $0xb8] sm:$0xff] %v10129_v17  ;;  %1171 = vst [vmem:[#allocation3 + $0x60] sm:$0xff] %v10129_v17 }
  0x6f   : > { %897 = vmatprep.subr.bf16.mxu0 %v9175_v34  ;;  %8990 = vmatprep.subr.bf16.mxu1 %v9175_v34  ;;  %1172 = vst [vmem:[#allocation3 + $0xf0] sm:$0xff] %v10129_v17  ;;  %1173 = vst [vmem:[#allocation3 + $0x8] sm:$0xff] %v10129_v17 }
  0x70   : > { %1174 = vst [vmem:[#allocation3 + $0x78] sm:$0xff] %v10129_v17  ;;  %1175 = vst [vmem:[#allocation3 + $0x38] sm:$0xff] %v10129_v17 }
  0x71   : > { %1176 = vst [vmem:[#allocation3 + $0x58] sm:$0xff] %v10129_v17  ;;  %1177 = vst [vmem:[#allocation3 + $0x40] sm:$0xff] %v10129_v17 }
  0x72   : > { %898 = vmatpush2.bf16.msra.mxu0 %v9177_v35  ;;  %9006 = vmatpush2.bf16.msra.mxu1 %v9177_v35  ;;  %1178 = vst [vmem:[#allocation3 + $0xc8] sm:$0xff] %v10129_v17  ;;  %1179 = vst [vmem:[#allocation3 + $0xe0] sm:$0xff] %v10129_v17 }
  0x73   : > { %899 = vmatprep.subr.bf16.mxu0 %v9178_v36  ;;  %8991 = vmatprep.subr.bf16.mxu1 %v9178_v36  ;;  %1180 = vst [vmem:[#allocation3 + $0x90] sm:$0xff] %v10129_v17  ;;  %1181 = vst [vmem:[#allocation3 + $0x70] sm:$0xff] %v10129_v17 }
  0x74   : > { %1182 = vst [vmem:[#allocation3 + $0xc0] sm:$0xff] %v10129_v17  ;;  %1183 = vst [vmem:[#allocation3 + $0xa8] sm:$0xff] %v10129_v17 }
  0x75   : > { %1184 = vst [vmem:[#allocation3 + $0xd0] sm:$0xff] %v10129_v17  ;;  %1185 = vst [vmem:[#allocation3 + $0x10] sm:$0xff] %v10129_v17 }
  0x76   : > { %900 = vmatpush2.bf16.msra.mxu0 %v9180_v37  ;;  %9007 = vmatpush2.bf16.msra.mxu1 %v9180_v37  ;;  %1186 = vst [vmem:[#allocation3 + $0x28] sm:$0xff] %v10129_v17  ;;  %1187 = vst [vmem:[#allocation3 + $0xa0] sm:$0xff] %v10129_v17 }
  0x77   : > { %1188 = vst [vmem:[#allocation3 + $0xf8] sm:$0xff] %v10129_v17  ;;  %1189 = vst [vmem:[#allocation3 + $0x20] sm:$0xff] %v10129_v17 }
  0x78   : > { %1190 = vst [vmem:[#allocation3 + $0x98] sm:$0xff] %v10129_v17 }
  0x79   : > { %902 = vmatmul.mubr.bf16.vlgmr.msra.gmra.mxu0 %v649_v46  ;;  %942 = vmatmul.mubr.bf16.vlgmr.msra.gmra.mxu1 %v657_v47 }
  0x7a   : > { %911 = vmatprep.mubr.bf16.mxu0 %v652_v48  ;;  %951 = vmatprep.mubr.bf16.mxu1 %v660_v49 }
  0x81   : > { %912 = vmatmul.mubr.bf16.gmra.mxu0 %v651_v58  ;;  %952 = vmatmul.mubr.bf16.gmra.mxu1 %v659_v59 }
  0x82   : > { %921 = vmatprep.mubr.bf16.mxu0 %v654_v60  ;;  %961 = vmatprep.mubr.bf16.mxu1 %v662_v61 }
  0x89   : > { %922 = vmatmul.mubr.bf16.gmra.mxu0 %v653_v6  ;;  %962 = vmatmul.mubr.bf16.gmra.mxu1 %v661_v7 }
  0x8a   : > { %931 = vmatprep.mubr.bf16.mxu0 %v656_v8  ;;  %971 = vmatprep.mubr.bf16.mxu1 %v664_v9 }
  0x91   : > { %932 = vmatmul.mubr.bf16.gmra.mxu0 %v655_v14  ;;  %972 = vmatmul.mubr.bf16.gmra.mxu1 %v663_v15 }
 0x139   : > { %v903_v25 = vpop.f32.mrf.mxu0  ;;  %v943_v26 = vpop.f32.mrf.mxu1 }
 0x13a   : > { %v904_v29 = vadd.f32 %v903_v25, %v10584_v23  ;;  %v944_v30 = vadd.f32 %v943_v26, %v10584_v23 }
 0x13b   : > { %v905_v27 = vpop.f32.mrf.mxu0  ;;  %v945_v28 = vpop.f32.mrf.mxu1 }
 0x13c   : > { %v906_v31 = vadd.f32 %v905_v27, %v10586_v24  ;;  %v946_v32 = vadd.f32 %v945_v28, %v10586_v24 }
 0x13d   : > { %v907_v33 = vpop.f32.mrf.mxu0  ;;  %v947_v34 = vpop.f32.mrf.mxu1 }
 0x13e   : > { %v8767_v35 = vpack.c.bf16 %v906_v31, %v904_v29  ;;  %v8775_v36 = vpack.c.bf16 %v946_v32, %v944_v30  ;;  %v908_v39 = vadd.f32 %v907_v33, %v10584_v23  ;;  %v948_v40 = vadd.f32 %v947_v34, %v10584_v23 }
 0x13f   : > { %v909_v37 = vpop.f32.mrf.mxu0  ;;  %v949_v38 = vpop.f32.mrf.mxu1 }
 0x140   : > { %1078 = vst [vmem:[#allocation2] sm:$0xff] %v8767_v35  ;;  %1086 = vst [vmem:[#allocation2 + $0x40] sm:$0xff] %v8775_v36  ;;  %v910_v41 = vadd.f32 %v909_v37, %v10586_v24  ;;  %v950_v42 = vadd.f32 %v949_v38, %v10586_v24 }
 0x141   : > { %v913_v43 = vpop.f32.mrf.mxu0  ;;  %v953_v44 = vpop.f32.mrf.mxu1 }
 0x142   : > { %v8768_v45 = vpack.c.bf16 %v910_v41, %v908_v39  ;;  %v8776_v46 = vpack.c.bf16 %v950_v42, %v948_v40  ;;  %v914_v49 = vadd.f32 %v913_v43, %v10584_v23  ;;  %v954_v50 = vadd.f32 %v953_v44, %v10584_v23 }
 0x143   : > { %v915_v47 = vpop.f32.mrf.mxu0  ;;  %v955_v48 = vpop.f32.mrf.mxu1 }
 0x144   : > { %1079 = vst [vmem:[#allocation2 + $0x8] sm:$0xff] %v8768_v45  ;;  %1087 = vst [vmem:[#allocation2 + $0x48] sm:$0xff] %v8776_v46  ;;  %v916_v51 = vadd.f32 %v915_v47, %v10586_v24  ;;  %v956_v52 = vadd.f32 %v955_v48, %v10586_v24 }
 0x145   : > { %v917_v53 = vpop.f32.mrf.mxu0  ;;  %v957_v54 = vpop.f32.mrf.mxu1 }
 0x146   : > { %v8769_v55 = vpack.c.bf16 %v916_v51, %v914_v49  ;;  %v8777_v56 = vpack.c.bf16 %v956_v52, %v954_v50  ;;  %v918_v59 = vadd.f32 %v917_v53, %v10584_v23  ;;  %v958_v60 = vadd.f32 %v957_v54, %v10584_v23 }
 0x147   : > { %v919_v57 = vpop.f32.mrf.mxu0  ;;  %v959_v58 = vpop.f32.mrf.mxu1 }
 0x148   : > { %1080 = vst [vmem:[#allocation2 + $0x10] sm:$0xff] %v8769_v55  ;;  %1088 = vst [vmem:[#allocation2 + $0x50] sm:$0xff] %v8777_v56  ;;  %v920_v61 = vadd.f32 %v919_v57, %v10586_v24  ;;  %v960_v62 = vadd.f32 %v959_v58, %v10586_v24 }
 0x149   : > { %v923_v63 = vpop.f32.mrf.mxu0  ;;  %v963_v0 = vpop.f32.mrf.mxu1 }
 0x14a   : > { %v8770_v1 = vpack.c.bf16 %v920_v61, %v918_v59  ;;  %v8778_v2 = vpack.c.bf16 %v960_v62, %v958_v60  ;;  %v924_v5 = vadd.f32 %v923_v63, %v10584_v23  ;;  %v964_v6 = vadd.f32 %v963_v0, %v10584_v23 }
 0x14b   : > { %v925_v3 = vpop.f32.mrf.mxu0  ;;  %v965_v4 = vpop.f32.mrf.mxu1 }
 0x14c   : > { %1081 = vst [vmem:[#allocation2 + $0x18] sm:$0xff] %v8770_v1  ;;  %1089 = vst [vmem:[#allocation2 + $0x58] sm:$0xff] %v8778_v2  ;;  %v926_v7 = vadd.f32 %v925_v3, %v10586_v24  ;;  %v966_v8 = vadd.f32 %v965_v4, %v10586_v24 }
 0x14d   : > { %v927_v9 = vpop.f32.mrf.mxu0  ;;  %v967_v10 = vpop.f32.mrf.mxu1 }
 0x14e   : > { %v8771_v11 = vpack.c.bf16 %v926_v7, %v924_v5  ;;  %v8779_v12 = vpack.c.bf16 %v966_v8, %v964_v6  ;;  %v928_v15 = vadd.f32 %v927_v9, %v10584_v23  ;;  %v968_v16 = vadd.f32 %v967_v10, %v10584_v23 }
 0x14f   : > { %v929_v13 = vpop.f32.mrf.mxu0  ;;  %v969_v14 = vpop.f32.mrf.mxu1 }
 0x150   : > { %1082 = vst [vmem:[#allocation2 + $0x20] sm:$0xff] %v8771_v11  ;;  %1090 = vst [vmem:[#allocation2 + $0x60] sm:$0xff] %v8779_v12  ;;  %v930_v17 = vadd.f32 %v929_v13, %v10586_v24  ;;  %v970_v18 = vadd.f32 %v969_v14, %v10586_v24 }
 0x151   : > { %v933_v19 = vpop.f32.mrf.mxu0  ;;  %v973_v20 = vpop.f32.mrf.mxu1 }
 0x152   : > { %v8772_v21 = vpack.c.bf16 %v930_v17, %v928_v15  ;;  %v8780_v22 = vpack.c.bf16 %v970_v18, %v968_v16  ;;  %v934_v27 = vadd.f32 %v933_v19, %v10584_v23  ;;  %v974_v28 = vadd.f32 %v973_v20, %v10584_v23 }
 0x153   : > { %v935_v25 = vpop.f32.mrf.mxu0  ;;  %v975_v26 = vpop.f32.mrf.mxu1 }
 0x154   : > { %1083 = vst [vmem:[#allocation2 + $0x28] sm:$0xff] %v8772_v21  ;;  %1091 = vst [vmem:[#allocation2 + $0x68] sm:$0xff] %v8780_v22  ;;  %v936_v29 = vadd.f32 %v935_v25, %v10586_v24  ;;  %v976_v30 = vadd.f32 %v975_v26, %v10586_v24 }
 0x155   : > { %v937_v31 = vpop.f32.mrf.mxu0  ;;  %v977_v32 = vpop.f32.mrf.mxu1 }
 0x156   : > { %v8773_v33 = vpack.c.bf16 %v936_v29, %v934_v27  ;;  %v8781_v34 = vpack.c.bf16 %v976_v30, %v974_v28  ;;  %v938_v37 = vadd.f32 %v937_v31, %v10584_v23  ;;  %v978_v38 = vadd.f32 %v977_v32, %v10584_v23 }
 0x157   : > { %v939_v35 = vpop.f32.mrf.mxu0  ;;  %v979_v36 = vpop.f32.mrf.mxu1 }
 0x158   : > { %1084 = vst [vmem:[#allocation2 + $0x30] sm:$0xff] %v8773_v33  ;;  %1092 = vst [vmem:[#allocation2 + $0x70] sm:$0xff] %v8781_v34  ;;  %v940_v39 = vadd.f32 %v939_v35, %v10586_v24  ;;  %v980_v40 = vadd.f32 %v979_v36, %v10586_v24 }
 0x15a   : > { %v8774_v41 = vpack.c.bf16 %v940_v39, %v938_v37  ;;  %v8782_v42 = vpack.c.bf16 %v980_v40, %v978_v38 }
 0x15c   : > { %1085 = vst [vmem:[#allocation2 + $0x38] sm:$0xff] %v8774_v41  ;;  %1093 = vst [vmem:[#allocation2 + $0x78] sm:$0xff] %v8782_v42 }
 0x15d PF: > { %v9183_v43 = vld [vmem:[%s10315_s23 + $0x70] ss:$8 sps:$4 sm:$0xff]   ;;  %v9184_v44 = vld [vmem:[%s10315_s23 + $0x60] ss:$8 sps:$4 sm:$0xff]   ;;  %v10130_v0 = vmov 0   ;;  %vm1752_vm1 = vcmask 7168  }
 0x15e   : > { %8848 = vmatprep.subr.bf16.mxu0 %v9183_v43  ;;  %v9185_v23 = vld [vmem:[%s10315_s23 + $0x50] ss:$8 sps:$4 sm:$0xff]   ;;  %v9191_v45 = vld [vmem:[#allocation2] ss:$8 sps:$4 sm:$0xff]   ;;  %9182 = vset.pattern.permute.xlu1 %v10130_v0  ;;  %p8471_p3 = scmp.ne.s32.totalorder %s10102_s21, 1 }
 0x15f   : > { %8849 = vmatpush3.bf16.xpose.msra.mxu0 %v9183_v43  ;;  %8864 = vmatprep.mubr.bf16.mxu0 %v9191_v45  ;;  %v9186_v24 = vld [vmem:[%s10315_s23 + $0x40] ss:$8 sps:$4 sm:$0xff]   ;;  %v9187_v46 = vld [vmem:[%s10315_s23 + $0x30] ss:$8 sps:$4 sm:$0xff]  }
 0x160   : > { %8850 = vmatprep.subr.bf16.mxu0 %v9184_v44  ;;  %v9188_v47 = vld [vmem:[%s10315_s23 + $0x20] ss:$8 sps:$4 sm:$0xff]   ;;  %v9189_v48 = vld [vmem:[%s10315_s23 + $0x10] ss:$8 sps:$4 sm:$0xff]   ;;  %9181 = vset.pattern.permute.xlu0 %v10130_v0 }
 0x161   : > { %v9190_v49 = vld [vmem:[%s10315_s23] ss:$8 sps:$4 sm:$0xff]   ;;  %v9192_v50 = vld [vmem:[#allocation2 + $0x10] ss:$8 sps:$4 sm:$0xff]  }
 0x162   : > { %v9193_v51 = vld [vmem:[#allocation2 + $0x20] ss:$8 sps:$4 sm:$0xff]   ;;  %v9196_v54 = vld [vmem:[#allocation2 + $0x50] ss:$8 sps:$4 sm:$0xff]  }
 0x163   : > { %v9194_v52 = vld [vmem:[#allocation2 + $0x30] ss:$8 sps:$4 sm:$0xff]   ;;  %v9195_v53 = vld [vmem:[#allocation2 + $0x40] ss:$8 sps:$4 sm:$0xff]  }
 0x164   : > { %v9197_v55 = vld [vmem:[#allocation2 + $0x60] ss:$8 sps:$4 sm:$0xff]   ;;  %v9198_v56 = vld [vmem:[#allocation2 + $0x70] ss:$8 sps:$4 sm:$0xff]  }
 0x165   : > { %v9199_v10 = vld [vmem:[%s10320_s27 + $0x70] ss:$8 sps:$4 sm:$0xff]   ;;  %v9200_v12 = vld [vmem:[%s10320_s27 + $0x60] ss:$8 sps:$4 sm:$0xff]  }
 0x166   : > { %8880 = vmatprep.subr.bf16.mxu1 %v9199_v10  ;;  %v10677_v11 = vld [vmem:[#allocation4 + $0x10] sm:$0xff]  ;;  %v10680_v14 = vld [vmem:[#allocation4] sm:$0xff]  ;;  %v10685_v17 = vld [vmem:[#allocation4 + $0x18] sm:$0xff] }
 0x167   : > { %8851 = vmatpush3.bf16.xpose.msra.mxu0 %v9184_v44  ;;  %8881 = vmatpush3.bf16.msra.mxu1 %v9199_v10  ;;  %v9201_v18 = vld [vmem:[%s10320_s27 + $0x50] ss:$8 sps:$4 sm:$0xff]   ;;  %v10696_v22 = vld [vmem:[#allocation4 + $0x8] sm:$0xff]  ;;  %v10727_v38 = vld [vmem:[#allocation4 + $0x20] sm:$0xff] }
 0x168   : > { %8852 = vmatprep.subr.bf16.mxu0 %v9185_v23  ;;  %8882 = vmatprep.subr.bf16.mxu1 %v9200_v12  ;;  %v9202_v28 = vld [vmem:[%s10320_s27 + $0x40] ss:$8 sps:$4 sm:$0xff]   ;;  %v10714_v31 = vld [vmem:[#allocation4 + $0x30] sm:$0xff]  ;;  %v10721_v33 = vld [vmem:[#allocation4 + $0x38] sm:$0xff] }
 0x169   : > { %v9203_v35 = vld [vmem:[%s10320_s27 + $0x30] ss:$8 sps:$4 sm:$0xff]   ;;  %v10737_v41 = vld [vmem:[#allocation4 + $0x28] sm:$0xff] }
 0x16a   : > { %v9204_v43 = vld [vmem:[%s10320_s27 + $0x20] ss:$8 sps:$4 sm:$0xff]  }
 0x16b   : > { %8883 = vmatpush3.bf16.msra.mxu1 %v9200_v12  ;;  %v10777_v0 = vld [vmem:[#allocation4 + $0x48] sm:$0xff] }
 0x16c   : > { %8884 = vmatprep.subr.bf16.mxu1 %v9201_v18  ;;  %v9206_v12 = vld [vmem:[%s10320_s27] ss:$8 sps:$4 sm:$0xff]  }
 0x16f   : > { %8853 = vmatpush3.bf16.xpose.msra.mxu0 %v9185_v23  ;;  %8885 = vmatpush3.bf16.msra.mxu1 %v9201_v18 }
 0x170   : > { %8854 = vmatprep.subr.bf16.mxu0 %v9186_v24  ;;  %8886 = vmatprep.subr.bf16.mxu1 %v9202_v28 }
 0x173   : > { %8887 = vmatpush3.bf16.msra.mxu1 %v9202_v28 }
 0x174   : > { %8888 = vmatprep.subr.bf16.mxu1 %v9203_v35 }
 0x177   : > { %8855 = vmatpush3.bf16.xpose.msra.mxu0 %v9186_v24  ;;  %8889 = vmatpush3.bf16.msra.mxu1 %v9203_v35  ;;  %v10747_v24 = vld [vmem:[#allocation4 + $0x50] sm:$0xff] }
 0x178   : > { %8856 = vmatprep.subr.bf16.mxu0 %v9187_v46  ;;  %8890 = vmatprep.subr.bf16.mxu1 %v9204_v43 }
 0x17b   : > { %8891 = vmatpush3.bf16.msra.mxu1 %v9204_v43 }
 0x17f   : > { %8857 = vmatpush3.bf16.xpose.msra.mxu0 %v9187_v46 }
 0x180   : > { %8858 = vmatprep.subr.bf16.mxu0 %v9188_v47 }
 0x187   : > { %8859 = vmatpush3.bf16.xpose.msra.mxu0 %v9188_v47 }
 0x188   : > { %8860 = vmatprep.subr.bf16.mxu0 %v9189_v48 }
 0x18f   : > { %8861 = vmatpush3.bf16.xpose.msra.mxu0 %v9189_v48  ;;  %v10757_v48 = vld [vmem:[#allocation4 + $0x58] sm:$0xff] }
 0x190   : > { %8862 = vmatprep.subr.bf16.mxu0 %v9190_v49 }
 0x197   : > { %8863 = vmatpush3.bf16.xpose.msra.mxu0 %v9190_v49 }
 0x19e   : > { %8865 = vmatmul.mubr.bf16.vlgmr.msra.gmra.mxu0 %v9192_v50  ;;  %v9205_v50 = vld [vmem:[%s10320_s27 + $0x10] ss:$8 sps:$4 sm:$0xff]  }
 0x19f   : > { %8868 = vmatprep.mubr.bf16.mxu0 %v9193_v51  ;;  %8892 = vmatprep.subr.bf16.mxu1 %v9205_v50 }
 0x1a0   : > { %8893 = vmatpush3.bf16.msra.mxu1 %v9205_v50 }
 0x1a1   : > { %8894 = vmatprep.subr.bf16.mxu1 %v9206_v12 }
 0x1a4   : > { %8895 = vmatpush3.bf16.msra.mxu1 %v9206_v12 }
 0x1a6   : > { %8869 = vmatmul.mubr.bf16.gmra.mxu0 %v9194_v52 }
 0x1a7   : > { %8872 = vmatprep.mubr.bf16.mxu0 %v9195_v53 }
 0x1ae   : > { %8873 = vmatmul.mubr.bf16.gmra.mxu0 %v9196_v54  ;;  %v10767_v54 = vld [vmem:[#allocation4 + $0x40] sm:$0xff] }
 0x1af   : > { %8876 = vmatprep.mubr.bf16.mxu0 %v9197_v55 }
 0x1b6   : > { %8877 = vmatmul.mubr.bf16.gmra.mxu0 %v9198_v56 }
 0x25e   : > { %v10628_v57 = vpop.f32.mrf.mxu0 }
 0x25f   : > { %1452 = vmax.xlane.f32.xlu1 %v10628_v57 }
 0x260   : > { %v10631_v58 = vpop.f32.mrf.mxu0 }
 0x261   : > { %1448 = vmax.xlane.f32.xlu0 %v10631_v58 }
 0x262   : > { %v10634_v59 = vpop.f32.mrf.mxu0 }
 0x263   : > { %1454 = vmax.xlane.f32.xlu1 %v10634_v59 }
 0x264   : > { %v10637_v60 = vpop.f32.mrf.mxu0 }
 0x265   : > { %1450 = vmax.xlane.f32.xlu0 %v10637_v60 }
 0x266   : > { %v10640_v61 = vpop.f32.mrf.mxu0 }
 0x268   : > { %v10642_v62 = vpop.f32.mrf.mxu0 }
 0x269   : > { %1460 = vmax.xlane.f32.xlu0 %v10640_v61 }
 0x26a   : > { %v10645_v63 = vpop.f32.mrf.mxu0 }
 0x26b   : > { %1462 = vmax.xlane.f32.xlu1 %v10645_v63 }
 0x26c   : > { %v10648_v1 = vpop.f32.mrf.mxu0 }
 0x26d   : > { %1456 = vmax.xlane.f32.xlu0 %v10642_v62 }
 0x26e   : > { %v10651_v2 = vpop.f32.mrf.mxu0 }
 0x26f   : > { %1458 = vmax.xlane.f32.xlu1 %v10648_v1 }
 0x270   : > { %v10654_v3 = vpop.f32.mrf.mxu0 }
 0x271   : > { %1468 = vmax.xlane.f32.xlu0 %v10651_v2 }
 0x272   : > { %v10657_v4 = vpop.f32.mrf.mxu0 }
 0x273   : > { %1470 = vmax.xlane.f32.xlu1 %v10657_v4 }
 0x274   : > { %v10660_v5 = vpop.f32.mrf.mxu0 }
 0x275   : > { %1464 = vmax.xlane.f32.xlu0 %v10654_v3 }
 0x276   : > { %v10663_v6 = vpop.f32.mrf.mxu0 }
 0x277   : > { %1466 = vmax.xlane.f32.xlu1 %v10660_v5 }
 0x278   : > { %v10666_v7 = vpop.f32.mrf.mxu0 }
 0x279   : > { %1476 = vmax.xlane.f32.xlu0 %v10663_v6 }
 0x27a   : > { %v10669_v8 = vpop.f32.mrf.mxu0 }
 0x27b   : > { %1478 = vmax.xlane.f32.xlu1 %v10669_v8 }
 0x27c   : > { %v10672_v9 = vpop.f32.mrf.mxu0 }
 0x27d   : > { %1472 = vmax.xlane.f32.xlu0 %v10666_v7 }
 0x27f   : > { %1474 = vmax.xlane.f32.xlu1 %v10672_v9 }
 0x2e8   : > { %v1453_v13 = vpop.xlane.xlu1 %1452 }
 0x2e9   : > { %v10683_v15 = vmax.f32 %v10677_v11, %v1453_v13 }
 0x2ea   : > { %v1449_v16 = vpop.xlane.xlu0 %1448 }
 0x2eb   : > { %v1498_v19 = vsub.f32 %v10677_v11, %v10683_v15  ;;  %2068 = vst.msk [vmem:[#allocation4 + $0x10] sm:$0xff] %vm1752_vm1, %v10683_v15  ;;  %v10693_v20 = vmax.f32 %v10680_v14, %v1449_v16  ;;  %1556 = vperm.xlu1 %9182, %v10683_v15  }
 0x2ec   : > { %v1455_v21 = vpop.xlane.xlu1 %1454 }
 0x2ed   : > { %2066 = vst.msk [vmem:[#allocation4] sm:$0xff] %vm1752_vm1, %v10693_v20  ;;  %v10703_v26 = vmax.f32 %v10685_v17, %v1455_v21  ;;  %1546 = vperm.xlu0 %9181, %v10693_v20   ;;  %v10787_v21 = vld [vmem:[#allocation4 + $0x70] sm:$0xff] }
 0x2ee   : > { %v1451_v27 = vpop.xlane.xlu0 %1450 }
 0x2ef   : > { %2069 = vst.msk [vmem:[#allocation4 + $0x18] sm:$0xff] %vm1752_vm1, %v10703_v26  ;;  %v10712_v30 = vmax.f32 %v10696_v22, %v1451_v27 }
 0x2f1   : > { %2067 = vst.msk [vmem:[#allocation4 + $0x8] sm:$0xff] %vm1752_vm1, %v10712_v30  ;;  %1551 = vperm.xlu1 %9182, %v10712_v30  }
 0x2f2   : > { %v1461_v34 = vpop.xlane.xlu0 %1460 }
 0x2f3   : > { %v10725_v36 = vmax.f32 %v10714_v31, %v1461_v34  ;;  %v10797_v34 = vld [vmem:[#allocation4 + $0x78] sm:$0xff] }
 0x2f4   : > { %v1463_v37 = vpop.xlane.xlu1 %1462 }
 0x2f5   : > { %v10730_v39 = vmax.f32 %v10721_v33, %v1463_v37  ;;  %1561 = vperm.xlu1 %9182, %v10703_v26   ;;  %2072 = vst.msk [vmem:[#allocation4 + $0x30] sm:$0xff] %vm1752_vm1, %v10725_v36  ;;  %v10800_v37 = vld [vmem:[%s10315_s23 + $0x74] ss:$8 sps:$4 sm:$0xff]  }
 0x2f6   : > { %v1457_v42 = vpop.xlane.xlu0 %1456  ;;  %8912 = vmatprep.subr.bf16.mxu1 %v10800_v37 }
 0x2f7   : > { %2073 = vst.msk [vmem:[#allocation4 + $0x38] sm:$0xff] %vm1752_vm1, %v10730_v39  ;;  %v10745_v23 = vmax.f32 %v10727_v38, %v1457_v42 }
 0x2f8   : > { %v1459_v45 = vpop.xlane.xlu1 %1458 }
 0x2f9   : > { %v10750_v46 = vmax.f32 %v10737_v41, %v1459_v45  ;;  %1576 = vperm.xlu1 %9182, %v10725_v36   ;;  %2070 = vst.msk [vmem:[#allocation4 + $0x20] sm:$0xff] %vm1752_vm1, %v10745_v23  ;;  %v15795_v11 = vsub.f32 %v10727_v38, %v10745_v23 }
 0x2fa   : > { %v1469_v49 = vpop.xlane.xlu0 %1468 }
 0x2fb   : > { %2071 = vst.msk [vmem:[#allocation4 + $0x28] sm:$0xff] %vm1752_vm1, %v10750_v46  ;;  %v10765_v52 = vmax.f32 %v10747_v24, %v1469_v49  ;;  %v10810_v49 = vld [vmem:[#allocation4 + $0x60] sm:$0xff] }
 0x2fc   : > { %v1471_v53 = vpop.xlane.xlu1 %1470 }
 0x2fd   : > { %v10770_v55 = vmax.f32 %v10757_v48, %v1471_v53  ;;  %1566 = vperm.xlu1 %9182, %v10745_v23   ;;  %2076 = vst.msk [vmem:[#allocation4 + $0x50] sm:$0xff] %vm1752_vm1, %v10765_v52  ;;  %v1675_v23 = vld [vmem:[#allocation5 + $0x18] sm:$0xff] }
 0x2fe   : > { %v1465_v10 = vpop.xlane.xlu0 %1464 }
 0x2ff   : > { %2077 = vst.msk [vmem:[#allocation4 + $0x58] sm:$0xff] %vm1752_vm1, %v10770_v55  ;;  %v10785_v16 = vmax.f32 %v10767_v54, %v1465_v10  ;;  %v10821_v10 = vld [vmem:[#allocation4 + $0x68] sm:$0xff] }
 0x300   : > { %v1467_v18 = vpop.xlane.xlu1 %1466 }
 0x301   : > { %v10790_v27 = vmax.f32 %v10777_v0, %v1467_v18  ;;  %1571 = vperm.xlu1 %9182, %v10750_v46   ;;  %2074 = vst.msk [vmem:[#allocation4 + $0x40] sm:$0xff] %vm1752_vm1, %v10785_v16 }
 0x302   : > { %v1477_v35 = vpop.xlane.xlu0 %1476 }
 0x303   : > { %2075 = vst.msk [vmem:[#allocation4 + $0x48] sm:$0xff] %vm1752_vm1, %v10790_v27  ;;  %1591 = vperm.xlu0 %9181, %v10790_v27   ;;  %v10808_v43 = vmax.f32 %v10787_v21, %v1477_v35 }
 0x304   : > { %v1479_v45 = vpop.xlane.xlu1 %1478 }
 0x305   : > { %v10814_v50 = vmax.f32 %v10797_v34, %v1479_v45  ;;  %1581 = vperm.xlu1 %9182, %v10730_v39   ;;  %2080 = vst.msk [vmem:[#allocation4 + $0x70] sm:$0xff] %vm1752_vm1, %v10808_v43 }
 0x306   : > { %v1473_v12 = vpop.xlane.xlu0 %1472 }
 0x307   : > { %2081 = vst.msk [vmem:[#allocation4 + $0x78] sm:$0xff] %vm1752_vm1, %v10814_v50  ;;  %1601 = vperm.xlu0 %9181, %v10770_v55   ;;  %v10829_v35 = vmax.f32 %v10810_v49, %v1473_v12 }
 0x308   : > { %v1475_v45 = vpop.xlane.xlu1 %1474 }
 0x309   : > { %v10832_v53 = vmax.f32 %v10821_v10, %v1475_v45  ;;  %1586 = vperm.xlu1 %9182, %v10785_v16   ;;  %2078 = vst.msk [vmem:[#allocation4 + $0x60] sm:$0xff] %vm1752_vm1, %v10829_v35 }
 0x30b   : > { %2079 = vst.msk [vmem:[#allocation4 + $0x68] sm:$0xff] %vm1752_vm1, %v10832_v53  ;;  %1611 = vperm.xlu0 %9181, %v10832_v53  }
 0x30d   : > { %1596 = vperm.xlu1 %9182, %v10765_v52  }
 0x30f   : > { %1621 = vperm.xlu0 %9181, %v10814_v50  }
 0x311   : > { %1606 = vperm.xlu1 %9182, %v10829_v35  }
 0x315   : > { %1616 = vperm.xlu1 %9182, %v10808_v43  }
 0x366   : > { %v1557_v12 = vpop.permute.xlu1 %1556 }
 0x367   : > { %v1626_v45 = vsub.f32 %v10628_v57, %v1557_v12 }
 0x368   : > { %v1547_v56 = vpop.permute.xlu0 %1546 }
 0x369   : > { %v1644_v28 = vmul.f32 1.442695, %v1626_v45  ;;  %v1624_v18 = vsub.f32 %v10631_v58, %v1547_v56 }
 0x36b   : > { %9231 = vpow2.f32 %v1644_v28  ;;  %v1640_v13 = vmul.f32 1.442695, %v1624_v18 }
 0x36c   : > { %v1552_v40 = vpop.permute.xlu1 %1551 }
 0x36d   : > { %9233 = vpow2.f32 %v1640_v13  ;;  %v1625_v42 = vsub.f32 %v10637_v60, %v1552_v40 }
 0x36f   : > { %v1642_v44 = vmul.f32 1.442695, %v1625_v42 }
 0x370   : > { %v1562_v51 = vpop.permute.xlu1 %1561 }
 0x371   : > { %9235 = vpow2.f32 %v1642_v44  ;;  %v1627_v47 = vsub.f32 %v10634_v59, %v1562_v51 }
 0x373   : > { %v1646_v32 = vmul.f32 1.442695, %v1627_v47 }
 0x374   : > { %v1577_v29 = vpop.permute.xlu1 %1576 }
 0x375   : > { %9237 = vpow2.f32 %v1646_v32  ;;  %v1630_v13 = vsub.f32 %v10640_v61, %v1577_v29 }
 0x377   : > { %v1652_v32 = vmul.f32 1.442695, %v1630_v13 }
 0x378   : > { %v9232_v25 = vpop.eup %9231  ;;  %v1567_v57 = vpop.permute.xlu1 %1566 }
 0x379   : > { %v1628_v12 = vsub.f32 %v10642_v62, %v1567_v57  ;;  %1708 = vadd.xlane.f32.xlu0 %v9232_v25  ;;  %v9208_v57 = vld [vmem:[%s10315_s23 + $0x64] ss:$8 sps:$4 sm:$0xff]  }
 0x37a   : > { %v9234_v58 = vpop.eup %9233 }
 0x37b   : > { %v1648_v56 = vmul.f32 1.442695, %v1628_v12  ;;  %1704 = vadd.xlane.f32.xlu1 %v9234_v58 }
 0x37c   : > { %v1572_v28 = vpop.permute.xlu1 %1571 }
 0x37d   : > { %9239 = vpow2.f32 %v1648_v56  ;;  %v1629_v60 = vsub.f32 %v10648_v1, %v1572_v28 }
 0x37e   : > { %v9236_v40 = vpop.eup %9235  ;;  %v1592_v59 = vpop.permute.xlu0 %1591 }
 0x37f   : > { %v1650_v44 = vmul.f32 1.442695, %v1629_v60  ;;  %v1881_v47 = vpack.c.bf16 %v9236_v40, %v9234_v58  ;;  %v1633_v51 = vsub.f32 %v10660_v5, %v1592_v59 }
 0x380   : > { %v1582_v42 = vpop.permute.xlu1 %1581 }
 0x381   : > { %9241 = vpow2.f32 %v1650_v44  ;;  %v1631_v62 = vsub.f32 %v10645_v63, %v1582_v42  ;;  %8896 = vmatprep.mubr.bf16.mxu1 %v1881_v47  ;;  %v1658_v1 = vmul.f32 1.442695, %v1633_v51 }
 0x382   : > { %v9238_v18 = vpop.eup %9237  ;;  %v1602_v45 = vpop.permute.xlu0 %1601  ;;  %9243 = vpow2.f32 %v1652_v32 }
 0x383   : > { %v1654_v61 = vmul.f32 1.442695, %v1631_v62  ;;  %1710 = vadd.xlane.f32.xlu1 %v9238_v18  ;;  %v1882_v29 = vpack.c.bf16 %v9238_v18, %v9232_v25  ;;  %v1635_v12 = vsub.f32 %v10657_v4, %v1602_v45 }
 0x384   : > { %v1587_v56 = vpop.permute.xlu1 %1586 }
 0x385   : > { %9245 = vpow2.f32 %v1654_v61  ;;  %v1632_v58 = vsub.f32 %v10654_v3, %v1587_v56  ;;  %8897 = vmatmul.mubr.bf16.vlgmr.msra.gmra.mxu1 %v1882_v29  ;;  %v1662_v13 = vmul.f32 1.442695, %v1635_v12  ;;  %v9209_v3 = vld [vmem:[%s10315_s23 + $0x54] ss:$8 sps:$4 sm:$0xff]   ;;  %v9210_v29 = vld [vmem:[%s10315_s23 + $0x44] ss:$8 sps:$4 sm:$0xff]  }
 0x386   : > { %8913 = vmatpush3.bf16.xpose.msra.mxu1 %v10800_v37  ;;  %v1612_v63 = vpop.permute.xlu0 %1611  ;;  %9247 = vpow2.f32 %v1658_v1 }
 0x387   : > { %v1656_v5 = vmul.f32 1.442695, %v1632_v58  ;;  %1706 = vadd.xlane.f32.xlu1 %v9236_v40  ;;  %8914 = vmatprep.subr.bf16.mxu1 %v9208_v57  ;;  %v1637_v25 = vsub.f32 %v10672_v9, %v1612_v63  ;;  %v9211_v63 = vld [vmem:[%s10315_s23 + $0x34] ss:$8 sps:$4 sm:$0xff]  }
 0x388   : > { %v1597_v28 = vpop.permute.xlu1 %1596 }
 0x389   : > { %9249 = vpow2.f32 %v1656_v5  ;;  %v1634_v4 = vsub.f32 %v10651_v2, %v1597_v28  ;;  %v1666_v47 = vmul.f32 1.442695, %v1637_v25 }
 0x38a   : > { %v9240_v60 = vpop.eup %9239  ;;  %v1622_v59 = vpop.permute.xlu0 %1621  ;;  %9251 = vpow2.f32 %v1662_v13 }
 0x38b   : > { %v1660_v44 = vmul.f32 1.442695, %v1634_v4  ;;  %1712 = vadd.xlane.f32.xlu0 %v9240_v60  ;;  %v1639_v37 = vsub.f32 %v10669_v8, %v1622_v59 }
 0x38c   : > { %v1607_v32 = vpop.permute.xlu1 %1606 }
 0x38d   : > { %9253 = vpow2.f32 %v1660_v44  ;;  %v1636_v40 = vsub.f32 %v10666_v7, %v1607_v32  ;;  %v1670_v2 = vmul.f32 1.442695, %v1639_v37  ;;  %v9212_v44 = vld [vmem:[%s10315_s23 + $0x24] ss:$8 sps:$4 sm:$0xff]   ;;  %v9216_v37 = vld [vmem:[#allocation2 + $0x14] ss:$8 sps:$4 sm:$0xff]  }
 0x38e   : > { %v9242_v51 = vpop.eup %9241  ;;  %8915 = vmatpush3.bf16.xpose.msra.mxu1 %v9208_v57  ;;  %9255 = vpow2.f32 %v1666_v47  ;;  %v9214_v47 = vld [vmem:[%s10315_s23 + $0x4] ss:$8 sps:$4 sm:$0xff]  }
 0x38f   : > { %v1664_v9 = vmul.f32 1.442695, %v1636_v40  ;;  %1714 = vadd.xlane.f32.xlu1 %v9242_v51  ;;  %v1883_v42 = vpack.c.bf16 %v9242_v51, %v9240_v60  ;;  %8916 = vmatprep.subr.bf16.mxu1 %v9209_v3  ;;  %v10866_v18 = vpop.eup %9243  ;;  %v9215_v60 = vld [vmem:[#allocation2 + $0x4] ss:$8 sps:$4 sm:$0xff]   ;;  %v9218_v40 = vld [vmem:[#allocation2 + $0x34] ss:$8 sps:$4 sm:$0xff]  }
 0x390   : > { %v1617_v62 = vpop.permute.xlu1 %1616  ;;  %v9217_v32 = vld [vmem:[#allocation2 + $0x24] ss:$8 sps:$4 sm:$0xff]  }
 0x391   : > { %9257 = vpow2.f32 %v1664_v9  ;;  %v1638_v45 = vsub.f32 %v10663_v6, %v1617_v62  ;;  %8900 = vmatprep.mubr.bf16.mxu1 %v1883_v42  ;;  %v9219_v51 = vld [vmem:[#allocation2 + $0x44] ss:$8 sps:$4 sm:$0xff]   ;;  %v9220_v9 = vld [vmem:[#allocation2 + $0x54] ss:$8 sps:$4 sm:$0xff]   ;;  %v1516_v62 = vmul.f32 1.442695, %v1498_v19 }
 0x392   : > { %v10869_v8 = vpop.eup %9245  ;;  %9259 = vpow2.f32 %v1670_v2  ;;  %v9221_v42 = vld [vmem:[#allocation2 + $0x64] ss:$8 sps:$4 sm:$0xff]   ;;  %v9222_v2 = vld [vmem:[#allocation2 + $0x74] ss:$8 sps:$4 sm:$0xff]  }
 0x393   : > { %v1668_v7 = vmul.f32 1.442695, %v1638_v45  ;;  %v1884_v61 = vpack.c.bf16 %v10869_v8, %v10866_v18  ;;  %v10874_v57 = vpop.eup %9247  ;;  %v15792_v45 = vsub.f32 %v10680_v14, %v10693_v20  ;;  %v1520_v14 = vmul.f32 1.442695, %v15795_v11  ;;  %v1672_v19 = vld [vmem:[#allocation5] sm:$0xff] }
 0x395   : > { %9261 = vpow2.f32 %v1668_v7  ;;  %8901 = vmatmul.mubr.bf16.gmra.mxu1 %v1884_v61  ;;  %v1512_v7 = vmul.f32 1.442695, %v15792_v45  ;;  %v15793_v61 = vsub.f32 %v10685_v17, %v10703_v26  ;;  %v15796_v26 = vsub.f32 %v10737_v41, %v10750_v46  ;;  %v1673_v46 = vld [vmem:[#allocation5 + $0x8] sm:$0xff] }
 0x396   : > { %v10876_v1 = vpop.eup %9249  ;;  %8917 = vmatpush3.bf16.xpose.msra.mxu1 %v9209_v3  ;;  %v9213_v3 = vld [vmem:[%s10315_s23 + $0x14] ss:$8 sps:$4 sm:$0xff]   ;;  %9263 = vpow2.f32 %v1516_v62 }
 0x397   : > { %v1885_v6 = vpack.c.bf16 %v10874_v57, %v10876_v1  ;;  %8918 = vmatprep.subr.bf16.mxu1 %v9210_v29  ;;  %v10880_v12 = vpop.eup %9251  ;;  %9265 = vpow2.f32 %v1512_v7  ;;  %v1677_v7 = vld [vmem:[#allocation5 + $0x28] sm:$0xff] }
 0x399   : > { %8904 = vmatprep.mubr.bf16.mxu1 %v1885_v6  ;;  %v15794_v6 = vsub.f32 %v10696_v22, %v10712_v30 }
 0x39a   : > { %v10882_v56 = vpop.eup %9253 }
 0x39b   : > { %v1886_v58 = vpack.c.bf16 %v10880_v12, %v10882_v56  ;;  %v10887_v5 = vpop.eup %9255 }
 0x39d   : > { %8905 = vmatmul.mubr.bf16.gmra.mxu1 %v1886_v58  ;;  %v1514_v58 = vmul.f32 1.442695, %v15794_v6 }
 0x39e   : > { %v10889_v13 = vpop.eup %9257  ;;  %8919 = vmatpush3.bf16.xpose.msra.mxu1 %v9210_v29  ;;  %v1518_v29 = vmul.f32 1.442695, %v15793_v61 }
 0x39f   : > { %v1887_v25 = vpack.c.bf16 %v10887_v5, %v10889_v13  ;;  %8920 = vmatprep.subr.bf16.mxu1 %v9211_v63  ;;  %v10893_v28 = vpop.eup %9259 }
 0x3a0   : > { %9267 = vpow2.f32 %v1518_v29 }
 0x3a1   : > { %8908 = vmatprep.mubr.bf16.mxu1 %v1887_v25  ;;  %v1674_v25 = vld [vmem:[#allocation5 + $0x10] sm:$0xff]  ;;  %9269 = vpow2.f32 %v1514_v58 }
 0x3a2   : > { %v10895_v4 = vpop.eup %9261  ;;  %9271 = vpow2.f32 %v1520_v14 }
 0x3a3   : > { %v1888_v59 = vpack.c.bf16 %v10893_v28, %v10895_v4 }
 0x3a5   : > { %8909 = vmatmul.mubr.bf16.gmra.mxu1 %v1888_v59 }
 0x3a6   : > { %8921 = vmatpush3.bf16.xpose.msra.mxu1 %v9211_v63  ;;  %8928 = vmatprep.mubr.bf16.mxu1 %v9215_v60  ;;  %v10914_v63 = vpop.eup %9263  ;;  %v1522_v60 = vmul.f32 1.442695, %v15796_v26 }
 0x3a7   : > { %8922 = vmatprep.subr.bf16.mxu1 %v9212_v44  ;;  %v10919_v15 = vpop.eup %9265  ;;  %v1690_v20 = vmul.f32 %v10914_v63, %v1674_v25 }
 0x3a8   : > { %v1688_v30 = vmul.f32 %v10919_v15, %v1672_v19  ;;  %9273 = vpow2.f32 %v1522_v60 }
 0x3ad   : > { %v10928_v38 = vpop.eup %9267 }
 0x3ae   : > { %8923 = vmatpush3.bf16.xpose.msra.mxu1 %v9212_v44 }
 0x3af   : > { %8924 = vmatprep.subr.bf16.mxu1 %v9213_v3 }
 0x3b6   : > { %8925 = vmatpush3.bf16.xpose.msra.mxu1 %v9213_v3  ;;  %v1691_v3 = vmul.f32 %v10928_v38, %v1675_v23 }
 0x3b7   : > { %8926 = vmatprep.subr.bf16.mxu1 %v9214_v47 }
 0x3be   : > { %8927 = vmatpush3.bf16.xpose.msra.mxu1 %v9214_v47  ;;  %v10931_v47 = vpop.eup %9269 }
 0x3c5   : > { %8929 = vmatmul.mubr.bf16.vlgmr.msra.gmra.mxu1 %v9216_v37 }
 0x3c6   : > { %8932 = vmatprep.mubr.bf16.mxu1 %v9217_v32  ;;  %v1689_v32 = vmul.f32 %v10931_v47, %v1673_v46 }
 0x3cd   : > { %8933 = vmatmul.mubr.bf16.gmra.mxu1 %v9218_v40  ;;  %v10935_v40 = vpop.eup %9271 }
 0x3ce   : > { %8936 = vmatprep.mubr.bf16.mxu1 %v9219_v51  ;;  %v10939_v62 = vpop.eup %9273 }
 0x3cf   : > { %v1693_v29 = vmul.f32 %v10939_v62, %v1677_v7 }
 0x3d5   : > { %8937 = vmatmul.mubr.bf16.gmra.mxu1 %v9220_v9  ;;  %v1676_v9 = vld [vmem:[#allocation5 + $0x20] sm:$0xff] }
 0x3d6   : > { %8940 = vmatprep.mubr.bf16.mxu1 %v9221_v42 }
 0x3dd   : > { %8941 = vmatmul.mubr.bf16.gmra.mxu1 %v9222_v2  ;;  %v1692_v2 = vmul.f32 %v10935_v40, %v1676_v9 }
 0x402   : > { %v1709_v17 = vpop.xlane.xlu0 %1708 }
 0x403   : > { %v1738_v22 = vadd.f32 %v1709_v17, %v1690_v20 }
 0x404   : > { %v1705_v59 = vpop.xlane.xlu1 %1704 }
 0x405   : > { %1755 = vst.msk [vmem:[#allocation5 + $0x10] sm:$0xff] %vm1752_vm1, %v1738_v22  ;;  %v1736_v44 = vadd.f32 %v1705_v59, %v1688_v30 }
 0x407   : > { %1753 = vst.msk [vmem:[#allocation5] sm:$0xff] %vm1752_vm1, %v1736_v44 }
 0x40c   : > { %v1711_v41 = vpop.xlane.xlu1 %1710 }
 0x40d   : > { %v1739_v37 = vadd.f32 %v1711_v41, %v1691_v3 }
 0x40f   : > { %1756 = vst.msk [vmem:[#allocation5 + $0x18] sm:$0xff] %vm1752_vm1, %v1739_v37 }
 0x410   : > { %v1707_v51 = vpop.xlane.xlu1 %1706 }
 0x411   : > { %v1737_v42 = vadd.f32 %v1707_v51, %v1689_v32 }
 0x413   : > { %1754 = vst.msk [vmem:[#allocation5 + $0x8] sm:$0xff] %vm1752_vm1, %v1737_v42 }
 0x414   : > { %v1713_v45 = vpop.xlane.xlu0 %1712 }
 0x415   : > { %v1740_v61 = vadd.f32 %v1713_v45, %v1692_v2 }
 0x417   : > { %1757 = vst.msk [vmem:[#allocation5 + $0x20] sm:$0xff] %vm1752_vm1, %v1740_v61 }
 0x418   : > { %v1715_v6 = vpop.xlane.xlu1 %1714 }
 0x419   : > { %v1741_v58 = vadd.f32 %v1715_v6, %v1693_v29 }
 0x41b   : > { %1758 = vst.msk [vmem:[#allocation5 + $0x28] sm:$0xff] %vm1752_vm1, %v1741_v58 }
 0x445   : > { %v10944_v25 = vpop.f32.mrf.mxu1 }
 0x446   : > { %15797 = vst [vmem:[#allocation24_spill] sm:$0xff] %v10944_v25  ;;  %v11123_v25 = vld [vmem:[#allocation4 + $0xc0] sm:$0xff] }
 0x447   : > { %v10946_v11 = vpop.f32.mrf.mxu1 }
 0x448   : > { %15798 = vst [vmem:[#allocation25_spill] sm:$0xff] %v10946_v11  ;;  %v11109_v11 = vld [vmem:[#allocation4 + $0xa8] sm:$0xff] }
 0x449   : > { %v10948_v14 = vpop.f32.mrf.mxu1 }
 0x44a   : > { %15799 = vst [vmem:[#allocation26_spill] sm:$0xff] %v10948_v14  ;;  %v11085_v14 = vld [vmem:[#allocation4 + $0xb8] sm:$0xff] }
 0x44b   : > { %v10950_v19 = vpop.f32.mrf.mxu1 }
 0x44c   : > { %15800 = vst [vmem:[#allocation27_spill] sm:$0xff] %v10950_v19 }
 0x455   : > { %v10952_v20 = vpop.f32.mrf.mxu1 }
 0x456   : > { %15801 = vst [vmem:[#allocation28_spill] sm:$0xff] %v10952_v20 }
 0x457   : > { %v10954_v17 = vpop.f32.mrf.mxu1 }
 0x458   : > { %15802 = vst [vmem:[#allocation29_spill] sm:$0xff] %v10954_v17 }
 0x459   : > { %v10956_v26 = vpop.f32.mrf.mxu1 }
 0x45a   : > { %15803 = vst [vmem:[#allocation30_spill] sm:$0xff] %v10956_v26  ;;  %v9226_v26 = vld [vmem:[%s10320_s27 + $0x44] ss:$8 sps:$4 sm:$0xff]  }
 0x45b   : > { %v10958_v60 = vpop.f32.mrf.mxu1 }
 0x45c   : > { %15804 = vst [vmem:[#allocation31_spill] sm:$0xff] %v10958_v60 }
 0x45d   : > { %v10960_v22 = vpop.f32.mrf.mxu1 }
 0x45e   : > { %15805 = vst [vmem:[#allocation32_spill] sm:$0xff] %v10960_v22  ;;  %v11062_v22 = vld [vmem:[#allocation4 + $0x88] sm:$0xff] }
 0x45f   : > { %v10962_v30 = vpop.f32.mrf.mxu1 }
 0x460   : > { %15806 = vst [vmem:[#allocation33_spill] sm:$0xff] %v10962_v30 }
 0x461   : > { %v10964_v59 = vpop.f32.mrf.mxu1 }
 0x462   : > { %15807 = vst [vmem:[#allocation34_spill] sm:$0xff] %v10964_v59  ;;  %v11057_v59 = vld [vmem:[#allocation4 + $0xb0] sm:$0xff] }
 0x463   : > { %v10966_v44 = vpop.f32.mrf.mxu1 }
 0x464   : > { %15808 = vst [vmem:[#allocation35_spill] sm:$0xff] %v10966_v44 }
 0x465   : > { %v10968_v23 = vpop.f32.mrf.mxu1 }
 0x466   : > { %15809 = vst [vmem:[#allocation36_spill] sm:$0xff] %v10968_v23 }
 0x467   : > { %v10970_v3 = vpop.f32.mrf.mxu1 }
 0x468   : > { %15810 = vst [vmem:[#allocation37_spill] sm:$0xff] %v10970_v3  ;;  %v11034_v3 = vld [vmem:[#allocation4 + $0x90] sm:$0xff] }
 0x469   : > { %v10972_v41 = vpop.f32.mrf.mxu1 }
 0x46a   : > { %15811 = vst [vmem:[#allocation38_spill] sm:$0xff] %v10972_v41 }
 0x46b   : > { %v10974_v46 = vpop.f32.mrf.mxu1 }
 0x46c   : > { %15812 = vst [vmem:[#allocation39_spill] sm:$0xff] %v10974_v46 }
 0x485   : > { %v10976_v37 = vpop.f32.mrf.mxu1 }
 0x486   : > { %2344 = vmax.xlane.f32.xlu1 %v10976_v37 }
 0x487   : > { %v10979_v32 = vpop.f32.mrf.mxu1 }
 0x488   : > { %2340 = vmax.xlane.f32.xlu0 %v10979_v32 }
 0x489   : > { %v10982_v51 = vpop.f32.mrf.mxu1 }
 0x48b   : > { %v10984_v9 = vpop.f32.mrf.mxu1 }
 0x48c   : > { %2346 = vmax.xlane.f32.xlu0 %v10982_v51 }
 0x48d   : > { %v10987_v42 = vpop.f32.mrf.mxu1 }
 0x48e   : > { %15813 = vst [vmem:[#allocation40_spill] sm:$0xff] %v10987_v42  ;;  %2352 = vmax.xlane.f32.xlu1 %v10987_v42 }
 0x48f   : > { %v10990_v2 = vpop.f32.mrf.mxu1 }
 0x490   : > { %15814 = vst [vmem:[#allocation41_spill] sm:$0xff] %v10990_v2  ;;  %2342 = vmax.xlane.f32.xlu0 %v10984_v9 }
 0x491   : > { %v10993_v45 = vpop.f32.mrf.mxu1 }
 0x492   : > { %15815 = vst [vmem:[#allocation42_spill] sm:$0xff] %v10993_v45  ;;  %2348 = vmax.xlane.f32.xlu1 %v10990_v2 }
 0x493   : > { %v10996_v7 = vpop.f32.mrf.mxu1 }
 0x494   : > { %15816 = vst [vmem:[#allocation43_spill] sm:$0xff] %v10996_v7  ;;  %2354 = vmax.xlane.f32.xlu0 %v10993_v45 }
 0x495   : > { %v10999_v61 = vpop.f32.mrf.mxu1 }
 0x496   : > { %15817 = vst [vmem:[#allocation44_spill] sm:$0xff] %v10999_v61  ;;  %2360 = vmax.xlane.f32.xlu1 %v10999_v61 }
 0x497   : > { %v11002_v29 = vpop.f32.mrf.mxu1 }
 0x498   : > { %15818 = vst [vmem:[#allocation45_spill] sm:$0xff] %v11002_v29  ;;  %2350 = vmax.xlane.f32.xlu0 %v10996_v7 }
 0x499   : > { %v11005_v6 = vpop.f32.mrf.mxu1 }
 0x49a   : > { %15819 = vst [vmem:[#allocation46_spill] sm:$0xff] %v11005_v6  ;;  %2356 = vmax.xlane.f32.xlu1 %v11002_v29 }
 0x49b   : > { %v11008_v58 = vpop.f32.mrf.mxu1 }
 0x49c   : > { %15820 = vst [vmem:[#allocation47_spill] sm:$0xff] %v11008_v58  ;;  %2362 = vmax.xlane.f32.xlu0 %v11005_v6 }
 0x49d   : > { %v11011_v41 = vpop.f32.mrf.mxu1 }
 0x49e   : > { %15821 = vst [vmem:[#allocation48_spill] sm:$0xff] %v11011_v41  ;;  %2368 = vmax.xlane.f32.xlu1 %v11011_v41  ;;  %v15836_v41 = vsub.f32 %v10787_v21, %v10808_v43 }
 0x49f   : > { %v11014_v23 = vpop.f32.mrf.mxu1 }
 0x4a0   : > { %15822 = vst [vmem:[#allocation49_spill] sm:$0xff] %v11014_v23  ;;  %2358 = vmax.xlane.f32.xlu0 %v11008_v58  ;;  %v1540_v6 = vmul.f32 1.442695, %v15836_v41  ;;  %v1678_v58 = vld [vmem:[#allocation5 + $0x30] sm:$0xff] }
 0x4a1   : > { %v11018_v46 = vpop.f32.mrf.mxu1 }
 0x4a2   : > { %2364 = vmax.xlane.f32.xlu1 %v11014_v23  ;;  %15823 = vst [vmem:[#allocation50_spill] sm:$0xff] %v11018_v46 }
 0x4a3   : > { %v11022_v30 = vpop.f32.mrf.mxu1 }
 0x4a4   : > { %2370 = vmax.xlane.f32.xlu0 %v11018_v46  ;;  %15824 = vst [vmem:[#allocation51_spill] sm:$0xff] %v11022_v30 }
 0x4a6   : > { %1718 = vadd.xlane.f32.xlu1 %v10869_v8  ;;  %v9223_v8 = vld [vmem:[%s10320_s27 + $0x74] ss:$8 sps:$4 sm:$0xff]  }
 0x4a7   : > { %8944 = vmatprep.subr.bf16.mxu0 %v9223_v8 }
 0x4a8   : > { %2366 = vmax.xlane.f32.xlu0 %v11022_v30  ;;  %8945 = vmatpush3.bf16.msra.mxu0 %v9223_v8  ;;  %v9225_v8 = vld [vmem:[%s10320_s27 + $0x54] ss:$8 sps:$4 sm:$0xff]  }
 0x4aa   : > { %1722 = vadd.xlane.f32.xlu1 %v10874_v57 }
 0x4ac   : > { %1716 = vadd.xlane.f32.xlu0 %v10866_v18  ;;  %v11036_v18 = vld [vmem:[#allocation4 + $0x80] sm:$0xff] }
 0x4ae   : > { %1726 = vadd.xlane.f32.xlu1 %v10880_v12  ;;  %v9224_v12 = vld [vmem:[%s10320_s27 + $0x64] ss:$8 sps:$4 sm:$0xff]  }
 0x4af   : > { %8946 = vmatprep.subr.bf16.mxu0 %v9224_v12 }
 0x4b0   : > { %1720 = vadd.xlane.f32.xlu0 %v10876_v1  ;;  %8947 = vmatpush3.bf16.msra.mxu0 %v9224_v12 }
 0x4b1   : > { %8948 = vmatprep.subr.bf16.mxu0 %v9225_v8 }
 0x4b2   : > { %1730 = vadd.xlane.f32.xlu1 %v10887_v5 }
 0x4b4   : > { %1724 = vadd.xlane.f32.xlu0 %v10882_v56  ;;  %8949 = vmatpush3.bf16.msra.mxu0 %v9225_v8  ;;  %v15825_v8 = vsub.f32 %v10721_v33, %v10730_v39  ;;  %v9227_v39 = vld [vmem:[%s10320_s27 + $0x34] ss:$8 sps:$4 sm:$0xff]  }
 0x4b5   : > { %8950 = vmatprep.subr.bf16.mxu0 %v9226_v26 }
 0x4b6   : > { %v1526_v60 = vmul.f32 1.442695, %v15825_v8  ;;  %v11097_v8 = vld [vmem:[#allocation4 + $0xd0] sm:$0xff] }
 0x4b8   : > { %1728 = vadd.xlane.f32.xlu0 %v10889_v13  ;;  %8951 = vmatpush3.bf16.msra.mxu0 %v9226_v26  ;;  %9275 = vpow2.f32 %v1526_v60  ;;  %v15826_v26 = vsub.f32 %v10777_v0, %v10790_v27  ;;  %v15827_v60 = vsub.f32 %v10714_v31, %v10725_v36  ;;  %v11135_v0 = vld [vmem:[#allocation4 + $0xd8] sm:$0xff]  ;;  %v11162_v36 = vld [vmem:[#allocation4 + $0xc8] sm:$0xff] }
 0x4b9   : > { %8952 = vmatprep.subr.bf16.mxu0 %v9227_v39 }
 0x4ba   : > { %v1530_v44 = vmul.f32 1.442695, %v15826_v26  ;;  %v1524_v46 = vmul.f32 1.442695, %v15827_v60 }
 0x4bc   : > { %1732 = vadd.xlane.f32.xlu0 %v10895_v4  ;;  %v11049_v4 = vld [vmem:[#allocation4 + $0x98] sm:$0xff]  ;;  %8953 = vmatpush3.bf16.msra.mxu0 %v9227_v39  ;;  %v15828_v39 = vsub.f32 %v10757_v48, %v10770_v55  ;;  %9277 = vpow2.f32 %v1530_v44  ;;  %v15829_v48 = vsub.f32 %v10767_v54, %v10785_v16  ;;  %v15831_v54 = vsub.f32 %v10821_v10, %v10832_v53 }
 0x4bd   : > { %9279 = vpow2.f32 %v1524_v46  ;;  %v11150_v46 = vld [vmem:[#allocation4 + $0xf0] sm:$0xff]  ;;  %v1679_v10 = vld [vmem:[#allocation5 + $0x38] sm:$0xff] }
 0x4be   : > { %v1534_v31 = vmul.f32 1.442695, %v15828_v39  ;;  %v1528_v55 = vmul.f32 1.442695, %v15829_v48  ;;  %15830 = vst [vmem:[#allocation52_spill] sm:$0xff] %v11150_v46  ;;  %v11177_v48 = vld [vmem:[#allocation4 + $0xe0] sm:$0xff] }
 0x4bf   : > { %v1538_v16 = vmul.f32 1.442695, %v15831_v54 }
 0x4c0   : > { %9281 = vpow2.f32 %v1534_v31  ;;  %v15832_v31 = vsub.f32 %v10747_v24, %v10765_v52  ;;  %v1681_v24 = vld [vmem:[#allocation5 + $0x48] sm:$0xff] }
 0x4c1   : > { %9283 = vpow2.f32 %v1528_v55 }
 0x4c2   : > { %v1532_v53 = vmul.f32 1.442695, %v15832_v31  ;;  %9285 = vpow2.f32 %v1538_v16  ;;  %v11188_v31 = vld [vmem:[#allocation4 + $0xf8] sm:$0xff]  ;;  %v15835_v16 = vsub.f32 %v10810_v49, %v10829_v35 }
 0x4c3   : > { %15834 = vst [vmem:[#allocation54_spill] sm:$0xff] %v11188_v31 }
 0x4c4   : > { %9287 = vpow2.f32 %v1532_v53  ;;  %v1536_v30 = vmul.f32 1.442695, %v15835_v16  ;;  %v11212_v16 = vld [vmem:[#allocation4 + $0xe8] sm:$0xff]  ;;  %v1683_v53 = vld [vmem:[#allocation5 + $0x58] sm:$0xff] }
 0x4c5   : > { %v11186_v55 = vpop.eup %9275 }
 0x4c6   : > { %v1695_v35 = vmul.f32 %v11186_v55, %v1679_v10  ;;  %9289 = vpow2.f32 %v1536_v30 }
 0x4c7   : > { %9291 = vpow2.f32 %v1540_v6 }
 0x50f   : > { %v2345_v57 = vpop.xlane.xlu1 %2344 }
 0x510   : > { %v11040_v1 = vmax.f32 %v11034_v3, %v2345_v57 }
 0x511   : > { %v2341_v5 = vpop.xlane.xlu0 %2340 }
 0x512   : > { %2960 = vst.msk [vmem:[#allocation4 + $0x90] sm:$0xff] %vm1752_vm1, %v11040_v1  ;;  %v11047_v13 = vmax.f32 %v11036_v18, %v2341_v5 }
 0x514   : > { %2958 = vst.msk [vmem:[#allocation4 + $0x80] sm:$0xff] %vm1752_vm1, %v11047_v13  ;;  %2438 = vperm.xlu1 %9182, %v11047_v13  }
 0x515   : > { %v2347_v56 = vpop.xlane.xlu0 %2346 }
 0x516   : > { %v11060_v5 = vmax.f32 %v11049_v4, %v2347_v56  ;;  %v11073_v56 = vld [vmem:[#allocation4 + $0xa0] sm:$0xff] }
 0x517   : > { %v2353_v12 = vpop.xlane.xlu1 %2352 }
 0x518   : > { %2961 = vst.msk [vmem:[#allocation4 + $0x98] sm:$0xff] %vm1752_vm1, %v11060_v5  ;;  %v11069_v57 = vmax.f32 %v11057_v59, %v2353_v12  ;;  %2448 = vperm.xlu1 %9182, %v11040_v1  }
 0x519   : > { %v2343_v20 = vpop.xlane.xlu0 %2342 }
 0x51a   : > { %2964 = vst.msk [vmem:[#allocation4 + $0xb0] sm:$0xff] %vm1752_vm1, %v11069_v57  ;;  %v11083_v12 = vmax.f32 %v11062_v22, %v2343_v20 }
 0x51b   : > { %v2349_v17 = vpop.xlane.xlu1 %2348 }
 0x51c   : > { %2959 = vst.msk [vmem:[#allocation4 + $0x88] sm:$0xff] %vm1752_vm1, %v11083_v12  ;;  %v11092_v33 = vmax.f32 %v11073_v56, %v2349_v17  ;;  %2443 = vperm.xlu0 %9181, %v11083_v12   ;;  %2453 = vperm.xlu1 %9182, %v11060_v5  }
 0x51d   : > { %v2355_v20 = vpop.xlane.xlu0 %2354 }
 0x51e   : > { %2962 = vst.msk [vmem:[#allocation4 + $0xa0] sm:$0xff] %vm1752_vm1, %v11092_v33  ;;  %v11107_v17 = vmax.f32 %v11085_v14, %v2355_v20  ;;  %v9228_v20 = vld [vmem:[%s10320_s27 + $0x24] ss:$8 sps:$4 sm:$0xff]  }
 0x51f   : > { %v2361_v19 = vpop.xlane.xlu1 %2360  ;;  %8954 = vmatprep.subr.bf16.mxu0 %v9228_v20 }
 0x520   : > { %2965 = vst.msk [vmem:[#allocation4 + $0xb8] sm:$0xff] %vm1752_vm1, %v11107_v17  ;;  %v11119_v27 = vmax.f32 %v11097_v8, %v2361_v19  ;;  %2458 = vperm.xlu0 %9181, %v11092_v33   ;;  %8955 = vmatpush3.bf16.msra.mxu0 %v9228_v20 }
 0x521   : > { %v2351_v26 = vpop.xlane.xlu0 %2350 }
 0x522   : > { %2968 = vst.msk [vmem:[#allocation4 + $0xd0] sm:$0xff] %vm1752_vm1, %v11119_v27  ;;  %v11133_v19 = vmax.f32 %v11109_v11, %v2351_v26  ;;  %v9229_v26 = vld [vmem:[%s10320_s27 + $0x14] ss:$8 sps:$4 sm:$0xff]  }
 0x523   : > { %v2357_v60 = vpop.xlane.xlu1 %2356  ;;  %8956 = vmatprep.subr.bf16.mxu0 %v9229_v26 }
 0x524   : > { %2963 = vst.msk [vmem:[#allocation4 + $0xa8] sm:$0xff] %vm1752_vm1, %v11133_v19  ;;  %v11145_v39 = vmax.f32 %v11123_v25, %v2357_v60  ;;  %2463 = vperm.xlu1 %9182, %v11133_v19   ;;  %2468 = vperm.xlu0 %9181, %v11069_v57  }
 0x525   : > { %v2363_v20 = vpop.xlane.xlu0 %2362  ;;  %8957 = vmatpush3.bf16.msra.mxu0 %v9229_v26 }
 0x526   : > { %2966 = vst.msk [vmem:[#allocation4 + $0xc0] sm:$0xff] %vm1752_vm1, %v11145_v39  ;;  %v11160_v60 = vmax.f32 %v11135_v0, %v2363_v20  ;;  %v9230_v20 = vld [vmem:[%s10320_s27 + $0x4] ss:$8 sps:$4 sm:$0xff]  }
 0x527   : > { %v2369_v44 = vpop.xlane.xlu1 %2368  ;;  %8958 = vmatprep.subr.bf16.mxu0 %v9230_v20 }
 0x528   : > { %2969 = vst.msk [vmem:[#allocation4 + $0xd8] sm:$0xff] %vm1752_vm1, %v11160_v60  ;;  %v11172_v54 = vmax.f32 %v11150_v46, %v2369_v44  ;;  %2473 = vperm.xlu1 %9182, %v11107_v17   ;;  %2478 = vperm.xlu0 %9181, %v11145_v39  }
 0x529   : > { %v2359_v26 = vpop.xlane.xlu0 %2358  ;;  %8959 = vmatpush3.bf16.msra.mxu0 %v9230_v20  ;;  %v11210_v20 = vpop.eup %9277 }
 0x52a   : > { %15833 = vst [vmem:[#allocation53_spill] sm:$0xff] %v11172_v54  ;;  %2972 = vst.msk [vmem:[#allocation4 + $0xf0] sm:$0xff] %vm1752_vm1, %v11172_v54  ;;  %v11184_v52 = vmax.f32 %v11162_v36, %v2359_v26  ;;  %v9280_v10 = vpop.eup %9279  ;;  %v1697_v43 = vmul.f32 %v11210_v20, %v1681_v24  ;;  %v1680_v24 = vld [vmem:[#allocation5 + $0x40] sm:$0xff] }
 0x52b   : > { %v2365_v44 = vpop.xlane.xlu1 %2364  ;;  %v11228_v30 = vpop.eup %9281 }
 0x52c   : > { %2967 = vst.msk [vmem:[#allocation4 + $0xc8] sm:$0xff] %vm1752_vm1, %v11184_v52  ;;  %v11198_v26 = vmax.f32 %v11177_v48, %v2365_v44  ;;  %2483 = vperm.xlu1 %9182, %v11184_v52   ;;  %2488 = vperm.xlu0 %9181, %v11119_v27   ;;  %v1699_v6 = vmul.f32 %v11228_v30, %v1683_v53 }
 0x52d   : > { %v2371_v46 = vpop.xlane.xlu0 %2370 }
 0x52e   : > { %2970 = vst.msk [vmem:[#allocation4 + $0xe0] sm:$0xff] %vm1752_vm1, %v11198_v26  ;;  %v11207_v49 = vmax.f32 %v11188_v31, %v2371_v46 }
 0x52f   : > { %v1719_v44 = vpop.xlane.xlu1 %1718 }
 0x530   : > { %2973 = vst.msk [vmem:[#allocation4 + $0xf8] sm:$0xff] %vm1752_vm1, %v11207_v49  ;;  %v1743_v46 = vadd.f32 %v1719_v44, %v1695_v35  ;;  %2493 = vperm.xlu1 %9182, %v11160_v60   ;;  %2498 = vperm.xlu0 %9181, %v11198_v26   ;;  %v1685_v35 = vld [vmem:[#allocation5 + $0x68] sm:$0xff] }
 0x531   : > { %v2367_v23 = vpop.xlane.xlu0 %2366 }
 0x532   : > { %1760 = vst.msk [vmem:[#allocation5 + $0x38] sm:$0xff] %vm1752_vm1, %v1743_v46  ;;  %v11225_v21 = vmax.f32 %v11212_v16, %v2367_v23  ;;  %v1694_v23 = vmul.f32 %v9280_v10, %v1678_v58  ;;  %v9284_v46 = vpop.eup %9283  ;;  %v1682_v58 = vld [vmem:[#allocation5 + $0x50] sm:$0xff] }
 0x533   : > { %v1723_v41 = vpop.xlane.xlu1 %1722  ;;  %v9286_v45 = vpop.eup %9285 }
 0x534   : > { %2971 = vst.msk [vmem:[#allocation4 + $0xe8] sm:$0xff] %vm1752_vm1, %v11225_v21  ;;  %v1745_v44 = vadd.f32 %v1723_v41, %v1697_v43  ;;  %2503 = vperm.xlu1 %9182, %v11225_v21   ;;  %2508 = vperm.xlu0 %9181, %v11172_v54   ;;  %v1696_v43 = vmul.f32 %v9284_v46, %v1680_v24  ;;  %v9288_v41 = vpop.eup %9287 }
 0x535   : > { %v1717_v31 = vpop.xlane.xlu0 %1716  ;;  %v1701_v2 = vmul.f32 %v9286_v45, %v1685_v35  ;;  %v1698_v53 = vmul.f32 %v9288_v41, %v1682_v58  ;;  %v15838_v58 = vsub.f32 %v11062_v22, %v11083_v12  ;;  %v15842_v22 = vsub.f32 %v11057_v59, %v11069_v57 }
 0x536   : > { %1762 = vst.msk [vmem:[#allocation5 + $0x48] sm:$0xff] %vm1752_vm1, %v1745_v44  ;;  %v1742_v61 = vadd.f32 %v1717_v31, %v1694_v23  ;;  %v9290_v23 = vpop.eup %9289  ;;  %v15845_v59 = vsub.f32 %v11085_v14, %v11107_v17  ;;  %v15846_v57 = vsub.f32 %v11123_v25, %v11145_v39  ;;  %v15848_v17 = vsub.f32 %v11177_v48, %v11198_v26 }
 0x537   : > { %v1727_v29 = vpop.xlane.xlu1 %1726  ;;  %v2416_v12 = vmul.f32 1.442695, %v15842_v22  ;;  %v15849_v39 = vsub.f32 %v11135_v0, %v11160_v60  ;;  %v15850_v48 = vsub.f32 %v11162_v36, %v11184_v52  ;;  %v15851_v0 = vsub.f32 %v11212_v16, %v11225_v21  ;;  %v15856_v22 = vld [vmem:[#allocation42_spill] sm:$0xff] }
 0x538   : > { %1759 = vst.msk [vmem:[#allocation5 + $0x30] sm:$0xff] %vm1752_vm1, %v1742_v61  ;;  %v1747_v7 = vadd.f32 %v1727_v29, %v1699_v6  ;;  %2513 = vperm.xlu1 %9182, %v11207_v49   ;;  %v1684_v29 = vld [vmem:[#allocation5 + $0x60] sm:$0xff]  ;;  %v1686_v6 = vld [vmem:[#allocation5 + $0x70] sm:$0xff] }
 0x539   : > { %v1721_v54 = vpop.xlane.xlu0 %1720  ;;  %v2422_v26 = vmul.f32 1.442695, %v15850_v48  ;;  %v2430_v60 = vmul.f32 1.442695, %v15851_v0 }
 0x53a   : > { %1764 = vst.msk [vmem:[#allocation5 + $0x58] sm:$0xff] %vm1752_vm1, %v1747_v7  ;;  %v1744_v42 = vadd.f32 %v1721_v54, %v1696_v43  ;;  %v1700_v7 = vmul.f32 %v9290_v23, %v1684_v29  ;;  %v9292_v54 = vpop.eup %9291 }
 0x53b   : > { %v1731_v44 = vpop.xlane.xlu1 %1730 }
 0x53c   : > { %1761 = vst.msk [vmem:[#allocation5 + $0x40] sm:$0xff] %vm1752_vm1, %v1744_v42  ;;  %v1749_v31 = vadd.f32 %v1731_v44, %v1701_v2  ;;  %1787 = vperm.xlu1 %9182, %v10919_v15   ;;  %v1702_v15 = vmul.f32 %v9292_v54, %v1686_v6  ;;  %v2406_v44 = vmul.f32 1.442695, %v15838_v58  ;;  %v15853_v58 = vld [vmem:[#allocation40_spill] sm:$0xff] }
 0x53d   : > { %v1725_v61 = vpop.xlane.xlu0 %1724 }
 0x53e   : > { %1766 = vst.msk [vmem:[#allocation5 + $0x68] sm:$0xff] %vm1752_vm1, %v1749_v31  ;;  %v1746_v24 = vadd.f32 %v1725_v61, %v1698_v53 }
 0x540   : > { %1763 = vst.msk [vmem:[#allocation5 + $0x50] sm:$0xff] %vm1752_vm1, %v1746_v24  ;;  %1792 = vperm.xlu1 %9182, %v10931_v47  }
 0x541   : > { %v1729_v35 = vpop.xlane.xlu0 %1728 }
 0x542   : > { %v1748_v43 = vadd.f32 %v1729_v35, %v1700_v7 }
 0x544   : > { %1765 = vst.msk [vmem:[#allocation5 + $0x60] sm:$0xff] %vm1752_vm1, %v1748_v43  ;;  %1797 = vperm.xlu1 %9182, %v10914_v63   ;;  %v15837_v63 = vsub.f32 %v10797_v34, %v10814_v50  ;;  %v15841_v34 = vsub.f32 %v11034_v3, %v11040_v1  ;;  %v2418_v3 = vmul.f32 1.442695, %v15845_v59 }
 0x545   : > { %v1733_v42 = vpop.xlane.xlu0 %1732 }
 0x546   : > { %v1750_v2 = vadd.f32 %v1733_v42, %v1702_v15  ;;  %v1542_v47 = vmul.f32 1.442695, %v15837_v63  ;;  %v2408_v50 = vmul.f32 1.442695, %v15841_v34  ;;  %v15855_v34 = vld [vmem:[#allocation45_spill] sm:$0xff] }
 0x548   : > { %1767 = vst.msk [vmem:[#allocation5 + $0x70] sm:$0xff] %vm1752_vm1, %v1750_v2  ;;  %1802 = vperm.xlu1 %9182, %v10928_v38   ;;  %9293 = vpow2.f32 %v1542_v47  ;;  %v15839_v38 = vsub.f32 %v11036_v18, %v11047_v13  ;;  %v15843_v18 = vsub.f32 %v11049_v4, %v11060_v5  ;;  %v2420_v4 = vmul.f32 1.442695, %v15846_v57  ;;  %v15852_v2 = vld [vmem:[#allocation41_spill] sm:$0xff]  ;;  %v15857_v57 = vld [vmem:[#allocation44_spill] sm:$0xff] }
 0x549   : > { %9295 = vpow2.f32 %v2406_v44 }
 0x54a   : > { %v2410_v13 = vmul.f32 1.442695, %v15843_v18 }
 0x54c   : > { %1807 = vperm.xlu1 %9182, %v10935_v40   ;;  %v2404_v40 = vmul.f32 1.442695, %v15839_v38  ;;  %v15854_v38 = vld [vmem:[#allocation43_spill] sm:$0xff] }
 0x54e   : > { %9297 = vpow2.f32 %v2404_v40 }
 0x550   : > { %1812 = vperm.xlu1 %9182, %v10939_v62  }
 0x553   : > { %1734 = vadd.xlane.f32.xlu0 %v10893_v28  ;;  %v15840_v28 = vsub.f32 %v11073_v56, %v11092_v33  ;;  %v15844_v56 = vsub.f32 %v11097_v8, %v11119_v27  ;;  %v2428_v27 = vmul.f32 1.442695, %v15848_v17 }
 0x554   : > { %1817 = vperm.xlu1 %9182, %v9280_v10  }
 0x555   : > { %v2412_v62 = vmul.f32 1.442695, %v15840_v28  ;;  %v2424_v33 = vmul.f32 1.442695, %v15844_v56  ;;  %v11283_v1 = vpop.eup %9293 }
 0x556   : > { %v11288_v5 = vpop.eup %9295 }
 0x557   : > { %9299 = vpow2.f32 %v2412_v62 }
 0x558   : > { %1822 = vperm.xlu1 %9182, %v11186_v55   ;;  %9301 = vpow2.f32 %v2408_v50  ;;  %v2426_v55 = vmul.f32 1.442695, %v15849_v39 }
 0x559   : > { %9303 = vpow2.f32 %v2416_v12 }
 0x55a   : > { %9305 = vpow2.f32 %v2410_v13 }
 0x55b   : > { %9307 = vpow2.f32 %v2424_v33  ;;  %v11295_v14 = vpop.eup %9297 }
 0x55c   : > { %1832 = vperm.xlu1 %9182, %v11210_v20   ;;  %9309 = vpow2.f32 %v2418_v3 }
 0x55d   : > { %9311 = vpow2.f32 %v2420_v4 }
 0x560   : > { %1837 = vperm.xlu1 %9182, %v9288_v41  }
 0x564   : > { %1842 = vperm.xlu1 %9182, %v11228_v30   ;;  %v11300_v25 = vpop.eup %9299 }
 0x568   : > { %1847 = vperm.xlu1 %9182, %v9290_v23  }
 0x569   : > { %1827 = vperm.xlu0 %9181, %v9284_v46  }
 0x56c   : > { %1852 = vperm.xlu1 %9182, %v9286_v45   ;;  %v15847_v45 = vsub.f32 %v11109_v11, %v11133_v19  ;;  %v11307_v11 = vpop.eup %9301 }
 0x56d   : > { %1857 = vperm.xlu0 %9181, %v9292_v54   ;;  %v11309_v19 = vpop.eup %9303 }
 0x56e   : > { %v2414_v8 = vmul.f32 1.442695, %v15847_v45  ;;  %v11316_v20 = vpop.eup %9305  ;;  %v15858_v45 = vld [vmem:[#allocation47_spill] sm:$0xff] }
 0x56f   : > { %v11318_v10 = vpop.eup %9307 }
 0x570   : > { %1862 = vperm.xlu1 %9182, %v11283_v1   ;;  %9313 = vpow2.f32 %v2414_v8  ;;  %v11325_v30 = vpop.eup %9309 }
 0x571   : > { %2684 = vperm.xlu0 %9181, %v11288_v5   ;;  %9315 = vpow2.f32 %v2428_v27  ;;  %v11327_v46 = vpop.eup %9311 }
 0x572   : > { %9317 = vpow2.f32 %v2426_v55 }
 0x573   : > { %9319 = vpow2.f32 %v2422_v26 }
 0x574   : > { %2679 = vperm.xlu1 %9182, %v11295_v14   ;;  %9321 = vpow2.f32 %v2430_v60 }
 0x575   : > { %2699 = vperm.xlu0 %9181, %v11300_v25  }
 0x578   : > { %2689 = vperm.xlu1 %9182, %v11307_v11  }
 0x579   : > { %2709 = vperm.xlu0 %9181, %v11309_v19  }
 0x57c   : > { %2694 = vperm.xlu1 %9182, %v11316_v20  }
 0x57d   : > { %2729 = vperm.xlu0 %9181, %v11318_v10   ;;  %v11331_v36 = vpop.eup %9313 }
 0x57e   : > { %v11333_v52 = vpop.eup %9315 }
 0x57f   : > { %v11337_v41 = vpop.eup %9317 }
 0x580   : > { %2714 = vperm.xlu1 %9182, %v11325_v30   ;;  %v11340_v16 = vpop.eup %9319 }
 0x581   : > { %2719 = vperm.xlu0 %9181, %v11327_v46   ;;  %v11343_v21 = vpop.eup %9321 }
 0x584   : > { %2704 = vperm.xlu1 %9182, %v11331_v36  }
 0x585   : > { %2739 = vperm.xlu0 %9181, %v11333_v52  }
 0x588   : > { %2734 = vperm.xlu1 %9182, %v11337_v41  }
 0x58c   : > { %2724 = vperm.xlu1 %9182, %v11340_v16  }
 0x58f   : > { %v2439_v31 = vpop.permute.xlu1 %2438 }
 0x590   : > { %2744 = vperm.xlu1 %9182, %v11343_v21   ;;  %v2516_v53 = vsub.f32 %v10979_v32, %v2439_v31  ;;  %v15859_v31 = vld [vmem:[#allocation49_spill] sm:$0xff] }
 0x592   : > { %v2532_v24 = vmul.f32 1.442695, %v2516_v53 }
 0x593   : > { %v2449_v23 = vpop.permute.xlu1 %2448 }
 0x594   : > { %v2518_v61 = vsub.f32 %v10976_v37, %v2449_v23  ;;  %v15860_v23 = vld [vmem:[#allocation46_spill] sm:$0xff] }
 0x596   : > { %v2536_v29 = vmul.f32 1.442695, %v2518_v61 }
 0x597   : > { %v2444_v7 = vpop.permute.xlu0 %2443  ;;  %v2454_v54 = vpop.permute.xlu1 %2453 }
 0x598   : > { %9323 = vpow2.f32 %v2536_v29  ;;  %v2517_v35 = vsub.f32 %v10984_v9, %v2444_v7  ;;  %v2519_v6 = vsub.f32 %v10982_v51, %v2454_v54 }
 0x599   : > { %9325 = vpow2.f32 %v2532_v24 }
 0x59a   : > { %v2534_v43 = vmul.f32 1.442695, %v2517_v35  ;;  %v2538_v15 = vmul.f32 1.442695, %v2519_v6  ;;  %v15861_v35 = vld [vmem:[#allocation48_spill] sm:$0xff] }
 0x59b   : > { %v2459_v42 = vpop.permute.xlu0 %2458 }
 0x59c   : > { %9327 = vpow2.f32 %v2534_v43  ;;  %v2520_v63 = vsub.f32 %v15852_v2, %v2459_v42  ;;  %v15862_v43 = vld [vmem:[#allocation51_spill] sm:$0xff] }
 0x59d   : > { %9329 = vpow2.f32 %v2538_v15 }
 0x59e   : > { %v2540_v37 = vmul.f32 1.442695, %v2520_v63 }
 0x59f   : > { %v2469_v32 = vpop.permute.xlu0 %2468  ;;  %v2464_v47 = vpop.permute.xlu1 %2463 }
 0x5a0   : > { %v2522_v44 = vsub.f32 %v15853_v58, %v2469_v32  ;;  %v2521_v40 = vsub.f32 %v15854_v38, %v2464_v47  ;;  %9331 = vpow2.f32 %v2540_v37  ;;  %v15863_v58 = vld [vmem:[#allocation50_spill] sm:$0xff] }
 0x5a2   : > { %v2542_v28 = vmul.f32 1.442695, %v2521_v40  ;;  %v2544_v51 = vmul.f32 1.442695, %v2522_v44  ;;  %v1769_v40 = vld [vmem:[#allocation3 + $0xb0] sm:$0xff] }
 0x5a3   : > { %v2479_v62 = vpop.permute.xlu0 %2478  ;;  %v2474_v9 = vpop.permute.xlu1 %2473 }
 0x5a4   : > { %v2524_v50 = vsub.f32 %v15855_v34, %v2479_v62  ;;  %v2523_v12 = vsub.f32 %v15856_v22, %v2474_v9  ;;  %9333 = vpow2.f32 %v2542_v28  ;;  %v1770_v22 = vld [vmem:[#allocation3 + $0xd8] sm:$0xff] }
 0x5a5   : > { %v9324_v18 = vpop.eup %9323  ;;  %9335 = vpow2.f32 %v2544_v51 }
 0x5a6   : > { %v2546_v13 = vmul.f32 1.442695, %v2523_v12  ;;  %2601 = vadd.xlane.f32.xlu0 %v9324_v18  ;;  %v9326_v59 = vpop.eup %9325  ;;  %v2548_v3 = vmul.f32 1.442695, %v2524_v50 }
 0x5a7   : > { %v2489_v56 = vpop.permute.xlu0 %2488  ;;  %v2484_v33 = vpop.permute.xlu1 %2483 }
 0x5a8   : > { %v2526_v4 = vsub.f32 %v15857_v57, %v2489_v56  ;;  %v2525_v8 = vsub.f32 %v15858_v45, %v2484_v33  ;;  %9337 = vpow2.f32 %v2546_v13  ;;  %v1771_v57 = vld [vmem:[#allocation3 + $0x50] sm:$0xff]  ;;  %v15865_v45 = vld [vmem:[#allocation27_spill] sm:$0xff] }
 0x5a9   : > { %v9328_v17 = vpop.eup %9327  ;;  %9339 = vpow2.f32 %v2548_v3 }
 0x5aa   : > { %v9330_v27 = vpop.eup %9329  ;;  %v2550_v39 = vmul.f32 1.442695, %v2525_v8  ;;  %2597 = vadd.xlane.f32.xlu0 %v9326_v59  ;;  %v2773_v55 = vpack.c.bf16 %v9328_v17, %v9326_v59  ;;  %v2552_v60 = vmul.f32 1.442695, %v2526_v4 }
 0x5ab   : > { %v2499_v48 = vpop.permute.xlu0 %2498  ;;  %v2494_v26 = vpop.permute.xlu1 %2493  ;;  %v2774_v0 = vpack.c.bf16 %v9330_v27, %v9324_v18  ;;  %v15864_v18 = vld [vmem:[#allocation25_spill] sm:$0xff] }
 0x5ac   : > { %v2528_v53 = vsub.f32 %v15859_v31, %v2499_v48  ;;  %v2527_v61 = vsub.f32 %v15860_v23, %v2494_v26  ;;  %8960 = vmatprep.mubr.bf16.mxu0 %v2773_v55  ;;  %9341 = vpow2.f32 %v2550_v39  ;;  %v1772_v48 = vld [vmem:[#allocation3 + $0x30] sm:$0xff] }
 0x5ad   : > { %8961 = vmatmul.mubr.bf16.vlgmr.msra.gmra.mxu0 %v2774_v0  ;;  %9343 = vpow2.f32 %v2552_v60  ;;  %v9332_v42 = vpop.eup %9331  ;;  %v15866_v0 = vld [vmem:[#allocation24_spill] sm:$0xff] }
 0x5ae   : > { %v2554_v29 = vmul.f32 1.442695, %v2527_v61  ;;  %2603 = vadd.xlane.f32.xlu0 %v9330_v27  ;;  %v2556_v54 = vmul.f32 1.442695, %v2528_v53 }
 0x5af   : > { %v2509_v24 = vpop.permute.xlu0 %2508  ;;  %v2504_v7 = vpop.permute.xlu1 %2503 }
 0x5b0   : > { %v2530_v6 = vsub.f32 %v15861_v35, %v2509_v24  ;;  %v2529_v15 = vsub.f32 %v15862_v43, %v2504_v7  ;;  %9345 = vpow2.f32 %v2554_v29  ;;  %v1773_v24 = vld [vmem:[#allocation3 + $0x80] sm:$0xff]  ;;  %v15867_v7 = vld [vmem:[#allocation26_spill] sm:$0xff] }
 0x5b1   : > { %v9334_v2 = vpop.eup %9333  ;;  %9347 = vpow2.f32 %v2556_v54 }
 0x5b2   : > { %v2558_v63 = vmul.f32 1.442695, %v2529_v15  ;;  %v2560_v32 = vmul.f32 1.442695, %v2530_v6  ;;  %v2775_v37 = vpack.c.bf16 %v9334_v2, %v9332_v42  ;;  %v9336_v38 = vpop.eup %9335  ;;  %v1774_v15 = vld [vmem:[#allocation3 + $0xe8] sm:$0xff] }
 0x5b3   : > { %v2514_v47 = vpop.permute.xlu1 %2513 }
 0x5b4   : > { %v2531_v44 = vsub.f32 %v15863_v58, %v2514_v47  ;;  %2599 = vadd.xlane.f32.xlu1 %v9328_v17  ;;  %9349 = vpow2.f32 %v2558_v63  ;;  %8964 = vmatprep.mubr.bf16.mxu0 %v2775_v37  ;;  %v15869_v63 = vld [vmem:[#allocation54_spill] sm:$0xff] }
 0x5b5   : > { %v9338_v28 = vpop.eup %9337  ;;  %9351 = vpow2.f32 %v2560_v32  ;;  %v15870_v32 = vsub.f32 %v15869_v63, %v11207_v49 }
 0x5b6   : > { %v2562_v62 = vmul.f32 1.442695, %v2531_v44  ;;  %2611 = vadd.xlane.f32.xlu0 %v9338_v28  ;;  %v2776_v51 = vpack.c.bf16 %v9338_v28, %v9336_v38  ;;  %v9340_v50 = vpop.eup %9339  ;;  %v1775_v44 = vld [vmem:[#allocation3 + $0x60] sm:$0xff] }
 0x5b7   : > { %v1788_v9 = vpop.permute.xlu1 %1787  ;;  %v2434_v47 = vmul.f32 1.442695, %v15870_v32  ;;  %v15872_v28 = vld [vmem:[#allocation52_spill] sm:$0xff] }
 0x5b8   : > { %9353 = vpow2.f32 %v2562_v62  ;;  %v1865_v34 = vmul.f32 %v1788_v9, %v1769_v40  ;;  %2609 = vadd.xlane.f32.xlu1 %v9336_v38  ;;  %8965 = vmatmul.mubr.bf16.gmra.mxu0 %v2776_v51  ;;  %v15871_v38 = vld [vmem:[#allocation31_spill] sm:$0xff]  ;;  %v15873_v62 = vld [vmem:[#allocation53_spill] sm:$0xff]  ;;  %v1783_v32 = vld [vmem:[#allocation3 + $0xa0] sm:$0xff] }
 0x5b9   : > { %v9342_v12 = vpop.eup %9341  ;;  %v15874_v9 = vsub.f32 %v15872_v28, %v15873_v62  ;;  %9355 = vpow2.f32 %v2434_v47  ;;  %v15881_v47 = vld [vmem:[#allocation33_spill] sm:$0xff]  ;;  %v1784_v28 = vld [vmem:[#allocation3 + $0x20] sm:$0xff]  ;;  %v15882_v62 = vld [vmem:[#allocation39_spill] sm:$0xff] }
 0x5ba   : > { %v2034_v13 = vadd.f32 %v15864_v18, %v1865_v34  ;;  %2607 = vadd.xlane.f32.xlu0 %v9334_v2  ;;  %v2777_v33 = vpack.c.bf16 %v9342_v12, %v9340_v50  ;;  %v9344_v3 = vpop.eup %9343 }
 0x5bb   : > { %v1793_v56 = vpop.permute.xlu1 %1792  ;;  %v2432_v51 = vmul.f32 1.442695, %v15874_v9 }
 0x5bc   : > { %2050 = vst [vmem:[#allocation3 + $0xb0] sm:$0xff] %v2034_v13  ;;  %v1866_v59 = vmul.f32 %v1793_v56, %v1770_v22  ;;  %2605 = vadd.xlane.f32.xlu1 %v9332_v42  ;;  %8968 = vmatprep.mubr.bf16.mxu0 %v2777_v33  ;;  %v15868_v42 = vld [vmem:[#allocation29_spill] sm:$0xff]  ;;  %v1778_v56 = vld [vmem:[#allocation3 + $0x40] sm:$0xff]  ;;  %v15876_v33 = vld [vmem:[#allocation30_spill] sm:$0xff] }
 0x5bd   : > { %v9346_v4 = vpop.eup %9345  ;;  %v1776_v22 = vld [vmem:[#allocation3 + $0x8] sm:$0xff]  ;;  %9357 = vpow2.f32 %v2432_v51  ;;  %v15883_v51 = vld [vmem:[#allocation36_spill] sm:$0xff] }
 0x5be   : > { %v2035_v8 = vadd.f32 %v15865_v45, %v1866_v59  ;;  %2619 = vadd.xlane.f32.xlu0 %v9346_v4  ;;  %v2778_v27 = vpack.c.bf16 %v9346_v4, %v9344_v3  ;;  %v9348_v55 = vpop.eup %9347  ;;  %v1687_v4 = vld [vmem:[#allocation5 + $0x78] sm:$0xff]  ;;  %v1779_v45 = vld [vmem:[#allocation3 + $0xe0] sm:$0xff] }
 0x5bf   : > { %v1798_v17 = vpop.permute.xlu1 %1797 }
 0x5c0   : > { %2051 = vst [vmem:[#allocation3 + $0xd8] sm:$0xff] %v2035_v8  ;;  %v1867_v39 = vmul.f32 %v1798_v17, %v1771_v57  ;;  %2617 = vadd.xlane.f32.xlu1 %v9344_v3  ;;  %8969 = vmatmul.mubr.bf16.gmra.mxu0 %v2778_v27  ;;  %v15877_v8 = vld [vmem:[#allocation35_spill] sm:$0xff] }
 0x5c1   : > { %v9350_v26 = vpop.eup %9349 }
 0x5c2   : > { %v2036_v60 = vadd.f32 %v15866_v0, %v1867_v39  ;;  %2615 = vadd.xlane.f32.xlu0 %v9342_v12  ;;  %v2779_v53 = vpack.c.bf16 %v9350_v26, %v9348_v55  ;;  %v9352_v23 = vpop.eup %9351  ;;  %v15875_v12 = vld [vmem:[#allocation28_spill] sm:$0xff]  ;;  %v1703_v39 = vmul.f32 %v11283_v1, %v1687_v4  ;;  %v1781_v1 = vld [vmem:[#allocation3 + $0xa8] sm:$0xff] }
 0x5c3   : > { %v1803_v31 = vpop.permute.xlu1 %1802 }
 0x5c4   : > { %2052 = vst [vmem:[#allocation3 + $0x50] sm:$0xff] %v2036_v60  ;;  %v1868_v61 = vmul.f32 %v1803_v31, %v1772_v48  ;;  %2613 = vadd.xlane.f32.xlu1 %v9340_v50  ;;  %8972 = vmatprep.mubr.bf16.mxu0 %v2779_v53  ;;  %v1780_v60 = vld [vmem:[#allocation3 + $0x70] sm:$0xff]  ;;  %v15878_v31 = vld [vmem:[#allocation32_spill] sm:$0xff] }
 0x5c5   : > { %v9354_v29 = vpop.eup %9353 }
 0x5c6   : > { %v2037_v54 = vadd.f32 %v15867_v7, %v1868_v61  ;;  %v2780_v35 = vpack.c.bf16 %v9354_v29, %v9352_v23  ;;  %2627 = vadd.xlane.f32.xlu0 %v9354_v29 }
 0x5c7   : > { %v1808_v6 = vpop.permute.xlu1 %1807 }
 0x5c8   : > { %2053 = vst [vmem:[#allocation3 + $0x30] sm:$0xff] %v2037_v54  ;;  %v1869_v43 = vmul.f32 %v1808_v6, %v1773_v24  ;;  %2625 = vadd.xlane.f32.xlu1 %v9352_v23  ;;  %8973 = vmatmul.mubr.bf16.gmra.mxu0 %v2780_v35  ;;  %v15879_v24 = vld [vmem:[#allocation34_spill] sm:$0xff]  ;;  %v1777_v54 = vld [vmem:[#allocation3 + $0x38] sm:$0xff] }
 0x5ca   : > { %v2038_v2 = vadd.f32 %v15868_v42, %v1869_v43  ;;  %2623 = vadd.xlane.f32.xlu0 %v9350_v26  ;;  %v1782_v42 = vld [vmem:[#allocation3 + $0x10] sm:$0xff] }
 0x5cb   : > { %v1813_v37 = vpop.permute.xlu1 %1812 }
 0x5cc   : > { %2054 = vst [vmem:[#allocation3 + $0x80] sm:$0xff] %v2038_v2  ;;  %v1870_v58 = vmul.f32 %v1813_v37, %v1774_v15  ;;  %2621 = vadd.xlane.f32.xlu1 %v9348_v55  ;;  %v11378_v55 = vpop.eup %9355  ;;  %v15880_v2 = vld [vmem:[#allocation37_spill] sm:$0xff] }
 0x5cd   : > { %v11383_v61 = vpop.eup %9357 }
 0x5ce   : > { %v2039_v40 = vadd.f32 %v15871_v38, %v1870_v58 }
 0x5cf   : > { %v1818_v34 = vpop.permute.xlu1 %1817 }
 0x5d0   : > { %2055 = vst [vmem:[#allocation3 + $0xe8] sm:$0xff] %v2039_v40  ;;  %v1871_v50 = vmul.f32 %v1818_v34, %v1775_v44 }
 0x5d2   : > { %v2040_v49 = vadd.f32 %v15875_v12, %v1871_v50  ;;  %v15884_v12 = vld [vmem:[#allocation38_spill] sm:$0xff] }
 0x5d3   : > { %v1823_v18 = vpop.permute.xlu1 %1822 }
 0x5d4   : > { %2056 = vst [vmem:[#allocation3 + $0x60] sm:$0xff] %v2040_v49  ;;  %v1872_v13 = vmul.f32 %v1823_v18, %v1776_v22 }
 0x5d6   : > { %v2041_v59 = vadd.f32 %v15876_v33, %v1872_v13 }
 0x5d7   : > { %v1833_v3 = vpop.permute.xlu1 %1832 }
 0x5d8   : > { %2057 = vst [vmem:[#allocation3 + $0x8] sm:$0xff] %v2041_v59  ;;  %v1874_v57 = vmul.f32 %v1833_v3, %v1778_v56 }
 0x5da   : > { %v2043_v17 = vadd.f32 %v15877_v8, %v1874_v57 }
 0x5db   : > { %v1838_v27 = vpop.permute.xlu1 %1837 }
 0x5dc   : > { %2059 = vst [vmem:[#allocation3 + $0x40] sm:$0xff] %v2043_v17  ;;  %v1875_v48 = vmul.f32 %v1838_v27, %v1779_v45  ;;  %v1735_v26 = vpop.xlane.xlu0 %1734  ;;  %v2567_v27 = vld [vmem:[#allocation5 + $0x90] sm:$0xff] }
 0x5dd   : > { %v1751_v0 = vadd.f32 %v1735_v26, %v1703_v39  ;;  %2754 = vperm.xlu1 %9182, %v11378_v55  }
 0x5de   : > { %v2044_v53 = vadd.f32 %v15878_v31, %v1875_v48  ;;  %v2583_v48 = vmul.f32 %v11307_v11, %v2567_v27  ;;  %v2566_v11 = vld [vmem:[#allocation5 + $0x88] sm:$0xff] }
 0x5df   : > { %1768 = vst.msk [vmem:[#allocation5 + $0x78] sm:$0xff] %vm1752_vm1, %v1751_v0  ;;  %v1843_v23 = vpop.permute.xlu1 %1842  ;;  %v2565_v0 = vld [vmem:[#allocation5 + $0x80] sm:$0xff] }
 0x5e0   : > { %2060 = vst [vmem:[#allocation3 + $0xe0] sm:$0xff] %v2044_v53  ;;  %v1876_v29 = vmul.f32 %v1843_v23, %v1780_v60  ;;  %2749 = vperm.xlu0 %9181, %v11383_v61   ;;  %v2581_v31 = vmul.f32 %v11295_v14, %v2565_v0 }
 0x5e2   : > { %v2045_v7 = vadd.f32 %v15879_v24, %v1876_v29  ;;  %v2568_v29 = vld [vmem:[#allocation5 + $0x98] sm:$0xff] }
 0x5e3   : > { %v1848_v35 = vpop.permute.xlu1 %1847  ;;  %v2584_v24 = vmul.f32 %v11316_v20, %v2568_v29 }
 0x5e4   : > { %2061 = vst [vmem:[#allocation3 + $0x70] sm:$0xff] %v2045_v7  ;;  %v1877_v6 = vmul.f32 %v1848_v35, %v1781_v1  ;;  %v1828_v43 = vpop.permute.xlu0 %1827 }
 0x5e5   : > { %v1873_v15 = vmul.f32 %v1828_v43, %v1777_v54  ;;  %v2572_v43 = vld [vmem:[#allocation5 + $0xb8] sm:$0xff] }
 0x5e6   : > { %v2046_v63 = vadd.f32 %v15880_v2, %v1877_v6  ;;  %v2582_v6 = vmul.f32 %v11288_v5, %v2566_v11  ;;  %v2588_v2 = vmul.f32 %v11325_v30, %v2572_v43  ;;  %v2576_v30 = vld [vmem:[#allocation5 + $0xd8] sm:$0xff] }
 0x5e7   : > { %v2042_v37 = vadd.f32 %v15881_v47, %v1873_v15  ;;  %v1853_v58 = vpop.permute.xlu1 %1852  ;;  %v2571_v15 = vld [vmem:[#allocation5 + $0xb0] sm:$0xff] }
 0x5e8   : > { %2062 = vst [vmem:[#allocation3 + $0xa8] sm:$0xff] %v2046_v63  ;;  %v1878_v44 = vmul.f32 %v1853_v58, %v1782_v42  ;;  %v1858_v38 = vpop.permute.xlu0 %1857  ;;  %v2587_v20 = vmul.f32 %v11309_v19, %v2571_v15  ;;  %v2569_v58 = vld [vmem:[#allocation5 + $0xa0] sm:$0xff]  ;;  %v2592_v19 = vmul.f32 %v11337_v41, %v2576_v30  ;;  %v2580_v41 = vld [vmem:[#allocation5 + $0xf8] sm:$0xff] }
 0x5e9   : > { %2058 = vst [vmem:[#allocation3 + $0x38] sm:$0xff] %v2042_v37  ;;  %v1879_v40 = vmul.f32 %v1858_v38, %v1783_v32  ;;  %v2570_v32 = vld [vmem:[#allocation5 + $0xa8] sm:$0xff] }
 0x5ea   : > { %v2047_v9 = vadd.f32 %v15882_v62, %v1878_v44  ;;  %v2586_v5 = vmul.f32 %v11331_v36, %v2570_v32  ;;  %v2574_v36 = vld [vmem:[#allocation5 + $0xc8] sm:$0xff] }
 0x5eb   : > { %v2048_v34 = vadd.f32 %v15883_v51, %v1879_v40  ;;  %v1863_v50 = vpop.permute.xlu1 %1862  ;;  %v2585_v40 = vmul.f32 %v11300_v25, %v2569_v58  ;;  %v2590_v25 = vmul.f32 %v11340_v16, %v2574_v36  ;;  %v2578_v16 = vld [vmem:[#allocation5 + $0xe8] sm:$0xff]  ;;  %v2671_v36 = vld [vmem:[#allocation3 + $0x90] sm:$0xff] }
 0x5ec   : > { %2063 = vst [vmem:[#allocation3 + $0x10] sm:$0xff] %v2047_v9  ;;  %v1880_v22 = vmul.f32 %v1863_v50, %v1784_v28  ;;  %v11392_v18 = vpop.permute.xlu0 %2684  ;;  %v2575_v9 = vld [vmem:[#allocation5 + $0xd0] sm:$0xff] }
 0x5ed   : > { %2064 = vst [vmem:[#allocation3 + $0xa0] sm:$0xff] %v2048_v34  ;;  %v2591_v50 = vmul.f32 %v11318_v10, %v2575_v9  ;;  %v2596_v10 = vmul.f32 %v11378_v55, %v2580_v41 }
 0x5ee   : > { %v2049_v49 = vadd.f32 %v15884_v12, %v1880_v22 }
 0x5ef   : > { %v11394_v13 = vpop.permute.xlu1 %2679 }
 0x5f0   : > { %2065 = vst [vmem:[#allocation3 + $0x20] sm:$0xff] %v2049_v49  ;;  %v11396_v56 = vpop.permute.xlu0 %2699  ;;  %v2573_v49 = vld [vmem:[#allocation5 + $0xc0] sm:$0xff] }
 0x5f3   : > { %v11398_v33 = vpop.permute.xlu1 %2689 }
 0x5f4   : > { %v11400_v59 = vpop.permute.xlu0 %2709 }
 0x5f7   : > { %v11402_v3 = vpop.permute.xlu1 %2694 }
 0x5f8   : > { %v11404_v57 = vpop.permute.xlu0 %2729 }
 0x5fb   : > { %v11406_v4 = vpop.permute.xlu1 %2714 }
 0x5fc   : > { %v11408_v45 = vpop.permute.xlu0 %2719 }
 0x5ff   : > { %v11410_v8 = vpop.permute.xlu1 %2704 }
 0x600   : > { %v11412_v17 = vpop.permute.xlu0 %2739 }
 0x603   : > { %v11414_v39 = vpop.permute.xlu1 %2734 }
 0x607   : > { %v11419_v53 = vpop.permute.xlu1 %2724 }
 0x60b   : > { %v11423_v35 = vpop.permute.xlu1 %2744 }
 0x62f   : > { %v2602_v26 = vpop.xlane.xlu0 %2601 }
 0x630   : > { %v2631_v60 = vadd.f32 %v2602_v26, %v2583_v48  ;;  %v2589_v26 = vmul.f32 %v11327_v46, %v2573_v49  ;;  %v2594_v46 = vmul.f32 %v11343_v21, %v2578_v16  ;;  %v2673_v16 = vld [vmem:[#allocation3 + $0xd0] sm:$0xff] }
 0x632   : > { %2647 = vst.msk [vmem:[#allocation5 + $0x90] sm:$0xff] %vm1752_vm1, %v2631_v60 }
 0x633   : > { %v2598_v23 = vpop.xlane.xlu0 %2597 }
 0x634   : > { %v2629_v1 = vadd.f32 %v2598_v23, %v2581_v31  ;;  %v2579_v31 = vld [vmem:[#allocation5 + $0xf0] sm:$0xff] }
 0x636   : > { %2645 = vst.msk [vmem:[#allocation5 + $0x80] sm:$0xff] %vm1752_vm1, %v2629_v1  ;;  %v2595_v1 = vmul.f32 %v11383_v61, %v2579_v31  ;;  %v2663_v61 = vld [vmem:[#allocation3 + $0x68] sm:$0xff] }
 0x637   : > { %v2604_v7 = vpop.xlane.xlu0 %2603 }
 0x638   : > { %v2632_v54 = vadd.f32 %v2604_v7, %v2584_v24 }
 0x63a   : > { %2648 = vst.msk [vmem:[#allocation5 + $0x98] sm:$0xff] %vm1752_vm1, %v2632_v54  ;;  %v2577_v54 = vld [vmem:[#allocation5 + $0xe0] sm:$0xff] }
 0x63b   : > { %v2593_v43 = vmul.f32 %v11333_v52, %v2577_v54  ;;  %v2676_v54 = vld [vmem:[#allocation3 + $0x98] sm:$0xff] }
 0x63d   : > { %v2600_v14 = vpop.xlane.xlu1 %2599 }
 0x63e   : > { %v2630_v42 = vadd.f32 %v2600_v14, %v2582_v6 }
 0x63f   : > { %v2612_v63 = vpop.xlane.xlu0 %2611 }
 0x640   : > { %2646 = vst.msk [vmem:[#allocation5 + $0x88] sm:$0xff] %vm1752_vm1, %v2630_v42  ;;  %v2636_v47 = vadd.f32 %v2612_v63, %v2588_v2  ;;  %v2661_v42 = vld [vmem:[#allocation3] sm:$0xff]  ;;  %v2759_v2 = vmul.f32 %v11398_v33, %v2663_v61  ;;  %v2664_v63 = vld [vmem:[#allocation3 + $0x48] sm:$0xff]  ;;  %v2667_v33 = vld [vmem:[#allocation3 + $0xf0] sm:$0xff] }
 0x641   : > { %v2610_v37 = vpop.xlane.xlu1 %2609  ;;  %v2757_v21 = vmul.f32 %v11394_v13, %v2661_v42  ;;  %v2760_v52 = vmul.f32 %v11402_v3, %v2664_v63  ;;  %v2763_v13 = vmul.f32 %v11400_v59, %v2667_v33  ;;  %v2767_v59 = vmul.f32 %v11404_v57, %v2671_v36 }
 0x642   : > { %v2635_v44 = vadd.f32 %v2610_v37, %v2587_v20  ;;  %2652 = vst.msk [vmem:[#allocation5 + $0xb8] sm:$0xff] %vm1752_vm1, %v2636_v47  ;;  %v2662_v47 = vld [vmem:[#allocation3 + $0x18] sm:$0xff] }
 0x643   : > { %v2608_v38 = vpop.xlane.xlu0 %2607 }
 0x644   : > { %2651 = vst.msk [vmem:[#allocation5 + $0xb0] sm:$0xff] %vm1752_vm1, %v2635_v44  ;;  %v2634_v28 = vadd.f32 %v2608_v38, %v2586_v5  ;;  %v2758_v5 = vmul.f32 %v11392_v18, %v2662_v47 }
 0x645   : > { %v2606_v62 = vpop.xlane.xlu1 %2605 }
 0x646   : > { %v2633_v51 = vadd.f32 %v2606_v62, %v2585_v40  ;;  %2650 = vst.msk [vmem:[#allocation5 + $0xa8] sm:$0xff] %vm1752_vm1, %v2634_v28  ;;  %v2665_v28 = vld [vmem:[#allocation3 + $0x88] sm:$0xff]  ;;  %v2668_v62 = vld [vmem:[#allocation3 + $0x78] sm:$0xff] }
 0x647   : > { %v2620_v34 = vpop.xlane.xlu0 %2619 }
 0x648   : > { %2649 = vst.msk [vmem:[#allocation5 + $0xa0] sm:$0xff] %vm1752_vm1, %v2633_v51  ;;  %v2640_v22 = vadd.f32 %v2620_v34, %v2592_v19  ;;  %v2761_v51 = vmul.f32 %v11396_v56, %v2665_v28  ;;  %v2666_v19 = vld [vmem:[#allocation3 + $0xb8] sm:$0xff]  ;;  %v2672_v56 = vld [vmem:[#allocation3 + $0xc0] sm:$0xff] }
 0x649   : > { %v2618_v12 = vpop.xlane.xlu1 %2617  ;;  %v2768_v31 = vmul.f32 %v11414_v39, %v2672_v56 }
 0x64a   : > { %v2639_v27 = vadd.f32 %v2618_v12, %v2591_v50  ;;  %2656 = vst.msk [vmem:[#allocation5 + $0xd8] sm:$0xff] %vm1752_vm1, %v2640_v22  ;;  %v2764_v50 = vmul.f32 %v11406_v4, %v2668_v62  ;;  %v2762_v12 = vmul.f32 %v11410_v8, %v2666_v19 }
 0x64b   : > { %v2616_v48 = vpop.xlane.xlu0 %2615 }
 0x64c   : > { %2655 = vst.msk [vmem:[#allocation5 + $0xd0] sm:$0xff] %vm1752_vm1, %v2639_v27  ;;  %v2638_v0 = vadd.f32 %v2616_v48, %v2590_v25  ;;  %v2669_v27 = vld [vmem:[#allocation3 + $0x58] sm:$0xff] }
 0x64d   : > { %v2614_v60 = vpop.xlane.xlu1 %2613  ;;  %v2765_v41 = vmul.f32 %v11408_v45, %v2669_v27 }
 0x64e   : > { %v2637_v23 = vadd.f32 %v2614_v60, %v2589_v26  ;;  %2654 = vst.msk [vmem:[#allocation5 + $0xc8] sm:$0xff] %vm1752_vm1, %v2638_v0  ;;  %v2670_v0 = vld [vmem:[#allocation3 + $0xc8] sm:$0xff] }
 0x64f   : > { %v2628_v29 = vpop.xlane.xlu0 %2627 }
 0x650   : > { %2653 = vst.msk [vmem:[#allocation5 + $0xc0] sm:$0xff] %vm1752_vm1, %v2637_v23  ;;  %v2644_v24 = vadd.f32 %v2628_v29, %v2596_v10  ;;  %v2675_v23 = vld [vmem:[#allocation3 + $0xf8] sm:$0xff] }
 0x651   : > { %v2626_v7 = vpop.xlane.xlu1 %2625 }
 0x652   : > { %v2643_v11 = vadd.f32 %v2626_v7, %v2595_v1  ;;  %2660 = vst.msk [vmem:[#allocation5 + $0xf8] sm:$0xff] %vm1752_vm1, %v2644_v24  ;;  %v2766_v1 = vmul.f32 %v11419_v53, %v2670_v0 }
 0x653   : > { %v2624_v6 = vpop.xlane.xlu0 %2623 }
 0x654   : > { %2659 = vst.msk [vmem:[#allocation5 + $0xf0] sm:$0xff] %vm1752_vm1, %v2643_v11  ;;  %v2642_v55 = vadd.f32 %v2624_v6, %v2594_v46  ;;  %v2769_v6 = vmul.f32 %v11412_v17, %v2673_v16 }
 0x655   : > { %v2622_v14 = vpop.xlane.xlu1 %2621 }
 0x656   : > { %v2641_v15 = vadd.f32 %v2622_v14, %v2593_v43  ;;  %2658 = vst.msk [vmem:[#allocation5 + $0xe8] sm:$0xff] %vm1752_vm1, %v2642_v55  ;;  %v2674_v43 = vld [vmem:[#allocation3 + $0x28] sm:$0xff] }
 0x657   : > { %v2770_v61 = vmul.f32 %v11423_v35, %v2674_v43 }
 0x658   : > { %2657 = vst.msk [vmem:[#allocation5 + $0xe0] sm:$0xff] %vm1752_vm1, %v2641_v15 }
 0x659   : > { %v2755_v11 = vpop.permute.xlu1 %2754 }
 0x65a   : > { %v2772_v14 = vmul.f32 %v2755_v11, %v2676_v54 }
 0x65b   : > { %v2750_v10 = vpop.permute.xlu0 %2749 }
 0x65c   : > { %v2771_v7 = vmul.f32 %v2750_v10, %v2675_v23 }
 0x66d   : > { %v8962_v20 = vpop.f32.mrf.mxu0 }
 0x66e   : > { %v2928_v32 = vadd.f32 %v8962_v20, %v2759_v2 }
 0x66f   : > { %v2863_v37 = vpop.f32.mrf.mxu0 }
 0x670   : > { %2944 = vst [vmem:[#allocation3 + $0x68] sm:$0xff] %v2928_v32  ;;  %v2926_v58 = vadd.f32 %v2863_v37, %v2757_v21 }
 0x671   : > { %v8963_v44 = vpop.f32.mrf.mxu0 }
 0x672   : > { %2942 = vst [vmem:[#allocation3] sm:$0xff] %v2926_v58  ;;  %v2929_v38 = vadd.f32 %v8963_v44, %v2760_v52 }
 0x673   : > { %v2866_v40 = vpop.f32.mrf.mxu0 }
 0x674   : > { %2945 = vst [vmem:[#allocation3 + $0x48] sm:$0xff] %v2929_v38  ;;  %v2927_v30 = vadd.f32 %v2866_v40, %v2758_v5 }
 0x676   : > { %2943 = vst [vmem:[#allocation3 + $0x18] sm:$0xff] %v2927_v30 }
 0x678   : > { %v8966_v9 = vpop.f32.mrf.mxu0 }
 0x679   : > { %v2932_v3 = vadd.f32 %v8966_v9, %v2763_v13 }
 0x67a   : > { %v2879_v34 = vpop.f32.mrf.mxu0 }
 0x67b   : > { %2948 = vst [vmem:[#allocation3 + $0xf0] sm:$0xff] %v2932_v3  ;;  %v2930_v18 = vadd.f32 %v2879_v34, %v2761_v51 }
 0x67c   : > { %v8967_v22 = vpop.f32.mrf.mxu0 }
 0x67d   : > { %2946 = vst [vmem:[#allocation3 + $0x88] sm:$0xff] %v2930_v18  ;;  %v2933_v49 = vadd.f32 %v8967_v22, %v2764_v50 }
 0x67e   : > { %v2882_v25 = vpop.f32.mrf.mxu0 }
 0x67f   : > { %2949 = vst [vmem:[#allocation3 + $0x78] sm:$0xff] %v2933_v49  ;;  %v2931_v48 = vadd.f32 %v2882_v25, %v2762_v12 }
 0x680   : > { %v8970_v26 = vpop.f32.mrf.mxu0 }
 0x681   : > { %2947 = vst [vmem:[#allocation3 + $0xb8] sm:$0xff] %v2931_v48  ;;  %v2936_v4 = vadd.f32 %v8970_v26, %v2767_v59 }
 0x682   : > { %v2895_v60 = vpop.f32.mrf.mxu0 }
 0x683   : > { %2952 = vst [vmem:[#allocation3 + $0x90] sm:$0xff] %v2936_v4  ;;  %v2934_v8 = vadd.f32 %v2895_v60, %v2765_v41 }
 0x684   : > { %v8971_v29 = vpop.f32.mrf.mxu0 }
 0x685   : > { %2950 = vst [vmem:[#allocation3 + $0x58] sm:$0xff] %v2934_v8  ;;  %v2937_v57 = vadd.f32 %v8971_v29, %v2768_v31 }
 0x686   : > { %v2898_v24 = vpop.f32.mrf.mxu0 }
 0x687   : > { %2953 = vst [vmem:[#allocation3 + $0xc0] sm:$0xff] %v2937_v57  ;;  %v2935_v45 = vadd.f32 %v2898_v24, %v2766_v1 }
 0x688   : > { %v8974_v46 = vpop.f32.mrf.mxu0 }
 0x689   : > { %2951 = vst [vmem:[#allocation3 + $0xc8] sm:$0xff] %v2935_v45  ;;  %v2940_v39 = vadd.f32 %v8974_v46, %v2771_v7 }
 0x68a   : > { %v2911_v55 = vpop.f32.mrf.mxu0 }
 0x68b   : > { %2956 = vst [vmem:[#allocation3 + $0xf8] sm:$0xff] %v2940_v39  ;;  %v2938_v15 = vadd.f32 %v2911_v55, %v2769_v6 }
 0x68c   : > { %v8975_v53 = vpop.f32.mrf.mxu0 }
 0x68d   : > { %2954 = vst [vmem:[#allocation3 + $0xd0] sm:$0xff] %v2938_v15  ;;  %v2941_v42 = vadd.f32 %v8975_v53, %v2772_v14  ;;  %2977 = sbr.rel (%p8471_p3) target bundleno = 3421 (0xd5d), region = 88 }
 0x68e   : > { %v2914_v2 = vpop.f32.mrf.mxu0 }
 0x68f   : > { %2957 = vst [vmem:[#allocation3 + $0x98] sm:$0xff] %v2941_v42  ;;  %v2939_v63 = vadd.f32 %v2914_v2, %v2770_v61 }
 0x691   : > { %2955 = vst [vmem:[#allocation3 + $0x28] sm:$0xff] %v2939_v63 }
 0x692   : > { %v3170_v17 = vld [vmem:[#allocation5 + $0x80] sm:$0xff]  ;;  %v3171_v21 = vld [vmem:[#allocation5 + $0x88] sm:$0xff]  ;;  %v10131_v32 = vmov 0   ;;  %v3172_v35 = vld [vmem:[#allocation5 + $0x90] sm:$0xff]  ;;  %s16188_s15 = sld [smem:[#allocation132_spill]] }
 0x693   : > { %v3010_v20 = vld [vmem:[#allocation5] sm:$0xff]  ;;  %9360 = vset.pattern.permute.xlu1 %v10131_v32  ;;  %9359 = vset.pattern.permute.xlu0 %v10131_v32  ;;  %9601 = vrcp.f32 %v3170_v17  ;;  %v3011_v47 = vld [vmem:[#allocation5 + $0x8] sm:$0xff]  ;;  %v3173_v37 = vld [vmem:[#allocation5 + $0x98] sm:$0xff]  ;;  %s16243_s22 = sld [smem:[#allocation133_spill]] }
 0x694   : > { %9603 = vrcp.f32 %v3010_v20  ;;  %v3012_v52 = vld [vmem:[#allocation5 + $0x10] sm:$0xff]  ;;  %v3013_v58 = vld [vmem:[#allocation5 + $0x18] sm:$0xff]  ;;  %v3174_v44 = vld [vmem:[#allocation5 + $0xa0] sm:$0xff]  ;;  %s16244_s12 = sld [smem:[#allocation134_spill]] }
 0x695   : > { %9605 = vrcp.f32 %v3171_v21  ;;  %v9361_v5 = vld [vmem:[%s15580_s5 + $0x74] ss:$8 sps:$4 sm:$0xff]   ;;  %v9363_v38 = vld [vmem:[%s15580_s5 + $0x70] ss:$8 sps:$4 sm:$0xff]   ;;  %v9364_v40 = vld [vmem:[%s15580_s5 + $0x64] ss:$8 sps:$4 sm:$0xff]  }
 0x696   : > { %9607 = vrcp.f32 %v3011_v47  ;;  %v3175_v30 = vld [vmem:[#allocation5 + $0xa8] sm:$0xff]  ;;  %3582 = vmatprep.subr.bf16.mxu0 %v9361_v5  ;;  %v9367_v62 = vld [vmem:[%s15580_s5 + $0x54] ss:$8 sps:$4 sm:$0xff]   ;;  %v3014_v51 = vld [vmem:[#allocation5 + $0x20] sm:$0xff] }
 0x697   : > { %9609 = vrcp.f32 %v3172_v35  ;;  %3583 = vmatpush1.bf16.msra.mxu0 %v9363_v38  ;;  %v9366_v28 = vld [vmem:[%s15580_s5 + $0x60] ss:$8 sps:$4 sm:$0xff]   ;;  %v9369_v34 = vld [vmem:[%s15580_s5 + $0x50] ss:$8 sps:$4 sm:$0xff]   ;;  %v9370_v50 = vld [vmem:[%s15580_s5 + $0x44] ss:$8 sps:$4 sm:$0xff]  }
 0x698   : > { %9611 = vrcp.f32 %v3173_v37  ;;  %3584 = vmatprep.subr.bf16.mxu0 %v9364_v40  ;;  %v3015_v19 = vld [vmem:[#allocation5 + $0x28] sm:$0xff]  ;;  %v3176_v36 = vld [vmem:[#allocation5 + $0xb0] sm:$0xff]  ;;  %v3177_v12 = vld [vmem:[#allocation5 + $0xb8] sm:$0xff] }
 0x699   : > { %9613 = vrcp.f32 %v3012_v52  ;;  %v9372_v49 = vld [vmem:[%s15580_s5 + $0x40] ss:$8 sps:$4 sm:$0xff]   ;;  %v9373_v27 = vld [vmem:[%s15580_s5 + $0x34] ss:$8 sps:$4 sm:$0xff]   ;;  %v9375_v26 = vld [vmem:[%s15580_s5 + $0x30] ss:$8 sps:$4 sm:$0xff]  }
 0x69a   : > { %9615 = vrcp.f32 %v3013_v58  ;;  %v3016_v59 = vld [vmem:[#allocation5 + $0x30] sm:$0xff]  ;;  %v3017_v56 = vld [vmem:[#allocation5 + $0x38] sm:$0xff]  ;;  %v9376_v41 = vld [vmem:[%s15580_s5 + $0x24] ss:$8 sps:$4 sm:$0xff]  }
 0x69b   : > { %9617 = vrcp.f32 %v3174_v44  ;;  %3585 = vmatpush1.bf16.msra.mxu0 %v9366_v28  ;;  %v3178_v0 = vld [vmem:[#allocation5 + $0xc0] sm:$0xff]  ;;  %v3179_v31 = vld [vmem:[#allocation5 + $0xc8] sm:$0xff]  ;;  %v9379_v23 = vld [vmem:[%s15580_s5 + $0x14] ss:$8 sps:$4 sm:$0xff]  }
 0x69c   : > { %9619 = vrcp.f32 %v3175_v30  ;;  %3586 = vmatprep.subr.bf16.mxu0 %v9367_v62  ;;  %v9378_v8 = vld [vmem:[%s15580_s5 + $0x20] ss:$8 sps:$4 sm:$0xff]   ;;  %v9381_v16 = vld [vmem:[%s15580_s5 + $0x10] ss:$8 sps:$4 sm:$0xff]   ;;  %v9382_v24 = vld [vmem:[%s15580_s5 + $0x4] ss:$8 sps:$4 sm:$0xff]  }
 0x69d   : > { %9621 = vrcp.f32 %v3014_v51  ;;  %v3018_v29 = vld [vmem:[#allocation5 + $0x40] sm:$0xff]  ;;  %v3019_v57 = vld [vmem:[#allocation5 + $0x48] sm:$0xff]  ;;  %v3180_v45 = vld [vmem:[#allocation5 + $0xd0] sm:$0xff] }
 0x69e   : > { %9623 = vrcp.f32 %v3015_v19  ;;  %v3181_v54 = vld [vmem:[#allocation5 + $0xd8] sm:$0xff]  ;;  %v3020_v46 = vld [vmem:[#allocation5 + $0x50] sm:$0xff]  ;;  %v9384_v6 = vld [vmem:[%s15580_s5] ss:$8 sps:$4 sm:$0xff]  }
 0x69f   : > { %3587 = vmatpush1.bf16.msra.mxu0 %v9369_v34  ;;  %9625 = vrcp.f32 %v3176_v36  ;;  %v3021_v39 = vld [vmem:[#allocation5 + $0x58] sm:$0xff]  ;;  %v3182_v15 = vld [vmem:[#allocation5 + $0xe0] sm:$0xff]  ;;  %v3183_v61 = vld [vmem:[#allocation5 + $0xe8] sm:$0xff] }
 0x6a0   : > { %v9602_v33 = vpop.eup %9601  ;;  %3588 = vmatprep.subr.bf16.mxu0 %v9370_v50  ;;  %9627 = vrcp.f32 %v3177_v12  ;;  %v9385_v43 = vld [vmem:[%s15580_s5 + $0xf4] ss:$8 sps:$4 sm:$0xff]   ;;  %v9387_v53 = vld [vmem:[%s15580_s5 + $0xf0] ss:$8 sps:$4 sm:$0xff]   ;;  %v9388_v42 = vld [vmem:[%s15580_s5 + $0xe4] ss:$8 sps:$4 sm:$0xff]  }
 0x6a1   : > { %v9604_v13 = vpop.eup %9603  ;;  %3220 = vperm.xlu0 %9359, %v9602_v33   ;;  %9629 = vrcp.f32 %v3016_v59  ;;  %v3022_v17 = vld [vmem:[#allocation5 + $0x60] sm:$0xff]  ;;  %v3023_v21 = vld [vmem:[#allocation5 + $0x68] sm:$0xff]  ;;  %v9391_v32 = vld [vmem:[%s15580_s5 + $0xd4] ss:$8 sps:$4 sm:$0xff]  }
 0x6a2   : > { %v9606_v9 = vpop.eup %9605  ;;  %3060 = vperm.xlu1 %9360, %v9604_v13   ;;  %9631 = vrcp.f32 %v3017_v56  ;;  %v9390_v20 = vld [vmem:[%s15580_s5 + $0xe0] ss:$8 sps:$4 sm:$0xff]   ;;  %v3184_v37 = vld [vmem:[#allocation5 + $0xf0] sm:$0xff]  ;;  %v3185_v58 = vld [vmem:[#allocation5 + $0xf8] sm:$0xff] }
 0x6a3   : > { %v9608_v3 = vpop.eup %9607  ;;  %3589 = vmatpush1.bf16.msra.mxu0 %v9372_v49  ;;  %9633 = vrcp.f32 %v3178_v0  ;;  %v9393_v52 = vld [vmem:[%s15580_s5 + $0xd0] ss:$8 sps:$4 sm:$0xff]   ;;  %v9394_v44 = vld [vmem:[%s15580_s5 + $0xc4] ss:$8 sps:$4 sm:$0xff]   ;;  %v9396_v30 = vld [vmem:[%s15580_s5 + $0xc0] ss:$8 sps:$4 sm:$0xff]  }
 0x6a4   : > { %v9610_v18 = vpop.eup %9609  ;;  %3590 = vmatprep.subr.bf16.mxu0 %v9373_v27  ;;  %9635 = vrcp.f32 %v3179_v31  ;;  %v3024_v40 = vld [vmem:[#allocation5 + $0x70] sm:$0xff]  ;;  %v3025_v33 = vld [vmem:[#allocation5 + $0x78] sm:$0xff]  ;;  %v9400_v51 = vld [vmem:[%s15580_s5 + $0xa4] ss:$8 sps:$4 sm:$0xff]  }
 0x6a5   : > { %3225 = vperm.xlu0 %9359, %v9606_v9   ;;  %v9612_v22 = vpop.eup %9611  ;;  %9637 = vrcp.f32 %v3018_v29  ;;  %v9397_v28 = vld [vmem:[%s15580_s5 + $0xb4] ss:$8 sps:$4 sm:$0xff]   ;;  %v9399_v9 = vld [vmem:[%s15580_s5 + $0xb0] ss:$8 sps:$4 sm:$0xff]   ;;  %v9402_v34 = vld [vmem:[%s15580_s5 + $0xa0] ss:$8 sps:$4 sm:$0xff]  }
 0x6a6   : > { %3065 = vperm.xlu1 %9360, %v9608_v3   ;;  %v9614_v25 = vpop.eup %9613  ;;  %9639 = vrcp.f32 %v3019_v57  ;;  %v9403_v50 = vld [vmem:[%s15580_s5 + $0x94] ss:$8 sps:$4 sm:$0xff]   ;;  %v9406_v12 = vld [vmem:[%s15580_s5 + $0x84] ss:$8 sps:$4 sm:$0xff]  }
 0x6a7   : > { %v9616_v48 = vpop.eup %9615  ;;  %3591 = vmatpush1.bf16.msra.mxu0 %v9375_v26  ;;  %9641 = vrcp.f32 %v3180_v45  ;;  %v3202_v56 = vld [vmem:[#allocation3] sm:$0xff]  ;;  %v3042_v26 = vld [vmem:[#allocation3 + $0xb0] sm:$0xff]  ;;  %v3203_v31 = vld [vmem:[#allocation3 + $0x18] sm:$0xff] }
 0x6a8   : > { %v9618_v4 = vpop.eup %9617  ;;  %3592 = vmatprep.subr.bf16.mxu0 %v9376_v41  ;;  %9643 = vrcp.f32 %v3181_v54  ;;  %v3204_v57 = vld [vmem:[#allocation3 + $0x68] sm:$0xff] }
 0x6a9   : > { %3230 = vperm.xlu0 %9359, %v9610_v18   ;;  %v9620_v60 = vpop.eup %9619  ;;  %9645 = vrcp.f32 %v3020_v46 }
 0x6aa   : > { %3235 = vperm.xlu1 %9360, %v9612_v22   ;;  %v9622_v10 = vpop.eup %9621  ;;  %9647 = vrcp.f32 %v3021_v39  ;;  %v9405_v22 = vld [vmem:[%s15580_s5 + $0x90] ss:$8 sps:$4 sm:$0xff]  }
 0x6ab   : > { %v9624_v1 = vpop.eup %9623  ;;  %3593 = vmatpush1.bf16.msra.mxu0 %v9378_v8  ;;  %9649 = vrcp.f32 %v3182_v15  ;;  %v3043_v8 = vld [vmem:[#allocation3 + $0xd8] sm:$0xff]  ;;  %v3045_v39 = vld [vmem:[#allocation3 + $0x30] sm:$0xff] }
 0x6ac   : > { %3594 = vmatprep.subr.bf16.mxu0 %v9379_v23  ;;  %v9626_v7 = vpop.eup %9625  ;;  %9651 = vrcp.f32 %v3183_v61  ;;  %v3206_v61 = vld [vmem:[#allocation3 + $0x88] sm:$0xff] }
 0x6ad   : > { %3070 = vperm.xlu0 %9359, %v9614_v25   ;;  %v9628_v11 = vpop.eup %9627  ;;  %9653 = vrcp.f32 %v3022_v17  ;;  %v9408_v25 = vld [vmem:[%s15580_s5 + $0x80] ss:$8 sps:$4 sm:$0xff]  }
 0x6ae   : > { %3075 = vperm.xlu1 %9360, %v9616_v48   ;;  %v9630_v55 = vpop.eup %9629  ;;  %9655 = vrcp.f32 %v3023_v21 }
 0x6af   : > { %3595 = vmatpush1.bf16.msra.mxu0 %v9381_v16  ;;  %v9632_v14 = vpop.eup %9631  ;;  %9657 = vrcp.f32 %v3184_v37  ;;  %v3205_v16 = vld [vmem:[#allocation3 + $0x48] sm:$0xff] }
 0x6b0   : > { %3596 = vmatprep.subr.bf16.mxu0 %v9382_v24  ;;  %v9634_v2 = vpop.eup %9633  ;;  %9659 = vrcp.f32 %v3185_v58 }
 0x6b1   : > { %3240 = vperm.xlu0 %9359, %v9618_v4   ;;  %v9636_v63 = vpop.eup %9635  ;;  %9661 = vrcp.f32 %v3024_v40 }
 0x6b2   : > { %3245 = vperm.xlu1 %9360, %v9620_v60   ;;  %v9638_v47 = vpop.eup %9637  ;;  %9663 = vrcp.f32 %v3025_v33 }
 0x6b3   : > { %3597 = vmatpush1.bf16.msra.mxu0 %v9384_v6  ;;  %v9640_v35 = vpop.eup %9639  ;;  %v3044_v6 = vld [vmem:[#allocation3 + $0x50] sm:$0xff] }
 0x6b4   : > { %3598 = vmatprep.subr.bf16.mxu0 %v9385_v43  ;;  %v9642_v5 = vpop.eup %9641 }
 0x6b5   : > { %3080 = vperm.xlu0 %9359, %v9622_v10   ;;  %v9644_v38 = vpop.eup %9643 }
 0x6b6   : > { %3085 = vperm.xlu1 %9360, %v9624_v1   ;;  %v9646_v13 = vpop.eup %9645 }
 0x6b7   : > { %3599 = vmatpush2.bf16.msra.mxu0 %v9387_v53  ;;  %v9648_v62 = vpop.eup %9647 }
 0x6b8   : > { %3600 = vmatprep.subr.bf16.mxu0 %v9388_v42  ;;  %v9650_v3 = vpop.eup %9649  ;;  %v3207_v42 = vld [vmem:[#allocation3 + $0xb8] sm:$0xff] }
 0x6b9   : > { %3250 = vperm.xlu0 %9359, %v9626_v7   ;;  %v9652_v19 = vpop.eup %9651 }
 0x6ba   : > { %3255 = vperm.xlu1 %9360, %v9628_v11   ;;  %v9654_v18 = vpop.eup %9653 }
 0x6bb   : > { %3601 = vmatpush2.bf16.msra.mxu0 %v9390_v20  ;;  %v9656_v36 = vpop.eup %9655 }
 0x6bc   : > { %3602 = vmatprep.subr.bf16.mxu0 %v9391_v32  ;;  %v9658_v49 = vpop.eup %9657  ;;  %v3046_v32 = vld [vmem:[#allocation3 + $0x80] sm:$0xff] }
 0x6bd   : > { %3090 = vperm.xlu0 %9359, %v9630_v55   ;;  %v9660_v27 = vpop.eup %9659 }
 0x6be   : > { %3095 = vperm.xlu1 %9360, %v9632_v14   ;;  %v9662_v59 = vpop.eup %9661 }
 0x6bf   : > { %3603 = vmatpush2.bf16.msra.mxu0 %v9393_v52  ;;  %v9664_v48 = vpop.eup %9663 }
 0x6c0   : > { %3604 = vmatprep.subr.bf16.mxu0 %v9394_v44 }
 0x6c1   : > { %3260 = vperm.xlu0 %9359, %v9634_v2  }
 0x6c2   : > { %3265 = vperm.xlu1 %9360, %v9636_v63  }
 0x6c3   : > { %3605 = vmatpush2.bf16.msra.mxu0 %v9396_v30 }
 0x6c4   : > { %3606 = vmatprep.subr.bf16.mxu0 %v9397_v28 }
 0x6c5   : > { %3100 = vperm.xlu0 %9359, %v9638_v47   ;;  %v3047_v47 = vld [vmem:[#allocation3 + $0xe8] sm:$0xff] }
 0x6c6   : > { %3105 = vperm.xlu1 %9360, %v9640_v35  }
 0x6c7   : > { %3607 = vmatpush2.bf16.msra.mxu0 %v9399_v9  ;;  %v3049_v9 = vld [vmem:[#allocation3 + $0x8] sm:$0xff] }
 0x6c8   : > { %3608 = vmatprep.subr.bf16.mxu0 %v9400_v51 }
 0x6c9   : > { %3270 = vperm.xlu0 %9359, %v9642_v5   ;;  %v3208_v5 = vld [vmem:[#allocation3 + $0xf0] sm:$0xff] }
 0x6ca   : > { %3275 = vperm.xlu1 %9360, %v9644_v38   ;;  %v3209_v38 = vld [vmem:[#allocation3 + $0x78] sm:$0xff] }
 0x6cb   : > { %3609 = vmatpush2.bf16.msra.mxu0 %v9402_v34 }
 0x6cc   : > { %3610 = vmatprep.subr.bf16.mxu0 %v9403_v50 }
 0x6cd   : > { %3110 = vperm.xlu0 %9359, %v9646_v13  }
 0x6ce   : > { %3115 = vperm.xlu1 %9360, %v9648_v62   ;;  %v3048_v62 = vld [vmem:[#allocation3 + $0x60] sm:$0xff] }
 0x6cf   : > { %3611 = vmatpush2.bf16.msra.mxu0 %v9405_v22 }
 0x6d0   : > { %3612 = vmatprep.subr.bf16.mxu0 %v9406_v12 }
 0x6d1   : > { %3280 = vperm.xlu0 %9359, %v9650_v3  }
 0x6d2   : > { %3285 = vperm.xlu1 %9360, %v9652_v19  }
 0x6d3   : > { %3613 = vmatpush2.bf16.msra.mxu0 %v9408_v25 }
 0x6d5   : > { %3120 = vperm.xlu0 %9359, %v9654_v18   ;;  %v3210_v18 = vld [vmem:[#allocation3 + $0x58] sm:$0xff] }
 0x6d6   : > { %3125 = vperm.xlu1 %9360, %v9656_v36   ;;  %v3211_v36 = vld [vmem:[#allocation3 + $0xc8] sm:$0xff] }
 0x6d9   : > { %3290 = vperm.xlu0 %9359, %v9658_v49  }
 0x6da   : > { %3295 = vperm.xlu1 %9360, %v9660_v27  }
 0x6dd   : > { %3130 = vperm.xlu0 %9359, %v9662_v59   ;;  %v3050_v59 = vld [vmem:[#allocation3 + $0x38] sm:$0xff] }
 0x6de   : > { %3135 = vperm.xlu1 %9360, %v9664_v48   ;;  %v3051_v48 = vld [vmem:[#allocation3 + $0x40] sm:$0xff] }
 0x71c   : > { %v3221_v41 = vpop.permute.xlu0 %3220 }
 0x71d   : > { %v3298_v4 = vmul.f32 %v3221_v41, %v3202_v56  ;;  %v3061_v0 = vpop.permute.xlu1 %3060 }
 0x71e   : > { %v3138_v60 = vmul.f32 %v3061_v0, %v3042_v26 }
 0x71f   : > { %3314 = vst [vmem:[#allocation3] sm:$0xff] %v3298_v4 }
 0x720   : > { %3154 = vst [vmem:[#allocation3 + $0xb0] sm:$0xff] %v3138_v60  ;;  %v3226_v23 = vpop.permute.xlu0 %3225 }
 0x721   : > { %v3299_v10 = vmul.f32 %v3226_v23, %v3203_v31  ;;  %v3066_v29 = vpop.permute.xlu1 %3065  ;;  %v3213_v31 = vld [vmem:[#allocation3 + $0xc0] sm:$0xff] }
 0x722   : > { %v3139_v1 = vmul.f32 %v3066_v29, %v3043_v8 }
 0x723   : > { %3315 = vst [vmem:[#allocation3 + $0x18] sm:$0xff] %v3299_v10  ;;  %v3363_v24 = vpack.c.bf16 %v3299_v10, %v3298_v4 }
 0x724   : > { %3155 = vst [vmem:[#allocation3 + $0xd8] sm:$0xff] %v3139_v1  ;;  %v3231_v7 = vpop.permute.xlu0 %3230  ;;  %v3362_v45 = vpack.c.bf16 %v3139_v1, %v3138_v60  ;;  %v3212_v60 = vld [vmem:[#allocation3 + $0x90] sm:$0xff] }
 0x725   : > { %v3300_v54 = vmul.f32 %v3231_v7, %v3204_v57  ;;  %v3236_v11 = vpop.permute.xlu1 %3235  ;;  %3614 = vmatprep.mubr.bf16.mxu0 %v3363_v24  ;;  %v3052_v57 = vld [vmem:[#allocation3 + $0xe0] sm:$0xff] }
 0x726   : > { %v3301_v46 = vmul.f32 %v3236_v11, %v3205_v16  ;;  %3615 = vmatmul.mubr.bf16.vlgmr.msra.gmra.mxu0 %v3362_v45  ;;  %v3053_v16 = vld [vmem:[#allocation3 + $0x70] sm:$0xff] }
 0x727   : > { %3316 = vst [vmem:[#allocation3 + $0x68] sm:$0xff] %v3300_v54 }
 0x728   : > { %3317 = vst [vmem:[#allocation3 + $0x48] sm:$0xff] %v3301_v46  ;;  %v3071_v43 = vpop.permute.xlu0 %3070  ;;  %v3365_v55 = vpack.c.bf16 %v3301_v46, %v3300_v54  ;;  %v3214_v46 = vld [vmem:[#allocation3 + $0xd0] sm:$0xff] }
 0x729   : > { %v3140_v14 = vmul.f32 %v3071_v43, %v3044_v6  ;;  %v3076_v15 = vpop.permute.xlu1 %3075  ;;  %v3215_v6 = vld [vmem:[#allocation3 + $0x28] sm:$0xff] }
 0x72a   : > { %v3141_v53 = vmul.f32 %v3076_v15, %v3045_v39  ;;  %3624 = vmatprep.mubr.bf16.mxu0 %v3365_v55 }
 0x72b   : > { %3156 = vst [vmem:[#allocation3 + $0x50] sm:$0xff] %v3140_v14 }
 0x72c   : > { %3157 = vst [vmem:[#allocation3 + $0x30] sm:$0xff] %v3141_v53  ;;  %v3241_v2 = vpop.permute.xlu0 %3240  ;;  %v3364_v63 = vpack.c.bf16 %v3141_v53, %v3140_v14  ;;  %v3054_v53 = vld [vmem:[#allocation3 + $0xa8] sm:$0xff] }
 0x72d   : > { %v3302_v17 = vmul.f32 %v3241_v2, %v3206_v61  ;;  %v3246_v20 = vpop.permute.xlu1 %3245  ;;  %v3055_v61 = vld [vmem:[#allocation3 + $0x10] sm:$0xff] }
 0x72e   : > { %v3303_v21 = vmul.f32 %v3246_v20, %v3207_v42  ;;  %3625 = vmatmul.mubr.bf16.gmra.mxu0 %v3364_v63 }
 0x72f   : > { %3318 = vst [vmem:[#allocation3 + $0x88] sm:$0xff] %v3302_v17 }
 0x730   : > { %3319 = vst [vmem:[#allocation3 + $0xb8] sm:$0xff] %v3303_v21  ;;  %v3081_v35 = vpop.permute.xlu0 %3080  ;;  %v3367_v37 = vpack.c.bf16 %v3303_v21, %v3302_v17  ;;  %v3216_v21 = vld [vmem:[#allocation3 + $0xf8] sm:$0xff] }
 0x731   : > { %v3142_v52 = vmul.f32 %v3081_v35, %v3046_v32  ;;  %v3086_v58 = vpop.permute.xlu1 %3085  ;;  %v3217_v32 = vld [vmem:[#allocation3 + $0x98] sm:$0xff] }
 0x732   : > { %v3143_v44 = vmul.f32 %v3086_v58, %v3047_v47  ;;  %3634 = vmatprep.mubr.bf16.mxu0 %v3367_v37 }
 0x733   : > { %3158 = vst [vmem:[#allocation3 + $0x80] sm:$0xff] %v3142_v52 }
 0x734   : > { %3159 = vst [vmem:[#allocation3 + $0xe8] sm:$0xff] %v3143_v44  ;;  %v3251_v40 = vpop.permute.xlu0 %3250  ;;  %v3366_v30 = vpack.c.bf16 %v3143_v44, %v3142_v52  ;;  %v3056_v44 = vld [vmem:[#allocation3 + $0xa0] sm:$0xff] }
 0x735   : > { %v3304_v33 = vmul.f32 %v3251_v40, %v3208_v5  ;;  %v3256_v28 = vpop.permute.xlu1 %3255  ;;  %v3057_v5 = vld [vmem:[#allocation3 + $0x20] sm:$0xff] }
 0x736   : > { %v3305_v13 = vmul.f32 %v3256_v28, %v3209_v38  ;;  %3635 = vmatmul.mubr.bf16.gmra.mxu0 %v3366_v30 }
 0x737   : > { %3320 = vst [vmem:[#allocation3 + $0xf0] sm:$0xff] %v3304_v33 }
 0x738   : > { %3321 = vst [vmem:[#allocation3 + $0x78] sm:$0xff] %v3305_v13  ;;  %v3091_v51 = vpop.permute.xlu0 %3090  ;;  %v3369_v3 = vpack.c.bf16 %v3305_v13, %v3304_v33 }
 0x739   : > { %v3144_v19 = vmul.f32 %v3091_v51, %v3048_v62  ;;  %v3096_v34 = vpop.permute.xlu1 %3095  ;;  %v3412_v62 = vlaneseq }
 0x73a   : > { %v3145_v50 = vmul.f32 %v3096_v34, %v3049_v9  ;;  %3644 = vmatprep.mubr.bf16.mxu0 %v3369_v3  ;;  %v3410_v3 = vld [vmem:[%s15581_s6] sm:$0x3] }
 0x73b   : > { %3160 = vst [vmem:[#allocation3 + $0x60] sm:$0xff] %v3144_v19  ;;  %v11563_v9 = vshrl.u32 %v3412_v62, 7 }
 0x73c   : > { %3161 = vst [vmem:[#allocation3 + $0x8] sm:$0xff] %v3145_v50  ;;  %v3261_v22 = vpop.permute.xlu0 %3260  ;;  %v3368_v12 = vpack.c.bf16 %v3145_v50, %v3144_v19 }
 0x73d   : > { %v3306_v49 = vmul.f32 %v3261_v22, %v3210_v18  ;;  %v3266_v27 = vpop.permute.xlu1 %3265  ;;  %15885 = vst [vmem:[#allocation55_spill] sm:$0xff] %v11563_v9  ;;  %v11566_v51 = vsub.s32 0, %v11563_v9  ;;  %v11572_v19 = vsub.s32 1, %v11563_v9  ;;  %v2978_v22 = vld [vmem:[%s10310_s20] sm:$0xff] }
 0x73e   : > { %v3307_v25 = vmul.f32 %v3266_v27, %v3211_v36  ;;  %3645 = vmatmul.mubr.bf16.gmra.mxu0 %v3368_v12  ;;  %v2979_v12 = vld [vmem:[%s10310_s20 + $0x8] sm:$0xff] }
 0x73f   : > { %3322 = vst [vmem:[#allocation3 + $0x58] sm:$0xff] %v3306_v49  ;;  %15886 = vst [vmem:[#allocation56_spill] sm:$0xff] %v11566_v51  ;;  %v11575_v34 = vrot.slane %v3410_v3, %v11566_v51  ;;  %v11578_v50 = vrot.slane %v3410_v3, %v11572_v19 }
 0x740   : > { %3323 = vst [vmem:[#allocation3 + $0xc8] sm:$0xff] %v3307_v25  ;;  %v3101_v56 = vpop.permute.xlu0 %3100  ;;  %v3371_v26 = vpack.c.bf16 %v3307_v25, %v3306_v49  ;;  %15887 = vst [vmem:[#allocation57_spill] sm:$0xff] %v11572_v19 }
 0x741   : > { %v3146_v41 = vmul.f32 %v3101_v56, %v3050_v59  ;;  %v3106_v4 = vpop.permute.xlu1 %3105 }
 0x742   : > { %v3147_v0 = vmul.f32 %v3106_v4, %v3051_v48  ;;  %3654 = vmatprep.mubr.bf16.mxu0 %v3371_v26  ;;  %v2980_v26 = vld [vmem:[%s10310_s20 + $0x10] sm:$0xff]  ;;  %v2981_v4 = vld [vmem:[%s10310_s20 + $0x18] sm:$0xff] }
 0x743   : > { %3162 = vst [vmem:[#allocation3 + $0x38] sm:$0xff] %v3146_v41 }
 0x744   : > { %3163 = vst [vmem:[#allocation3 + $0x40] sm:$0xff] %v3147_v0  ;;  %v3271_v8 = vpop.permute.xlu0 %3270  ;;  %v3370_v23 = vpack.c.bf16 %v3147_v0, %v3146_v41 }
 0x745   : > { %v3308_v10 = vmul.f32 %v3271_v8, %v3212_v60  ;;  %v3276_v29 = vpop.permute.xlu1 %3275 }
 0x746   : > { %v3309_v1 = vmul.f32 %v3276_v29, %v3213_v31  ;;  %3655 = vmatmul.mubr.bf16.gmra.mxu0 %v3370_v23  ;;  %v2982_v29 = vld [vmem:[%s10310_s20 + $0x20] sm:$0xff] }
 0x747   : > { %3324 = vst [vmem:[#allocation3 + $0x90] sm:$0xff] %v3308_v10 }
 0x748   : > { %3325 = vst [vmem:[#allocation3 + $0xc0] sm:$0xff] %v3309_v1  ;;  %v3111_v24 = vpop.permute.xlu0 %3110  ;;  %v3373_v7 = vpack.c.bf16 %v3309_v1, %v3308_v10  ;;  %v2983_v1 = vld [vmem:[%s10310_s20 + $0x28] sm:$0xff] }
 0x749   : > { %v3148_v45 = vmul.f32 %v3111_v24, %v3052_v57  ;;  %v3116_v54 = vpop.permute.xlu1 %3115 }
 0x74a   : > { %v3149_v11 = vmul.f32 %v3116_v54, %v3053_v16  ;;  %3664 = vmatprep.mubr.bf16.mxu0 %v3373_v7 }
 0x74b   : > { %3164 = vst [vmem:[#allocation3 + $0xe0] sm:$0xff] %v3148_v45 }
 0x74c   : > { %3165 = vst [vmem:[#allocation3 + $0x70] sm:$0xff] %v3149_v11  ;;  %v3281_v39 = vpop.permute.xlu0 %3280  ;;  %v3372_v43 = vpack.c.bf16 %v3149_v11, %v3148_v45 }
 0x74d   : > { %v3310_v55 = vmul.f32 %v3281_v39, %v3214_v46  ;;  %v3286_v14 = vpop.permute.xlu1 %3285  ;;  %v2984_v46 = vld [vmem:[%s10310_s20 + $0x30] sm:$0xff]  ;;  %v2985_v39 = vld [vmem:[%s10310_s20 + $0x38] sm:$0xff] }
 0x74e   : > { %v3311_v15 = vmul.f32 %v3286_v14, %v3215_v6  ;;  %3665 = vmatmul.mubr.bf16.gmra.mxu0 %v3372_v43 }
 0x74f   : > { %3326 = vst [vmem:[#allocation3 + $0xd0] sm:$0xff] %v3310_v55 }
 0x750   : > { %3327 = vst [vmem:[#allocation3 + $0x28] sm:$0xff] %v3311_v15  ;;  %v3121_v42 = vpop.permute.xlu0 %3120  ;;  %v3375_v2 = vpack.c.bf16 %v3311_v15, %v3310_v55 }
 0x751   : > { %v3150_v63 = vmul.f32 %v3121_v42, %v3054_v53  ;;  %v3126_v17 = vpop.permute.xlu1 %3125  ;;  %v2986_v42 = vld [vmem:[%s10310_s20 + $0x40] sm:$0xff] }
 0x752   : > { %v3151_v20 = vmul.f32 %v3126_v17, %v3055_v61  ;;  %3674 = vmatprep.mubr.bf16.mxu0 %v3375_v2  ;;  %v2987_v2 = vld [vmem:[%s10310_s20 + $0x48] sm:$0xff] }
 0x753   : > { %3166 = vst [vmem:[#allocation3 + $0xa8] sm:$0xff] %v3150_v63 }
 0x754   : > { %3167 = vst [vmem:[#allocation3 + $0x10] sm:$0xff] %v3151_v20  ;;  %v3291_v47 = vpop.permute.xlu0 %3290  ;;  %v3374_v35 = vpack.c.bf16 %v3151_v20, %v3150_v63 }
 0x755   : > { %v3312_v37 = vmul.f32 %v3291_v47, %v3216_v21  ;;  %v3296_v52 = vpop.permute.xlu1 %3295 }
 0x756   : > { %v3313_v58 = vmul.f32 %v3296_v52, %v3217_v32  ;;  %3675 = vmatmul.mubr.bf16.gmra.mxu0 %v3374_v35 }
 0x757   : > { %3328 = vst [vmem:[#allocation3 + $0xf8] sm:$0xff] %v3312_v37 }
 0x758   : > { %3329 = vst [vmem:[#allocation3 + $0x98] sm:$0xff] %v3313_v58  ;;  %v3131_v38 = vpop.permute.xlu0 %3130  ;;  %v3377_v40 = vpack.c.bf16 %v3313_v58, %v3312_v37  ;;  %v2988_v37 = vld [vmem:[%s10310_s20 + $0x50] sm:$0xff]  ;;  %v2989_v58 = vld [vmem:[%s10310_s20 + $0x58] sm:$0xff] }
 0x759   : > { %v3152_v30 = vmul.f32 %v3131_v38, %v3056_v44  ;;  %v3136_v33 = vpop.permute.xlu1 %3135 }
 0x75a   : > { %v3153_v28 = vmul.f32 %v3136_v33, %v3057_v5  ;;  %3684 = vmatprep.mubr.bf16.mxu0 %v3377_v40 }
 0x75b   : > { %3168 = vst [vmem:[#allocation3 + $0xa0] sm:$0xff] %v3152_v30 }
 0x75c   : > { %3169 = vst [vmem:[#allocation3 + $0x20] sm:$0xff] %v3153_v28  ;;  %v3376_v13 = vpack.c.bf16 %v3153_v28, %v3152_v30  ;;  %v2990_v28 = vld [vmem:[%s10310_s20 + $0x60] sm:$0xff] }
 0x75e   : > { %3685 = vmatmul.mubr.bf16.gmra.mxu0 %v3376_v13  ;;  %v2991_v13 = vld [vmem:[%s10310_s20 + $0x68] sm:$0xff] }
 0x7e6   : > { %v3616_v18 = vpop.f32.mrf.mxu0 }
 0x7e7   : > { %v3617_v36 = vadd.f32 %v3616_v18, %v11575_v34 }
 0x7e8   : > { %v3618_v49 = vpop.f32.mrf.mxu0 }
 0x7e9   : > { %v3619_v27 = vadd.f32 %v3618_v49, %v11578_v50  ;;  %v11584_v59 = vadd.f32 %v3617_v36, %v2978_v22 }
 0x7ea   : > { %v3620_v25 = vpop.f32.mrf.mxu0 }
 0x7eb   : > { %v11586_v48 = vadd.f32 %v3619_v27, %v2979_v12  ;;  %v3621_v56 = vadd.f32 %v3620_v25, %v11575_v34  ;;  %v2992_v27 = vld [vmem:[%s10310_s20 + $0x70] sm:$0xff] }
 0x7ec   : > { %v3622_v41 = vpop.f32.mrf.mxu0 }
 0x7ed   : > { %v3623_v0 = vadd.f32 %v3622_v41, %v11578_v50  ;;  %v3729_v60 = vadd.f32 %v11586_v48, %v11584_v59  ;;  %v11594_v8 = vadd.f32 %v3621_v56, %v2980_v26  ;;  %v2993_v56 = vld [vmem:[%s10310_s20 + $0x78] sm:$0xff] }
 0x7ee   : > { %v3626_v31 = vpop.f32.mrf.mxu0 }
 0x7ef   : > { %v3627_v23 = vadd.f32 %v3626_v31, %v11575_v34  ;;  %3730 = vadd.xlane.f32.xlu0 %v3729_v60  ;;  %v11597_v10 = vadd.f32 %v3623_v0, %v2981_v4 }
 0x7f0   : > { %v3628_v57 = vpop.f32.mrf.mxu0 }
 0x7f1   : > { %v3629_v16 = vadd.f32 %v3628_v57, %v11578_v50  ;;  %v3732_v24 = vadd.f32 %v11597_v10, %v11594_v8  ;;  %v11604_v45 = vadd.f32 %v3627_v23, %v2982_v29  ;;  %v2994_v23 = vld [vmem:[%s10310_s20 + $0x80] sm:$0xff]  ;;  %v2995_v29 = vld [vmem:[%s10310_s20 + $0x88] sm:$0xff] }
 0x7f2   : > { %v3630_v7 = vpop.f32.mrf.mxu0 }
 0x7f3   : > { %v11606_v54 = vadd.f32 %v3629_v16, %v2983_v1  ;;  %v3631_v11 = vadd.f32 %v3630_v7, %v11575_v34  ;;  %3733 = vadd.xlane.f32.xlu1 %v3732_v24 }
 0x7f4   : > { %v3632_v6 = vpop.f32.mrf.mxu0 }
 0x7f5   : > { %v3633_v43 = vadd.f32 %v3632_v6, %v11578_v50  ;;  %v3735_v55 = vadd.f32 %v11606_v54, %v11604_v45  ;;  %v11614_v15 = vadd.f32 %v3631_v11, %v2984_v46  ;;  %v2996_v6 = vld [vmem:[%s10310_s20 + $0x90] sm:$0xff] }
 0x7f6   : > { %v3636_v14 = vpop.f32.mrf.mxu0 }
 0x7f7   : > { %v3637_v53 = vadd.f32 %v3636_v14, %v11575_v34  ;;  %3736 = vadd.xlane.f32.xlu0 %v3735_v55  ;;  %v11617_v61 = vadd.f32 %v3633_v43, %v2985_v39  ;;  %v2997_v43 = vld [vmem:[%s10310_s20 + $0x98] sm:$0xff] }
 0x7f8   : > { %v3638_v63 = vpop.f32.mrf.mxu0 }
 0x7f9   : > { %v3639_v17 = vadd.f32 %v3638_v63, %v11578_v50  ;;  %v3738_v20 = vadd.f32 %v11617_v61, %v11614_v15  ;;  %v11624_v32 = vadd.f32 %v3637_v53, %v2986_v42 }
 0x7fa   : > { %v3640_v21 = vpop.f32.mrf.mxu0 }
 0x7fb   : > { %v11626_v47 = vadd.f32 %v3639_v17, %v2987_v2  ;;  %v3641_v35 = vadd.f32 %v3640_v21, %v11575_v34  ;;  %3739 = vadd.xlane.f32.xlu0 %v3738_v20  ;;  %v2998_v17 = vld [vmem:[%s10310_s20 + $0xa0] sm:$0xff]  ;;  %v2999_v20 = vld [vmem:[%s10310_s20 + $0xa8] sm:$0xff] }
 0x7fc   : > { %v3642_v52 = vpop.f32.mrf.mxu0 }
 0x7fd   : > { %v3643_v44 = vadd.f32 %v3642_v52, %v11578_v50  ;;  %v3741_v5 = vadd.f32 %v11626_v47, %v11624_v32  ;;  %v11634_v40 = vadd.f32 %v3641_v35, %v2988_v37 }
 0x7fe   : > { %v3646_v38 = vpop.f32.mrf.mxu0 }
 0x7ff   : > { %v3647_v30 = vadd.f32 %v3646_v38, %v11575_v34  ;;  %3742 = vadd.xlane.f32.xlu1 %v3741_v5  ;;  %v11637_v33 = vadd.f32 %v3643_v44, %v2989_v58  ;;  %v3000_v38 = vld [vmem:[%s10310_s20 + $0xb0] sm:$0xff] }
 0x800   : > { %v3648_v62 = vpop.f32.mrf.mxu0 }
 0x801   : > { %v3649_v3 = vadd.f32 %v3648_v62, %v11578_v50  ;;  %v3744_v18 = vadd.f32 %v11637_v33, %v11634_v40  ;;  %v11644_v22 = vadd.f32 %v3647_v30, %v2990_v28  ;;  %v3001_v28 = vld [vmem:[%s10310_s20 + $0xb8] sm:$0xff] }
 0x802   : > { %v3650_v36 = vpop.f32.mrf.mxu0 }
 0x803   : > { %v11646_v12 = vadd.f32 %v3649_v3, %v2991_v13  ;;  %v3651_v49 = vadd.f32 %v3650_v36, %v11575_v34  ;;  %3745 = vadd.xlane.f32.xlu0 %v3744_v18 }
 0x804   : > { %v3652_v25 = vpop.f32.mrf.mxu0 }
 0x805   : > { %v3653_v26 = vadd.f32 %v3652_v25, %v11578_v50  ;;  %v3747_v41 = vadd.f32 %v11646_v12, %v11644_v22  ;;  %v11654_v0 = vadd.f32 %v3651_v49, %v2992_v27  ;;  %v3002_v27 = vld [vmem:[%s10310_s20 + $0xc0] sm:$0xff]  ;;  %v3003_v25 = vld [vmem:[%s10310_s20 + $0xc8] sm:$0xff] }
 0x806   : > { %v3656_v4 = vpop.f32.mrf.mxu0 }
 0x807   : > { %v3657_v60 = vadd.f32 %v3656_v4, %v11575_v34  ;;  %3748 = vadd.xlane.f32.xlu1 %v3747_v41  ;;  %v11657_v31 = vadd.f32 %v3653_v26, %v2993_v56 }
 0x808   : > { %v3658_v1 = vpop.f32.mrf.mxu0 }
 0x809   : > { %v3659_v57 = vadd.f32 %v3658_v1, %v11578_v50  ;;  %v3750_v16 = vadd.f32 %v11657_v31, %v11654_v0  ;;  %v11664_v7 = vadd.f32 %v3657_v60, %v2994_v23  ;;  %v3004_v1 = vld [vmem:[%s10310_s20 + $0xd0] sm:$0xff] }
 0x80a   : > { %v3660_v24 = vpop.f32.mrf.mxu0 }
 0x80b   : > { %v11666_v11 = vadd.f32 %v3659_v57, %v2995_v29  ;;  %v3661_v46 = vadd.f32 %v3660_v24, %v11575_v34  ;;  %3751 = vadd.xlane.f32.xlu0 %v3750_v16  ;;  %v3005_v16 = vld [vmem:[%s10310_s20 + $0xd8] sm:$0xff] }
 0x80c   : > { %v3662_v39 = vpop.f32.mrf.mxu0 }
 0x80d   : > { %v3663_v55 = vadd.f32 %v3662_v39, %v11578_v50  ;;  %v3753_v14 = vadd.f32 %v11666_v11, %v11664_v7  ;;  %v11674_v42 = vadd.f32 %v3661_v46, %v2996_v6 }
 0x80e   : > { %v3666_v53 = vpop.f32.mrf.mxu0 }
 0x80f   : > { %v3667_v2 = vadd.f32 %v3666_v53, %v11575_v34  ;;  %3754 = vadd.xlane.f32.xlu1 %v3753_v14  ;;  %v11677_v63 = vadd.f32 %v3663_v55, %v2997_v43  ;;  %v3006_v14 = vld [vmem:[%s10310_s20 + $0xe0] sm:$0xff]  ;;  %v3007_v53 = vld [vmem:[%s10310_s20 + $0xe8] sm:$0xff] }
 0x810   : > { %v3668_v21 = vpop.f32.mrf.mxu0 }
 0x811   : > { %v3669_v35 = vadd.f32 %v3668_v21, %v11578_v50  ;;  %v3756_v37 = vadd.f32 %v11677_v63, %v11674_v42  ;;  %v11684_v58 = vadd.f32 %v3667_v2, %v2998_v17 }
 0x812   : > { %v3670_v52 = vpop.f32.mrf.mxu0 }
 0x813   : > { %v11686_v44 = vadd.f32 %v3669_v35, %v2999_v20  ;;  %v3671_v5 = vadd.f32 %v3670_v52, %v11575_v34  ;;  %3757 = vadd.xlane.f32.xlu0 %v3756_v37 }
 0x814   : > { %v3672_v30 = vpop.f32.mrf.mxu0 }
 0x815   : > { %v3673_v13 = vadd.f32 %v3672_v30, %v11578_v50  ;;  %v3759_v62 = vadd.f32 %v11686_v44, %v11684_v58  ;;  %v11694_v18 = vadd.f32 %v3671_v5, %v3000_v38  ;;  %v3008_v5 = vld [vmem:[%s10310_s20 + $0xf0] sm:$0xff]  ;;  %v3009_v30 = vld [vmem:[%s10310_s20 + $0xf8] sm:$0xff] }
 0x816   : > { %v3676_v3 = vpop.f32.mrf.mxu0 }
 0x817   : > { %v3677_v36 = vadd.f32 %v3676_v3, %v11575_v34  ;;  %3760 = vadd.xlane.f32.xlu1 %v3759_v62  ;;  %v11697_v49 = vadd.f32 %v3673_v13, %v3001_v28 }
 0x818   : > { %v3678_v56 = vpop.f32.mrf.mxu0 }
 0x819   : > { %v3679_v26 = vadd.f32 %v3678_v56, %v11578_v50  ;;  %v3762_v41 = vadd.f32 %v11697_v49, %v11694_v18  ;;  %v11704_v60 = vadd.f32 %v3677_v36, %v3002_v27  ;;  %v4145_v27 = vld [vmem:[%s15584_s9 + $0x1c8] sm:$0xff] }
 0x81a   : > { %v3680_v4 = vpop.f32.mrf.mxu0 }
 0x81b   : > { %v11706_v23 = vadd.f32 %v3679_v26, %v3003_v25  ;;  %v3681_v29 = vadd.f32 %v3680_v4, %v11575_v34  ;;  %3763 = vadd.xlane.f32.xlu0 %v3762_v41  ;;  %v4149_v26 = vld [vmem:[%s15584_s9 + $0x1e8] sm:$0xff]  ;;  %v4136_v41 = vld [vmem:[%s15584_s9 + $0x180] sm:$0xff] }
 0x81c   : > { %v3682_v57 = vpop.f32.mrf.mxu0  ;;  %v4140_v4 = vld [vmem:[%s15584_s9 + $0x1a0] sm:$0xff] }
 0x81d   : > { %v3683_v24 = vadd.f32 %v3682_v57, %v11578_v50  ;;  %v3765_v46 = vadd.f32 %v11706_v23, %v11704_v60  ;;  %v11714_v39 = vadd.f32 %v3681_v29, %v3004_v1  ;;  %v8562_v29 = vcombine.low %v4145_v27, %v4149_v26 }
 0x81e   : > { %v3686_v6 = vpop.f32.mrf.mxu0  ;;  %v8563_v1 = vcombine.high %v4145_v27, %v4149_v26  ;;  %v8553_v57 = vcombine.high %v4136_v41, %v4140_v4  ;;  %v4116_v27 = vld [vmem:[%s15584_s9 + $0xe0] sm:$0xff] }
 0x81f   : > { %v3687_v43 = vadd.f32 %v3686_v6, %v11575_v34  ;;  %3766 = vadd.xlane.f32.xlu1 %v3765_v46  ;;  %v11717_v55 = vadd.f32 %v3683_v24, %v3005_v16  ;;  %v4137_v16 = vld [vmem:[%s15584_s9 + $0x188] sm:$0xff]  ;;  %v4128_v46 = vld [vmem:[%s15584_s9 + $0x140] sm:$0xff] }
 0x820   : > { %v3688_v2 = vpop.f32.mrf.mxu0  ;;  %v4141_v24 = vld [vmem:[%s15584_s9 + $0x1a8] sm:$0xff]  ;;  %5011 = vmatprep.subr.bf16.mxu0 %v8563_v1  ;;  %v4104_v1 = vld [vmem:[%s15584_s9 + $0x80] sm:$0xff] }
 0x821   : > { %v3689_v17 = vadd.f32 %v3688_v2, %v11578_v50  ;;  %v3768_v20 = vadd.f32 %v11717_v55, %v11714_v39  ;;  %v11724_v35 = vadd.f32 %v3687_v43, %v3006_v14  ;;  %v8555_v6 = vcombine.high %v4137_v16, %v4141_v24  ;;  %v4132_v43 = vld [vmem:[%s15584_s9 + $0x160] sm:$0xff]  ;;  %v4129_v14 = vld [vmem:[%s15584_s9 + $0x148] sm:$0xff]  ;;  %5012 = vmatpush1.bf16.msra.mxu0 %v8562_v29 }
 0x822   : > { %v3690_v21 = vpop.f32.mrf.mxu0  ;;  %v8552_v2 = vcombine.low %v4136_v41, %v4140_v4 }
 0x823   : > { %v11726_v37 = vadd.f32 %v3689_v17, %v3007_v53  ;;  %v3691_v52 = vadd.f32 %v3690_v21, %v11575_v34  ;;  %3769 = vadd.xlane.f32.xlu0 %v3768_v20  ;;  %v4144_v34 = vld [vmem:[%s15584_s9 + $0x1c0] sm:$0xff]  ;;  %v4133_v53 = vld [vmem:[%s15584_s9 + $0x168] sm:$0xff]  ;;  %v8554_v17 = vcombine.low %v4137_v16, %v4141_v24  ;;  %v8545_v20 = vcombine.high %v4128_v46, %v4132_v43 }
 0x824   : > { %v3692_v38 = vpop.f32.mrf.mxu0  ;;  %5013 = vmatprep.subr.bf16.mxu0 %v8555_v6  ;;  %v8547_v21 = vcombine.high %v4129_v14, %v4133_v53  ;;  %v4105_v16 = vld [vmem:[%s15584_s9 + $0x88] sm:$0xff] }
 0x825   : > { %v3693_v28 = vadd.f32 %v3692_v38, %v11578_v50  ;;  %v3771_v13 = vadd.f32 %v11726_v37, %v11724_v35  ;;  %v11734_v62 = vadd.f32 %v3691_v52, %v3008_v5  ;;  %v4148_v50 = vld [vmem:[%s15584_s9 + $0x1e0] sm:$0xff]  ;;  %v4121_v38 = vld [vmem:[%s15584_s9 + $0x108] sm:$0xff]  ;;  %5014 = vmatpush1.bf16.msra.mxu0 %v8554_v17 }
 0x826   : > { %v8561_v25 = vcombine.high %v4144_v34, %v4148_v50  ;;  %v8560_v56 = vcombine.low %v4144_v34, %v4148_v50  ;;  %v4120_v52 = vld [vmem:[%s15584_s9 + $0x100] sm:$0xff]  ;;  %5015 = vmatprep.subr.bf16.mxu0 %v8547_v21  ;;  %v4109_v24 = vld [vmem:[%s15584_s9 + $0xa8] sm:$0xff] }
 0x827   : > { %3772 = vadd.xlane.f32.xlu1 %v3771_v13  ;;  %v11736_v3 = vadd.f32 %v3693_v28, %v3009_v30  ;;  %v4124_v5 = vld [vmem:[%s15584_s9 + $0x120] sm:$0xff]  ;;  %v4125_v30 = vld [vmem:[%s15584_s9 + $0x128] sm:$0xff]  ;;  %v8544_v28 = vcombine.low %v4128_v46, %v4132_v43  ;;  %v8546_v13 = vcombine.low %v4129_v14, %v4133_v53  ;;  %v8523_v14 = vcombine.high %v4105_v16, %v4109_v24 }
 0x828   : > { %4898 = vmatprep.subr.bf16.mxu1 %v8561_v25  ;;  %v8539_v34 = vcombine.high %v4121_v38, %v4125_v30  ;;  %v4112_v50 = vld [vmem:[%s15584_s9 + $0xc0] sm:$0xff]  ;;  %v4113_v25 = vld [vmem:[%s15584_s9 + $0xc8] sm:$0xff]  ;;  %v8536_v26 = vcombine.low %v4120_v52, %v4124_v5  ;;  %v8538_v41 = vcombine.low %v4121_v38, %v4125_v30 }
 0x829   : > { %v3774_v36 = vadd.f32 %v11736_v3, %v11734_v62  ;;  %4899 = vmatpush1.bf16.msra.mxu1 %v8560_v56  ;;  %v4117_v56 = vld [vmem:[%s15584_s9 + $0xe8] sm:$0xff]  ;;  %5016 = vmatpush1.bf16.msra.mxu0 %v8546_v13  ;;  %v8529_v4 = vcombine.high %v4112_v50, %v4116_v27  ;;  %v8528_v46 = vcombine.low %v4112_v50, %v4116_v27  ;;  %v4096_v53 = vld [vmem:[%s15584_s9 + $0x40] sm:$0xff] }
 0x82a   : > { %4900 = vmatprep.subr.bf16.mxu1 %v8553_v57  ;;  %5017 = vmatprep.subr.bf16.mxu0 %v8539_v34  ;;  %v8531_v29 = vcombine.high %v4113_v25, %v4117_v56  ;;  %v4108_v57 = vld [vmem:[%s15584_s9 + $0xa0] sm:$0xff]  ;;  %v8530_v6 = vcombine.low %v4113_v25, %v4117_v56  ;;  %v4097_v17 = vld [vmem:[%s15584_s9 + $0x48] sm:$0xff] }
 0x82b   : > { %3775 = vadd.xlane.f32.xlu0 %v3774_v36  ;;  %v8537_v36 = vcombine.high %v4120_v52, %v4124_v5  ;;  %v8521_v43 = vcombine.high %v4104_v1, %v4108_v57  ;;  %v8520_v21 = vcombine.low %v4104_v1, %v4108_v57  ;;  %v8522_v52 = vcombine.low %v4105_v16, %v4109_v24  ;;  %v4088_v30 = vld [vmem:[%s15584_s9] sm:$0xff]  ;;  %v4089_v13 = vld [vmem:[%s15584_s9 + $0x8] sm:$0xff] }
 0x82c   : > { %v4208_v56 = vld [vmem:[%s15584_s9 + $0x3c0] sm:$0xff] }
 0x82d   : > { %4901 = vmatpush1.bf16.msra.mxu1 %v8552_v2  ;;  %5018 = vmatpush1.bf16.msra.mxu0 %v8538_v41  ;;  %v4100_v2 = vld [vmem:[%s15584_s9 + $0x60] sm:$0xff]  ;;  %v4209_v41 = vld [vmem:[%s15584_s9 + $0x3c8] sm:$0xff] }
 0x82e   : > { %4902 = vmatprep.subr.bf16.mxu1 %v8545_v20  ;;  %5019 = vmatprep.subr.bf16.mxu0 %v8531_v29  ;;  %v4101_v20 = vld [vmem:[%s15584_s9 + $0x68] sm:$0xff]  ;;  %v8513_v5 = vcombine.high %v4096_v53, %v4100_v2  ;;  %v8512_v34 = vcombine.low %v4096_v53, %v4100_v2 }
 0x82f   : > { %v8515_v38 = vcombine.high %v4097_v17, %v4101_v20  ;;  %v8514_v50 = vcombine.low %v4097_v17, %v4101_v20 }
 0x831   : > { %4903 = vmatpush1.bf16.msra.mxu1 %v8544_v28  ;;  %5020 = vmatpush1.bf16.msra.mxu0 %v8530_v6  ;;  %v4092_v28 = vld [vmem:[%s15584_s9 + $0x20] sm:$0xff] }
 0x832   : > { %4904 = vmatprep.subr.bf16.mxu1 %v8537_v36  ;;  %5021 = vmatprep.subr.bf16.mxu0 %v8523_v14  ;;  %v4093_v36 = vld [vmem:[%s15584_s9 + $0x28] sm:$0xff]  ;;  %v8505_v27 = vcombine.high %v4088_v30, %v4092_v28  ;;  %v8504_v29 = vcombine.low %v4088_v30, %v4092_v28 }
 0x833   : > { %v8507_v25 = vcombine.high %v4089_v13, %v4093_v36  ;;  %v8506_v1 = vcombine.low %v4089_v13, %v4093_v36 }
 0x835   : > { %4905 = vmatpush1.bf16.msra.mxu1 %v8536_v26  ;;  %5022 = vmatpush1.bf16.msra.mxu0 %v8522_v52  ;;  %v4212_v26 = vld [vmem:[%s15584_s9 + $0x3e0] sm:$0xff] }
 0x836   : > { %4906 = vmatprep.subr.bf16.mxu1 %v8529_v4  ;;  %5023 = vmatprep.subr.bf16.mxu0 %v8515_v38  ;;  %v4213_v4 = vld [vmem:[%s15584_s9 + $0x3e8] sm:$0xff]  ;;  %v8625_v57 = vcombine.high %v4208_v56, %v4212_v26  ;;  %v8624_v24 = vcombine.low %v4208_v56, %v4212_v26 }
 0x837   : > { %v8627_v16 = vcombine.high %v4209_v41, %v4213_v4 }
 0x839   : > { %4907 = vmatpush1.bf16.msra.mxu1 %v8528_v46  ;;  %5024 = vmatpush1.bf16.msra.mxu0 %v8514_v50  ;;  %v8626_v46 = vcombine.low %v4209_v41, %v4213_v4 }
 0x83a   : > { %4908 = vmatprep.subr.bf16.mxu1 %v8521_v43  ;;  %5025 = vmatprep.subr.bf16.mxu0 %v8507_v25 }
 0x83d   : > { %4909 = vmatpush1.bf16.msra.mxu1 %v8520_v21  ;;  %5026 = vmatpush1.bf16.msra.mxu0 %v8506_v1 }
 0x83e   : > { %4910 = vmatprep.subr.bf16.mxu1 %v8513_v5  ;;  %5027 = vmatprep.subr.bf16.mxu0 %v8627_v16  ;;  %v4204_v16 = vld [vmem:[%s15584_s9 + $0x3a0] sm:$0xff] }
 0x841   : > { %4911 = vmatpush1.bf16.msra.mxu1 %v8512_v34  ;;  %5028 = vmatpush2.bf16.msra.mxu0 %v8626_v46 }
 0x842   : > { %4912 = vmatprep.subr.bf16.mxu1 %v8505_v27 }
 0x845   : > { %4913 = vmatpush1.bf16.msra.mxu1 %v8504_v29 }
 0x846   : > { %4914 = vmatprep.subr.bf16.mxu1 %v8625_v57 }
 0x849   : > { %4915 = vmatpush2.bf16.msra.mxu1 %v8624_v24  ;;  %v4201_v24 = vld [vmem:[%s15584_s9 + $0x388] sm:$0xff] }
 0x878   : > { %v3731_v6 = vpop.xlane.xlu0 %3730 }
 0x879   : > { %v3778_v43 = vmul.f32 0.00390625, %v3731_v6 }
 0x87b   : > { %v11849_v14 = vsub.f32 %v11584_v59, %v3778_v43  ;;  %v11852_v53 = vsub.f32 %v11586_v48, %v3778_v43  ;;  %v4205_v43 = vld [vmem:[%s15584_s9 + $0x3a8] sm:$0xff] }
 0x87c   : > { %v3734_v2 = vpop.xlane.xlu1 %3733 }
 0x87d   : > { %v3779_v17 = vmul.f32 0.00390625, %v3734_v2  ;;  %v3826_v20 = vmul.f32 %v11849_v14, %v11849_v14  ;;  %v3827_v21 = vmul.f32 %v11852_v53, %v11852_v53 }
 0x87f   : > { %v11859_v52 = vsub.f32 %v11594_v8, %v3779_v17  ;;  %v11862_v5 = vsub.f32 %v11597_v10, %v3779_v17  ;;  %v3858_v38 = vadd.f32 %v3827_v21, %v3826_v20  ;;  %v8618_v17 = vcombine.low %v4201_v24, %v4205_v43 }
 0x880   : > { %v3737_v59 = vpop.xlane.xlu0 %3736  ;;  %v8619_v20 = vcombine.high %v4201_v24, %v4205_v43 }
 0x881   : > { %v3780_v30 = vmul.f32 0.00390625, %v3737_v59  ;;  %3859 = vadd.xlane.f32.xlu1 %v3858_v38  ;;  %v3828_v48 = vmul.f32 %v11859_v52, %v11859_v52  ;;  %v3829_v28 = vmul.f32 %v11862_v5, %v11862_v5 }
 0x882   : > { %5029 = vmatprep.subr.bf16.mxu0 %v8619_v20 }
 0x883   : > { %v11869_v13 = vsub.f32 %v11604_v45, %v3780_v30  ;;  %v11872_v36 = vsub.f32 %v11606_v54, %v3780_v30  ;;  %v3861_v8 = vadd.f32 %v3829_v28, %v3828_v48  ;;  %v4192_v48 = vld [vmem:[%s15584_s9 + $0x340] sm:$0xff]  ;;  %5030 = vmatpush2.bf16.msra.mxu0 %v8618_v17 }
 0x884   : > { %v3740_v34 = vpop.xlane.xlu0 %3739  ;;  %v4196_v28 = vld [vmem:[%s15584_s9 + $0x360] sm:$0xff] }
 0x885   : > { %v3781_v10 = vmul.f32 0.00390625, %v3740_v34  ;;  %3862 = vadd.xlane.f32.xlu0 %v3861_v8  ;;  %v3830_v50 = vmul.f32 %v11869_v13, %v11869_v13  ;;  %v3831_v27 = vmul.f32 %v11872_v36, %v11872_v36 }
 0x887   : > { %v11879_v25 = vsub.f32 %v11614_v15, %v3781_v10  ;;  %v11882_v56 = vsub.f32 %v11617_v61, %v3781_v10  ;;  %v3864_v45 = vadd.f32 %v3831_v27, %v3830_v50  ;;  %v4200_v61 = vld [vmem:[%s15584_s9 + $0x380] sm:$0xff]  ;;  %v8609_v10 = vcombine.high %v4192_v48, %v4196_v28  ;;  %v4197_v50 = vld [vmem:[%s15584_s9 + $0x368] sm:$0xff] }
 0x888   : > { %v3743_v26 = vpop.xlane.xlu1 %3742  ;;  %v8617_v6 = vcombine.high %v4200_v61, %v4204_v16  ;;  %v8616_v2 = vcombine.low %v4200_v61, %v4204_v16  ;;  %v8608_v27 = vcombine.low %v4192_v48, %v4196_v28  ;;  %v4188_v61 = vld [vmem:[%s15584_s9 + $0x320] sm:$0xff] }
 0x889   : > { %v3782_v54 = vmul.f32 0.00390625, %v3743_v26  ;;  %3865 = vadd.xlane.f32.xlu1 %v3864_v45  ;;  %v3832_v41 = vmul.f32 %v11879_v25, %v11879_v25  ;;  %v3833_v4 = vmul.f32 %v11882_v56, %v11882_v56  ;;  %v4180_v48 = vld [vmem:[%s15584_s9 + $0x2e0] sm:$0xff] }
 0x88a   : > { %4916 = vmatprep.subr.bf16.mxu1 %v8617_v6 }
 0x88b   : > { %v11889_v29 = vsub.f32 %v11624_v32, %v3782_v54  ;;  %v11892_v1 = vsub.f32 %v11626_v47, %v3782_v54  ;;  %v3867_v15 = vadd.f32 %v3833_v4, %v3832_v41  ;;  %4917 = vmatpush2.bf16.msra.mxu1 %v8616_v2 }
 0x88c   : > { %v3746_v57 = vpop.xlane.xlu0 %3745  ;;  %4918 = vmatprep.subr.bf16.mxu1 %v8609_v10 }
 0x88d   : > { %v3783_v46 = vmul.f32 0.00390625, %v3746_v57  ;;  %3868 = vadd.xlane.f32.xlu0 %v3867_v15  ;;  %v3834_v32 = vmul.f32 %v11889_v29, %v11889_v29  ;;  %v3835_v47 = vmul.f32 %v11892_v1, %v11892_v1  ;;  %v4184_v57 = vld [vmem:[%s15584_s9 + $0x300] sm:$0xff] }
 0x88f   : > { %v11911_v21 = vsub.f32 %v11634_v40, %v3783_v46  ;;  %v11914_v38 = vsub.f32 %v11637_v33, %v3783_v46  ;;  %v3870_v59 = vadd.f32 %v3835_v47, %v3834_v32  ;;  %v4193_v40 = vld [vmem:[%s15584_s9 + $0x348] sm:$0xff]  ;;  %4919 = vmatpush2.bf16.msra.mxu1 %v8608_v27  ;;  %v8601_v46 = vcombine.high %v4184_v57, %v4188_v61 }
 0x890   : > { %v3749_v30 = vpop.xlane.xlu1 %3748  ;;  %v8610_v45 = vcombine.low %v4193_v40, %v4197_v50  ;;  %v8611_v26 = vcombine.high %v4193_v40, %v4197_v50  ;;  %v4189_v32 = vld [vmem:[%s15584_s9 + $0x328] sm:$0xff]  ;;  %v8600_v47 = vcombine.low %v4184_v57, %v4188_v61  ;;  %v4172_v57 = vld [vmem:[%s15584_s9 + $0x2a0] sm:$0xff] }
 0x891   : > { %v3784_v8 = vmul.f32 0.00390625, %v3749_v30  ;;  %3871 = vadd.xlane.f32.xlu1 %v3870_v59  ;;  %v3836_v33 = vmul.f32 %v11911_v21, %v11911_v21  ;;  %v3837_v34 = vmul.f32 %v11914_v38, %v11914_v38  ;;  %4920 = vmatprep.subr.bf16.mxu1 %v8601_v46  ;;  %v4176_v30 = vld [vmem:[%s15584_s9 + $0x2c0] sm:$0xff] }
 0x892   : > { %5031 = vmatprep.subr.bf16.mxu0 %v8611_v26 }
 0x893   : > { %v11933_v54 = vsub.f32 %v11644_v22, %v3784_v8  ;;  %v11936_v41 = vsub.f32 %v11646_v12, %v3784_v8  ;;  %v3873_v4 = vadd.f32 %v3837_v34, %v3836_v33  ;;  %v4185_v22 = vld [vmem:[%s15584_s9 + $0x308] sm:$0xff]  ;;  %5032 = vmatpush2.bf16.msra.mxu0 %v8610_v45  ;;  %4921 = vmatpush2.bf16.msra.mxu1 %v8600_v47 }
 0x894   : > { %v3752_v15 = vpop.xlane.xlu0 %3751  ;;  %v8602_v6 = vcombine.low %v4185_v22, %v4189_v32  ;;  %v8603_v43 = vcombine.high %v4185_v22, %v4189_v32  ;;  %v8593_v8 = vcombine.high %v4176_v30, %v4180_v48  ;;  %v4181_v33 = vld [vmem:[%s15584_s9 + $0x2e8] sm:$0xff]  ;;  %v8592_v34 = vcombine.low %v4176_v30, %v4180_v48  ;;  %v4164_v30 = vld [vmem:[%s15584_s9 + $0x260] sm:$0xff] }
 0x895   : > { %v3785_v16 = vmul.f32 0.00390625, %v3752_v15  ;;  %3874 = vadd.xlane.f32.xlu0 %v3873_v4  ;;  %v3838_v12 = vmul.f32 %v11933_v54, %v11933_v54  ;;  %v3839_v24 = vmul.f32 %v11936_v41, %v11936_v41  ;;  %v4168_v15 = vld [vmem:[%s15584_s9 + $0x280] sm:$0xff] }
 0x896   : > { %5033 = vmatprep.subr.bf16.mxu0 %v8603_v43  ;;  %4922 = vmatprep.subr.bf16.mxu1 %v8593_v8 }
 0x897   : > { %v11955_v2 = vsub.f32 %v11654_v0, %v3785_v16  ;;  %v11958_v17 = vsub.f32 %v11657_v31, %v3785_v16  ;;  %v3876_v20 = vadd.f32 %v3839_v24, %v3838_v12  ;;  %v4177_v0 = vld [vmem:[%s15584_s9 + $0x2c8] sm:$0xff]  ;;  %5034 = vmatpush2.bf16.msra.mxu0 %v8602_v6  ;;  %4923 = vmatpush2.bf16.msra.mxu1 %v8592_v34 }
 0x898   : > { %v3755_v59 = vpop.xlane.xlu1 %3754  ;;  %v8594_v10 = vcombine.low %v4177_v0, %v4181_v33  ;;  %v8595_v50 = vcombine.high %v4177_v0, %v4181_v33  ;;  %v8585_v16 = vcombine.high %v4168_v15, %v4172_v57  ;;  %v4173_v12 = vld [vmem:[%s15584_s9 + $0x2a8] sm:$0xff]  ;;  %v8584_v24 = vcombine.low %v4168_v15, %v4172_v57  ;;  %v4156_v15 = vld [vmem:[%s15584_s9 + $0x220] sm:$0xff] }
 0x899   : > { %v3786_v28 = vmul.f32 0.00390625, %v3755_v59  ;;  %3877 = vadd.xlane.f32.xlu1 %v3876_v20  ;;  %v3840_v31 = vmul.f32 %v11955_v2, %v11955_v2  ;;  %v3841_v40 = vmul.f32 %v11958_v17, %v11958_v17  ;;  %v4160_v59 = vld [vmem:[%s15584_s9 + $0x240] sm:$0xff] }
 0x89a   : > { %5035 = vmatprep.subr.bf16.mxu0 %v8595_v50  ;;  %4924 = vmatprep.subr.bf16.mxu1 %v8585_v16 }
 0x89b   : > { %v11977_v27 = vsub.f32 %v11664_v7, %v3786_v28  ;;  %v11980_v45 = vsub.f32 %v11666_v11, %v3786_v28  ;;  %v3879_v26 = vadd.f32 %v3841_v40, %v3840_v31  ;;  %v4169_v7 = vld [vmem:[%s15584_s9 + $0x288] sm:$0xff]  ;;  %5036 = vmatpush2.bf16.msra.mxu0 %v8594_v10  ;;  %4925 = vmatpush2.bf16.msra.mxu1 %v8584_v24 }
 0x89c   : > { %v3758_v4 = vpop.xlane.xlu0 %3757  ;;  %v8586_v46 = vcombine.low %v4169_v7, %v4173_v12  ;;  %v8587_v32 = vcombine.high %v4169_v7, %v4173_v12  ;;  %v8577_v28 = vcombine.high %v4160_v59, %v4164_v30  ;;  %v4165_v31 = vld [vmem:[%s15584_s9 + $0x268] sm:$0xff]  ;;  %v8576_v40 = vcombine.low %v4160_v59, %v4164_v30  ;;  %v12056_v59 = vld [vmem:[%s15584_s9 + $0x1f0] sm:$0xff] }
 0x89d   : > { %v3787_v61 = vmul.f32 0.00390625, %v3758_v4  ;;  %3880 = vadd.xlane.f32.xlu0 %v3879_v26  ;;  %v3842_v11 = vmul.f32 %v11977_v27, %v11977_v27  ;;  %v3843_v22 = vmul.f32 %v11980_v45, %v11980_v45  ;;  %v4152_v4 = vld [vmem:[%s15584_s9 + $0x200] sm:$0xff] }
 0x89e   : > { %5037 = vmatprep.subr.bf16.mxu0 %v8587_v32  ;;  %4926 = vmatprep.subr.bf16.mxu1 %v8577_v28 }
 0x89f   : > { %v11999_v47 = vsub.f32 %v11674_v42, %v3787_v61  ;;  %v12002_v6 = vsub.f32 %v11677_v63, %v3787_v61  ;;  %v3882_v43 = vadd.f32 %v3843_v22, %v3842_v11  ;;  %v4161_v42 = vld [vmem:[%s15584_s9 + $0x248] sm:$0xff]  ;;  %5038 = vmatpush2.bf16.msra.mxu0 %v8586_v46  ;;  %4927 = vmatpush2.bf16.msra.mxu1 %v8576_v40 }
 0x8a0   : > { %v3761_v20 = vpop.xlane.xlu1 %3760  ;;  %v8578_v8 = vcombine.low %v4161_v42, %v4165_v31  ;;  %v8579_v33 = vcombine.high %v4161_v42, %v4165_v31  ;;  %v8569_v61 = vcombine.high %v4152_v4, %v4156_v15  ;;  %v4157_v11 = vld [vmem:[%s15584_s9 + $0x228] sm:$0xff]  ;;  %v8568_v22 = vcombine.low %v4152_v4, %v4156_v15 }
 0x8a1   : > { %v3788_v48 = vmul.f32 0.00390625, %v3761_v20  ;;  %3883 = vadd.xlane.f32.xlu1 %v3882_v43  ;;  %v3844_v63 = vmul.f32 %v11999_v47, %v11999_v47  ;;  %v3845_v0 = vmul.f32 %v12002_v6, %v12002_v6  ;;  %v12051_v20 = vld [vmem:[%s15584_s9 + $0x1d0] sm:$0xff] }
 0x8a2   : > { %5039 = vmatprep.subr.bf16.mxu0 %v8579_v33  ;;  %4928 = vmatprep.subr.bf16.mxu1 %v8569_v61 }
 0x8a3   : > { %v12021_v34 = vsub.f32 %v11684_v58, %v3788_v48  ;;  %v12024_v10 = vsub.f32 %v11686_v44, %v3788_v48  ;;  %v3885_v50 = vadd.f32 %v3845_v0, %v3844_v63  ;;  %v4153_v58 = vld [vmem:[%s15584_s9 + $0x208] sm:$0xff]  ;;  %5040 = vmatpush2.bf16.msra.mxu0 %v8578_v8  ;;  %4929 = vmatpush2.bf16.msra.mxu1 %v8568_v22  ;;  %v12072_v63 = vld [vmem:[%s15584_s9 + $0x1f8] sm:$0xff] }
 0x8a4   : > { %v3764_v26 = vpop.xlane.xlu0 %3763  ;;  %v8570_v16 = vcombine.low %v4153_v58, %v4157_v11  ;;  %v8571_v12 = vcombine.high %v4153_v58, %v4157_v11  ;;  %v8565_v48 = vcombine.high %v12051_v20, %v12056_v59  ;;  %v8564_v0 = vcombine.low %v12051_v20, %v12056_v59 }
 0x8a5   : > { %v3789_v57 = vmul.f32 0.00390625, %v3764_v26  ;;  %3886 = vadd.xlane.f32.xlu0 %v3885_v50  ;;  %v3846_v44 = vmul.f32 %v12021_v34, %v12021_v34  ;;  %v3847_v7 = vmul.f32 %v12024_v10, %v12024_v10 }
 0x8a6   : > { %5041 = vmatprep.subr.bf16.mxu0 %v8571_v12  ;;  %5124 = vmatprep.subr.bf16.mxu1 %v8565_v48 }
 0x8a7   : > { %v12043_v24 = vsub.f32 %v11694_v18, %v3789_v57  ;;  %v12046_v46 = vsub.f32 %v11697_v49, %v3789_v57  ;;  %v3888_v32 = vadd.f32 %v3847_v7, %v3846_v44  ;;  %v12061_v18 = vld [vmem:[%s15584_s9 + $0x1d8] sm:$0xff]  ;;  %5042 = vmatpush2.bf16.msra.mxu0 %v8570_v16 }
 0x8a8   : > { %v3767_v43 = vpop.xlane.xlu1 %3766  ;;  %v8566_v28 = vcombine.low %v12061_v18, %v12072_v63  ;;  %v8567_v31 = vcombine.high %v12061_v18, %v12072_v63 }
 0x8a9   : > { %v3790_v49 = vmul.f32 0.00390625, %v3767_v43  ;;  %3889 = vadd.xlane.f32.xlu1 %v3888_v32  ;;  %v3848_v30 = vmul.f32 %v12043_v24, %v12043_v24  ;;  %v3849_v42 = vmul.f32 %v12046_v46, %v12046_v46 }
 0x8aa   : > { %5237 = vmatprep.subr.bf16.mxu0 %v8567_v31 }
 0x8ab   : > { %v12081_v40 = vsub.f32 %v11704_v60, %v3790_v49  ;;  %v12084_v8 = vsub.f32 %v11706_v23, %v3790_v49  ;;  %v3891_v33 = vadd.f32 %v3849_v42, %v3848_v30 }
 0x8ac   : > { %v3770_v50 = vpop.xlane.xlu0 %3769 }
 0x8ad   : > { %v3791_v26 = vmul.f32 0.00390625, %v3770_v50  ;;  %3892 = vadd.xlane.f32.xlu0 %v3891_v33  ;;  %v3850_v4 = vmul.f32 %v12081_v40, %v12081_v40  ;;  %v3851_v15 = vmul.f32 %v12084_v8, %v12084_v8 }
 0x8af   : > { %v12091_v58 = vsub.f32 %v11714_v39, %v3791_v26  ;;  %v12094_v60 = vsub.f32 %v11717_v55, %v3791_v26  ;;  %v3894_v23 = vadd.f32 %v3851_v15, %v3850_v4 }
 0x8b0   : > { %v3773_v57 = vpop.xlane.xlu1 %3772 }
 0x8b1   : > { %v3792_v44 = vmul.f32 0.00390625, %v3773_v57  ;;  %3895 = vadd.xlane.f32.xlu1 %v3894_v23  ;;  %v3852_v7 = vmul.f32 %v12091_v58, %v12091_v58  ;;  %v3853_v61 = vmul.f32 %v12094_v60, %v12094_v60 }
 0x8b3   : > { %v12101_v11 = vsub.f32 %v11724_v35, %v3792_v44  ;;  %v12104_v22 = vsub.f32 %v11726_v37, %v3792_v44  ;;  %v3897_v39 = vadd.f32 %v3853_v61, %v3852_v7  ;;  %v3727_v7 = vld [vmem:[%s15582_s7] sm:$0x3] }
 0x8b4   : > { %v3776_v16 = vpop.xlane.xlu0 %3775 }
 0x8b5   : > { %v3793_v55 = vmul.f32 0.00390625, %v3776_v16  ;;  %3898 = vadd.xlane.f32.xlu0 %v3897_v39  ;;  %v3854_v12 = vmul.f32 %v12101_v11, %v12101_v11  ;;  %v3855_v32 = vmul.f32 %v12104_v22, %v12104_v22 }
 0x8b7   : > { %v12111_v43 = vsub.f32 %v11734_v62, %v3793_v55  ;;  %v12114_v49 = vsub.f32 %v11736_v3, %v3793_v55  ;;  %v3900_v35 = vadd.f32 %v3855_v32, %v3854_v12  ;;  %v12124_v55 = vrot.slane %v3727_v7, %v11572_v19 }
 0x8b8   : > { %v12127_v12 = vrot.slane %v3727_v7, %v11566_v51 }
 0x8b9   : > { %3901 = vadd.xlane.f32.xlu1 %v3900_v35  ;;  %v3856_v37 = vmul.f32 %v12111_v43, %v12111_v43  ;;  %v3857_v30 = vmul.f32 %v12114_v49, %v12114_v49  ;;  %v3728_v35 = vld [vmem:[%s15583_s8] sm:$0x3] }
 0x8bb   : > { %v3903_v42 = vadd.f32 %v3857_v30, %v3856_v37 }
 0x8bd   : > { %3904 = vadd.xlane.f32.xlu0 %v3903_v42 }
 0x90a   : > { %v3860_v48 = vpop.xlane.xlu1 %3859 }
 0x90b   : > { %v3906_v31 = vmul.f32 0.00390625, %v3860_v48 }
 0x90d   : > { %v3922_v33 = vadd.f32 1e-05, %v3906_v31 }
 0x90e   : > { %v3863_v50 = vpop.xlane.xlu0 %3862 }
 0x90f   : > { %9665 = vrsqrt.f32 %v3922_v33  ;;  %v3907_v62 = vmul.f32 0.00390625, %v3863_v50  ;;  %v12136_v50 = vrot.slane %v3728_v35, %v11572_v19 }
 0x911   : > { %v3923_v26 = vadd.f32 1e-05, %v3907_v62 }
 0x912   : > { %v3866_v4 = vpop.xlane.xlu1 %3865 }
 0x913   : > { %9667 = vrsqrt.f32 %v3923_v26  ;;  %v3908_v3 = vmul.f32 0.00390625, %v3866_v4  ;;  %v12140_v26 = vrot.slane %v3728_v35, %v11566_v51  ;;  %v4139_v35 = vld [vmem:[%s15584_s9 + $0x198] sm:$0xff] }
 0x915   : > { %v3924_v15 = vadd.f32 1e-05, %v3908_v3 }
 0x916   : > { %v3869_v23 = vpop.xlane.xlu0 %3868 }
 0x917   : > { %9669 = vrsqrt.f32 %v3924_v15  ;;  %v3909_v57 = vmul.f32 0.00390625, %v3869_v23 }
 0x919   : > { %v3925_v44 = vadd.f32 1e-05, %v3909_v57 }
 0x91a   : > { %v3872_v61 = vpop.xlane.xlu1 %3871 }
 0x91b   : > { %9671 = vrsqrt.f32 %v3925_v44  ;;  %v3910_v39 = vmul.f32 0.00390625, %v3872_v61 }
 0x91c   : > { %v9666_v16 = vpop.eup %9665 }
 0x91d   : > { %v3926_v32 = vadd.f32 1e-05, %v3910_v39  ;;  %v3955_v37 = vmul.f32 %v9666_v16, %v11852_v53  ;;  %v3954_v30 = vmul.f32 %v9666_v16, %v11849_v14 }
 0x91e   : > { %v3875_v42 = vpop.xlane.xlu0 %3874 }
 0x91f   : > { %9673 = vrsqrt.f32 %v3926_v32  ;;  %v3911_v48 = vmul.f32 0.00390625, %v3875_v42  ;;  %v3998_v33 = vmul.f32 %v12124_v55, %v3955_v37  ;;  %v3997_v62 = vmul.f32 %v12127_v12, %v3954_v30  ;;  %v4142_v32 = vld [vmem:[%s15584_s9 + $0x1b0] sm:$0xff]  ;;  %v4143_v37 = vld [vmem:[%s15584_s9 + $0x1b8] sm:$0xff] }
 0x920   : > { %v9668_v31 = vpop.eup %9667 }
 0x921   : > { %v3927_v4 = vadd.f32 1e-05, %v3911_v48  ;;  %v3957_v3 = vmul.f32 %v9668_v31, %v11862_v5  ;;  %v3956_v53 = vmul.f32 %v9668_v31, %v11859_v52  ;;  %v12147_v7 = vadd.f32 %v12136_v50, %v3998_v33  ;;  %v4138_v5 = vld [vmem:[%s15584_s9 + $0x190] sm:$0xff] }
 0x922   : > { %v3878_v14 = vpop.xlane.xlu1 %3877  ;;  %v12150_v61 = vadd.f32 %v12140_v26, %v3997_v62 }
 0x923   : > { %9675 = vrsqrt.f32 %v3927_v4  ;;  %v3912_v15 = vmul.f32 0.00390625, %v3878_v14  ;;  %v4000_v23 = vmul.f32 %v12124_v55, %v3957_v3  ;;  %v3999_v57 = vmul.f32 %v12127_v12, %v3956_v53  ;;  %15888 = vst [vmem:[#allocation58_spill] sm:$0xff] %v12147_v7  ;;  %v12183_v4 = vld [vmem:[%s15584_s9 + $0x150] sm:$0xff] }
 0x924   : > { %v9670_v44 = vpop.eup %9669  ;;  %15889 = vst [vmem:[#allocation59_spill] sm:$0xff] %v12150_v61  ;;  %v8557_v3 = vcombine.high %v4138_v5, %v4142_v32  ;;  %v8559_v53 = vcombine.high %v4139_v35, %v4143_v37 }
 0x925   : > { %v3928_v39 = vadd.f32 1e-05, %v3912_v15  ;;  %v12156_v52 = vadd.f32 %v12136_v50, %v4000_v23  ;;  %v12159_v16 = vadd.f32 %v12140_v26, %v3999_v57  ;;  %v3959_v30 = vmul.f32 %v9670_v44, %v11872_v36  ;;  %v12188_v36 = vld [vmem:[%s15584_s9 + $0x170] sm:$0xff] }
 0x926   : > { %v3881_v42 = vpop.xlane.xlu0 %3880  ;;  %v3958_v48 = vmul.f32 %v9670_v44, %v11869_v13 }
 0x927   : > { %15890 = vst [vmem:[#allocation60_spill] sm:$0xff] %v12156_v52  ;;  %15891 = vst [vmem:[#allocation61_spill] sm:$0xff] %v12159_v16  ;;  %9677 = vrsqrt.f32 %v3928_v39  ;;  %v3913_v31 = vmul.f32 0.00390625, %v3881_v42  ;;  %v12174_v33 = vpack.c.bf16 %v12156_v52, %v12147_v7  ;;  %v12178_v62 = vpack.c.bf16 %v12159_v16, %v12150_v61  ;;  %v12199_v39 = vld [vmem:[%s15584_s9 + $0x158] sm:$0xff] }
 0x928   : > { %v9672_v13 = vpop.eup %9671  ;;  %v4002_v14 = vmul.f32 %v12124_v55, %v3959_v30  ;;  %v4001_v15 = vmul.f32 %v12127_v12, %v3958_v48  ;;  %v4135_v30 = vld [vmem:[%s15584_s9 + $0x178] sm:$0xff]  ;;  %v8556_v48 = vcombine.low %v4138_v5, %v4142_v32  ;;  %v12219_v5 = vld [vmem:[%s15584_s9 + $0x110] sm:$0xff] }
 0x929   : > { %v3929_v23 = vadd.f32 1e-05, %v3913_v31  ;;  %4930 = vmatprep.mubr.bf16.mxu1 %v12174_v33  ;;  %5043 = vmatprep.mubr.bf16.mxu0 %v12174_v33  ;;  %v3961_v57 = vmul.f32 %v9672_v13, %v11882_v56  ;;  %v3960_v44 = vmul.f32 %v9672_v13, %v11879_v25  ;;  %v8558_v31 = vcombine.low %v4139_v35, %v4143_v37  ;;  %v12224_v32 = vld [vmem:[%s15584_s9 + $0x130] sm:$0xff]  ;;  %v12242_v37 = vld [vmem:[%s15584_s9 + $0x118] sm:$0xff] }
 0x92a   : > { %v3884_v42 = vpop.xlane.xlu1 %3883  ;;  %4931 = vmatmul.mubr.bf16.vlgmr.msra.gmra.mxu1 %v12178_v62  ;;  %5044 = vmatmul.mubr.bf16.vlgmr.msra.gmra.mxu0 %v12178_v62  ;;  %v8549_v56 = vcombine.high %v12183_v4, %v12188_v36  ;;  %v12227_v59 = vadd.f32 %v12136_v50, %v4002_v14  ;;  %v12230_v18 = vadd.f32 %v12140_v26, %v4001_v15 }
 0x92b   : > { %9679 = vrsqrt.f32 %v3929_v23  ;;  %v3914_v25 = vmul.f32 0.00390625, %v3884_v42  ;;  %5125 = vmatpush1.bf16.msra.mxu1 %v8564_v0  ;;  %5238 = vmatpush1.bf16.msra.mxu0 %v8566_v28  ;;  %v4004_v13 = vmul.f32 %v12124_v55, %v3961_v57  ;;  %v4003_v52 = vmul.f32 %v12127_v12, %v3960_v44 }
 0x92c   : > { %v9674_v20 = vpop.eup %9673  ;;  %5126 = vmatprep.subr.bf16.mxu1 %v8557_v3  ;;  %5239 = vmatprep.subr.bf16.mxu0 %v8559_v53  ;;  %15892 = vst [vmem:[#allocation62_spill] sm:$0xff] %v12227_v59  ;;  %15893 = vst [vmem:[#allocation63_spill] sm:$0xff] %v12230_v18  ;;  %v8551_v63 = vcombine.high %v12199_v39, %v4135_v30  ;;  %v4127_v3 = vld [vmem:[%s15584_s9 + $0x138] sm:$0xff]  ;;  %v8548_v15 = vcombine.low %v12183_v4, %v12188_v36  ;;  %v12265_v4 = vld [vmem:[%s15584_s9 + $0xd0] sm:$0xff] }
 0x92d   : > { %v3930_v0 = vadd.f32 1e-05, %v3914_v25  ;;  %v12234_v28 = vadd.f32 %v12136_v50, %v4004_v13  ;;  %v12237_v35 = vadd.f32 %v12140_v26, %v4003_v52  ;;  %v3963_v53 = vmul.f32 %v9674_v20, %v11892_v1 }
 0x92e   : > { %v3887_v14 = vpop.xlane.xlu0 %3886  ;;  %v8550_v23 = vcombine.low %v12199_v39, %v4135_v30  ;;  %v8541_v52 = vcombine.high %v12219_v5, %v12224_v32  ;;  %v3962_v57 = vmul.f32 %v9674_v20, %v11889_v29  ;;  %v12270_v29 = vld [vmem:[%s15584_s9 + $0xf0] sm:$0xff]  ;;  %v8543_v39 = vcombine.high %v12242_v37, %v4127_v3  ;;  %v4119_v20 = vld [vmem:[%s15584_s9 + $0xf8] sm:$0xff] }
 0x92f   : > { %15894 = vst [vmem:[#allocation64_spill] sm:$0xff] %v12234_v28  ;;  %15895 = vst [vmem:[#allocation65_spill] sm:$0xff] %v12237_v35  ;;  %9681 = vrsqrt.f32 %v3930_v0  ;;  %5127 = vmatpush1.bf16.msra.mxu1 %v8556_v48  ;;  %v3915_v44 = vmul.f32 0.00390625, %v3887_v14  ;;  %5240 = vmatpush1.bf16.msra.mxu0 %v8558_v31  ;;  %v12256_v42 = vpack.c.bf16 %v12234_v28, %v12227_v59 }
 0x930   : > { %v12260_v1 = vpack.c.bf16 %v12237_v35, %v12230_v18  ;;  %v9676_v36 = vpop.eup %9675  ;;  %5128 = vmatprep.subr.bf16.mxu1 %v8549_v56  ;;  %5241 = vmatprep.subr.bf16.mxu0 %v8551_v63  ;;  %v4006_v30 = vmul.f32 %v12124_v55, %v3963_v53  ;;  %v4005_v48 = vmul.f32 %v12127_v12, %v3962_v57  ;;  %v12282_v56 = vld [vmem:[%s15584_s9 + $0xd8] sm:$0xff] }
 0x931   : > { %v3931_v31 = vadd.f32 1e-05, %v3915_v44  ;;  %4940 = vmatprep.mubr.bf16.mxu1 %v12256_v42  ;;  %5053 = vmatprep.mubr.bf16.mxu0 %v12256_v42  ;;  %v3965_v25 = vmul.f32 %v9676_v36, %v11914_v38  ;;  %v3964_v13 = vmul.f32 %v9676_v36, %v11911_v21  ;;  %v8540_v0 = vcombine.low %v12219_v5, %v12224_v32  ;;  %v12299_v44 = vld [vmem:[%s15584_s9 + $0x90] sm:$0xff] }
 0x932   : > { %v3890_v63 = vpop.xlane.xlu1 %3889  ;;  %4941 = vmatmul.mubr.bf16.gmra.mxu1 %v12260_v1  ;;  %5054 = vmatmul.mubr.bf16.gmra.mxu0 %v12260_v1  ;;  %v8542_v38 = vcombine.low %v12242_v37, %v4127_v3  ;;  %v8533_v21 = vcombine.high %v12265_v4, %v12270_v29  ;;  %v12304_v5 = vld [vmem:[%s15584_s9 + $0xb0] sm:$0xff]  ;;  %v12307_v37 = vadd.f32 %v12136_v50, %v4006_v30 }
 0x933   : > { %9683 = vrsqrt.f32 %v3931_v31  ;;  %v3916_v53 = vmul.f32 0.00390625, %v3890_v63  ;;  %5129 = vmatpush1.bf16.msra.mxu1 %v8548_v15  ;;  %5242 = vmatpush1.bf16.msra.mxu0 %v8550_v23  ;;  %v4008_v14 = vmul.f32 %v12124_v55, %v3965_v25  ;;  %v4007_v57 = vmul.f32 %v12127_v12, %v3964_v13 }
 0x934   : > { %v9678_v32 = vpop.eup %9677  ;;  %5130 = vmatprep.subr.bf16.mxu1 %v8541_v52  ;;  %5243 = vmatprep.subr.bf16.mxu0 %v8543_v39  ;;  %15896 = vst [vmem:[#allocation66_spill] sm:$0xff] %v12307_v37  ;;  %v12310_v3 = vadd.f32 %v12140_v26, %v4005_v48  ;;  %v8535_v15 = vcombine.high %v12282_v56, %v4119_v20  ;;  %v12322_v52 = vld [vmem:[%s15584_s9 + $0x98] sm:$0xff] }
 0x935   : > { %v3932_v23 = vadd.f32 1e-05, %v3916_v53  ;;  %v12314_v36 = vadd.f32 %v12136_v50, %v4008_v14  ;;  %v12317_v31 = vadd.f32 %v12140_v26, %v4007_v57  ;;  %v4111_v39 = vld [vmem:[%s15584_s9 + $0xb8] sm:$0xff]  ;;  %v3967_v30 = vmul.f32 %v9678_v32, %v11936_v41 }
 0x936   : > { %15897 = vst [vmem:[#allocation67_spill] sm:$0xff] %v12310_v3  ;;  %v3893_v48 = vpop.xlane.xlu0 %3892  ;;  %v8532_v25 = vcombine.low %v12265_v4, %v12270_v29  ;;  %v8534_v13 = vcombine.low %v12282_v56, %v4119_v20  ;;  %v8525_v63 = vcombine.high %v12299_v44, %v12304_v5  ;;  %v3966_v53 = vmul.f32 %v9678_v32, %v11933_v54  ;;  %v12345_v4 = vld [vmem:[%s15584_s9 + $0x50] sm:$0xff] }
 0x937   : > { %15898 = vst [vmem:[#allocation68_spill] sm:$0xff] %v12314_v36  ;;  %15899 = vst [vmem:[#allocation69_spill] sm:$0xff] %v12317_v31  ;;  %9685 = vrsqrt.f32 %v3932_v23  ;;  %5131 = vmatpush1.bf16.msra.mxu1 %v8540_v0  ;;  %v3917_v14 = vmul.f32 0.00390625, %v3893_v48  ;;  %5244 = vmatpush1.bf16.msra.mxu0 %v8542_v38  ;;  %v12336_v57 = vpack.c.bf16 %v12314_v36, %v12307_v37  ;;  %v12350_v54 = vld [vmem:[%s15584_s9 + $0x70] sm:$0xff] }
 0x938   : > { %v12340_v41 = vpack.c.bf16 %v12317_v31, %v12310_v3  ;;  %v9680_v29 = vpop.eup %9679  ;;  %5132 = vmatprep.subr.bf16.mxu1 %v8533_v21  ;;  %5245 = vmatprep.subr.bf16.mxu0 %v8535_v15  ;;  %v8527_v56 = vcombine.high %v12322_v52, %v4111_v39  ;;  %v4010_v20 = vmul.f32 %v12124_v55, %v3967_v30  ;;  %v12362_v21 = vld [vmem:[%s15584_s9 + $0x58] sm:$0xff]  ;;  %v12379_v36 = vld [vmem:[%s15584_s9 + $0x10] sm:$0xff] }
 0x939   : > { %v4009_v0 = vmul.f32 %v12127_v12, %v3966_v53  ;;  %v3933_v38 = vadd.f32 1e-05, %v3917_v14  ;;  %4950 = vmatprep.mubr.bf16.mxu1 %v12336_v57  ;;  %5063 = vmatprep.mubr.bf16.mxu0 %v12336_v57  ;;  %v3969_v32 = vmul.f32 %v9680_v29, %v11958_v17  ;;  %v3968_v23 = vmul.f32 %v9680_v29, %v11955_v2  ;;  %v4103_v15 = vld [vmem:[%s15584_s9 + $0x78] sm:$0xff] }
 0x93a   : > { %v3896_v30 = vpop.xlane.xlu1 %3895  ;;  %4951 = vmatmul.mubr.bf16.gmra.mxu1 %v12340_v41  ;;  %5064 = vmatmul.mubr.bf16.gmra.mxu0 %v12340_v41  ;;  %v8524_v48 = vcombine.low %v12299_v44, %v12304_v5  ;;  %v8526_v17 = vcombine.low %v12322_v52, %v4111_v39  ;;  %v8517_v2 = vcombine.high %v12345_v4, %v12350_v54  ;;  %v12384_v44 = vld [vmem:[%s15584_s9 + $0x30] sm:$0xff] }
 0x93b   : > { %9687 = vrsqrt.f32 %v3933_v38  ;;  %v3918_v53 = vmul.f32 0.00390625, %v3896_v30  ;;  %5133 = vmatpush1.bf16.msra.mxu1 %v8532_v25  ;;  %5246 = vmatpush1.bf16.msra.mxu0 %v8534_v13  ;;  %v4012_v14 = vmul.f32 %v12124_v55, %v3969_v32  ;;  %v4011_v29 = vmul.f32 %v12127_v12, %v3968_v23 }
 0x93c   : > { %v9682_v5 = vpop.eup %9681  ;;  %5134 = vmatprep.subr.bf16.mxu1 %v8525_v63  ;;  %5247 = vmatprep.subr.bf16.mxu0 %v8527_v56  ;;  %v12387_v52 = vadd.f32 %v12136_v50, %v4010_v20  ;;  %v12390_v39 = vadd.f32 %v12140_v26, %v4009_v0  ;;  %v8519_v25 = vcombine.high %v12362_v21, %v4103_v15  ;;  %v12402_v63 = vld [vmem:[%s15584_s9 + $0x18] sm:$0xff] }
 0x93d   : > { %v3934_v13 = vadd.f32 1e-05, %v3918_v53  ;;  %v12394_v38 = vadd.f32 %v12136_v50, %v4012_v14  ;;  %v12397_v32 = vadd.f32 %v12140_v26, %v4011_v29  ;;  %v4095_v56 = vld [vmem:[%s15584_s9 + $0x38] sm:$0xff]  ;;  %v3971_v20 = vmul.f32 %v9682_v5, %v11980_v45 }
 0x93e   : > { %15900 = vst [vmem:[#allocation70_spill] sm:$0xff] %v12387_v52  ;;  %15901 = vst [vmem:[#allocation71_spill] sm:$0xff] %v12390_v39  ;;  %v3899_v0 = vpop.xlane.xlu0 %3898  ;;  %v8516_v23 = vcombine.low %v12345_v4, %v12350_v54  ;;  %v8518_v30 = vcombine.low %v12362_v21, %v4103_v15  ;;  %v8509_v53 = vcombine.high %v12379_v36, %v12384_v44  ;;  %v12425_v4 = vld [vmem:[%s15584_s9 + $0x3d0] sm:$0xff] }
 0x93f   : > { %15902 = vst [vmem:[#allocation72_spill] sm:$0xff] %v12394_v38  ;;  %15903 = vst [vmem:[#allocation73_spill] sm:$0xff] %v12397_v32  ;;  %v3970_v14 = vmul.f32 %v9682_v5, %v11977_v27  ;;  %9689 = vrsqrt.f32 %v3934_v13  ;;  %5135 = vmatpush1.bf16.msra.mxu1 %v8524_v48  ;;  %v3919_v29 = vmul.f32 0.00390625, %v3899_v0  ;;  %5248 = vmatpush1.bf16.msra.mxu0 %v8526_v17  ;;  %v12430_v27 = vld [vmem:[%s15584_s9 + $0x3f0] sm:$0xff] }
 0x940   : > { %v12416_v31 = vpack.c.bf16 %v12394_v38, %v12387_v52  ;;  %v12420_v45 = vpack.c.bf16 %v12397_v32, %v12390_v39  ;;  %v9684_v54 = vpop.eup %9683  ;;  %5136 = vmatprep.subr.bf16.mxu1 %v8517_v2  ;;  %5249 = vmatprep.subr.bf16.mxu0 %v8519_v25  ;;  %v8511_v21 = vcombine.high %v12402_v63, %v4095_v56  ;;  %v4211_v2 = vld [vmem:[%s15584_s9 + $0x3d8] sm:$0xff]  ;;  %v12457_v38 = vld [vmem:[%s15584_s9 + $0x390] sm:$0xff] }
 0x941   : > { %v4014_v15 = vmul.f32 %v12124_v55, %v3971_v20  ;;  %v4013_v48 = vmul.f32 %v12127_v12, %v3970_v14  ;;  %v3935_v17 = vadd.f32 1e-05, %v3919_v29  ;;  %v3973_v5 = vmul.f32 %v9684_v54, %v12002_v6  ;;  %v4215_v25 = vld [vmem:[%s15584_s9 + $0x3f8] sm:$0xff] }
 0x942   : > { %4960 = vmatprep.mubr.bf16.mxu1 %v12416_v31  ;;  %5073 = vmatprep.mubr.bf16.mxu0 %v12416_v31  ;;  %v3972_v13 = vmul.f32 %v9684_v54, %v11999_v47  ;;  %v3902_v20 = vpop.xlane.xlu1 %3901  ;;  %v8508_v0 = vcombine.low %v12379_v36, %v12384_v44  ;;  %v8510_v6 = vcombine.low %v12402_v63, %v4095_v56  ;;  %v12462_v36 = vld [vmem:[%s15584_s9 + $0x3b0] sm:$0xff] }
 0x943   : > { %4961 = vmatmul.mubr.bf16.gmra.mxu1 %v12420_v45  ;;  %5074 = vmatmul.mubr.bf16.gmra.mxu0 %v12420_v45  ;;  %v8629_v47 = vcombine.high %v12425_v4, %v12430_v27  ;;  %9691 = vrsqrt.f32 %v3935_v17  ;;  %v3920_v14 = vmul.f32 0.00390625, %v3902_v20  ;;  %v4016_v29 = vmul.f32 %v12124_v55, %v3973_v5 }
 0x944   : > { %5137 = vmatpush1.bf16.msra.mxu1 %v8516_v23  ;;  %5250 = vmatpush1.bf16.msra.mxu0 %v8518_v30  ;;  %v4015_v54 = vmul.f32 %v12127_v12, %v3972_v13  ;;  %v9686_v44 = vpop.eup %9685  ;;  %v12465_v63 = vadd.f32 %v12136_v50, %v4014_v15  ;;  %v12468_v56 = vadd.f32 %v12140_v26, %v4013_v48  ;;  %v4203_v13 = vld [vmem:[%s15584_s9 + $0x398] sm:$0xff] }
 0x945   : > { %5138 = vmatprep.subr.bf16.mxu1 %v8509_v53  ;;  %5251 = vmatprep.subr.bf16.mxu0 %v8511_v21  ;;  %v8631_v23 = vcombine.high %v4211_v2, %v4215_v25  ;;  %v3936_v30 = vadd.f32 1e-05, %v3920_v14  ;;  %v12471_v17 = vadd.f32 %v12136_v50, %v4016_v29  ;;  %v4207_v53 = vld [vmem:[%s15584_s9 + $0x3b8] sm:$0xff]  ;;  %v3975_v21 = vmul.f32 %v9686_v44, %v12024_v10 }
 0x946   : > { %15904 = vst [vmem:[#allocation74_spill] sm:$0xff] %v12465_v63  ;;  %15905 = vst [vmem:[#allocation75_spill] sm:$0xff] %v12468_v56  ;;  %v12474_v5 = vadd.f32 %v12140_v26, %v4015_v54  ;;  %v3905_v15 = vpop.xlane.xlu0 %3904  ;;  %v8628_v48 = vcombine.low %v12425_v4, %v12430_v27  ;;  %v8630_v20 = vcombine.low %v4211_v2, %v4215_v25  ;;  %v4198_v2 = vld [vmem:[%s15584_s9 + $0x370] sm:$0xff] }
 0x947   : > { %15906 = vst [vmem:[#allocation76_spill] sm:$0xff] %v12471_v17  ;;  %v8621_v14 = vcombine.high %v12457_v38, %v12462_v36  ;;  %v3974_v29 = vmul.f32 %v9686_v44, %v12021_v34  ;;  %9693 = vrsqrt.f32 %v3936_v30  ;;  %v3921_v54 = vmul.f32 0.00390625, %v3905_v15  ;;  %v4194_v34 = vld [vmem:[%s15584_s9 + $0x350] sm:$0xff]  ;;  %v4195_v44 = vld [vmem:[%s15584_s9 + $0x358] sm:$0xff] }
 0x948   : > { %15907 = vst [vmem:[#allocation77_spill] sm:$0xff] %v12474_v5  ;;  %5139 = vmatpush1.bf16.msra.mxu1 %v8508_v0  ;;  %5252 = vmatpush1.bf16.msra.mxu0 %v8510_v6  ;;  %v12490_v32 = vpack.c.bf16 %v12471_v17, %v12465_v63  ;;  %v12494_v10 = vpack.c.bf16 %v12474_v5, %v12468_v56  ;;  %v9688_v52 = vpop.eup %9687 }
 0x949   : > { %5140 = vmatprep.subr.bf16.mxu1 %v8629_v47  ;;  %5253 = vmatprep.subr.bf16.mxu0 %v8631_v23  ;;  %v8623_v4 = vcombine.high %v4203_v13, %v4207_v53  ;;  %v4018_v27 = vmul.f32 %v12124_v55, %v3975_v21  ;;  %v4017_v25 = vmul.f32 %v12127_v12, %v3974_v29  ;;  %v3937_v0 = vadd.f32 1e-05, %v3921_v54  ;;  %v4199_v23 = vld [vmem:[%s15584_s9 + $0x378] sm:$0xff] }
 0x94a   : > { %4970 = vmatprep.mubr.bf16.mxu1 %v12490_v32  ;;  %5083 = vmatprep.mubr.bf16.mxu0 %v12490_v32  ;;  %v3977_v6 = vmul.f32 %v9688_v52, %v12046_v46  ;;  %v3976_v47 = vmul.f32 %v9688_v52, %v12043_v24  ;;  %v8620_v30 = vcombine.low %v12457_v38, %v12462_v36  ;;  %v4186_v38 = vld [vmem:[%s15584_s9 + $0x310] sm:$0xff] }
 0x94b   : > { %4971 = vmatmul.mubr.bf16.gmra.mxu1 %v12494_v10  ;;  %5084 = vmatmul.mubr.bf16.gmra.mxu0 %v12494_v10  ;;  %v8622_v21 = vcombine.low %v4203_v13, %v4207_v53  ;;  %9695 = vrsqrt.f32 %v3937_v0  ;;  %v8613_v46 = vcombine.high %v4194_v34, %v4198_v2  ;;  %v12521_v29 = vadd.f32 %v12136_v50, %v4018_v27  ;;  %v4190_v36 = vld [vmem:[%s15584_s9 + $0x330] sm:$0xff] }
 0x94c   : > { %5141 = vmatpush2.bf16.msra.mxu1 %v8628_v48  ;;  %5254 = vmatpush2.bf16.msra.mxu0 %v8630_v20  ;;  %v4020_v24 = vmul.f32 %v12124_v55, %v3977_v6  ;;  %v4019_v52 = vmul.f32 %v12127_v12, %v3976_v47  ;;  %v9690_v15 = vpop.eup %9689  ;;  %v12524_v54 = vadd.f32 %v12140_v26, %v4017_v25  ;;  %v4187_v48 = vld [vmem:[%s15584_s9 + $0x318] sm:$0xff] }
 0x94d   : > { %5142 = vmatprep.subr.bf16.mxu1 %v8621_v14  ;;  %5255 = vmatprep.subr.bf16.mxu0 %v8623_v4  ;;  %15908 = vst [vmem:[#allocation78_spill] sm:$0xff] %v12521_v29  ;;  %v8615_v17 = vcombine.high %v4195_v44, %v4199_v23  ;;  %v4191_v20 = vld [vmem:[%s15584_s9 + $0x338] sm:$0xff]  ;;  %v3979_v14 = vmul.f32 %v9690_v15, %v12084_v8 }
 0x94e   : > { %15909 = vst [vmem:[#allocation79_spill] sm:$0xff] %v12524_v54  ;;  %v12533_v13 = vadd.f32 %v12136_v50, %v4020_v24  ;;  %v12536_v53 = vadd.f32 %v12140_v26, %v4019_v52  ;;  %v3978_v4 = vmul.f32 %v9690_v15, %v12081_v40  ;;  %v8612_v27 = vcombine.low %v4194_v34, %v4198_v2  ;;  %v4178_v40 = vld [vmem:[%s15584_s9 + $0x2d0] sm:$0xff] }
 0x94f   : > { %v8614_v25 = vcombine.low %v4195_v44, %v4199_v23  ;;  %v8605_v47 = vcombine.high %v4186_v38, %v4190_v36  ;;  %v8607_v52 = vcombine.high %v4187_v48, %v4191_v20  ;;  %v4022_v8 = vmul.f32 %v12124_v55, %v3979_v14  ;;  %v4182_v34 = vld [vmem:[%s15584_s9 + $0x2f0] sm:$0xff]  ;;  %v4179_v23 = vld [vmem:[%s15584_s9 + $0x2d8] sm:$0xff] }
 0x950   : > { %15910 = vst [vmem:[#allocation80_spill] sm:$0xff] %v12533_v13  ;;  %15911 = vst [vmem:[#allocation81_spill] sm:$0xff] %v12536_v53  ;;  %5143 = vmatpush2.bf16.msra.mxu1 %v8620_v30  ;;  %5256 = vmatpush2.bf16.msra.mxu0 %v8622_v21  ;;  %v12548_v0 = vpack.c.bf16 %v12533_v13, %v12521_v29  ;;  %v12552_v6 = vpack.c.bf16 %v12536_v53, %v12524_v54  ;;  %v9692_v24 = vpop.eup %9691  ;;  %v4183_v30 = vld [vmem:[%s15584_s9 + $0x2f8] sm:$0xff] }
 0x951   : > { %5144 = vmatprep.subr.bf16.mxu1 %v8613_v46  ;;  %5257 = vmatprep.subr.bf16.mxu0 %v8615_v17  ;;  %v4021_v2 = vmul.f32 %v12127_v12, %v3978_v4  ;;  %v3981_v44 = vmul.f32 %v9692_v24, %v12094_v60  ;;  %v3980_v17 = vmul.f32 %v9692_v24, %v12091_v58 }
 0x952   : > { %4980 = vmatprep.mubr.bf16.mxu1 %v12548_v0  ;;  %5093 = vmatprep.mubr.bf16.mxu0 %v12548_v0  ;;  %v8604_v21 = vcombine.low %v4186_v38, %v4190_v36  ;;  %v8606_v46 = vcombine.low %v4187_v48, %v4191_v20  ;;  %v8597_v15 = vcombine.high %v4178_v40, %v4182_v34  ;;  %v4170_v38 = vld [vmem:[%s15584_s9 + $0x290] sm:$0xff] }
 0x953   : > { %4981 = vmatmul.mubr.bf16.gmra.mxu1 %v12552_v6  ;;  %5094 = vmatmul.mubr.bf16.gmra.mxu0 %v12552_v6  ;;  %v4024_v60 = vmul.f32 %v12124_v55, %v3981_v44  ;;  %v4023_v58 = vmul.f32 %v12127_v12, %v3980_v17  ;;  %v12577_v4 = vadd.f32 %v12136_v50, %v4022_v8  ;;  %v4174_v20 = vld [vmem:[%s15584_s9 + $0x2b0] sm:$0xff] }
 0x954   : > { %5145 = vmatpush2.bf16.msra.mxu1 %v8612_v27  ;;  %5258 = vmatpush2.bf16.msra.mxu0 %v8614_v25  ;;  %v9694_v14 = vpop.eup %9693  ;;  %v12580_v24 = vadd.f32 %v12140_v26, %v4021_v2  ;;  %v8599_v13 = vcombine.high %v4179_v23, %v4183_v30  ;;  %v4171_v27 = vld [vmem:[%s15584_s9 + $0x298] sm:$0xff]  ;;  %v8596_v8 = vcombine.low %v4178_v40, %v4182_v34  ;;  %v4166_v34 = vld [vmem:[%s15584_s9 + $0x270] sm:$0xff] }
 0x955   : > { %5146 = vmatprep.subr.bf16.mxu1 %v8605_v47  ;;  %5259 = vmatprep.subr.bf16.mxu0 %v8607_v52  ;;  %15912 = vst [vmem:[#allocation82_spill] sm:$0xff] %v12577_v4  ;;  %v12586_v36 = vadd.f32 %v12136_v50, %v4024_v60  ;;  %v12589_v48 = vadd.f32 %v12140_v26, %v4023_v58  ;;  %v4175_v25 = vld [vmem:[%s15584_s9 + $0x2b8] sm:$0xff] }
 0x956   : > { %15913 = vst [vmem:[#allocation83_spill] sm:$0xff] %v12580_v24  ;;  %v3983_v47 = vmul.f32 %v9694_v14, %v12104_v22  ;;  %v3982_v52 = vmul.f32 %v9694_v14, %v12101_v11  ;;  %v8598_v17 = vcombine.low %v4179_v23, %v4183_v30  ;;  %v8589_v58 = vcombine.high %v4170_v38, %v4174_v20  ;;  %v4162_v11 = vld [vmem:[%s15584_s9 + $0x250] sm:$0xff]  ;;  %v4163_v30 = vld [vmem:[%s15584_s9 + $0x258] sm:$0xff] }
 0x957   : > { %15914 = vst [vmem:[#allocation84_spill] sm:$0xff] %v12586_v36  ;;  %15915 = vst [vmem:[#allocation85_spill] sm:$0xff] %v12589_v48  ;;  %v12604_v2 = vpack.c.bf16 %v12586_v36, %v12577_v4  ;;  %v12608_v44 = vpack.c.bf16 %v12589_v48, %v12580_v24  ;;  %v8591_v53 = vcombine.high %v4171_v27, %v4175_v25 }
 0x958   : > { %5147 = vmatpush2.bf16.msra.mxu1 %v8604_v21  ;;  %5260 = vmatpush2.bf16.msra.mxu0 %v8606_v46  ;;  %v9696_v60 = vpop.eup %9695  ;;  %v4026_v22 = vmul.f32 %v12124_v55, %v3983_v47  ;;  %v4025_v23 = vmul.f32 %v12127_v12, %v3982_v52  ;;  %v4167_v21 = vld [vmem:[%s15584_s9 + $0x278] sm:$0xff]  ;;  %v8590_v46 = vcombine.low %v4171_v27, %v4175_v25 }
 0x959   : > { %5148 = vmatprep.subr.bf16.mxu1 %v8597_v15  ;;  %5261 = vmatprep.subr.bf16.mxu0 %v8599_v13  ;;  %v3985_v40 = vmul.f32 %v9696_v60, %v12114_v49  ;;  %v3984_v13 = vmul.f32 %v9696_v60, %v12111_v43  ;;  %v8588_v49 = vcombine.low %v4170_v38, %v4174_v20 }
 0x95a   : > { %4990 = vmatprep.mubr.bf16.mxu1 %v12604_v2  ;;  %5103 = vmatprep.mubr.bf16.mxu0 %v12604_v2  ;;  %v8581_v14 = vcombine.high %v4162_v11, %v4166_v34  ;;  %v8583_v47 = vcombine.high %v4163_v30, %v4167_v21  ;;  %v12633_v52 = vadd.f32 %v12136_v50, %v4026_v22 }
 0x95b   : > { %4991 = vmatmul.mubr.bf16.gmra.mxu1 %v12608_v44  ;;  %5104 = vmatmul.mubr.bf16.gmra.mxu0 %v12608_v44  ;;  %v4028_v43 = vmul.f32 %v12124_v55, %v3985_v40  ;;  %v4027_v15 = vmul.f32 %v12127_v12, %v3984_v13  ;;  %v12639_v36 = vadd.f32 %v12140_v26, %v4025_v23  ;;  %v4154_v55 = vld [vmem:[%s15584_s9 + $0x210] sm:$0xff]  ;;  %v9417_v13 = vld [vmem:[%s15586_s11 + $0x64] ss:$8 sps:$4 sm:$0xff]  }
 0x95c   : > { %5149 = vmatpush2.bf16.msra.mxu1 %v8596_v8  ;;  %5262 = vmatpush2.bf16.msra.mxu0 %v8598_v17  ;;  %15916 = vst [vmem:[#allocation86_spill] sm:$0xff] %v12633_v52  ;;  %v4158_v12 = vld [vmem:[%s15584_s9 + $0x230] sm:$0xff]  ;;  %v8580_v20 = vcombine.low %v4162_v11, %v4166_v34  ;;  %v8582_v25 = vcombine.low %v4163_v30, %v4167_v21  ;;  %v9420_v23 = vld [vmem:[%s15586_s11 + $0x164] ss:$8 sps:$4 sm:$0xff]   ;;  %v9415_v30 = vld [vmem:[%s15586_s11 + $0x60] ss:$8 sps:$4 sm:$0xff]  }
 0x95d   : > { %5150 = vmatprep.subr.bf16.mxu1 %v8589_v58  ;;  %5263 = vmatprep.subr.bf16.mxu0 %v8591_v53  ;;  %v12636_v60 = vadd.f32 %v12136_v50, %v4028_v43  ;;  %15918 = vst [vmem:[#allocation88_spill] sm:$0xff] %v12639_v36  ;;  %v12642_v38 = vadd.f32 %v12140_v26, %v4027_v15  ;;  %v4155_v53 = vld [vmem:[%s15584_s9 + $0x218] sm:$0xff]  ;;  %v9418_v21 = vld [vmem:[%s15586_s11 + $0x160] ss:$8 sps:$4 sm:$0xff]   ;;  %v9429_v43 = vld [vmem:[%s15586_s11 + $0x44] ss:$8 sps:$4 sm:$0xff]  }
 0x95e   : > { %v4159_v50 = vld [vmem:[%s15584_s9 + $0x238] sm:$0xff]  ;;  %v8573_v8 = vcombine.high %v4154_v55, %v4158_v12  ;;  %v8572_v58 = vcombine.low %v4154_v55, %v4158_v12  ;;  %v9432_v15 = vld [vmem:[%s15586_s11 + $0x144] ss:$8 sps:$4 sm:$0xff]  }
 0x95f   : > { %15917 = vst [vmem:[#allocation87_spill] sm:$0xff] %v12636_v60  ;;  %15919 = vst [vmem:[#allocation89_spill] sm:$0xff] %v12642_v38  ;;  %v12658_v26 = vpack.c.bf16 %v12636_v60, %v12633_v52  ;;  %v12662_v27 = vpack.c.bf16 %v12642_v38, %v12639_v36  ;;  %v8575_v17 = vcombine.high %v4155_v53, %v4159_v50  ;;  %v9411_v11 = vld [vmem:[%s15586_s11 + $0x74] ss:$8 sps:$4 sm:$0xff]   ;;  %v9409_v34 = vld [vmem:[%s15586_s11 + $0x70] ss:$8 sps:$4 sm:$0xff]  }
 0x960   : > { %5151 = vmatpush2.bf16.msra.mxu1 %v8588_v49  ;;  %5264 = vmatpush2.bf16.msra.mxu0 %v8590_v46  ;;  %v8574_v22 = vcombine.low %v4155_v53, %v4159_v50  ;;  %v9414_v40 = vld [vmem:[%s15586_s11 + $0x174] ss:$8 sps:$4 sm:$0xff]   ;;  %v9424_v46 = vld [vmem:[%s15586_s11 + $0x150] ss:$8 sps:$4 sm:$0xff]   ;;  %v9441_v53 = vld [vmem:[%s15586_s11 + $0x24] ss:$8 sps:$4 sm:$0xff]  }
 0x961   : > { %5152 = vmatprep.subr.bf16.mxu1 %v8581_v14  ;;  %5265 = vmatprep.subr.bf16.mxu0 %v8583_v47  ;;  %v9423_v49 = vld [vmem:[%s15586_s11 + $0x54] ss:$8 sps:$4 sm:$0xff]   ;;  %v9427_v14 = vld [vmem:[%s15586_s11 + $0x40] ss:$8 sps:$4 sm:$0xff]   ;;  %v9436_v12 = vld [vmem:[%s15586_s11 + $0x130] ss:$8 sps:$4 sm:$0xff]  }
 0x962   : > { %5000 = vmatprep.mubr.bf16.mxu1 %v12658_v26  ;;  %5113 = vmatprep.mubr.bf16.mxu0 %v12658_v26  ;;  %v9430_v47 = vld [vmem:[%s15586_s11 + $0x140] ss:$8 sps:$4 sm:$0xff]   ;;  %v9435_v55 = vld [vmem:[%s15586_s11 + $0x34] ss:$8 sps:$4 sm:$0xff]   ;;  %v9444_v50 = vld [vmem:[%s15586_s11 + $0x124] ss:$8 sps:$4 sm:$0xff]  }
 0x963   : > { %5001 = vmatmul.mubr.bf16.gmra.mxu1 %v12662_v27  ;;  %5114 = vmatmul.mubr.bf16.gmra.mxu0 %v12662_v27 }
 0x964   : > { %5153 = vmatpush2.bf16.msra.mxu1 %v8580_v20  ;;  %5156 = vmatprep.mubr.bf16.mxu1 %v12174_v33  ;;  %v9439_v20 = vld [vmem:[%s15586_s11 + $0x20] ss:$8 sps:$4 sm:$0xff]  }
 0x965   : > { %5266 = vmatpush2.bf16.msra.mxu0 %v8582_v25  ;;  %5269 = vmatprep.mubr.bf16.mxu0 %v12174_v33  ;;  %v9412_v33 = vld [vmem:[%s15586_s11 + $0x170] ss:$8 sps:$4 sm:$0xff]   ;;  %v9442_v25 = vld [vmem:[%s15586_s11 + $0x120] ss:$8 sps:$4 sm:$0xff]  }
 0x966   : > { %5154 = vmatprep.subr.bf16.mxu1 %v8573_v8  ;;  %5267 = vmatprep.subr.bf16.mxu0 %v8575_v17  ;;  %v9447_v8 = vld [vmem:[%s15586_s11 + $0x14] ss:$8 sps:$4 sm:$0xff]   ;;  %v9448_v17 = vld [vmem:[%s15586_s11 + $0x110] ss:$8 sps:$4 sm:$0xff]  }
 0x968   : > { %5155 = vmatpush2.bf16.msra.mxu1 %v8572_v58  ;;  %v9453_v58 = vld [vmem:[%s15586_s11 + $0x4] ss:$8 sps:$4 sm:$0xff]  }
 0x969   : > { %5268 = vmatpush2.bf16.msra.mxu0 %v8574_v22  ;;  %7346 = vmatprep.subr.bf16.mxu1 %v9411_v11  ;;  %v9456_v22 = vld [vmem:[%s15586_s11 + $0x104] ss:$8 sps:$4 sm:$0xff]   ;;  %v9451_v11 = vld [vmem:[%s15586_s11] ss:$8 sps:$4 sm:$0xff]  }
 0x96a   : > { %7459 = vmatprep.subr.bf16.mxu0 %v9414_v40  ;;  %v9454_v40 = vld [vmem:[%s15586_s11 + $0x100] ss:$8 sps:$4 sm:$0xff]  }
 0x96b   : > { %5157 = vmatmul.mubr.bf16.vlgmr.msra.gmra.mxu1 %v12178_v62 }
 0x96c   : > { %5270 = vmatmul.mubr.bf16.vlgmr.msra.gmra.mxu0 %v12178_v62  ;;  %5166 = vmatprep.mubr.bf16.mxu1 %v12256_v42  ;;  %v9426_v62 = vld [vmem:[%s15586_s11 + $0x154] ss:$8 sps:$4 sm:$0xff]  }
 0x96d   : > { %5279 = vmatprep.mubr.bf16.mxu0 %v12256_v42  ;;  %7347 = vmatpush1.bf16.msra.mxu1 %v9409_v34  ;;  %v9421_v42 = vld [vmem:[%s15586_s11 + $0x50] ss:$8 sps:$4 sm:$0xff]   ;;  %v9459_v34 = vld [vmem:[%s15586_s11 + $0xf4] ss:$8 sps:$4 sm:$0xff]  }
 0x96e   : > { %7460 = vmatpush1.bf16.msra.mxu0 %v9412_v33  ;;  %7348 = vmatprep.subr.bf16.mxu1 %v9417_v13  ;;  %v9460_v33 = vld [vmem:[%s15586_s11 + $0x1f0] ss:$8 sps:$4 sm:$0xff]   ;;  %v9465_v13 = vld [vmem:[%s15586_s11 + $0xe4] ss:$8 sps:$4 sm:$0xff]  }
 0x96f   : > { %7461 = vmatprep.subr.bf16.mxu0 %v9420_v23  ;;  %v9468_v23 = vld [vmem:[%s15586_s11 + $0x1e4] ss:$8 sps:$4 sm:$0xff]  }
 0x971   : > { %7349 = vmatpush1.bf16.msra.mxu1 %v9415_v30  ;;  %v9463_v30 = vld [vmem:[%s15586_s11 + $0xe0] ss:$8 sps:$4 sm:$0xff]  }
 0x972   : > { %7462 = vmatpush1.bf16.msra.mxu0 %v9418_v21  ;;  %7350 = vmatprep.subr.bf16.mxu1 %v9423_v49  ;;  %v9466_v21 = vld [vmem:[%s15586_s11 + $0x1e0] ss:$8 sps:$4 sm:$0xff]   ;;  %v9471_v49 = vld [vmem:[%s15586_s11 + $0xd4] ss:$8 sps:$4 sm:$0xff]  }
 0x973   : > { %5167 = vmatmul.mubr.bf16.gmra.mxu1 %v12260_v1  ;;  %7463 = vmatprep.subr.bf16.mxu0 %v9426_v62  ;;  %v9472_v62 = vld [vmem:[%s15586_s11 + $0x1d0] ss:$8 sps:$4 sm:$0xff]  }
 0x974   : > { %5280 = vmatmul.mubr.bf16.gmra.mxu0 %v12260_v1  ;;  %5176 = vmatprep.mubr.bf16.mxu1 %v12336_v57  ;;  %v9438_v1 = vld [vmem:[%s15586_s11 + $0x134] ss:$8 sps:$4 sm:$0xff]  }
 0x975   : > { %5289 = vmatprep.mubr.bf16.mxu0 %v12336_v57  ;;  %7351 = vmatpush1.bf16.msra.mxu1 %v9421_v42  ;;  %v9433_v57 = vld [vmem:[%s15586_s11 + $0x30] ss:$8 sps:$4 sm:$0xff]   ;;  %v9477_v42 = vld [vmem:[%s15586_s11 + $0xc4] ss:$8 sps:$4 sm:$0xff]  }
 0x976   : > { %7464 = vmatpush1.bf16.msra.mxu0 %v9424_v46  ;;  %7352 = vmatprep.subr.bf16.mxu1 %v9429_v43  ;;  %v9480_v46 = vld [vmem:[%s15586_s11 + $0x1c4] ss:$8 sps:$4 sm:$0xff]   ;;  %v9475_v43 = vld [vmem:[%s15586_s11 + $0xc0] ss:$8 sps:$4 sm:$0xff]  }
 0x977   : > { %7465 = vmatprep.subr.bf16.mxu0 %v9432_v15  ;;  %v9478_v15 = vld [vmem:[%s15586_s11 + $0x1c0] ss:$8 sps:$4 sm:$0xff]  }
 0x979   : > { %7353 = vmatpush1.bf16.msra.mxu1 %v9427_v14  ;;  %v9483_v14 = vld [vmem:[%s15586_s11 + $0xb4] ss:$8 sps:$4 sm:$0xff]  }
 0x97a   : > { %7466 = vmatpush1.bf16.msra.mxu0 %v9430_v47  ;;  %7354 = vmatprep.subr.bf16.mxu1 %v9435_v55  ;;  %v9484_v47 = vld [vmem:[%s15586_s11 + $0x1b0] ss:$8 sps:$4 sm:$0xff]   ;;  %v9489_v55 = vld [vmem:[%s15586_s11 + $0xa4] ss:$8 sps:$4 sm:$0xff]  }
 0x97b   : > { %5177 = vmatmul.mubr.bf16.gmra.mxu1 %v12340_v41  ;;  %7467 = vmatprep.subr.bf16.mxu0 %v9438_v1  ;;  %v9492_v1 = vld [vmem:[%s15586_s11 + $0x1a4] ss:$8 sps:$4 sm:$0xff]  }
 0x97c   : > { %5290 = vmatmul.mubr.bf16.gmra.mxu0 %v12340_v41  ;;  %5186 = vmatprep.mubr.bf16.mxu1 %v12416_v31  ;;  %v9445_v41 = vld [vmem:[%s15586_s11 + $0x10] ss:$8 sps:$4 sm:$0xff]  }
 0x97d   : > { %5299 = vmatprep.mubr.bf16.mxu0 %v12416_v31  ;;  %7355 = vmatpush1.bf16.msra.mxu1 %v9433_v57  ;;  %v9450_v31 = vld [vmem:[%s15586_s11 + $0x114] ss:$8 sps:$4 sm:$0xff]   ;;  %v9487_v57 = vld [vmem:[%s15586_s11 + $0xa0] ss:$8 sps:$4 sm:$0xff]  }
 0x97e   : > { %7468 = vmatpush1.bf16.msra.mxu0 %v9436_v12  ;;  %7356 = vmatprep.subr.bf16.mxu1 %v9441_v53  ;;  %v9490_v12 = vld [vmem:[%s15586_s11 + $0x1a0] ss:$8 sps:$4 sm:$0xff]   ;;  %v9495_v53 = vld [vmem:[%s15586_s11 + $0x94] ss:$8 sps:$4 sm:$0xff]  }
 0x97f   : > { %7469 = vmatprep.subr.bf16.mxu0 %v9444_v50  ;;  %v9496_v50 = vld [vmem:[%s15586_s11 + $0x190] ss:$8 sps:$4 sm:$0xff]  }
 0x981   : > { %7357 = vmatpush1.bf16.msra.mxu1 %v9439_v20  ;;  %v9501_v20 = vld [vmem:[%s15586_s11 + $0x84] ss:$8 sps:$4 sm:$0xff]  }
 0x982   : > { %7470 = vmatpush1.bf16.msra.mxu0 %v9442_v25  ;;  %7358 = vmatprep.subr.bf16.mxu1 %v9447_v8  ;;  %v9504_v25 = vld [vmem:[%s15586_s11 + $0x184] ss:$8 sps:$4 sm:$0xff]   ;;  %v9499_v8 = vld [vmem:[%s15586_s11 + $0x80] ss:$8 sps:$4 sm:$0xff]  }
 0x983   : > { %5187 = vmatmul.mubr.bf16.gmra.mxu1 %v12420_v45  ;;  %7471 = vmatprep.subr.bf16.mxu0 %v9450_v31  ;;  %v9502_v31 = vld [vmem:[%s15586_s11 + $0x180] ss:$8 sps:$4 sm:$0xff]  }
 0x984   : > { %5300 = vmatmul.mubr.bf16.gmra.mxu0 %v12420_v45  ;;  %5196 = vmatprep.mubr.bf16.mxu1 %v12490_v32  ;;  %v9457_v45 = vld [vmem:[%s15586_s11 + $0xf0] ss:$8 sps:$4 sm:$0xff]  }
 0x985   : > { %5309 = vmatprep.mubr.bf16.mxu0 %v12490_v32  ;;  %7359 = vmatpush1.bf16.msra.mxu1 %v9445_v41  ;;  %v9462_v32 = vld [vmem:[%s15586_s11 + $0x1f4] ss:$8 sps:$4 sm:$0xff]  }
 0x986   : > { %7472 = vmatpush1.bf16.msra.mxu0 %v9448_v17  ;;  %7360 = vmatprep.subr.bf16.mxu1 %v9453_v58  ;;  %v9507_v41 = vld [vmem:[%s15586_s11 + $0x274] ss:$8 sps:$4 sm:$0xff]   ;;  %v4216_v17 = vld [vmem:[%s15585_s10] sm:$0xff] }
 0x987   : > { %7473 = vmatprep.subr.bf16.mxu0 %v9456_v22 }
 0x989   : > { %7361 = vmatpush1.bf16.msra.mxu1 %v9451_v11  ;;  %v4228_v11 = vsub.s32 2, %v11563_v9 }
 0x98a   : > { %7474 = vmatpush1.bf16.msra.mxu0 %v9454_v40  ;;  %7362 = vmatprep.subr.bf16.mxu1 %v9459_v34  ;;  %v12903_v40 = vrot.slane %v4216_v17, %v11566_v51 }
 0x98b   : > { %5197 = vmatmul.mubr.bf16.gmra.mxu1 %v12494_v10  ;;  %7475 = vmatprep.subr.bf16.mxu0 %v9462_v32 }
 0x98c   : > { %5310 = vmatmul.mubr.bf16.gmra.mxu0 %v12494_v10  ;;  %5206 = vmatprep.mubr.bf16.mxu1 %v12548_v0  ;;  %v9474_v10 = vld [vmem:[%s15586_s11 + $0x1d4] ss:$8 sps:$4 sm:$0xff]  }
 0x98d   : > { %5319 = vmatprep.mubr.bf16.mxu0 %v12548_v0  ;;  %7363 = vmatpush2.bf16.msra.mxu1 %v9457_v45  ;;  %v9469_v0 = vld [vmem:[%s15586_s11 + $0xd0] ss:$8 sps:$4 sm:$0xff]  }
 0x98e   : > { %7476 = vmatpush2.bf16.msra.mxu0 %v9460_v33  ;;  %7364 = vmatprep.subr.bf16.mxu1 %v9465_v13  ;;  %v12905_v13 = vrot.slane %v4216_v17, %v4228_v11 }
 0x98f   : > { %7477 = vmatprep.subr.bf16.mxu0 %v9468_v23 }
 0x991   : > { %7365 = vmatpush2.bf16.msra.mxu1 %v9463_v30 }
 0x992   : > { %7478 = vmatpush2.bf16.msra.mxu0 %v9466_v21  ;;  %7366 = vmatprep.subr.bf16.mxu1 %v9471_v49 }
 0x993   : > { %5207 = vmatmul.mubr.bf16.gmra.mxu1 %v12552_v6  ;;  %7479 = vmatprep.subr.bf16.mxu0 %v9474_v10 }
 0x994   : > { %5320 = vmatmul.mubr.bf16.gmra.mxu0 %v12552_v6  ;;  %5216 = vmatprep.mubr.bf16.mxu1 %v12604_v2  ;;  %v9486_v6 = vld [vmem:[%s15586_s11 + $0x1b4] ss:$8 sps:$4 sm:$0xff]  }
 0x995   : > { %5329 = vmatprep.mubr.bf16.mxu0 %v12604_v2  ;;  %7367 = vmatpush2.bf16.msra.mxu1 %v9469_v0  ;;  %v9481_v2 = vld [vmem:[%s15586_s11 + $0xb0] ss:$8 sps:$4 sm:$0xff]  }
 0x996   : > { %7480 = vmatpush2.bf16.msra.mxu0 %v9472_v62  ;;  %7368 = vmatprep.subr.bf16.mxu1 %v9477_v42  ;;  %v4232_v62 = vsub.s32 3, %v11563_v9 }
 0x997   : > { %7481 = vmatprep.subr.bf16.mxu0 %v9480_v46 }
 0x999   : > { %7369 = vmatpush2.bf16.msra.mxu1 %v9475_v43 }
 0x99a   : > { %7482 = vmatpush2.bf16.msra.mxu0 %v9478_v15  ;;  %7370 = vmatprep.subr.bf16.mxu1 %v9483_v14  ;;  %v12911_v15 = vrot.slane %v4216_v17, %v11572_v19 }
 0x99b   : > { %5217 = vmatmul.mubr.bf16.gmra.mxu1 %v12608_v44  ;;  %7483 = vmatprep.subr.bf16.mxu0 %v9486_v6 }
 0x99c   : > { %5330 = vmatmul.mubr.bf16.gmra.mxu0 %v12608_v44  ;;  %5226 = vmatprep.mubr.bf16.mxu1 %v12658_v26  ;;  %v9498_v44 = vld [vmem:[%s15586_s11 + $0x194] ss:$8 sps:$4 sm:$0xff]  }
 0x99d   : > { %5339 = vmatprep.mubr.bf16.mxu0 %v12658_v26  ;;  %7371 = vmatpush2.bf16.msra.mxu1 %v9481_v2  ;;  %v9493_v26 = vld [vmem:[%s15586_s11 + $0x90] ss:$8 sps:$4 sm:$0xff]  }
 0x99e   : > { %7484 = vmatpush2.bf16.msra.mxu0 %v9484_v47  ;;  %7372 = vmatprep.subr.bf16.mxu1 %v9489_v55  ;;  %v12913_v47 = vrot.slane %v4216_v17, %v4232_v62 }
 0x99f   : > { %7485 = vmatprep.subr.bf16.mxu0 %v9492_v1 }
 0x9a1   : > { %7373 = vmatpush2.bf16.msra.mxu1 %v9487_v57 }
 0x9a2   : > { %7486 = vmatpush2.bf16.msra.mxu0 %v9490_v12  ;;  %7374 = vmatprep.subr.bf16.mxu1 %v9495_v53 }
 0x9a3   : > { %5227 = vmatmul.mubr.bf16.gmra.mxu1 %v12662_v27  ;;  %7487 = vmatprep.subr.bf16.mxu0 %v9498_v44 }
 0x9a4   : > { %5340 = vmatmul.mubr.bf16.gmra.mxu0 %v12662_v27  ;;  %v9510_v27 = vld [vmem:[%s15586_s11 + $0x374] ss:$8 sps:$4 sm:$0xff]  }
 0x9a5   : > { %7375 = vmatpush2.bf16.msra.mxu1 %v9493_v26 }
 0x9a6   : > { %7488 = vmatpush2.bf16.msra.mxu0 %v9496_v50  ;;  %7376 = vmatprep.subr.bf16.mxu1 %v9501_v20 }
 0x9a7   : > { %7489 = vmatprep.subr.bf16.mxu0 %v9504_v25 }
 0x9a9   : > { %7377 = vmatpush2.bf16.msra.mxu1 %v9499_v8 }
 0x9aa   : > { %7490 = vmatpush2.bf16.msra.mxu0 %v9502_v31  ;;  %7572 = vmatprep.subr.bf16.mxu1 %v9507_v41 }
 0x9ab   : > { %7685 = vmatprep.subr.bf16.mxu0 %v9510_v27 }
 0x9ea   : > { %v4932_v58 = vpop.f32.mrf.mxu1  ;;  %v5045_v22 = vpop.f32.mrf.mxu0 }
 0x9eb   : > { %v4933_v23 = vadd.f32 %v4932_v58, %v12903_v40  ;;  %v5046_v0 = vadd.f32 %v5045_v22, %v12905_v13 }
 0x9ec   : > { %v4934_v34 = vpop.f32.mrf.mxu1  ;;  %v5047_v32 = vpop.f32.mrf.mxu0 }
 0x9ed   : > { %v5478_v42 = vmul.f32 0.044715, %v4933_v23  ;;  %v5480_v2 = vmul.f32 0.044715, %v5046_v0  ;;  %v12917_v53 = vadd.f32 %v4934_v34, %v12911_v15  ;;  %v12921_v25 = vadd.f32 %v5047_v32, %v12913_v47 }
 0x9ee   : > { %v4936_v45 = vpop.f32.mrf.mxu1  ;;  %v5049_v33 = vpop.f32.mrf.mxu0  ;;  %v12941_v52 = vmul.f32 0.5, %v5046_v0 }
 0x9ef   : > { %v5606_v55 = vmul.f32 %v5478_v42, %v4933_v23  ;;  %v4937_v12 = vadd.f32 %v4936_v45, %v12903_v40  ;;  %v5050_v44 = vadd.f32 %v5049_v33, %v12905_v13  ;;  %v5608_v20 = vmul.f32 %v5480_v2, %v5046_v0 }
 0x9f0   : > { %v4938_v30 = vpop.f32.mrf.mxu1  ;;  %v5051_v21 = vpop.f32.mrf.mxu0  ;;  %v5479_v17 = vmul.f32 0.044715, %v12917_v53  ;;  %v5481_v11 = vmul.f32 0.044715, %v12921_v25 }
 0x9f1   : > { %v5734_v8 = vmul.f32 %v5606_v55, %v4933_v23  ;;  %v5486_v41 = vmul.f32 0.044715, %v4937_v12  ;;  %v5488_v58 = vmul.f32 0.044715, %v5050_v44  ;;  %v5736_v22 = vmul.f32 %v5608_v20, %v5046_v0 }
 0x9f2   : > { %v4942_v49 = vpop.f32.mrf.mxu1  ;;  %v5055_v10 = vpop.f32.mrf.mxu0  ;;  %v12930_v62 = vadd.f32 %v4938_v30, %v12911_v15  ;;  %v5607_v42 = vmul.f32 %v5479_v17, %v12917_v53  ;;  %v5609_v60 = vmul.f32 %v5481_v11, %v12921_v25  ;;  %v12937_v38 = vadd.f32 %v5051_v21, %v12913_v47 }
 0x9f3   : > { %v5862_v34 = vadd.f32 %v5734_v8, %v4933_v23  ;;  %v5614_v33 = vmul.f32 %v5486_v41, %v4937_v12  ;;  %v5616_v2 = vmul.f32 %v5488_v58, %v5050_v44  ;;  %v5864_v55 = vadd.f32 %v5736_v22, %v5046_v0 }
 0x9f4   : > { %v4944_v46 = vpop.f32.mrf.mxu1  ;;  %v5057_v43 = vpop.f32.mrf.mxu0  ;;  %v12939_v20 = vmul.f32 0.5, %v4933_v23  ;;  %v5487_v36 = vmul.f32 0.044715, %v12930_v62  ;;  %v12949_v17 = vmul.f32 0.5, %v12917_v53  ;;  %v12952_v58 = vmul.f32 0.5, %v12921_v25 }
 0x9f5   : > { %v5990_v8 = vmul.f32 0.7978846, %v5862_v34  ;;  %v5742_v30 = vmul.f32 %v5614_v33, %v4937_v12  ;;  %v12955_v21 = vmul.f32 %v5607_v42, %v12917_v53  ;;  %v12957_v23 = vmul.f32 0.5, %v4937_v12 }
 0x9f6   : > { %v4946_v14 = vpop.f32.mrf.mxu1  ;;  %v5059_v6 = vpop.f32.mrf.mxu0  ;;  %v12959_v0 = vmul.f32 0.5, %v5050_v44  ;;  %v5744_v22 = vmul.f32 %v5616_v2, %v5050_v44  ;;  %v5992_v11 = vmul.f32 0.7978846, %v5864_v55  ;;  %v12962_v34 = vmul.f32 %v5609_v60, %v12921_v25 }
 0x9f7   : > { %v5489_v33 = vmul.f32 0.044715, %v12937_v38  ;;  %v12966_v4 = vadd.f32 %v4942_v49, %v12903_v40  ;;  %9697 = vtanh.f32 %v5990_v8  ;;  %v12969_v24 = vadd.f32 %v5055_v10, %v12905_v13 }
 0x9f8   : > { %v4948_v1 = vpop.f32.mrf.mxu1  ;;  %v5061_v57 = vpop.f32.mrf.mxu0  ;;  %v12972_v42 = vadd.f32 %v4944_v46, %v12911_v15  ;;  %v12975_v29 = vadd.f32 %v5057_v43, %v12913_v47  ;;  %v5870_v55 = vadd.f32 %v5742_v30, %v4937_v12  ;;  %v5615_v60 = vmul.f32 %v5487_v36, %v12930_v62 }
 0x9f9   : > { %v12981_v54 = vadd.f32 %v4946_v14, %v12903_v40  ;;  %v12984_v49 = vadd.f32 %v5059_v6, %v12905_v13  ;;  %v5872_v10 = vadd.f32 %v5744_v22, %v5050_v44  ;;  %v12989_v46 = vadd.f32 %v4948_v1, %v12911_v15 }
 0x9fa   : > { %v4952_v26 = vpop.f32.mrf.mxu1  ;;  %v5065_v50 = vpop.f32.mrf.mxu0  ;;  %v12992_v43 = vadd.f32 %v5061_v57, %v12913_v47  ;;  %v5617_v36 = vmul.f32 %v5489_v33, %v12937_v38  ;;  %v5494_v14 = vmul.f32 0.044715, %v12966_v4  ;;  %9699 = vtanh.f32 %v5992_v11 }
 0x9fb   : > { %15920 = vst [vmem:[#allocation90_spill] sm:$0xff] %v12984_v49  ;;  %v12995_v5 = vadd.f32 %v4952_v26, %v12903_v40  ;;  %v13000_v12 = vadd.f32 %v5065_v50, %v12905_v13  ;;  %v5496_v1 = vmul.f32 0.044715, %v12969_v24  ;;  %v5495_v44 = vmul.f32 0.044715, %v12972_v42 }
 0x9fc   : > { %v12923_v31 = vpop.f32.mrf.mxu0  ;;  %v4954_v27 = vpop.f32.mrf.mxu1  ;;  %v5497_v57 = vmul.f32 0.044715, %v12975_v29  ;;  %v5998_v26 = vmul.f32 0.7978846, %v5870_v55  ;;  %v5743_v22 = vmul.f32 %v5615_v60, %v12930_v62  ;;  %v5502_v33 = vmul.f32 0.044715, %v12981_v54 }
 0x9fd   : > { %15921 = vst [vmem:[#allocation91_spill] sm:$0xff] %v12995_v5  ;;  %15922 = vst [vmem:[#allocation92_spill] sm:$0xff] %v13000_v12  ;;  %v13003_v6 = vadd.f32 %v4954_v27, %v12911_v15  ;;  %v5504_v50 = vmul.f32 0.044715, %v12984_v49  ;;  %v5503_v27 = vmul.f32 0.044715, %v12989_v46  ;;  %v13018_v39 = vadd.f32 %v12923_v31, %v12913_v47 }
 0x9fe   : > { %v12927_v45 = vpop.f32.mrf.mxu0  ;;  %v12932_v32 = vpop.f32.mrf.mxu1  ;;  %v5505_v11 = vmul.f32 0.044715, %v12992_v43  ;;  %v5510_v56 = vmul.f32 0.044715, %v12995_v5  ;;  %v6000_v37 = vmul.f32 0.7978846, %v5872_v10  ;;  %v5745_v55 = vmul.f32 %v5617_v36, %v12937_v38 }
 0x9ff   : > { %15923 = vst [vmem:[#allocation93_spill] sm:$0xff] %v13003_v6  ;;  %15924 = vst [vmem:[#allocation94_spill] sm:$0xff] %v13018_v39  ;;  %v5512_v60 = vmul.f32 0.044715, %v13000_v12  ;;  %v5511_v3 = vmul.f32 0.044715, %v13003_v6  ;;  %v5622_v28 = vmul.f32 %v5494_v14, %v12966_v4  ;;  %v5624_v35 = vmul.f32 %v5496_v1, %v12969_v24 }
 0xa00   : > { %v12943_v41 = vpop.f32.mrf.mxu0  ;;  %v12946_v48 = vpop.f32.mrf.mxu1  ;;  %v5623_v59 = vmul.f32 %v5495_v44, %v12972_v42  ;;  %v5625_v18 = vmul.f32 %v5497_v57, %v12975_v29  ;;  %9701 = vtanh.f32 %v5998_v26  ;;  %v5630_v31 = vmul.f32 %v5502_v33, %v12981_v54 }
 0xa01   : > { %v5632_v10 = vmul.f32 %v5504_v50, %v12984_v49  ;;  %v13031_v36 = vadd.f32 %v12932_v32, %v12903_v40  ;;  %v5631_v61 = vmul.f32 %v5503_v27, %v12989_v46  ;;  %v5633_v14 = vmul.f32 %v5505_v11, %v12992_v43 }
 0xa02   : > { %v5638_v1 = vmul.f32 %v5510_v56, %v12995_v5  ;;  %v5513_v44 = vmul.f32 0.044715, %v13018_v39  ;;  %9703 = vtanh.f32 %v6000_v37  ;;  %v5640_v57 = vmul.f32 %v5512_v60, %v13000_v12 }
 0xa03   : > { %v12977_v2 = vpop.f32.mrf.mxu0  ;;  %v12986_v8 = vpop.f32.mrf.mxu1  ;;  %15925 = vst [vmem:[#allocation95_spill] sm:$0xff] %v13031_v36  ;;  %v5639_v26 = vmul.f32 %v5511_v3, %v13003_v6  ;;  %v13041_v33 = vadd.f32 %v12927_v45, %v12905_v13  ;;  %v13044_v32 = vmul.f32 %v5622_v28, %v12966_v4  ;;  %v13047_v50 = vmul.f32 %v5624_v35, %v12969_v24 }
 0xa04   : > { %v13050_v27 = vmul.f32 %v5623_v59, %v12972_v42  ;;  %v13053_v56 = vmul.f32 %v5625_v18, %v12975_v29  ;;  %v13055_v11 = vpop.eup %9697  ;;  %v13058_v3 = vmul.f32 %v5630_v31, %v12981_v54  ;;  %v13061_v45 = vmul.f32 %v5632_v10, %v12984_v49 }
 0xa05   : > { %v13008_v30 = vpop.f32.mrf.mxu0  ;;  %v4964_v63 = vpop.f32.mrf.mxu1  ;;  %15926 = vst [vmem:[#allocation96_spill] sm:$0xff] %v13041_v33  ;;  %15927 = vst [vmem:[#allocation97_spill] sm:$0xff] %v13047_v50  ;;  %v5518_v28 = vmul.f32 0.044715, %v13031_v36  ;;  %v13066_v35 = vadd.f32 %v12946_v48, %v12911_v15  ;;  %v13069_v60 = vmul.f32 %v5631_v61, %v12989_v46  ;;  %v13072_v18 = vmul.f32 %v5633_v14, %v12992_v43 }
 0xa06   : > { %15928 = vst [vmem:[#allocation98_spill] sm:$0xff] %v13061_v45  ;;  %v13075_v19 = vmul.f32 %v5638_v1, %v12995_v5  ;;  %v5641_v31 = vmul.f32 %v5513_v44, %v13018_v39  ;;  %v13079_v10 = vmul.f32 %v5640_v57, %v13000_v12  ;;  %v13082_v51 = vmul.f32 %v5639_v26, %v13003_v6 }
 0xa07   : > { %v5079_v16 = vpop.f32.mrf.mxu0  ;;  %v4966_v7 = vpop.f32.mrf.mxu1  ;;  %v5520_v48 = vmul.f32 0.044715, %v13041_v33  ;;  %v5863_v61 = vadd.f32 %v12955_v21, %v12917_v53  ;;  %v13089_v14 = vadd.f32 %v12943_v41, %v12913_v47  ;;  %v13093_v1 = vadd.f32 %v12986_v8, %v12903_v40 }
 0xa08   : > { %15929 = vst [vmem:[#allocation99_spill] sm:$0xff] %v13075_v19  ;;  %15930 = vst [vmem:[#allocation100_spill] sm:$0xff] %v13079_v10  ;;  %v13097_v44 = vadd.f32 %v12977_v2, %v12905_v13  ;;  %v5871_v26 = vadd.f32 %v5743_v22, %v12930_v62  ;;  %v13100_v9 = vpop.eup %9699  ;;  %v5646_v10 = vmul.f32 %v5518_v28, %v13031_v36  ;;  %v5519_v53 = vmul.f32 0.044715, %v13066_v35 }
 0xa09   : > { %v5081_v37 = vpop.f32.mrf.mxu0  ;;  %v4968_v59 = vpop.f32.mrf.mxu1  ;;  %15931 = vst [vmem:[#allocation101_spill] sm:$0xff] %v13082_v51  ;;  %15932 = vst [vmem:[#allocation102_spill] sm:$0xff] %v13089_v14  ;;  %v13105_v41 = vadd.f32 %v4964_v63, %v12911_v15  ;;  %v5991_v12 = vmul.f32 0.7978846, %v5863_v61  ;;  %v13108_v8 = vmul.f32 %v5641_v31, %v13018_v39  ;;  %v13112_v2 = vadd.f32 %v13008_v30, %v12913_v47 }
 0xa0a   : > { %15933 = vst [vmem:[#allocation103_spill] sm:$0xff] %v13093_v1  ;;  %15934 = vst [vmem:[#allocation104_spill] sm:$0xff] %v13097_v44  ;;  %v13115_v22 = vadd.f32 %v4966_v7, %v12903_v40  ;;  %v5999_v19 = vmul.f32 0.7978846, %v5871_v26  ;;  %v5648_v28 = vmul.f32 %v5520_v48, %v13041_v33  ;;  %v13119_v5 = vadd.f32 %v5079_v16, %v12905_v13 }
 0xa0b   : > { %v5085_v57 = vpop.f32.mrf.mxu0  ;;  %15935 = vst [vmem:[#allocation105_spill] sm:$0xff] %v13105_v41  ;;  %v4972_v21 = vpop.f32.mrf.mxu1  ;;  %15936 = vst [vmem:[#allocation106_spill] sm:$0xff] %v13108_v8  ;;  %v5865_v63 = vadd.f32 %v12962_v34, %v12921_v25  ;;  %v5873_v61 = vadd.f32 %v5745_v55, %v12937_v38  ;;  %v5521_v31 = vmul.f32 0.044715, %v13089_v14  ;;  %v5526_v8 = vmul.f32 0.044715, %v13093_v1 }
 0xa0c   : > { %15937 = vst [vmem:[#allocation107_spill] sm:$0xff] %v13112_v2  ;;  %15938 = vst [vmem:[#allocation108_spill] sm:$0xff] %v13115_v22  ;;  %v5528_v30 = vmul.f32 0.044715, %v13097_v44  ;;  %9705 = vtanh.f32 %v5991_v12  ;;  %v13128_v7 = vadd.f32 %v5085_v57, %v12905_v13  ;;  %v13131_v25 = vmul.f32 %v5646_v10, %v13031_v36 }
 0xa0d   : > { %15939 = vst [vmem:[#allocation109_spill] sm:$0xff] %v13119_v5  ;;  %v5087_v39 = vpop.f32.mrf.mxu0  ;;  %v4974_v48 = vpop.f32.mrf.mxu1  ;;  %9707 = vtanh.f32 %v5999_v19  ;;  %v5993_v16 = vmul.f32 0.7978846, %v5865_v63  ;;  %v6001_v26 = vmul.f32 0.7978846, %v5873_v61  ;;  %v13138_v12 = vadd.f32 %v4968_v59, %v12911_v15 }
 0xa0e   : > { %15940 = vst [vmem:[#allocation110_spill] sm:$0xff] %v13128_v7  ;;  %v9702_v51 = vpop.eup %9701  ;;  %15941 = vst [vmem:[#allocation111_spill] sm:$0xff] %v13131_v25  ;;  %v5527_v34 = vmul.f32 0.044715, %v13105_v41  ;;  %v5529_v55 = vmul.f32 0.044715, %v13112_v2  ;;  %v13141_v57 = vadd.f32 %v5081_v37, %v12913_v47  ;;  %v13144_v63 = vmul.f32 %v5648_v28, %v13041_v33 }
 0xa0f   : > { %v5534_v6 = vmul.f32 0.044715, %v13115_v22  ;;  %v5536_v45 = vmul.f32 0.044715, %v13119_v5  ;;  %9709 = vtanh.f32 %v5993_v16  ;;  %v9704_v19 = vpop.eup %9703  ;;  %v5647_v10 = vmul.f32 %v5519_v53, %v13066_v35  ;;  %v5089_v36 = vpop.f32.mrf.mxu0 }
 0xa10   : > { %15942 = vst [vmem:[#allocation112_spill] sm:$0xff] %v13144_v63  ;;  %v13148_v61 = vadd.f32 %v4972_v21, %v12903_v40  ;;  %v13151_v25 = vadd.f32 %v4974_v48, %v12911_v15  ;;  %v5649_v59 = vmul.f32 %v5521_v31, %v13089_v14  ;;  %v5654_v49 = vmul.f32 %v5526_v8, %v13093_v1  ;;  %v4976_v63 = vpop.f32.mrf.mxu1 }
 0xa11   : > { %v5544_v37 = vmul.f32 0.044715, %v13128_v7  ;;  %9711 = vtanh.f32 %v6001_v26  ;;  %v5656_v16 = vmul.f32 %v5528_v30, %v13097_v44  ;;  %v5655_v28 = vmul.f32 %v5527_v34, %v13105_v41 }
 0xa12   : > { %v5657_v53 = vmul.f32 %v5529_v55, %v13112_v2  ;;  %v5662_v21 = vmul.f32 %v5534_v6, %v13115_v22  ;;  %v5664_v48 = vmul.f32 %v5536_v45, %v13119_v5  ;;  %v5535_v33 = vmul.f32 0.044715, %v13138_v12 }
 0xa13   : > { %v5537_v31 = vmul.f32 0.044715, %v13141_v57  ;;  %v13164_v8 = vadd.f32 %v5089_v36, %v12905_v13  ;;  %v13167_v26 = vmul.f32 %v5647_v10, %v13066_v35  ;;  %v5542_v30 = vmul.f32 0.044715, %v13148_v61 }
 0xa14   : > { %v5543_v34 = vmul.f32 0.044715, %v13151_v25  ;;  %v13172_v55 = vadd.f32 %v5087_v39, %v12913_v47  ;;  %v13175_v6 = vmul.f32 %v5649_v59, %v13089_v14  ;;  %v13178_v45 = vmul.f32 %v5654_v49, %v13093_v1 }
 0xa15   : > { %15943 = vst [vmem:[#allocation113_spill] sm:$0xff] %v13164_v8  ;;  %15944 = vst [vmem:[#allocation114_spill] sm:$0xff] %v13167_v26  ;;  %v5672_v50 = vmul.f32 %v5544_v37, %v13128_v7  ;;  %v13182_v36 = vadd.f32 %v4976_v63, %v12903_v40  ;;  %v13185_v10 = vmul.f32 %v5656_v16, %v13097_v44  ;;  %v5552_v16 = vmul.f32 0.044715, %v13164_v8 }
 0xa16   : > { %15945 = vst [vmem:[#allocation115_spill] sm:$0xff] %v13175_v6  ;;  %15946 = vst [vmem:[#allocation116_spill] sm:$0xff] %v13178_v45  ;;  %v13188_v26 = vmul.f32 %v5655_v28, %v13105_v41  ;;  %v13191_v39 = vmul.f32 %v5657_v53, %v13112_v2  ;;  %v13194_v59 = vmul.f32 %v5662_v21, %v13115_v22  ;;  %v4978_v6 = vpop.f32.mrf.mxu1  ;;  %v5545_v21 = vmul.f32 0.044715, %v13172_v55 }
 0xa17   : > { %15947 = vst [vmem:[#allocation117_spill] sm:$0xff] %v13182_v36  ;;  %15948 = vst [vmem:[#allocation118_spill] sm:$0xff] %v13185_v10  ;;  %v13197_v49 = vmul.f32 %v5664_v48, %v13119_v5  ;;  %v13200_v37 = vmul.f32 %v5535_v33, %v13138_v12  ;;  %v13203_v63 = vmul.f32 %v5537_v31, %v13141_v57  ;;  %v6254_v10 = vadd.f32 1.0, %v9702_v51  ;;  %v5091_v5 = vpop.f32.mrf.mxu0 }
 0xa18   : > { %15949 = vst [vmem:[#allocation119_spill] sm:$0xff] %v13188_v26  ;;  %15950 = vst [vmem:[#allocation120_spill] sm:$0xff] %v13191_v39  ;;  %v13207_v28 = vmul.f32 %v5542_v30, %v13148_v61  ;;  %v13210_v53 = vmul.f32 %v5543_v34, %v13151_v25  ;;  %v5800_v48 = vmul.f32 %v5672_v50, %v13128_v7  ;;  %v13215_v33 = vmul.f32 0.044715, %v13182_v36 }
 0xa19   : > { %15951 = vst [vmem:[#allocation121_spill] sm:$0xff] %v13194_v59  ;;  %15952 = vst [vmem:[#allocation122_spill] sm:$0xff] %v13197_v49  ;;  %v9706_v44 = vpop.eup %9705  ;;  %v13218_v31 = vadd.f32 %v4978_v6, %v12911_v15  ;;  %v5879_v49 = vadd.f32 %v13050_v27, %v12972_v42  ;;  %v5359_v34 = vmul.f32 0.5, %v12930_v62  ;;  %v6246_v22 = vadd.f32 1.0, %v13055_v11  ;;  %v5095_v14 = vpop.f32.mrf.mxu0 }
 0xa1a   : > { %v9708_v30 = vpop.eup %9707  ;;  %v6247_v59 = vadd.f32 1.0, %v9706_v44  ;;  %v5887_v51 = vadd.f32 %v13069_v60, %v12989_v46  ;;  %v5680_v50 = vmul.f32 %v5552_v16, %v13164_v8  ;;  %v6248_v1 = vadd.f32 1.0, %v13100_v9 }
 0xa1b   : > { %v6255_v45 = vadd.f32 1.0, %v9708_v30  ;;  %v6007_v6 = vmul.f32 0.7978846, %v5879_v49  ;;  %v6382_v2 = vmul.f32 %v6254_v10, %v12957_v23  ;;  %v6256_v27 = vadd.f32 1.0, %v9704_v19  ;;  %v4982_v30 = vpop.f32.mrf.mxu1 }
 0xa1c   : > { %v9710_v39 = vpop.eup %9709  ;;  %v6015_v26 = vmul.f32 0.7978846, %v5887_v51  ;;  %v5881_v62 = vadd.f32 %v13053_v56, %v12975_v29  ;;  %v6375_v44 = vmul.f32 %v6247_v59, %v12949_v17  ;;  %v6374_v16 = vmul.f32 %v6246_v22, %v12939_v20  ;;  %v9505_v17 = vld [vmem:[%s15586_s11 + $0x270] ss:$8 sps:$4 sm:$0xff]   ;;  %v9513_v20 = vld [vmem:[%s15586_s11 + $0x264] ss:$8 sps:$4 sm:$0xff]  }
 0xa1d   : > { %v6383_v11 = vmul.f32 %v6255_v45, %v5359_v34  ;;  %v6249_v41 = vadd.f32 1.0, %v9710_v39  ;;  %9713 = vtanh.f32 %v6007_v6  ;;  %v5889_v9 = vadd.f32 %v13072_v18, %v12992_v43  ;;  %v5097_v34 = vpop.f32.mrf.mxu0  ;;  %v15954_v6 = vld [vmem:[#allocation97_spill] sm:$0xff] }
 0xa1e   : > { %v9712_v60 = vpop.eup %9711  ;;  %9715 = vtanh.f32 %v6015_v26  ;;  %v6009_v49 = vmul.f32 0.7978846, %v5881_v62  ;;  %v5808_v23 = vmul.f32 %v5680_v50, %v13164_v8  ;;  %v5361_v10 = vmul.f32 0.5, %v12937_v38 }
 0xa1f   : > { %v6503_v19 = vpack.c.bf16 %v6383_v11, %v6375_v44  ;;  %v6257_v56 = vadd.f32 1.0, %v9712_v60  ;;  %v6502_v45 = vpack.c.bf16 %v6382_v2, %v6374_v16  ;;  %v6384_v39 = vmul.f32 %v6256_v27, %v12959_v0  ;;  %v9514_v11 = vld [vmem:[%s15586_s11 + $0x360] ss:$8 sps:$4 sm:$0xff]   ;;  %v15956_v60 = vld [vmem:[#allocation90_spill] sm:$0xff] }
 0xa20   : > { %v6017_v22 = vmul.f32 0.7978846, %v5889_v9  ;;  %9717 = vtanh.f32 %v6009_v49  ;;  %v6377_v18 = vmul.f32 %v6249_v41, %v12952_v58  ;;  %v13246_v38 = vadd.f32 %v5095_v14, %v12905_v13  ;;  %v15957_v16 = vld [vmem:[#allocation98_spill] sm:$0xff] }
 0xa21   : > { %7378 = vmatprep.mubr.bf16.mxu1 %v6503_v19  ;;  %v6385_v26 = vmul.f32 %v6257_v56, %v5361_v10  ;;  %v5878_v59 = vadd.f32 %v13044_v32, %v12966_v4  ;;  %v5673_v2 = vmul.f32 %v5545_v21, %v13172_v55  ;;  %v6376_v0 = vmul.f32 %v6248_v1, %v12941_v52  ;;  %v9508_v32 = vld [vmem:[%s15586_s11 + $0x370] ss:$8 sps:$4 sm:$0xff]   ;;  %v9511_v52 = vld [vmem:[%s15586_s11 + $0x260] ss:$8 sps:$4 sm:$0xff]   ;;  %v4984_v19 = vpop.f32.mrf.mxu1  ;;  %v5099_v10 = vpop.f32.mrf.mxu0 }
 0xa22   : > { %15953 = vst [vmem:[#allocation123_spill] sm:$0xff] %v13246_v38  ;;  %7379 = vmatmul.mubr.bf16.vlgmr.msra.gmra.mxu1 %v6502_v45  ;;  %9719 = vtanh.f32 %v6017_v22  ;;  %v5886_v51 = vadd.f32 %v13058_v3, %v12981_v54  ;;  %v5928_v58 = vadd.f32 %v5800_v48, %v13128_v7  ;;  %v13256_v41 = vadd.f32 %v5091_v5, %v12913_v47  ;;  %v9516_v5 = vld [vmem:[%s15586_s11 + $0x364] ss:$8 sps:$4 sm:$0xff]   ;;  %v9519_v3 = vld [vmem:[%s15586_s11 + $0x254] ss:$8 sps:$4 sm:$0xff]  }
 0xa23   : > { %v6505_v14 = vpack.c.bf16 %v6385_v26, %v6377_v18  ;;  %7573 = vmatpush1.bf16.msra.mxu1 %v9505_v17  ;;  %v6006_v1 = vmul.f32 0.7978846, %v5878_v59  ;;  %v5936_v21 = vadd.f32 %v5808_v23, %v13164_v8  ;;  %v6504_v50 = vpack.c.bf16 %v6384_v39, %v6376_v0  ;;  %v9517_v56 = vld [vmem:[%s15586_s11 + $0x250] ss:$8 sps:$4 sm:$0xff]   ;;  %v9522_v22 = vld [vmem:[%s15586_s11 + $0x354] ss:$8 sps:$4 sm:$0xff]  }
 0xa24   : > { %7574 = vmatprep.subr.bf16.mxu1 %v9513_v20  ;;  %v6014_v48 = vmul.f32 0.7978846, %v5886_v51  ;;  %v5880_v27 = vadd.f32 %v15954_v6, %v12969_v24  ;;  %v13274_v62 = vadd.f32 %v4982_v30, %v12903_v40  ;;  %v5560_v44 = vmul.f32 0.044715, %v13246_v38  ;;  %v9532_v8 = vld [vmem:[%s15586_s11 + $0x330] ss:$8 sps:$4 sm:$0xff]  }
 0xa25   : > { %7491 = vmatprep.mubr.bf16.mxu0 %v6505_v14  ;;  %9721 = vtanh.f32 %v6006_v1  ;;  %v5888_v9 = vadd.f32 %v15957_v16, %v15956_v60  ;;  %v5678_v49 = vmul.f32 %v13215_v33, %v13182_v36  ;;  %v5551_v23 = vmul.f32 0.044715, %v13218_v31  ;;  %v9520_v1 = vld [vmem:[%s15586_s11 + $0x350] ss:$8 sps:$4 sm:$0xff]  }
 0xa26   : > { %15955 = vst [vmem:[#allocation97_spill] sm:$0xff] %v13274_v62  ;;  %7492 = vmatmul.mubr.bf16.vlgmr.msra.gmra.mxu0 %v6504_v50  ;;  %9723 = vtanh.f32 %v6014_v48  ;;  %v6008_v17 = vmul.f32 0.7978846, %v5880_v27  ;;  %v13290_v45 = vmul.f32 %v13200_v37, %v13138_v12  ;;  %v13294_v39 = vmul.f32 %v13203_v63, %v13141_v57  ;;  %v9525_v63 = vld [vmem:[%s15586_s11 + $0x244] ss:$8 sps:$4 sm:$0xff]  }
 0xa27   : > { %v5553_v33 = vmul.f32 0.044715, %v13256_v41  ;;  %7686 = vmatpush1.bf16.msra.mxu0 %v9508_v32  ;;  %7575 = vmatpush1.bf16.msra.mxu1 %v9511_v52  ;;  %v6016_v20 = vmul.f32 0.7978846, %v5888_v9  ;;  %v13302_v18 = vmul.f32 %v13207_v28, %v13148_v61  ;;  %v6056_v26 = vmul.f32 0.7978846, %v5928_v58  ;;  %v4986_v52 = vpop.f32.mrf.mxu1 }
 0xa28   : > { %v6064_v37 = vmul.f32 0.7978846, %v5936_v21  ;;  %7687 = vmatprep.subr.bf16.mxu0 %v9516_v5  ;;  %7576 = vmatprep.subr.bf16.mxu1 %v9519_v3  ;;  %9725 = vtanh.f32 %v6008_v17  ;;  %v5558_v59 = vmul.f32 0.044715, %v13274_v62  ;;  %v5688_v30 = vmul.f32 %v5560_v44, %v13246_v38  ;;  %v9523_v3 = vld [vmem:[%s15586_s11 + $0x240] ss:$8 sps:$4 sm:$0xff]  }
 0xa29   : > { %15958 = vst [vmem:[#allocation90_spill] sm:$0xff] %v13302_v18  ;;  %v13310_v0 = vadd.f32 %v5099_v10, %v12905_v13  ;;  %9727 = vtanh.f32 %v6016_v20  ;;  %v13314_v28 = vmul.f32 %v13210_v53, %v13151_v25  ;;  %v13317_v58 = vmul.f32 %v5673_v2, %v13172_v55  ;;  %v9528_v48 = vld [vmem:[%s15586_s11 + $0x344] ss:$8 sps:$4 sm:$0xff]   ;;  %v9529_v17 = vld [vmem:[%s15586_s11 + $0x230] ss:$8 sps:$4 sm:$0xff]  }
 0xa2a   : > { %v9714_v51 = vpop.eup %9713  ;;  %v13320_v14 = vmul.f32 %v5678_v49, %v13182_v36  ;;  %v13323_v32 = vmul.f32 %v5551_v23, %v13218_v31  ;;  %v13329_v50 = vmul.f32 %v5553_v33, %v13256_v41  ;;  %v13332_v53 = vadd.f32 %v4984_v19, %v12911_v15 }
 0xa2b   : > { %15959 = vst [vmem:[#allocation98_spill] sm:$0xff] %v13310_v0  ;;  %v9716_v21 = vpop.eup %9715  ;;  %v13335_v2 = vadd.f32 %v5097_v34, %v12913_v47  ;;  %7688 = vmatpush1.bf16.msra.mxu0 %v9514_v11  ;;  %v6263_v5 = vadd.f32 1.0, %v9714_v51  ;;  %7577 = vmatpush1.bf16.msra.mxu1 %v9517_v56  ;;  %9729 = vtanh.f32 %v6056_v26  ;;  %v5367_v6 = vmul.f32 0.5, %v12972_v42  ;;  %v9531_v34 = vld [vmem:[%s15586_s11 + $0x234] ss:$8 sps:$4 sm:$0xff]  }
 0xa2c   : > { %15960 = vst [vmem:[#allocation124_spill] sm:$0xff] %v13320_v14  ;;  %v5375_v27 = vmul.f32 0.5, %v12989_v46  ;;  %v6271_v44 = vadd.f32 1.0, %v9716_v21  ;;  %7689 = vmatprep.subr.bf16.mxu0 %v9522_v22  ;;  %7578 = vmatprep.subr.bf16.mxu1 %v9525_v63  ;;  %9731 = vtanh.f32 %v6064_v37  ;;  %v13349_v16 = vmul.f32 %v5558_v59, %v13274_v62  ;;  %v4988_v46 = vpop.f32.mrf.mxu1  ;;  %v9526_v56 = vld [vmem:[%s15586_s11 + $0x340] ss:$8 sps:$4 sm:$0xff]  }
 0xa2d   : > { %15961 = vst [vmem:[#allocation125_spill] sm:$0xff] %v13335_v2  ;;  %v9718_v11 = vpop.eup %9717  ;;  %v5816_v9 = vmul.f32 %v5688_v30, %v13246_v38  ;;  %v5568_v49 = vmul.f32 0.044715, %v13310_v0  ;;  %v13354_v42 = vadd.f32 %v4986_v52, %v12903_v40  ;;  %v6391_v23 = vmul.f32 %v6263_v5, %v5367_v6  ;;  %v15963_v37 = vld [vmem:[#allocation93_spill] sm:$0xff]  ;;  %v5101_v30 = vpop.f32.mrf.mxu0  ;;  %v15965_v5 = vld [vmem:[#allocation114_spill] sm:$0xff] }
 0xa2e   : > { %v6399_v19 = vmul.f32 %v6271_v44, %v5375_v27  ;;  %v6265_v10 = vadd.f32 1.0, %v9718_v11  ;;  %v13363_v20 = vmul.f32 0.044715, %v13332_v53  ;;  %v13366_v22 = vmul.f32 0.044715, %v13335_v2  ;;  %v15964_v63 = vld [vmem:[#allocation101_spill] sm:$0xff] }
 0xa2f   : > { %15962 = vst [vmem:[#allocation126_spill] sm:$0xff] %v13354_v42  ;;  %v9720_v33 = vpop.eup %9719  ;;  %v5369_v26 = vmul.f32 0.5, %v12975_v29  ;;  %7690 = vmatpush1.bf16.msra.mxu0 %v9520_v1  ;;  %7579 = vmatpush1.bf16.msra.mxu1 %v9523_v3  ;;  %v5895_v59 = vadd.f32 %v15964_v63, %v15963_v37  ;;  %v5377_v52 = vmul.f32 0.5, %v12992_v43  ;;  %v5903_v6 = vadd.f32 %v15965_v5, %v13066_v35  ;;  %v9534_v27 = vld [vmem:[%s15586_s11 + $0x334] ss:$8 sps:$4 sm:$0xff]  }
 0xa30   : > { %v6511_v51 = vpack.c.bf16 %v6399_v19, %v6391_v23  ;;  %v6273_v21 = vadd.f32 1.0, %v9720_v33  ;;  %7691 = vmatprep.subr.bf16.mxu0 %v9528_v48  ;;  %7580 = vmatprep.subr.bf16.mxu1 %v9531_v34  ;;  %v9537_v29 = vld [vmem:[%s15586_s11 + $0x224] ss:$8 sps:$4 sm:$0xff]   ;;  %v5696_v1 = vmul.f32 %v5568_v49, %v13310_v0  ;;  %v13382_v3 = vadd.f32 %v4988_v46, %v12911_v15  ;;  %v15966_v34 = vld [vmem:[#allocation94_spill] sm:$0xff]  ;;  %v15969_v5 = vld [vmem:[#allocation115_spill] sm:$0xff] }
 0xa31   : > { %v6393_v43 = vmul.f32 %v6265_v10, %v5369_v26  ;;  %v6023_v44 = vmul.f32 0.7978846, %v5895_v59  ;;  %v6031_v23 = vmul.f32 0.7978846, %v5903_v6  ;;  %v15967_v19 = vld [vmem:[#allocation106_spill] sm:$0xff]  ;;  %v13395_v10 = vadd.f32 %v5101_v30, %v12913_v47 }
 0xa32   : > { %v9722_v48 = vpop.eup %9721  ;;  %7388 = vmatprep.mubr.bf16.mxu1 %v6511_v51  ;;  %v6401_v11 = vmul.f32 %v6273_v21, %v5377_v52  ;;  %v5897_v33 = vadd.f32 %v15967_v19, %v15966_v34  ;;  %v15968_v63 = vld [vmem:[#allocation102_spill] sm:$0xff]  ;;  %v9535_v49 = vld [vmem:[%s15586_s11 + $0x220] ss:$8 sps:$4 sm:$0xff]   ;;  %v5366_v26 = vmul.f32 0.5, %v12966_v4  ;;  %v5374_v59 = vmul.f32 0.5, %v12981_v54 }
 0xa33   : > { %v5905_v7 = vadd.f32 %v15969_v5, %v15968_v63  ;;  %v9724_v46 = vpop.eup %9723  ;;  %v6262_v51 = vadd.f32 1.0, %v9722_v48  ;;  %7692 = vmatpush1.bf16.msra.mxu0 %v9526_v56  ;;  %7581 = vmatpush1.bf16.msra.mxu1 %v9529_v17  ;;  %v9540_v52 = vld [vmem:[%s15586_s11 + $0x324] ss:$8 sps:$4 sm:$0xff]   ;;  %9733 = vtanh.f32 %v6023_v44  ;;  %v9543_v30 = vld [vmem:[%s15586_s11 + $0x214] ss:$8 sps:$4 sm:$0xff]   ;;  %v5944_v54 = vadd.f32 %v5816_v9, %v13246_v38  ;;  %v5105_v17 = vpop.f32.mrf.mxu0 }
 0xa34   : > { %v6513_v21 = vpack.c.bf16 %v6401_v11, %v6393_v43  ;;  %v6270_v6 = vadd.f32 1.0, %v9724_v46  ;;  %v6025_v19 = vmul.f32 0.7978846, %v5897_v33  ;;  %7693 = vmatprep.subr.bf16.mxu0 %v9534_v27  ;;  %7582 = vmatprep.subr.bf16.mxu1 %v9537_v29  ;;  %v5824_v56 = vmul.f32 %v5696_v1, %v13310_v0  ;;  %v9538_v27 = vld [vmem:[%s15586_s11 + $0x320] ss:$8 sps:$4 sm:$0xff]  }
 0xa35   : > { %v9726_v4 = vpop.eup %9725  ;;  %9735 = vtanh.f32 %v6031_v23  ;;  %v6033_v48 = vmul.f32 0.7978846, %v5905_v7  ;;  %v6390_v43 = vmul.f32 %v6262_v51, %v5366_v26  ;;  %v9541_v29 = vld [vmem:[%s15586_s11 + $0x210] ss:$8 sps:$4 sm:$0xff]   ;;  %v5368_v9 = vmul.f32 0.5, %v12969_v24  ;;  %v13428_v51 = vpop.f32.mrf.mxu0 }
 0xa36   : > { %v9728_v5 = vpop.eup %9727  ;;  %7501 = vmatprep.mubr.bf16.mxu0 %v6513_v21  ;;  %v6398_v11 = vmul.f32 %v6270_v6, %v5374_v59  ;;  %v6264_v44 = vadd.f32 1.0, %v9726_v4  ;;  %9737 = vtanh.f32 %v6025_v19  ;;  %v5376_v1 = vmul.f32 0.5, %v15956_v60  ;;  %v9546_v7 = vld [vmem:[%s15586_s11 + $0x314] ss:$8 sps:$4 sm:$0xff]   ;;  %v9549_v24 = vld [vmem:[%s15586_s11 + $0x204] ss:$8 sps:$4 sm:$0xff]  }
 0xa37   : > { %v6272_v23 = vadd.f32 1.0, %v9728_v5  ;;  %9739 = vtanh.f32 %v6033_v48  ;;  %7694 = vmatpush1.bf16.msra.mxu0 %v9532_v8  ;;  %7583 = vmatpush1.bf16.msra.mxu1 %v9535_v49  ;;  %v5566_v33 = vmul.f32 0.044715, %v13354_v42  ;;  %v5567_v46 = vmul.f32 0.044715, %v13382_v3  ;;  %v15972_v21 = vld [vmem:[#allocation91_spill] sm:$0xff] }
 0xa38   : > { %v13421_v26 = vadd.f32 %v5105_v17, %v12905_v13  ;;  %v6510_v59 = vpack.c.bf16 %v6398_v11, %v6390_v43  ;;  %7695 = vmatprep.subr.bf16.mxu0 %v9540_v52  ;;  %7584 = vmatprep.subr.bf16.mxu1 %v9543_v30  ;;  %v13426_v8 = vpop.eup %9729  ;;  %v6392_v60 = vmul.f32 %v6264_v44, %v5368_v9  ;;  %v15973_v6 = vld [vmem:[#allocation99_spill] sm:$0xff]  ;;  %v5569_v11 = vmul.f32 0.044715, %v13395_v10  ;;  %v15977_v44 = vld [vmem:[#allocation92_spill] sm:$0xff] }
 0xa39   : > { %15971 = vst [vmem:[#allocation101_spill] sm:$0xff] %v13426_v8  ;;  %v6400_v49 = vmul.f32 %v6272_v23, %v5376_v1  ;;  %v5894_v19 = vadd.f32 %v15973_v6, %v15972_v21  ;;  %v15974_v4 = vld [vmem:[#allocation95_spill] sm:$0xff]  ;;  %v13437_v30 = vpop.eup %9731  ;;  %v5687_v5 = vmul.f32 %v13363_v20, %v13332_v53  ;;  %v5952_v43 = vadd.f32 %v5824_v56, %v13310_v0  ;;  %v15978_v9 = vld [vmem:[#allocation100_spill] sm:$0xff] }
 0xa3a   : > { %15970 = vst [vmem:[#allocation93_spill] sm:$0xff] %v13421_v26  ;;  %v15975_v48 = vld [vmem:[#allocation111_spill] sm:$0xff]  ;;  %15976 = vst [vmem:[#allocation114_spill] sm:$0xff] %v13437_v30  ;;  %7389 = vmatmul.mubr.bf16.gmra.mxu1 %v6510_v59  ;;  %v5896_v1 = vadd.f32 %v15978_v9, %v15977_v44  ;;  %v9547_v23 = vld [vmem:[%s15586_s11 + $0x200] ss:$8 sps:$4 sm:$0xff]   ;;  %v5689_v14 = vmul.f32 %v13366_v22, %v13335_v2 }
 0xa3b   : > { %v5902_v17 = vadd.f32 %v15975_v48, %v15974_v4  ;;  %v9544_v52 = vld [vmem:[%s15586_s11 + $0x310] ss:$8 sps:$4 sm:$0xff]   ;;  %v9552_v6 = vld [vmem:[%s15586_s11 + $0x304] ss:$8 sps:$4 sm:$0xff]   ;;  %v4992_v48 = vpop.f32.mrf.mxu1  ;;  %v6512_v38 = vpack.c.bf16 %v6400_v49, %v6392_v60  ;;  %v6022_v8 = vmul.f32 0.7978846, %v5894_v19  ;;  %7696 = vmatpush1.bf16.msra.mxu0 %v9538_v27  ;;  %7585 = vmatpush1.bf16.msra.mxu1 %v9541_v29  ;;  %v5694_v60 = vmul.f32 %v5566_v33, %v13354_v42  ;;  %v5109_v27 = vpop.f32.mrf.mxu0 }
 0xa3c   : > { %v15979_v30 = vld [vmem:[#allocation96_spill] sm:$0xff]  ;;  %v9555_v59 = vld [vmem:[%s15586_s11 + $0x2f4] ss:$8 sps:$4 sm:$0xff]   ;;  %v6072_v9 = vmul.f32 0.7978846, %v5944_v54  ;;  %7697 = vmatprep.subr.bf16.mxu0 %v9546_v7  ;;  %7586 = vmatprep.subr.bf16.mxu1 %v9549_v24  ;;  %v5695_v49 = vmul.f32 %v5567_v46, %v13382_v3  ;;  %v13463_v19 = vmul.f32 %v13323_v32, %v13218_v31  ;;  %v13466_v22 = vadd.f32 %v4992_v48, %v12903_v40 }
 0xa3d   : > { %v6030_v20 = vmul.f32 0.7978846, %v5902_v17  ;;  %v15980_v56 = vld [vmem:[#allocation112_spill] sm:$0xff]  ;;  %v5576_v36 = vmul.f32 0.044715, %v13421_v26  ;;  %7502 = vmatmul.mubr.bf16.gmra.mxu0 %v6512_v38  ;;  %9741 = vtanh.f32 %v6022_v8  ;;  %v13470_v7 = vmul.f32 %v13329_v50, %v13256_v41 }
 0xa3e   : > { %v5904_v0 = vadd.f32 %v15980_v56, %v15979_v30  ;;  %v6024_v18 = vmul.f32 0.7978846, %v5896_v1  ;;  %v6080_v54 = vmul.f32 0.7978846, %v5952_v43  ;;  %15981 = vst [vmem:[#allocation94_spill] sm:$0xff] %v13466_v22  ;;  %v13474_v33 = vmul.f32 %v13349_v16, %v13274_v62 }
 0xa3f   : > { %9743 = vtanh.f32 %v6030_v20  ;;  %v13477_v38 = vmul.f32 %v5687_v5, %v13332_v53  ;;  %7698 = vmatpush1.bf16.msra.mxu0 %v9544_v52  ;;  %7587 = vmatpush1.bf16.msra.mxu1 %v9547_v23  ;;  %v9550_v32 = vld [vmem:[%s15586_s11 + $0x300] ss:$8 sps:$4 sm:$0xff]   ;;  %v9553_v50 = vld [vmem:[%s15586_s11 + $0x2f0] ss:$8 sps:$4 sm:$0xff]   ;;  %v13486_v46 = vmul.f32 %v5689_v14, %v13335_v2  ;;  %v5704_v16 = vmul.f32 %v5576_v36, %v13421_v26  ;;  %v9561_v8 = vld [vmem:[%s15586_s11 + $0x2e4] ss:$8 sps:$4 sm:$0xff]  }
 0xa40   : > { %v6032_v29 = vmul.f32 0.7978846, %v5904_v0  ;;  %15982 = vst [vmem:[#allocation106_spill] sm:$0xff] %v13474_v33  ;;  %v4994_v0 = vpop.f32.mrf.mxu1  ;;  %9745 = vtanh.f32 %v6024_v18  ;;  %v13490_v24 = vadd.f32 %v5109_v27, %v12905_v13  ;;  %7699 = vmatprep.subr.bf16.mxu0 %v9552_v6  ;;  %7588 = vmatprep.subr.bf16.mxu1 %v9555_v59  ;;  %v9558_v18 = vld [vmem:[%s15586_s11 + $0x3f4] ss:$8 sps:$4 sm:$0xff]   ;;  %v9734_v17 = vpop.eup %9733  ;;  %v13499_v52 = vmul.f32 %v5694_v60, %v13354_v42  ;;  %v15998_v2 = vld [vmem:[#allocation121_spill] sm:$0xff] }
 0xa41   : > { %9747 = vtanh.f32 %v6072_v9  ;;  %15983 = vst [vmem:[#allocation102_spill] sm:$0xff] %v13486_v46  ;;  %v13502_v14 = vmul.f32 %v5695_v49, %v13382_v3  ;;  %v13505_v36 = vmul.f32 %v5569_v11, %v13395_v10  ;;  %v9556_v5 = vld [vmem:[%s15586_s11 + $0x3f0] ss:$8 sps:$4 sm:$0xff]   ;;  %v5574_v1 = vmul.f32 0.044715, %v13466_v22  ;;  %v13521_v59 = vpop.f32.mrf.mxu0 }
 0xa42   : > { %15984 = vst [vmem:[#allocation115_spill] sm:$0xff] %v13490_v24  ;;  %15985 = vst [vmem:[#allocation91_spill] sm:$0xff] %v13499_v52  ;;  %9749 = vtanh.f32 %v6032_v29  ;;  %v9736_v43 = vpop.eup %9735  ;;  %v13512_v23 = vadd.f32 %v4994_v0, %v12911_v15  ;;  %v6279_v6 = vadd.f32 1.0, %v9734_v17  ;;  %v9559_v48 = vld [vmem:[%s15586_s11 + $0x2e0] ss:$8 sps:$4 sm:$0xff]   ;;  %v13519_v11 = vadd.f32 %v13428_v51, %v12913_v47  ;;  %v4996_v56 = vpop.f32.mrf.mxu1 }
 0xa43   : > { %15986 = vst [vmem:[#allocation99_spill] sm:$0xff] %v13502_v14  ;;  %9751 = vtanh.f32 %v6080_v54  ;;  %v9738_v20 = vpop.eup %9737  ;;  %v5383_v9 = vmul.f32 0.5, %v15963_v37  ;;  %v5391_v60 = vmul.f32 0.5, %v13066_v35  ;;  %v6287_v49 = vadd.f32 1.0, %v9736_v43  ;;  %7700 = vmatpush1.bf16.msra.mxu0 %v9550_v32  ;;  %7589 = vmatpush2.bf16.msra.mxu1 %v9553_v50  ;;  %v9564_v27 = vld [vmem:[%s15586_s11 + $0x3e4] ss:$8 sps:$4 sm:$0xff]   ;;  %v5115_v46 = vpop.f32.mrf.mxu0 }
 0xa44   : > { %v9740_v29 = vpop.eup %9739  ;;  %v5832_v54 = vmul.f32 %v5704_v16, %v13421_v26  ;;  %v5584_v51 = vmul.f32 0.044715, %v13490_v24  ;;  %v5385_v0 = vmul.f32 0.5, %v15966_v34  ;;  %v6281_v17 = vadd.f32 1.0, %v9738_v20  ;;  %7701 = vmatprep.subr.bf16.mxu0 %v9558_v18  ;;  %7590 = vmatprep.subr.bf16.mxu1 %v9561_v8  ;;  %v9567_v35 = vld [vmem:[%s15586_s11 + $0x2d4] ss:$8 sps:$4 sm:$0xff]  }
 0xa45   : > { %v6407_v37 = vmul.f32 %v6279_v6, %v5383_v9  ;;  %v6415_v32 = vmul.f32 %v6287_v49, %v5391_v60  ;;  %v5393_v50 = vmul.f32 0.5, %v15968_v63  ;;  %v6289_v43 = vadd.f32 1.0, %v9740_v29  ;;  %v15988_v34 = vld [vmem:[#allocation105_spill] sm:$0xff]  ;;  %v15989_v20 = vld [vmem:[#allocation119_spill] sm:$0xff]  ;;  %v4998_v60 = vpop.f32.mrf.mxu1 }
 0xa46   : > { %v13536_v52 = vmul.f32 %v5574_v1, %v13466_v22  ;;  %v13539_v16 = vadd.f32 %v4996_v56, %v12903_v40  ;;  %v6409_v42 = vmul.f32 %v6281_v17, %v5385_v0  ;;  %v5911_v18 = vadd.f32 %v15989_v20, %v15988_v34  ;;  %v9562_v63 = vld [vmem:[%s15586_s11 + $0x3e0] ss:$8 sps:$4 sm:$0xff]   ;;  %v9565_v1 = vld [vmem:[%s15586_s11 + $0x2d0] ss:$8 sps:$4 sm:$0xff]  }
 0xa47   : > { %v5575_v8 = vmul.f32 0.044715, %v13512_v23  ;;  %v6519_v33 = vpack.c.bf16 %v6415_v32, %v6407_v37  ;;  %v6417_v62 = vmul.f32 %v6289_v43, %v5393_v50  ;;  %v5919_v6 = vadd.f32 %v13290_v45, %v13138_v12  ;;  %7702 = vmatpush2.bf16.msra.mxu0 %v9556_v5  ;;  %7591 = vmatpush2.bf16.msra.mxu1 %v9559_v48  ;;  %v15990_v29 = vld [vmem:[#allocation107_spill] sm:$0xff]  ;;  %v15991_v0 = vld [vmem:[#allocation120_spill] sm:$0xff] }
 0xa48   : > { %15987 = vst [vmem:[#allocation95_spill] sm:$0xff] %v13539_v16  ;;  %v5960_v56 = vadd.f32 %v5832_v54, %v13421_v26  ;;  %v5577_v9 = vmul.f32 0.044715, %v13519_v11  ;;  %v6039_v49 = vmul.f32 0.7978846, %v5911_v18  ;;  %v5913_v17 = vadd.f32 %v15991_v0, %v15990_v29  ;;  %7703 = vmatprep.subr.bf16.mxu0 %v9564_v27  ;;  %7592 = vmatprep.subr.bf16.mxu1 %v9567_v35 }
 0xa49   : > { %v9570_v45 = vld [vmem:[%s15586_s11 + $0x3d4] ss:$8 sps:$4 sm:$0xff]   ;;  %v5712_v5 = vmul.f32 %v5584_v51, %v13490_v24  ;;  %7398 = vmatprep.mubr.bf16.mxu1 %v6519_v33  ;;  %v6521_v48 = vpack.c.bf16 %v6417_v62, %v6409_v42  ;;  %v6047_v37 = vmul.f32 0.7978846, %v5919_v6  ;;  %v5921_v54 = vadd.f32 %v13294_v39, %v13141_v57  ;;  %v9573_v32 = vld [vmem:[%s15586_s11 + $0x2c4] ss:$8 sps:$4 sm:$0xff]  }
 0xa4a   : > { %v9742_v50 = vpop.eup %9741  ;;  %v13566_v27 = vmul.f32 0.044715, %v13539_v16  ;;  %v13569_v35 = vadd.f32 %v5115_v46, %v12905_v13  ;;  %9753 = vtanh.f32 %v6039_v49  ;;  %v6041_v43 = vmul.f32 0.7978846, %v5913_v17  ;;  %v9568_v62 = vld [vmem:[%s15586_s11 + $0x3d0] ss:$8 sps:$4 sm:$0xff]  }
 0xa4b   : > { %v13575_v39 = vadd.f32 %v4998_v60, %v12911_v15  ;;  %7511 = vmatprep.mubr.bf16.mxu0 %v6521_v48  ;;  %v6278_v33 = vadd.f32 1.0, %v9742_v50  ;;  %9755 = vtanh.f32 %v6047_v37  ;;  %v6049_v51 = vmul.f32 0.7978846, %v5921_v54  ;;  %7704 = vmatpush2.bf16.msra.mxu0 %v9562_v63  ;;  %v9571_v46 = vld [vmem:[%s15586_s11 + $0x2c0] ss:$8 sps:$4 sm:$0xff]   ;;  %v13593_v50 = vpop.f32.mrf.mxu0 }
 0xa4c   : > { %15992 = vst [vmem:[#allocation111_spill] sm:$0xff] %v13569_v35  ;;  %v9744_v42 = vpop.eup %9743  ;;  %v5382_v18 = vmul.f32 0.5, %v15972_v21  ;;  %v5390_v6 = vmul.f32 0.5, %v15974_v4  ;;  %9757 = vtanh.f32 %v6041_v43  ;;  %7593 = vmatpush2.bf16.msra.mxu1 %v9565_v1  ;;  %7705 = vmatprep.subr.bf16.mxu0 %v9570_v45  ;;  %v9576_v60 = vld [vmem:[%s15586_s11 + $0x3c4] ss:$8 sps:$4 sm:$0xff]   ;;  %v5703_v63 = vmul.f32 %v5575_v8, %v13512_v23  ;;  %v5002_v1 = vpop.f32.mrf.mxu1  ;;  %v15994_v43 = vld [vmem:[#allocation103_spill] sm:$0xff] }
 0xa4d   : > { %v9746_v20 = vpop.eup %9745  ;;  %v6286_v49 = vadd.f32 1.0, %v9744_v42  ;;  %v5840_v17 = vmul.f32 %v5712_v5, %v13490_v24  ;;  %9759 = vtanh.f32 %v6049_v51  ;;  %7594 = vmatprep.subr.bf16.mxu1 %v9573_v32  ;;  %v9579_v21 = vld [vmem:[%s15586_s11 + $0x2b4] ss:$8 sps:$4 sm:$0xff]   ;;  %v5592_v45 = vmul.f32 0.044715, %v13569_v35  ;;  %v15995_v42 = vld [vmem:[#allocation116_spill] sm:$0xff] }
 0xa4e   : > { %v13585_v0 = vpop.eup %9747  ;;  %v6280_v48 = vadd.f32 1.0, %v9746_v20  ;;  %v6406_v37 = vmul.f32 %v6278_v33, %v5382_v18  ;;  %v5910_v8 = vadd.f32 %v15995_v42, %v15994_v43  ;;  %v9574_v5 = vld [vmem:[%s15586_s11 + $0x3c0] ss:$8 sps:$4 sm:$0xff]   ;;  %v5384_v51 = vmul.f32 0.5, %v15977_v44  ;;  %v9577_v18 = vld [vmem:[%s15586_s11 + $0x2b0] ss:$8 sps:$4 sm:$0xff]  }
 0xa4f   : > { %15993 = vst [vmem:[#allocation92_spill] sm:$0xff] %v13585_v0  ;;  %v9750_v4 = vpop.eup %9749  ;;  %v6414_v54 = vmul.f32 %v6286_v49, %v5390_v6  ;;  %v5392_v20 = vmul.f32 0.5, %v15979_v30  ;;  %v15997_v0 = vld [vmem:[#allocation108_spill] sm:$0xff]  ;;  %7706 = vmatpush2.bf16.msra.mxu0 %v9568_v62  ;;  %v6088_v6 = vmul.f32 0.7978846, %v5960_v56  ;;  %v5705_v49 = vmul.f32 %v5577_v9, %v13519_v11 }
 0xa50   : > { %v13600_v32 = vpop.eup %9751  ;;  %v6288_v26 = vadd.f32 1.0, %v9750_v4  ;;  %v5918_v33 = vadd.f32 %v15998_v2, %v15997_v0  ;;  %v5583_v42 = vmul.f32 0.044715, %v13575_v39  ;;  %7595 = vmatpush2.bf16.msra.mxu1 %v9571_v46  ;;  %7707 = vmatprep.subr.bf16.mxu0 %v9576_v60  ;;  %v9582_v30 = vld [vmem:[%s15586_s11 + $0x3b4] ss:$8 sps:$4 sm:$0xff]   ;;  %v6408_v44 = vmul.f32 %v6280_v48, %v5384_v51  ;;  %v13622_v60 = vpop.f32.mrf.mxu1 }
 0xa51   : > { %15996 = vst [vmem:[#allocation100_spill] sm:$0xff] %v13600_v32  ;;  %v6518_v14 = vpack.c.bf16 %v6414_v54, %v6406_v37  ;;  %v6038_v2 = vmul.f32 0.7978846, %v5910_v8  ;;  %7596 = vmatprep.subr.bf16.mxu1 %v9579_v21  ;;  %v9585_v56 = vld [vmem:[%s15586_s11 + $0x2a4] ss:$8 sps:$4 sm:$0xff]   ;;  %v13619_v9 = vadd.f32 %v13521_v59, %v12913_v47  ;;  %v5720_v46 = vmul.f32 %v5592_v45, %v13569_v35  ;;  %v5119_v37 = vpop.f32.mrf.mxu0  ;;  %v16000_v48 = vld [vmem:[#allocation118_spill] sm:$0xff] }
 0xa52   : > { %v6416_v4 = vmul.f32 %v6288_v26, %v5392_v20  ;;  %v6046_v62 = vmul.f32 0.7978846, %v5918_v33  ;;  %v15999_v54 = vld [vmem:[#allocation104_spill] sm:$0xff]  ;;  %v16001_v8 = vld [vmem:[#allocation109_spill] sm:$0xff]  ;;  %v16002_v51 = vld [vmem:[#allocation122_spill] sm:$0xff]  ;;  %v5968_v20 = vadd.f32 %v5840_v17, %v13490_v24  ;;  %v13630_v33 = vadd.f32 %v5002_v1, %v12903_v40 }
 0xa53   : > { %7399 = vmatmul.mubr.bf16.gmra.mxu1 %v6518_v14  ;;  %v5912_v26 = vadd.f32 %v16000_v48, %v15999_v54  ;;  %v5920_v21 = vadd.f32 %v16002_v51, %v16001_v8  ;;  %9761 = vtanh.f32 %v6038_v2  ;;  %7708 = vmatpush2.bf16.msra.mxu0 %v9574_v5  ;;  %v9580_v14 = vld [vmem:[%s15586_s11 + $0x3b0] ss:$8 sps:$4 sm:$0xff]   ;;  %v9583_v59 = vld [vmem:[%s15586_s11 + $0x2a0] ss:$8 sps:$4 sm:$0xff]   ;;  %v5710_v45 = vmul.f32 %v13566_v27, %v13539_v16  ;;  %v9588_v1 = vld [vmem:[%s15586_s11 + $0x3a4] ss:$8 sps:$4 sm:$0xff]  }
 0xa54   : > { %16003 = vst [vmem:[#allocation96_spill] sm:$0xff] %v13630_v33  ;;  %v6520_v32 = vpack.c.bf16 %v6416_v4, %v6408_v44  ;;  %9763 = vtanh.f32 %v6046_v62  ;;  %7597 = vmatpush2.bf16.msra.mxu1 %v9577_v18  ;;  %7709 = vmatprep.subr.bf16.mxu0 %v9582_v30  ;;  %v13645_v5 = vmul.f32 %v13505_v36, %v13395_v10  ;;  %v16005_v27 = vld [vmem:[#allocation55_spill] sm:$0xff]  ;;  %v5585_v2 = vmul.f32 0.044715, %v13619_v9  ;;  %v5006_v62 = vpop.f32.mrf.mxu1 }
 0xa55   : > { %v6040_v48 = vmul.f32 0.7978846, %v5912_v26  ;;  %v6048_v17 = vmul.f32 0.7978846, %v5920_v21  ;;  %v13649_v44 = vmul.f32 %v13536_v52, %v13466_v22  ;;  %9765 = vtanh.f32 %v6088_v6  ;;  %7598 = vmatprep.subr.bf16.mxu1 %v9585_v56  ;;  %v9591_v18 = vld [vmem:[%s15586_s11 + $0x294] ss:$8 sps:$4 sm:$0xff]   ;;  %v13660_v26 = vpop.f32.mrf.mxu0 }
 0xa56   : > { %7512 = vmatmul.mubr.bf16.gmra.mxu0 %v6520_v32  ;;  %v4244_v4 = vsub.s32 6, %v16005_v27  ;;  %v13656_v30 = vmul.f32 %v5703_v63, %v13512_v23  ;;  %v5848_v36 = vmul.f32 %v5720_v46, %v13569_v35  ;;  %v13663_v32 = vmul.f32 %v5705_v49, %v13519_v11  ;;  %v9586_v63 = vld [vmem:[%s15586_s11 + $0x3a0] ss:$8 sps:$4 sm:$0xff]  }
 0xa57   : > { %16004 = vst [vmem:[#allocation112_spill] sm:$0xff] %v13649_v44  ;;  %9767 = vtanh.f32 %v6040_v48  ;;  %v9754_v52 = vpop.eup %9753  ;;  %v6096_v6 = vmul.f32 0.7978846, %v5968_v20  ;;  %v5590_v56 = vmul.f32 0.044715, %v13630_v33  ;;  %7710 = vmatpush2.bf16.msra.mxu0 %v9580_v14  ;;  %v13670_v46 = vmul.f32 %v5710_v45, %v13539_v16  ;;  %v5271_v16 = vpop.f32.mrf.mxu0 }
 0xa58   : > { %16006 = vst [vmem:[#allocation105_spill] sm:$0xff] %v13663_v32  ;;  %9769 = vtanh.f32 %v6048_v17  ;;  %v9756_v51 = vpop.eup %9755  ;;  %v5711_v21 = vmul.f32 %v5583_v42, %v13575_v39  ;;  %v13674_v48 = vadd.f32 %v5119_v37, %v12905_v13  ;;  %v6295_v49 = vadd.f32 1.0, %v9754_v52  ;;  %7599 = vmatpush2.bf16.msra.mxu1 %v9583_v59  ;;  %7711 = vmatprep.subr.bf16.mxu0 %v9588_v1  ;;  %v9589_v20 = vld [vmem:[%s15586_s11 + $0x290] ss:$8 sps:$4 sm:$0xff]   ;;  %v9594_v14 = vld [vmem:[%s15586_s11 + $0x394] ss:$8 sps:$4 sm:$0xff]  }
 0xa59   : > { %16007 = vst [vmem:[#allocation119_spill] sm:$0xff] %v13670_v46  ;;  %v9758_v17 = vpop.eup %9757  ;;  %v5399_v45 = vmul.f32 0.5, %v15988_v34  ;;  %v5407_v24 = vmul.f32 0.5, %v13138_v12  ;;  %v6303_v42 = vadd.f32 1.0, %v9756_v51  ;;  %v13687_v13 = vld [vmem:[%s15585_s10] sm:$0xff]  ;;  %7600 = vmatprep.subr.bf16.mxu1 %v9591_v18  ;;  %v5976_v52 = vadd.f32 %v5848_v36, %v13569_v35  ;;  %v5008_v34 = vpop.f32.mrf.mxu1 }
 0xa5a   : > { %16008 = vst [vmem:[#allocation107_spill] sm:$0xff] %v13674_v48  ;;  %v13690_v37 = vrot.slane %v13687_v13, %v4244_v4  ;;  %v9597_v59 = vld [vmem:[%s15586_s11 + $0x284] ss:$8 sps:$4 sm:$0xff]   ;;  %v9760_v1 = vpop.eup %9759  ;;  %v5401_v12 = vmul.f32 0.5, %v15990_v29  ;;  %v6297_v51 = vadd.f32 1.0, %v9758_v17  ;;  %v4236_v46 = vsub.s32 4, %v16005_v27 }
 0xa5b   : > { %v6423_v44 = vmul.f32 %v6295_v49, %v5399_v45  ;;  %v6431_v22 = vmul.f32 %v6303_v42, %v5407_v24  ;;  %v5409_v4 = vmul.f32 0.5, %v13141_v57  ;;  %v6305_v32 = vadd.f32 1.0, %v9760_v1  ;;  %7712 = vmatpush2.bf16.msra.mxu0 %v9586_v63  ;;  %v9592_v18 = vld [vmem:[%s15586_s11 + $0x390] ss:$8 sps:$4 sm:$0xff]   ;;  %v9595_v57 = vld [vmem:[%s15586_s11 + $0x280] ss:$8 sps:$4 sm:$0xff]  }
 0xa5c   : > { %v13704_v36 = vadd.f32 %v13622_v60, %v12911_v15  ;;  %v13708_v29 = vadd.f32 %v13593_v50, %v12913_v47  ;;  %v13711_v17 = vadd.f32 %v5006_v62, %v12903_v40  ;;  %v5600_v24 = vmul.f32 0.044715, %v13674_v48  ;;  %7601 = vmatpush2.bf16.msra.mxu1 %v9589_v20  ;;  %7713 = vmatprep.subr.bf16.mxu0 %v9594_v14  ;;  %v9600_v60 = vld [vmem:[%s15586_s11 + $0x384] ss:$8 sps:$4 sm:$0xff]   ;;  %v5158_v14 = vpop.f32.mrf.mxu1 }
 0xa5d   : > { %v6527_v63 = vpack.c.bf16 %v6431_v22, %v6423_v44  ;;  %v6425_v49 = vmul.f32 %v6297_v51, %v5401_v12  ;;  %v6433_v45 = vmul.f32 %v6305_v32, %v5409_v4  ;;  %v13721_v50 = vadd.f32 %v5271_v16, %v13690_v37  ;;  %7602 = vmatprep.subr.bf16.mxu1 %v9597_v59  ;;  %v9598_v32 = vld [vmem:[%s15586_s11 + $0x380] ss:$8 sps:$4 sm:$0xff]   ;;  %v13750_v59 = vpop.f32.mrf.mxu0  ;;  %v9986_v4 = vld [vmem:[%s15586_s11 + $0x374] ss:$8 sps:$4 sm:$0xff]  }
 0xa5e   : > { %16009 = vst [vmem:[#allocation120_spill] sm:$0xff] %v13711_v17  ;;  %9771 = vtanh.f32 %v6096_v6  ;;  %v13724_v40 = vmul.f32 %v5711_v21, %v13575_v39  ;;  %v13727_v62 = vmul.f32 %v5585_v2, %v13619_v9  ;;  %v13730_v20 = vrot.slane %v13687_v13, %v4236_v46 }
 0xa5f   : > { %v13733_v42 = vmul.f32 %v5590_v56, %v13630_v33  ;;  %v6104_v22 = vmul.f32 0.7978846, %v5976_v52  ;;  %7408 = vmatprep.mubr.bf16.mxu1 %v6527_v63  ;;  %v6529_v44 = vpack.c.bf16 %v6433_v45, %v6425_v49  ;;  %v5927_v16 = vadd.f32 %v13314_v28, %v13151_v25  ;;  %7714 = vmatpush2.bf16.msra.mxu0 %v9592_v18  ;;  %v13765_v49 = vpop.f32.mrf.mxu1 }
 0xa60   : > { %v9762_v2 = vpop.eup %9761  ;;  %v13741_v6 = vmul.f32 0.044715, %v13704_v36  ;;  %v13744_v46 = vmul.f32 0.044715, %v13708_v29  ;;  %v13747_v56 = vmul.f32 0.044715, %v13711_v17  ;;  %v5728_v21 = vmul.f32 %v5600_v24, %v13674_v48  ;;  %7603 = vmatpush2.bf16.msra.mxu1 %v9595_v57  ;;  %7715 = vmatprep.subr.bf16.mxu0 %v9600_v60 }
 0xa61   : > { %v9764_v28 = vpop.eup %9763  ;;  %7521 = vmatprep.mubr.bf16.mxu0 %v6529_v44  ;;  %v5484_v1 = vmul.f32 0.044715, %v13721_v50  ;;  %v6294_v52 = vadd.f32 1.0, %v9762_v2  ;;  %v5935_v12 = vadd.f32 %v13463_v19, %v13218_v31  ;;  %v6055_v51 = vmul.f32 0.7978846, %v5927_v16  ;;  %9008 = vmatprep.subr.bf16.mxu1 %v9986_v4 }
 0xa62   : > { %v13758_v18 = vpop.eup %9765  ;;  %v13761_v24 = vadd.f32 %v5158_v14, %v13730_v20  ;;  %v5398_v57 = vmul.f32 0.5, %v15994_v43  ;;  %v5406_v60 = vmul.f32 0.5, %v15997_v0  ;;  %v6302_v63 = vadd.f32 1.0, %v9764_v28  ;;  %v5275_v28 = vpop.f32.mrf.mxu0 }
 0xa63   : > { %16010 = vst [vmem:[#allocation103_spill] sm:$0xff] %v13758_v18  ;;  %v13768_v19 = vadd.f32 %v5008_v34, %v12911_v15  ;;  %v13772_v44 = vadd.f32 %v13660_v26, %v12913_v47  ;;  %v6063_v16 = vmul.f32 0.7978846, %v5935_v12  ;;  %9773 = vtanh.f32 %v6055_v51  ;;  %7716 = vmatpush2.bf16.msra.mxu0 %v9598_v32  ;;  %v5162_v12 = vpop.f32.mrf.mxu1 }
 0xa64   : > { %v9768_v45 = vpop.eup %9767  ;;  %v6422_v2 = vmul.f32 %v6294_v52, %v5398_v57  ;;  %v6430_v4 = vmul.f32 %v6302_v63, %v5406_v60  ;;  %v5400_v43 = vmul.f32 0.5, %v15999_v54  ;;  %v5612_v35 = vmul.f32 %v5484_v1, %v13721_v50 }
 0xa65   : > { %16011 = vst [vmem:[#allocation116_spill] sm:$0xff] %v13772_v44  ;;  %v9770_v14 = vpop.eup %9769  ;;  %v6296_v0 = vadd.f32 1.0, %v9768_v45  ;;  %v5408_v18 = vmul.f32 0.5, %v16001_v8  ;;  %9775 = vtanh.f32 %v6063_v16  ;;  %v5856_v34 = vmul.f32 %v5728_v21, %v13674_v48  ;;  %v16012_v16 = vld [vmem:[#allocation90_spill] sm:$0xff] }
 0xa66   : > { %v6304_v15 = vadd.f32 1.0, %v9770_v14  ;;  %v5482_v47 = vmul.f32 0.044715, %v13761_v24  ;;  %v6526_v26 = vpack.c.bf16 %v6430_v4, %v6422_v2  ;;  %v5929_v32 = vadd.f32 %v13317_v58, %v13172_v55  ;;  %v16014_v14 = vld [vmem:[#allocation124_spill] sm:$0xff] }
 0xa67   : > { %v6424_v52 = vmul.f32 %v6296_v0, %v5400_v43  ;;  %v13782_v54 = vadd.f32 %v5275_v28, %v13690_v37  ;;  %v5937_v1 = vadd.f32 %v13470_v7, %v13256_v41  ;;  %9777 = vtanh.f32 %v6104_v22  ;;  %v16013_v22 = vld [vmem:[#allocation117_spill] sm:$0xff] }
 0xa68   : > { %v6432_v51 = vmul.f32 %v6304_v15, %v5408_v18  ;;  %v5599_v8 = vmul.f32 0.044715, %v13768_v19  ;;  %7409 = vmatmul.mubr.bf16.gmra.mxu1 %v6526_v26  ;;  %v4240_v21 = vsub.s32 5, %v16005_v27  ;;  %v6057_v57 = vmul.f32 0.7978846, %v5929_v32 }
 0xa69   : > { %v5740_v60 = vmul.f32 %v5612_v35, %v13721_v50  ;;  %v13790_v58 = vadd.f32 %v5162_v12, %v13730_v20  ;;  %v6065_v18 = vmul.f32 0.7978846, %v5937_v1  ;;  %v5601_v45 = vmul.f32 0.044715, %v13772_v44 }
 0xa6a   : > { %v6528_v63 = vpack.c.bf16 %v6432_v51, %v6424_v52  ;;  %9779 = vtanh.f32 %v6057_v57  ;;  %v5926_v7 = vadd.f32 %v16012_v16, %v13148_v61  ;;  %v5934_v2 = vadd.f32 %v16014_v14, %v16013_v22 }
 0xa6b   : > { %v13797_v4 = vpop.eup %9771  ;;  %v5984_v43 = vadd.f32 %v5856_v34, %v13674_v48  ;;  %v5610_v35 = vmul.f32 %v5482_v47, %v13761_v24  ;;  %v5492_v0 = vmul.f32 0.044715, %v13782_v54  ;;  %9781 = vtanh.f32 %v6065_v18 }
 0xa6c   : > { %7522 = vmatmul.mubr.bf16.gmra.mxu0 %v6528_v63  ;;  %v13803_v28 = vrot.slane %v13687_v13, %v4240_v21  ;;  %v4248_v15 = vsub.s32 7, %v16005_v27  ;;  %v6054_v26 = vmul.f32 0.7978846, %v5926_v7  ;;  %v6062_v12 = vmul.f32 0.7978846, %v5934_v2 }
 0xa6d   : > { %v5719_v32 = vmul.f32 %v13741_v6, %v13704_v36  ;;  %v5721_v52 = vmul.f32 %v13744_v46, %v13708_v29  ;;  %v5868_v34 = vadd.f32 %v5740_v60, %v13721_v50  ;;  %v5490_v47 = vmul.f32 0.044715, %v13790_v58 }
 0xa6e   : > { %v5726_v51 = vmul.f32 %v13747_v56, %v13711_v17  ;;  %v5727_v1 = vmul.f32 %v5599_v8, %v13768_v19  ;;  %v5729_v21 = vmul.f32 %v5601_v45, %v13772_v44  ;;  %9783 = vtanh.f32 %v6054_v26 }
 0xa6f   : > { %v13818_v27 = vmul.f32 %v13727_v62, %v13619_v9  ;;  %v13822_v6 = vmul.f32 %v13733_v42, %v13630_v33  ;;  %v5620_v46 = vmul.f32 %v5492_v0, %v13782_v54  ;;  %9785 = vtanh.f32 %v6062_v12  ;;  %v5277_v62 = vpop.f32.mrf.mxu0  ;;  %v16030_v33 = vld [vmem:[#allocation102_spill] sm:$0xff] }
 0xa70   : > { %v9774_v57 = vpop.eup %9773  ;;  %v6112_v60 = vmul.f32 0.7978846, %v5984_v43  ;;  %v5738_v56 = vmul.f32 %v5610_v35, %v13761_v24  ;;  %v13828_v8 = vadd.f32 %v13765_v49, %v13803_v28  ;;  %v13831_v63 = vrot.slane %v13687_v13, %v4248_v15  ;;  %v5164_v35 = vpop.f32.mrf.mxu1 }
 0xa71   : > { %16015 = vst [vmem:[#allocation108_spill] sm:$0xff] %v13822_v6  ;;  %v13834_v18 = vmul.f32 %v5719_v32, %v13704_v36  ;;  %v5996_v42 = vmul.f32 0.7978846, %v5868_v34  ;;  %v5618_v45 = vmul.f32 %v5490_v47, %v13790_v58  ;;  %v6311_v16 = vadd.f32 1.0, %v9774_v57  ;;  %v5281_v34 = vpop.f32.mrf.mxu0 }
 0xa72   : > { %16016 = vst [vmem:[#allocation121_spill] sm:$0xff] %v13828_v8  ;;  %v9776_v7 = vpop.eup %9775  ;;  %v13838_v14 = vmul.f32 %v5721_v52, %v13708_v29  ;;  %v13841_v2 = vmul.f32 %v5726_v51, %v13711_v17  ;;  %v13844_v49 = vmul.f32 %v5727_v1, %v13768_v19  ;;  %v13847_v13 = vmul.f32 %v5729_v21, %v13772_v44  ;;  %v5168_v6 = vpop.f32.mrf.mxu1 }
 0xa73   : > { %v5748_v43 = vmul.f32 %v5620_v46, %v13782_v54  ;;  %v5415_v0 = vmul.f32 0.5, %v13151_v25  ;;  %v5423_v15 = vmul.f32 0.5, %v13218_v31  ;;  %v6319_v26 = vadd.f32 1.0, %v9776_v7  ;;  %v16023_v46 = vld [vmem:[#allocation114_spill] sm:$0xff] }
 0xa74   : > { %16017 = vst [vmem:[#allocation104_spill] sm:$0xff] %v13841_v2  ;;  %16018 = vst [vmem:[#allocation118_spill] sm:$0xff] %v13847_v13  ;;  %9787 = vtanh.f32 %v6112_v60  ;;  %v13853_v12 = vadd.f32 %v5738_v56, %v13761_v24  ;;  %v13856_v32 = vmul.f32 0.044715, %v13828_v8  ;;  %v13860_v52 = vadd.f32 %v13750_v59, %v13831_v63  ;;  %v13862_v47 = vpop.eup %9777  ;;  %v5170_v44 = vpop.f32.mrf.mxu1 }
 0xa75   : > { %16020 = vst [vmem:[#allocation122_spill] sm:$0xff] %v13862_v47  ;;  %9789 = vtanh.f32 %v5996_v42  ;;  %v5746_v25 = vmul.f32 %v5618_v45, %v13790_v58  ;;  %v6439_v51 = vmul.f32 %v6311_v16, %v5415_v0  ;;  %v6447_v31 = vmul.f32 %v6319_v26, %v5423_v15  ;;  %v16025_v45 = vld [vmem:[#allocation113_spill] sm:$0xff] }
 0xa76   : > { %16019 = vst [vmem:[#allocation109_spill] sm:$0xff] %v13860_v52  ;;  %v13866_v1 = vadd.f32 %v5164_v35, %v13803_v28  ;;  %v13869_v21 = vadd.f32 %v5277_v62, %v13831_v63  ;;  %v6320_v57 = vadd.f32 1.0, %v16023_v46  ;;  %v5943_v59 = vadd.f32 %v13477_v38, %v13332_v53  ;;  %v16026_v15 = vld [vmem:[#allocation101_spill] sm:$0xff]  ;;  %v16027_v62 = vld [vmem:[#allocation99_spill] sm:$0xff] }
 0xa77   : > { %v9780_v60 = vpop.eup %9779  ;;  %v5876_v56 = vadd.f32 %v5748_v43, %v13782_v54  ;;  %v6535_v7 = vpack.c.bf16 %v6447_v31, %v6439_v51  ;;  %v13876_v42 = vadd.f32 %v5281_v34, %v13690_v37  ;;  %v5424_v16 = vmul.f32 0.5, %v16025_v45  ;;  %v16028_v34 = vld [vmem:[#allocation110_spill] sm:$0xff] }
 0xa78   : > { %16021 = vst [vmem:[#allocation55_spill] sm:$0xff] %v13866_v1  ;;  %16022 = vst [vmem:[#allocation90_spill] sm:$0xff] %v13869_v21  ;;  %v9782_v0 = vpop.eup %9781  ;;  %v6313_v35 = vadd.f32 1.0, %v9780_v60  ;;  %v6312_v26 = vadd.f32 1.0, %v16026_v15  ;;  %v5951_v47 = vadd.f32 %v16027_v62, %v13382_v3  ;;  %v6071_v46 = vmul.f32 0.7978846, %v5943_v59  ;;  %v5283_v59 = vpop.f32.mrf.mxu0 }
 0xa79   : > { %16024 = vst [vmem:[#allocation117_spill] sm:$0xff] %v13876_v42  ;;  %7418 = vmatprep.mubr.bf16.mxu1 %v6535_v7  ;;  %v5417_v38 = vmul.f32 0.5, %v13172_v55  ;;  %v5425_v48 = vmul.f32 0.5, %v13256_v41  ;;  %v6321_v43 = vadd.f32 1.0, %v9782_v0  ;;  %v5414_v51 = vmul.f32 0.5, %v13148_v61  ;;  %v16029_v7 = vld [vmem:[#allocation125_spill] sm:$0xff] }
 0xa7a   : > { %v5416_v31 = vmul.f32 0.5, %v16028_v34  ;;  %v6448_v2 = vmul.f32 %v6320_v57, %v5424_v16  ;;  %v6079_v45 = vmul.f32 0.7978846, %v5951_v47  ;;  %9791 = vtanh.f32 %v6071_v46 }
 0xa7b   : > { %v9784_v60 = vpop.eup %9783  ;;  %v6441_v17 = vmul.f32 %v6313_v35, %v5417_v38  ;;  %v6449_v15 = vmul.f32 %v6321_v43, %v5425_v48  ;;  %v5422_v62 = vmul.f32 0.5, %v16013_v22  ;;  %v5945_v55 = vadd.f32 %v16030_v33, %v16029_v7 }
 0xa7c   : > { %v9786_v13 = vpop.eup %9785  ;;  %v5500_v41 = vmul.f32 0.044715, %v13876_v42  ;;  %v6310_v0 = vadd.f32 1.0, %v9784_v60  ;;  %v6440_v61 = vmul.f32 %v6312_v26, %v5416_v31  ;;  %v5953_v57 = vadd.f32 %v13645_v5, %v13395_v10  ;;  %v5285_v60 = vpop.f32.mrf.mxu0 }
 0xa7d   : > { %v6537_v47 = vpack.c.bf16 %v6449_v15, %v6441_v17  ;;  %v6318_v16 = vadd.f32 1.0, %v9786_v13  ;;  %9793 = vtanh.f32 %v6079_v45  ;;  %v6073_v35 = vmul.f32 0.7978846, %v5945_v55  ;;  %v16031_v17 = vld [vmem:[#allocation97_spill] sm:$0xff]  ;;  %v16032_v13 = vld [vmem:[#allocation106_spill] sm:$0xff]  ;;  %v16035_v15 = vld [vmem:[#allocation91_spill] sm:$0xff] }
 0xa7e   : > { %v5485_v48 = vmul.f32 0.044715, %v13860_v52  ;;  %v5874_v22 = vadd.f32 %v5746_v25, %v13790_v58  ;;  %v6536_v46 = vpack.c.bf16 %v6448_v2, %v6440_v61  ;;  %v6081_v38 = vmul.f32 0.7978846, %v5953_v57 }
 0xa7f   : > { %v6004_v43 = vmul.f32 0.7978846, %v5876_v56  ;;  %7531 = vmatprep.mubr.bf16.mxu0 %v6537_v47  ;;  %v6438_v33 = vmul.f32 %v6310_v0, %v5414_v51  ;;  %v6446_v34 = vmul.f32 %v6318_v16, %v5422_v62  ;;  %9795 = vtanh.f32 %v6073_v35  ;;  %v16034_v51 = vld [vmem:[#allocation126_spill] sm:$0xff] }
 0xa80   : > { %v5491_v26 = vmul.f32 0.044715, %v13866_v1  ;;  %v5493_v5 = vmul.f32 0.044715, %v13869_v21  ;;  %7532 = vmatmul.mubr.bf16.gmra.mxu0 %v6536_v46  ;;  %9797 = vtanh.f32 %v6081_v38  ;;  %v5942_v31 = vadd.f32 %v16032_v13, %v16031_v17 }
 0xa81   : > { %v13898_v45 = vpop.eup %9787  ;;  %v13901_v2 = vmul.f32 0.5, %v13761_v24  ;;  %v5628_v25 = vmul.f32 %v5500_v41, %v13876_v42  ;;  %v6534_v56 = vpack.c.bf16 %v6446_v34, %v6438_v33  ;;  %v5950_v62 = vadd.f32 %v16035_v15, %v16034_v51  ;;  %v5172_v41 = vpop.f32.mrf.mxu1 }
 0xa82   : > { %v9790_v55 = vpop.eup %9789  ;;  %v5994_v0 = vmul.f32 0.7978846, %v13853_v12  ;;  %v13908_v61 = vmul.f32 0.5, %v13721_v50  ;;  %v13911_v57 = vadd.f32 %v5285_v60, %v13690_v37  ;;  %v6070_v47 = vmul.f32 0.7978846, %v5942_v31 }
 0xa83   : > { %16033 = vst [vmem:[#allocation124_spill] sm:$0xff] %v13901_v2  ;;  %v5611_v24 = vmul.f32 %v13856_v32, %v13828_v8  ;;  %v5613_v16 = vmul.f32 %v5485_v48, %v13860_v52  ;;  %9799 = vtanh.f32 %v6004_v43  ;;  %7419 = vmatmul.mubr.bf16.gmra.mxu1 %v6534_v56  ;;  %v6078_v35 = vmul.f32 0.7978846, %v5950_v62 }
 0xa84   : > { %16036 = vst [vmem:[#allocation114_spill] sm:$0xff] %v13911_v57  ;;  %v6002_v46 = vmul.f32 0.7978846, %v5874_v22  ;;  %v5619_v38 = vmul.f32 %v5491_v26, %v13866_v1  ;;  %v5621_v12 = vmul.f32 %v5493_v5, %v13869_v21  ;;  %9801 = vtanh.f32 %v6070_v47 }
 0xa85   : > { %v13919_v50 = vadd.f32 %v5168_v6, %v13730_v20  ;;  %v5756_v33 = vmul.f32 %v5628_v25, %v13876_v42  ;;  %v13923_v34 = vadd.f32 %v5170_v44, %v13803_v28  ;;  %9803 = vtanh.f32 %v6078_v35 }
 0xa86   : > { %v13926_v32 = vmul.f32 0.5, %v13790_v58  ;;  %v13929_v48 = vadd.f32 %v5283_v59, %v13831_v63  ;;  %v13932_v22 = vadd.f32 %v5172_v41, %v13730_v20  ;;  %v5508_v43 = vmul.f32 0.044715, %v13911_v57  ;;  %v5174_v58 = vpop.f32.mrf.mxu1 }
 0xa87   : > { %16037 = vst [vmem:[#allocation113_spill] sm:$0xff] %v13919_v50  ;;  %v9792_v60 = vpop.eup %9791  ;;  %9805 = vtanh.f32 %v5994_v0  ;;  %v13936_v6 = vmul.f32 %v5611_v24, %v13828_v8  ;;  %v13939_v44 = vmul.f32 %v5613_v16, %v13860_v52  ;;  %v13942_v26 = vmul.f32 0.5, %v13782_v54  ;;  %v5287_v24 = vpop.f32.mrf.mxu0 }
 0xa88   : > { %16038 = vst [vmem:[#allocation101_spill] sm:$0xff] %v13926_v32  ;;  %16039 = vst [vmem:[#allocation99_spill] sm:$0xff] %v13932_v22  ;;  %v13944_v5 = vadd.f32 1.0, %v9790_v55  ;;  %9807 = vtanh.f32 %v6002_v46  ;;  %v13947_v59 = vmul.f32 %v5619_v38, %v13866_v1  ;;  %v13950_v13 = vmul.f32 %v5621_v12, %v13869_v21  ;;  %v16044_v46 = vld [vmem:[#allocation100_spill] sm:$0xff]  ;;  %v16048_v1 = vld [vmem:[#allocation123_spill] sm:$0xff] }
 0xa89   : > { %16040 = vst [vmem:[#allocation110_spill] sm:$0xff] %v13936_v6  ;;  %16041 = vst [vmem:[#allocation125_spill] sm:$0xff] %v13939_v44  ;;  %v13953_v31 = vmul.f32 0.044715, %v13919_v50  ;;  %v13956_v25 = vadd.f32 %v5756_v33, %v13876_v42  ;;  %v13959_v56 = vmul.f32 0.044715, %v13923_v34  ;;  %v5636_v0 = vmul.f32 %v5508_v43, %v13911_v57  ;;  %v5178_v44 = vpop.f32.mrf.mxu1  ;;  %v5291_v52 = vpop.f32.mrf.mxu0 }
 0xa8a   : > { %16042 = vst [vmem:[#allocation102_spill] sm:$0xff] %v13947_v59  ;;  %16043 = vst [vmem:[#allocation97_spill] sm:$0xff] %v13950_v13  ;;  %v6327_v54 = vadd.f32 1.0, %v9792_v60  ;;  %v9794_v15 = vpop.eup %9793  ;;  %v13962_v62 = vmul.f32 0.044715, %v13929_v48  ;;  %v13969_v47 = vadd.f32 %v5174_v58, %v13803_v28  ;;  %v5431_v16 = vmul.f32 0.5, %v13332_v53 }
 0xa8b   : > { %v13965_v55 = vmul.f32 0.044715, %v13932_v22  ;;  %v5439_v41 = vmul.f32 0.5, %v13382_v3  ;;  %v6335_v35 = vadd.f32 1.0, %v9794_v15  ;;  %v6336_v38 = vadd.f32 1.0, %v16044_v46  ;;  %v16045_v60 = vld [vmem:[#allocation98_spill] sm:$0xff] }
 0xa8c   : > { %v9796_v12 = vpop.eup %9795  ;;  %v5433_v33 = vmul.f32 0.5, %v16029_v7  ;;  %v5440_v42 = vmul.f32 0.5, %v16045_v60  ;;  %v5959_v2 = vadd.f32 %v13656_v30, %v13512_v23  ;;  %v5967_v43 = vadd.f32 %v13724_v40, %v13575_v39  ;;  %v16046_v21 = vld [vmem:[#allocation92_spill] sm:$0xff] }
 0xa8d   : > { %v9798_v58 = vpop.eup %9797  ;;  %v6455_v32 = vmul.f32 %v6327_v54, %v5431_v16  ;;  %v6463_v13 = vmul.f32 %v6335_v35, %v5439_v41  ;;  %v6329_v53 = vadd.f32 1.0, %v9796_v12  ;;  %v6328_v3 = vadd.f32 1.0, %v16046_v21  ;;  %v16049_v21 = vld [vmem:[#allocation105_spill] sm:$0xff] }
 0xa8e   : > { %v5441_v15 = vmul.f32 0.5, %v13395_v10  ;;  %v6337_v46 = vadd.f32 1.0, %v9798_v58  ;;  %v6087_v7 = vmul.f32 0.7978846, %v5959_v2  ;;  %v6095_v59 = vmul.f32 0.7978846, %v5967_v43 }
 0xa8f   : > { %v13983_v60 = vadd.f32 %v5287_v24, %v13831_v63  ;;  %v6543_v30 = vpack.c.bf16 %v6463_v13, %v6455_v32  ;;  %v5432_v6 = vmul.f32 0.5, %v16048_v1  ;;  %v6464_v40 = vmul.f32 %v6336_v38, %v5440_v42  ;;  %v5180_v38 = vpop.f32.mrf.mxu1 }
 0xa90   : > { %v9800_v8 = vpop.eup %9799  ;;  %v6457_v54 = vmul.f32 %v6329_v53, %v5433_v33  ;;  %v6465_v16 = vmul.f32 %v6337_v46, %v5441_v15  ;;  %9809 = vtanh.f32 %v6087_v7  ;;  %v5961_v41 = vadd.f32 %v16049_v21, %v13519_v11  ;;  %v5293_v46 = vpop.f32.mrf.mxu0  ;;  %v16052_v7 = vld [vmem:[#allocation112_spill] sm:$0xff]  ;;  %v16055_v21 = vld [vmem:[#allocation119_spill] sm:$0xff] }
 0xa91   : > { %16047 = vst [vmem:[#allocation106_spill] sm:$0xff] %v13983_v60  ;;  %v9802_v10 = vpop.eup %9801  ;;  %7428 = vmatprep.mubr.bf16.mxu1 %v6543_v30  ;;  %v13989_v35 = vadd.f32 %v5291_v52, %v13690_v37  ;;  %v6456_v2 = vmul.f32 %v6328_v3, %v5432_v6  ;;  %9811 = vtanh.f32 %v6095_v59  ;;  %v5969_v32 = vadd.f32 %v13818_v27, %v13619_v9 }
 0xa92   : > { %v9804_v13 = vpop.eup %9803  ;;  %v6545_v1 = vpack.c.bf16 %v6465_v16, %v6457_v54  ;;  %v5430_v42 = vmul.f32 0.5, %v16031_v17  ;;  %v6326_v24 = vadd.f32 1.0, %v9802_v10  ;;  %v6089_v12 = vmul.f32 0.7978846, %v5961_v41  ;;  %v5182_v54 = vpop.f32.mrf.mxu1  ;;  %v16054_v16 = vld [vmem:[#allocation95_spill] sm:$0xff] }
 0xa93   : > { %16050 = vst [vmem:[#allocation126_spill] sm:$0xff] %v13989_v35  ;;  %v5438_v33 = vmul.f32 0.5, %v16034_v51  ;;  %v6334_v43 = vadd.f32 1.0, %v9804_v13  ;;  %v6544_v58 = vpack.c.bf16 %v6464_v40, %v6456_v2  ;;  %v6097_v53 = vmul.f32 0.7978846, %v5969_v32  ;;  %v16051_v51 = vld [vmem:[#allocation94_spill] sm:$0xff] }
 0xa94   : > { %v13995_v15 = vpop.eup %9805  ;;  %v6260_v52 = vadd.f32 1.0, %v9800_v8  ;;  %v5764_v6 = vmul.f32 %v5636_v0, %v13911_v57  ;;  %v5507_v59 = vmul.f32 0.044715, %v13969_v47  ;;  %7541 = vmatprep.mubr.bf16.mxu0 %v6545_v1  ;;  %9813 = vtanh.f32 %v6089_v12 }
 0xa95   : > { %v13999_v27 = vpop.eup %9807  ;;  %v6454_v17 = vmul.f32 %v6326_v24, %v5430_v42  ;;  %v6462_v3 = vmul.f32 %v6334_v43, %v5438_v33  ;;  %7542 = vmatmul.mubr.bf16.gmra.mxu0 %v6544_v58  ;;  %9815 = vtanh.f32 %v6097_v53  ;;  %v5958_v30 = vadd.f32 %v16052_v7, %v16051_v51  ;;  %v14027_v58 = vpop.f32.mrf.mxu1 }
 0xa96   : > { %v5509_v40 = vmul.f32 0.044715, %v13983_v60  ;;  %v14005_v8 = vadd.f32 %v5178_v44, %v13730_v20  ;;  %v5516_v0 = vmul.f32 0.044715, %v13989_v35  ;;  %v5966_v41 = vadd.f32 %v16055_v21, %v16054_v16 }
 0xa97   : > { %v5626_v10 = vmul.f32 %v13953_v31, %v13919_v50  ;;  %v5627_v2 = vmul.f32 %v13959_v56, %v13923_v34  ;;  %v6542_v32 = vpack.c.bf16 %v6462_v3, %v6454_v17  ;;  %v6086_v13 = vmul.f32 0.7978846, %v5958_v30  ;;  %v5295_v56 = vpop.f32.mrf.mxu0 }
 0xa98   : > { %16053 = vst [vmem:[#allocation91_spill] sm:$0xff] %v14005_v8  ;;  %v6012_v1 = vmul.f32 0.7978846, %v13956_v25  ;;  %v5629_v44 = vmul.f32 %v13962_v62, %v13929_v48  ;;  %v5634_v42 = vmul.f32 %v13965_v55, %v13932_v22  ;;  %v6094_v24 = vmul.f32 0.7978846, %v5966_v41 }
 0xa99   : > { %v14020_v12 = vmul.f32 %v6260_v52, %v13942_v26  ;;  %v5892_v33 = vadd.f32 %v5764_v6, %v13911_v57  ;;  %v5635_v31 = vmul.f32 %v5507_v59, %v13969_v47  ;;  %7429 = vmatmul.mubr.bf16.gmra.mxu1 %v6542_v32  ;;  %9817 = vtanh.f32 %v6086_v13  ;;  %v5297_v30 = vpop.f32.mrf.mxu0  ;;  %v16065_v57 = vld [vmem:[#allocation103_spill] sm:$0xff] }
 0xa9a   : > { %v5637_v43 = vmul.f32 %v5509_v40, %v13983_v60  ;;  %v5514_v25 = vmul.f32 0.044715, %v14005_v8  ;;  %v5644_v62 = vmul.f32 %v5516_v0, %v13989_v35  ;;  %9819 = vtanh.f32 %v6094_v24 }
 0xa9b   : > { %16056 = vst [vmem:[#allocation100_spill] sm:$0xff] %v14020_v12  ;;  %v14031_v26 = vmul.f32 %v13944_v5, %v13908_v61  ;;  %v14034_v55 = vmul.f32 %v5626_v10, %v13919_v50  ;;  %v14037_v53 = vmul.f32 %v5627_v2, %v13923_v34  ;;  %v14040_v52 = vadd.f32 %v5180_v38, %v13803_v28  ;;  %v14068_v10 = vpop.f32.mrf.mxu1 }
 0xa9c   : > { %9821 = vtanh.f32 %v6012_v1  ;;  %v14043_v6 = vmul.f32 %v5629_v44, %v13929_v48  ;;  %v14046_v59 = vadd.f32 %v5293_v46, %v13831_v63  ;;  %v14049_v17 = vadd.f32 %v5295_v56, %v13690_v37 }
 0xa9d   : > { %16057 = vst [vmem:[#allocation98_spill] sm:$0xff] %v14031_v26  ;;  %16058 = vst [vmem:[#allocation92_spill] sm:$0xff] %v14034_v55  ;;  %v9810_v61 = vpop.eup %9809  ;;  %v14054_v3 = vmul.f32 %v5634_v42, %v13932_v22  ;;  %v14056_v7 = vmul.f32 0.7978846, %v5892_v33  ;;  %v14059_v38 = vmul.f32 %v5635_v31, %v13969_v47  ;;  %v14062_v46 = vmul.f32 %v5637_v43, %v13983_v60  ;;  %v14088_v26 = vpop.f32.mrf.mxu1 }
 0xa9e   : > { %16059 = vst [vmem:[#allocation123_spill] sm:$0xff] %v14040_v52  ;;  %16060 = vst [vmem:[#allocation105_spill] sm:$0xff] %v14046_v59  ;;  %v9812_v40 = vpop.eup %9811  ;;  %v14065_v0 = vmul.f32 %v5514_v25, %v14005_v8  ;;  %v5772_v21 = vmul.f32 %v5644_v62, %v13989_v35  ;;  %v6343_v41 = vadd.f32 1.0, %v9810_v61  ;;  %v14071_v2 = vmul.f32 0.044715, %v14040_v52  ;;  %v5301_v62 = vpop.f32.mrf.mxu0 }
 0xa9f   : > { %16061 = vst [vmem:[#allocation94_spill] sm:$0xff] %v14049_v17  ;;  %16062 = vst [vmem:[#allocation112_spill] sm:$0xff] %v14054_v3  ;;  %v5447_v32 = vmul.f32 0.5, %v13512_v23  ;;  %v5455_v13 = vmul.f32 0.5, %v13575_v39  ;;  %v6351_v1 = vadd.f32 1.0, %v9812_v40  ;;  %v14079_v42 = vadd.f32 %v5182_v54, %v13730_v20  ;;  %v16064_v40 = vld [vmem:[#allocation115_spill] sm:$0xff] }
 0xaa0   : > { %16063 = vst [vmem:[#allocation95_spill] sm:$0xff] %v14062_v46  ;;  %v14076_v44 = vmul.f32 0.044715, %v14046_v59  ;;  %v5524_v24 = vmul.f32 0.044715, %v14049_v17  ;;  %v6352_v33 = vadd.f32 1.0, %v13797_v4  ;;  %v5975_v23 = vadd.f32 %v13834_v18, %v13704_v36 }
 0xaa1   : > { %v9814_v31 = vpop.eup %9813  ;;  %v6471_v56 = vmul.f32 %v6343_v41, %v5447_v32  ;;  %v6479_v43 = vmul.f32 %v6351_v1, %v5455_v13  ;;  %v5449_v25 = vmul.f32 0.5, %v13519_v11  ;;  %v5456_v5 = vmul.f32 0.5, %v16064_v40  ;;  %v16067_v18 = vld [vmem:[#allocation93_spill] sm:$0xff] }
 0xaa2   : > { %v9816_v39 = vpop.eup %9815  ;;  %v6345_v61 = vadd.f32 1.0, %v9814_v31  ;;  %v6344_v54 = vadd.f32 1.0, %v16065_v57  ;;  %v5983_v4 = vadd.f32 %v13844_v49, %v13768_v19  ;;  %v5457_v41 = vmul.f32 0.5, %v13619_v9  ;;  %v16097_v46 = vld [vmem:[#allocation97_spill] sm:$0xff] }
 0xaa3   : > { %v6551_v12 = vpack.c.bf16 %v6479_v43, %v6471_v56  ;;  %v6353_v32 = vadd.f32 1.0, %v9816_v39  ;;  %v6103_v11 = vmul.f32 0.7978846, %v5975_v23  ;;  %v14094_v13 = vadd.f32 %v5301_v62, %v13690_v37  ;;  %v14100_v43 = vpop.f32.mrf.mxu1  ;;  %v16068_v62 = vld [vmem:[#allocation116_spill] sm:$0xff]  ;;  %v16069_v23 = vld [vmem:[#allocation118_spill] sm:$0xff] }
 0xaa4   : > { %v5448_v1 = vmul.f32 0.5, %v16067_v18  ;;  %v6480_v31 = vmul.f32 %v6352_v33, %v5456_v5  ;;  %v6111_v3 = vmul.f32 0.7978846, %v5983_v4  ;;  %v6473_v40 = vmul.f32 %v6345_v61, %v5449_v25  ;;  %v5303_v25 = vpop.f32.mrf.mxu0 }
 0xaa5   : > { %16066 = vst [vmem:[#allocation119_spill] sm:$0xff] %v14094_v13  ;;  %7438 = vmatprep.mubr.bf16.mxu1 %v6551_v12  ;;  %v6481_v57 = vmul.f32 %v6353_v32, %v5457_v41  ;;  %9823 = vtanh.f32 %v6103_v11  ;;  %v5977_v22 = vadd.f32 %v13838_v14, %v13708_v29  ;;  %v5652_v56 = vmul.f32 %v5524_v24, %v14049_v17 }
 0xaa6   : > { %v9818_v49 = vpop.eup %9817  ;;  %v6472_v9 = vmul.f32 %v6344_v54, %v5448_v1  ;;  %9825 = vtanh.f32 %v6111_v3  ;;  %v5985_v39 = vadd.f32 %v16069_v23, %v16068_v62  ;;  %v5446_v12 = vmul.f32 0.5, %v16051_v51  ;;  %v14117_v1 = vpop.f32.mrf.mxu1  ;;  %v16075_v23 = vld [vmem:[#allocation104_spill] sm:$0xff] }
 0xaa7   : > { %v9820_v18 = vpop.eup %9819  ;;  %v6553_v5 = vpack.c.bf16 %v6481_v57, %v6473_v40  ;;  %v6342_v33 = vadd.f32 1.0, %v9818_v49  ;;  %v6105_v61 = vmul.f32 0.7978846, %v5977_v22  ;;  %v5454_v4 = vmul.f32 0.5, %v16054_v16  ;;  %v16072_v40 = vld [vmem:[#allocation96_spill] sm:$0xff] }
 0xaa8   : > { %v6350_v14 = vadd.f32 1.0, %v9820_v18  ;;  %v6552_v41 = vpack.c.bf16 %v6480_v31, %v6472_v9  ;;  %v6113_v32 = vmul.f32 0.7978846, %v5985_v39  ;;  %v5900_v54 = vadd.f32 %v5772_v21, %v13989_v35  ;;  %v16073_v57 = vld [vmem:[#allocation108_spill] sm:$0xff] }
 0xaa9   : > { %v14106_v24 = vpop.eup %9821  ;;  %v14111_v3 = vadd.f32 %v14027_v58, %v13803_v28  ;;  %7551 = vmatprep.mubr.bf16.mxu0 %v6553_v5  ;;  %v5532_v11 = vmul.f32 0.044715, %v14094_v13  ;;  %9827 = vtanh.f32 %v6105_v61  ;;  %v14115_v51 = vadd.f32 %v5297_v30, %v13831_v63  ;;  %v5305_v58 = vpop.f32.mrf.mxu0  ;;  %v16074_v9 = vld [vmem:[#allocation120_spill] sm:$0xff] }
 0xaaa   : > { %16070 = vst [vmem:[#allocation115_spill] sm:$0xff] %v14106_v24  ;;  %v6470_v22 = vmul.f32 %v6342_v33, %v5446_v12  ;;  %v6478_v16 = vmul.f32 %v6350_v14, %v5454_v4  ;;  %7552 = vmatmul.mubr.bf16.gmra.mxu0 %v6552_v41  ;;  %9829 = vtanh.f32 %v6113_v32  ;;  %v5780_v31 = vmul.f32 %v5652_v56, %v14049_v17 }
 0xaab   : > { %v14122_v21 = vadd.f32 %v14068_v10, %v13730_v20  ;;  %v5974_v49 = vadd.f32 %v16073_v57, %v16072_v40  ;;  %v5982_v30 = vadd.f32 %v16075_v23, %v16074_v9  ;;  %9831 = vtanh.f32 %v14056_v7 }
 0xaac   : > { %v5643_v39 = vmul.f32 %v14071_v2, %v14040_v52  ;;  %v5522_v18 = vmul.f32 0.044715, %v14079_v42  ;;  %v6550_v5 = vpack.c.bf16 %v6478_v16, %v6470_v22  ;;  %v5645_v56 = vmul.f32 %v14076_v44, %v14046_v59  ;;  %v5198_v2 = vpop.f32.mrf.mxu1 }
 0xaad   : > { %16071 = vst [vmem:[#allocation103_spill] sm:$0xff] %v14122_v21  ;;  %v5660_v10 = vmul.f32 %v5532_v11, %v14094_v13  ;;  %v6102_v12 = vmul.f32 0.7978846, %v5974_v49  ;;  %v6110_v33 = vmul.f32 0.7978846, %v5982_v30  ;;  %v14138_v7 = vadd.f32 %v5305_v58, %v13690_v37  ;;  %v5307_v58 = vpop.f32.mrf.mxu0 }
 0xaae   : > { %v6028_v61 = vmul.f32 0.7978846, %v5900_v54  ;;  %v5523_v4 = vmul.f32 0.044715, %v14111_v3  ;;  %v5525_v14 = vmul.f32 0.044715, %v14115_v51  ;;  %7439 = vmatmul.mubr.bf16.gmra.mxu1 %v6550_v5  ;;  %v14142_v41 = vmul.f32 %v14065_v0, %v14005_v8 }
 0xaaf   : > { %16076 = vst [vmem:[#allocation93_spill] sm:$0xff] %v14138_v7  ;;  %v5908_v44 = vadd.f32 %v5780_v31, %v14049_v17  ;;  %v5530_v32 = vmul.f32 0.044715, %v14122_v21  ;;  %9833 = vtanh.f32 %v6102_v12  ;;  %v14147_v54 = vmul.f32 %v5643_v39, %v14040_v52  ;;  %v16084_v8 = vld [vmem:[#allocation122_spill] sm:$0xff] }
 0xab0   : > { %16077 = vst [vmem:[#allocation116_spill] sm:$0xff] %v14142_v41  ;;  %v14150_v11 = vmul.f32 %v5522_v18, %v14079_v42  ;;  %v14154_v22 = vadd.f32 %v14088_v26, %v13803_v28  ;;  %9835 = vtanh.f32 %v6110_v33  ;;  %v14157_v16 = vmul.f32 %v5645_v56, %v14046_v59 }
 0xab1   : > { %16078 = vst [vmem:[#allocation118_spill] sm:$0xff] %v14147_v54  ;;  %v5788_v0 = vmul.f32 %v5660_v10, %v14094_v13  ;;  %v14161_v31 = vadd.f32 %v5303_v25, %v13831_v63  ;;  %v14164_v57 = vadd.f32 %v5198_v2, %v13730_v20  ;;  %9837 = vtanh.f32 %v6028_v61 }
 0xab2   : > { %16079 = vst [vmem:[#allocation96_spill] sm:$0xff] %v14157_v16  ;;  %v9824_v49 = vpop.eup %9823  ;;  %v14167_v23 = vmul.f32 %v5523_v4, %v14111_v3  ;;  %v14170_v26 = vmul.f32 %v5525_v14, %v14115_v51  ;;  %v5540_v30 = vmul.f32 0.044715, %v14138_v7  ;;  %v14173_v18 = vmul.f32 0.7978846, %v5908_v44  ;;  %v5311_v44 = vpop.f32.mrf.mxu0 }
 0xab3   : > { %16080 = vst [vmem:[#allocation108_spill] sm:$0xff] %v14161_v31  ;;  %16081 = vst [vmem:[#allocation120_spill] sm:$0xff] %v14164_v57  ;;  %v9826_v39 = vpop.eup %9825  ;;  %v14176_v25 = vmul.f32 %v5530_v32, %v14122_v21  ;;  %v14180_v5 = vadd.f32 %v14100_v43, %v13730_v20  ;;  %v6359_v56 = vadd.f32 1.0, %v9824_v49  ;;  %v14183_v10 = vmul.f32 0.044715, %v14154_v22 }
 0xab4   : > { %v5463_v12 = vmul.f32 0.5, %v13704_v36  ;;  %v5471_v33 = vmul.f32 0.5, %v13768_v19  ;;  %v6367_v61 = vadd.f32 1.0, %v9826_v39  ;;  %v5916_v4 = vadd.f32 %v5788_v0, %v14094_v13  ;;  %v16083_v0 = vld [vmem:[#allocation107_spill] sm:$0xff]  ;;  %v5313_v50 = vpop.f32.mrf.mxu0 }
 0xab5   : > { %16082 = vst [vmem:[#allocation104_spill] sm:$0xff] %v14180_v5  ;;  %v14189_v14 = vmul.f32 0.044715, %v14161_v31  ;;  %v5546_v2 = vmul.f32 0.044715, %v14164_v57  ;;  %v6368_v43 = vadd.f32 1.0, %v13898_v45  ;;  %v5668_v49 = vmul.f32 %v5540_v30, %v14138_v7  ;;  %v14201_v45 = vpop.f32.mrf.mxu1 }
 0xab6   : > { %v9828_v32 = vpop.eup %9827  ;;  %v6487_v35 = vmul.f32 %v6359_v56, %v5463_v12  ;;  %v6495_v17 = vmul.f32 %v6367_v61, %v5471_v33  ;;  %v5465_v36 = vmul.f32 0.5, %v13708_v29  ;;  %v5473_v19 = vmul.f32 0.5, %v16068_v62  ;;  %v16086_v30 = vld [vmem:[#allocation121_spill] sm:$0xff]  ;;  %v16087_v56 = vld [vmem:[#allocation110_spill] sm:$0xff]  ;;  %v16089_v61 = vld [vmem:[#allocation111_spill] sm:$0xff] }
 0xab7   : > { %v9830_v41 = vpop.eup %9829  ;;  %v6361_v39 = vadd.f32 1.0, %v9828_v32  ;;  %v5472_v13 = vmul.f32 0.5, %v16083_v0  ;;  %v6360_v16 = vadd.f32 1.0, %v16084_v8  ;;  %v14199_v54 = vadd.f32 %v5311_v44, %v13690_v37 }
 0xab8   : > { %v6559_v59 = vpack.c.bf16 %v6495_v17, %v6487_v35  ;;  %v6369_v24 = vadd.f32 1.0, %v9830_v41  ;;  %v5867_v12 = vadd.f32 %v16087_v56, %v16086_v30  ;;  %v14205_v33 = vpop.eup %9831  ;;  %v5538_v29 = vmul.f32 0.044715, %v14180_v5  ;;  %v16090_v17 = vld [vmem:[#allocation55_spill] sm:$0xff]  ;;  %v16091_v41 = vld [vmem:[#allocation102_spill] sm:$0xff] }
 0xab9   : > { %16085 = vst [vmem:[#allocation107_spill] sm:$0xff] %v14199_v54  ;;  %16088 = vst [vmem:[#allocation122_spill] sm:$0xff] %v14205_v33  ;;  %v5674_v62 = vmul.f32 %v5546_v2, %v14164_v57  ;;  %v5464_v32 = vmul.f32 0.5, %v16089_v61  ;;  %v6496_v0 = vmul.f32 %v6368_v43, %v5472_v13  ;;  %v6489_v35 = vmul.f32 %v6361_v39, %v5465_v36 }
 0xaba   : > { %7448 = vmatprep.mubr.bf16.mxu1 %v6559_v59  ;;  %v6497_v8 = vmul.f32 %v6369_v24, %v5473_v19  ;;  %v5875_v44 = vadd.f32 %v16091_v41, %v16090_v17  ;;  %v5995_v52 = vmul.f32 0.7978846, %v5867_v12  ;;  %v5796_v55 = vmul.f32 %v5668_v49, %v14138_v7  ;;  %v5202_v24 = vpop.f32.mrf.mxu1  ;;  %v16094_v49 = vld [vmem:[#allocation109_spill] sm:$0xff] }
 0xabb   : > { %v14215_v56 = vadd.f32 %v14117_v1, %v13803_v28  ;;  %v14218_v33 = vadd.f32 %v5307_v58, %v13831_v63  ;;  %v6488_v2 = vmul.f32 %v6360_v16, %v5464_v32  ;;  %v5548_v59 = vmul.f32 0.044715, %v14199_v54  ;;  %v16095_v12 = vld [vmem:[#allocation125_spill] sm:$0xff]  ;;  %v16096_v1 = vld [vmem:[#allocation90_spill] sm:$0xff] }
 0xabc   : > { %v9834_v61 = vpop.eup %9833  ;;  %v6561_v13 = vpack.c.bf16 %v6497_v8, %v6489_v35  ;;  %v6003_v43 = vmul.f32 0.7978846, %v5875_v44  ;;  %9839 = vtanh.f32 %v5995_v52  ;;  %v5869_v41 = vadd.f32 %v16095_v12, %v16094_v49 }
 0xabd   : > { %16092 = vst [vmem:[#allocation121_spill] sm:$0xff] %v14215_v56  ;;  %16093 = vst [vmem:[#allocation110_spill] sm:$0xff] %v14218_v33  ;;  %v9836_v36 = vpop.eup %9835  ;;  %v6358_v19 = vadd.f32 1.0, %v9834_v61  ;;  %v6560_v39 = vpack.c.bf16 %v6496_v0, %v6488_v2  ;;  %v5877_v60 = vadd.f32 %v16097_v46, %v16096_v1  ;;  %v5802_v16 = vmul.f32 %v5674_v62, %v14164_v57  ;;  %v5315_v0 = vpop.f32.mrf.mxu0 }
 0xabe   : > { %7561 = vmatprep.mubr.bf16.mxu0 %v6561_v13  ;;  %v5462_v58 = vmul.f32 0.5, %v16072_v40  ;;  %v5470_v32 = vmul.f32 0.5, %v16074_v9  ;;  %v6366_v35 = vadd.f32 1.0, %v9836_v36  ;;  %v14228_v8 = vpop.eup %9837  ;;  %v14231_v52 = vadd.f32 %v5202_v24, %v13730_v20 }
 0xabf   : > { %7562 = vmatmul.mubr.bf16.gmra.mxu0 %v6560_v39  ;;  %9841 = vtanh.f32 %v6003_v43  ;;  %v5997_v44 = vmul.f32 0.7978846, %v5869_v41  ;;  %v6005_v2 = vmul.f32 0.7978846, %v5877_v60  ;;  %v6044_v61 = vmul.f32 0.7978846, %v5916_v4  ;;  %v5204_v60 = vpop.f32.mrf.mxu1 }
 0xac0   : > { %16098 = vst [vmem:[#allocation111_spill] sm:$0xff] %v14231_v52  ;;  %v5539_v46 = vmul.f32 0.044715, %v14215_v56  ;;  %v6486_v13 = vmul.f32 %v6358_v19, %v5462_v58  ;;  %v6494_v62 = vmul.f32 %v6366_v35, %v5470_v32  ;;  %v5924_v40 = vadd.f32 %v5796_v55, %v14138_v7  ;;  %v14260_v58 = vpop.f32.mrf.mxu0  ;;  %v16111_v7 = vld [vmem:[#allocation124_spill] sm:$0xff] }
 0xac1   : > { %v5541_v9 = vmul.f32 0.044715, %v14218_v33  ;;  %v5676_v36 = vmul.f32 %v5548_v59, %v14199_v54  ;;  %9843 = vtanh.f32 %v5997_v44  ;;  %v5659_v24 = vmul.f32 %v14183_v10, %v14154_v22  ;;  %v5208_v35 = vpop.f32.mrf.mxu1 }
 0xac2   : > { %v6558_v39 = vpack.c.bf16 %v6494_v62, %v6486_v13  ;;  %v14240_v43 = vadd.f32 %v5315_v0, %v13690_v37  ;;  %9845 = vtanh.f32 %v6005_v2  ;;  %v14244_v4 = vmul.f32 %v14150_v11, %v14079_v42  ;;  %v5321_v62 = vpop.f32.mrf.mxu0 }
 0xac3   : > { %v14248_v55 = vmul.f32 %v14167_v23, %v14111_v3  ;;  %v5930_v59 = vadd.f32 %v5802_v16, %v14164_v57  ;;  %v5554_v19 = vmul.f32 0.044715, %v14231_v52  ;;  %v14254_v10 = vmul.f32 %v14170_v26, %v14115_v51 }
 0xac4   : > { %16099 = vst [vmem:[#allocation55_spill] sm:$0xff] %v14240_v43  ;;  %v5661_v12 = vmul.f32 %v14189_v14, %v14161_v31  ;;  %v5666_v41 = vmul.f32 %v5538_v29, %v14180_v5  ;;  %v5667_v11 = vmul.f32 %v5539_v46, %v14215_v56  ;;  %7449 = vmatmul.mubr.bf16.gmra.mxu1 %v6558_v39  ;;  %9847 = vtanh.f32 %v14173_v18 }
 0xac5   : > { %v6052_v23 = vmul.f32 0.7978846, %v5924_v40  ;;  %v5669_v16 = vmul.f32 %v5541_v9, %v14218_v33  ;;  %v5804_v32 = vmul.f32 %v5676_v36, %v14199_v54  ;;  %v14267_v26 = vmul.f32 %v14176_v25, %v14122_v21 }
 0xac6   : > { %9849 = vtanh.f32 %v6044_v61  ;;  %v14270_v14 = vmul.f32 %v5659_v24, %v14154_v22  ;;  %v5556_v29 = vmul.f32 0.044715, %v14240_v43  ;;  %v6058_v0 = vmul.f32 0.7978846, %v5930_v59  ;;  %v14305_v59 = vpop.f32.mrf.mxu1 }
 0xac7   : > { %16100 = vst [vmem:[#allocation102_spill] sm:$0xff] %v14267_v26  ;;  %v14275_v18 = vadd.f32 %v14201_v45, %v13803_v28  ;;  %v14278_v44 = vadd.f32 %v5313_v50, %v13831_v63  ;;  %v5682_v2 = vmul.f32 %v5554_v19, %v14231_v52  ;;  %v14282_v25 = vmul.f32 %v5661_v12, %v14161_v31  ;;  %v16136_v31 = vld [vmem:[#allocation117_spill] sm:$0xff] }
 0xac8   : > { %v14285_v61 = vmul.f32 %v5666_v41, %v14180_v5  ;;  %v14288_v46 = vmul.f32 %v5667_v11, %v14215_v56  ;;  %v14291_v13 = vadd.f32 %v5204_v60, %v13803_v28  ;;  %9851 = vtanh.f32 %v6052_v23 }
 0xac9   : > { %16101 = vst [vmem:[#allocation109_spill] sm:$0xff] %v14275_v18  ;;  %16102 = vst [vmem:[#allocation125_spill] sm:$0xff] %v14278_v44  ;;  %v9840_v45 = vpop.eup %9839  ;;  %v14294_v50 = vmul.f32 %v5669_v16, %v14218_v33  ;;  %v14297_v40 = vadd.f32 %v5804_v32, %v14199_v54  ;;  %v6258_v9 = vadd.f32 1.0, %v13999_v27  ;;  %v5684_v36 = vmul.f32 %v5556_v29, %v14240_v43  ;;  %v14322_v32 = vpop.f32.mrf.mxu0 }
 0xaca   : > { %16103 = vst [vmem:[#allocation90_spill] sm:$0xff] %v14282_v25  ;;  %16104 = vst [vmem:[#allocation97_spill] sm:$0xff] %v14285_v61  ;;  %v6251_v24 = vadd.f32 1.0, %v9840_v45  ;;  %v14302_v39 = vadd.f32 %v5208_v35, %v13730_v20  ;;  %v6250_v60 = vadd.f32 1.0, %v13995_v15  ;;  %9853 = vtanh.f32 %v6058_v0  ;;  %v16110_v35 = vld [vmem:[#allocation101_spill] sm:$0xff]  ;;  %v5212_v61 = vpop.f32.mrf.mxu1 }
 0xacb   : > { %16105 = vst [vmem:[#allocation127_spill] sm:$0xff] %v14288_v46  ;;  %16106 = vst [vmem:[#allocation128_spill] sm:$0xff] %v14291_v13  ;;  %v14308_v19 = vmul.f32 0.044715, %v14275_v18  ;;  %v14311_v12 = vmul.f32 0.044715, %v14278_v44  ;;  %v5810_v41 = vmul.f32 %v5682_v2, %v14231_v52  ;;  %v14320_v15 = vadd.f32 %v5321_v62, %v13690_v37  ;;  %v5325_v33 = vpop.f32.mrf.mxu0 }
 0xacc   : > { %16107 = vst [vmem:[#allocation129_spill] sm:$0xff] %v14294_v50  ;;  %16108 = vst [vmem:[#allocation130_spill] sm:$0xff] %v14302_v39  ;;  %v9842_v27 = vpop.eup %9841  ;;  %v14315_v11 = vmul.f32 0.044715, %v14291_v13  ;;  %v5355_v23 = vmul.f32 0.5, %v16086_v30  ;;  %v5363_v16 = vmul.f32 0.5, %v16090_v17  ;;  %v6386_v0 = vmul.f32 %v6258_v9, %v16110_v35 }
 0xacd   : > { %16109 = vst [vmem:[#allocation131_spill] sm:$0xff] %v14320_v15  ;;  %v6259_v29 = vadd.f32 1.0, %v9842_v27  ;;  %v5883_v45 = vadd.f32 %v14037_v53, %v13923_v34  ;;  %v5891_v2 = vadd.f32 %v14059_v38, %v13969_v47  ;;  %v5812_v57 = vmul.f32 %v5684_v36, %v14240_v43 }
 0xace   : > { %v9844_v54 = vpop.eup %9843  ;;  %v6379_v30 = vmul.f32 %v6251_v24, %v5355_v23  ;;  %v5562_v17 = vmul.f32 0.044715, %v14302_v39  ;;  %v6378_v62 = vmul.f32 %v6250_v60, %v16111_v7  ;;  %v5357_v35 = vmul.f32 0.5, %v16094_v49  ;;  %v16112_v49 = vld [vmem:[#allocation106_spill] sm:$0xff] }
 0xacf   : > { %v9846_v5 = vpop.eup %9845  ;;  %v6387_v26 = vmul.f32 %v6259_v29, %v5363_v16  ;;  %v6253_v27 = vadd.f32 1.0, %v9844_v54  ;;  %v6011_v21 = vmul.f32 0.7978846, %v5883_v45  ;;  %v6019_v9 = vmul.f32 0.7978846, %v5891_v2  ;;  %v16113_v29 = vld [vmem:[#allocation95_spill] sm:$0xff] }
 0xad0   : > { %v5365_v53 = vmul.f32 0.5, %v16096_v1  ;;  %v6261_v50 = vadd.f32 1.0, %v9846_v5  ;;  %v5564_v38 = vmul.f32 0.044715, %v14320_v15  ;;  %v6506_v24 = vpack.c.bf16 %v6386_v0, %v6378_v62 }
 0xad1   : > { %v6507_v36 = vpack.c.bf16 %v6387_v26, %v6379_v30  ;;  %v14336_v23 = vadd.f32 %v5212_v61, %v13730_v20  ;;  %v5885_v7 = vadd.f32 %v14043_v6, %v13929_v48  ;;  %v14340_v60 = vpop.eup %9847  ;;  %v6381_v54 = vmul.f32 %v6253_v27, %v5357_v35  ;;  %v9987_v30 = vld [vmem:[%s15586_s11 + $0x370] ss:$8 sps:$4 sm:$0xff]  }
 0xad2   : > { %v6389_v16 = vmul.f32 %v6261_v50, %v5365_v53  ;;  %9855 = vtanh.f32 %v6011_v21  ;;  %v5893_v1 = vadd.f32 %v16113_v29, %v16112_v49  ;;  %v5690_v26 = vmul.f32 %v5562_v17, %v14302_v39  ;;  %v16117_v17 = vld [vmem:[#allocation92_spill] sm:$0xff]  ;;  %v16118_v27 = vld [vmem:[#allocation99_spill] sm:$0xff] }
 0xad3   : > { %v14344_v5 = vpop.eup %9849  ;;  %7604 = vmatprep.mubr.bf16.mxu1 %v6507_v36  ;;  %v14348_v0 = vadd.f32 %v5325_v33, %v13690_v37  ;;  %9857 = vtanh.f32 %v6019_v9  ;;  %v6013_v61 = vmul.f32 0.7978846, %v5885_v7  ;;  %v5938_v6 = vadd.f32 %v5810_v41, %v14231_v52  ;;  %v16116_v33 = vld [vmem:[#allocation113_spill] sm:$0xff]  ;;  %v16119_v41 = vld [vmem:[#allocation112_spill] sm:$0xff] }
 0xad4   : > { %16114 = vst [vmem:[#allocation101_spill] sm:$0xff] %v14344_v5  ;;  %v14353_v45 = vadd.f32 %v14260_v58, %v13831_v63  ;;  %v6509_v21 = vpack.c.bf16 %v6389_v16, %v6381_v54  ;;  %7605 = vmatmul.mubr.bf16.vlgmr.msra.gmra.mxu1 %v6506_v24  ;;  %v6021_v50 = vmul.f32 0.7978846, %v5893_v1  ;;  %v5940_v2 = vadd.f32 %v5812_v57, %v14240_v43  ;;  %v9988_v57 = vld [vmem:[%s15586_s11 + $0x364] ss:$8 sps:$4 sm:$0xff]   ;;  %v5214_v24 = vpop.f32.mrf.mxu1  ;;  %v16122_v16 = vld [vmem:[#allocation98_spill] sm:$0xff] }
 0xad5   : > { %16115 = vst [vmem:[#allocation124_spill] sm:$0xff] %v14348_v0  ;;  %9024 = vmatpush1.bf16.msra.mxu1 %v9987_v30  ;;  %9859 = vtanh.f32 %v6013_v61  ;;  %v5882_v62 = vadd.f32 %v16117_v17, %v16116_v33  ;;  %v5890_v9 = vadd.f32 %v16119_v41, %v16118_v27  ;;  %v14363_v35 = vpop.eup %9851  ;;  %v6060_v58 = vmul.f32 0.7978846, %v14297_v40  ;;  %v16121_v54 = vld [vmem:[#allocation100_spill] sm:$0xff] }
 0xad6   : > { %16120 = vst [vmem:[#allocation106_spill] sm:$0xff] %v14363_v35  ;;  %7717 = vmatprep.mubr.bf16.mxu0 %v6509_v21  ;;  %v5692_v53 = vmul.f32 %v5564_v38, %v14320_v15  ;;  %9009 = vmatprep.subr.bf16.mxu1 %v9988_v57  ;;  %v5570_v36 = vmul.f32 0.044715, %v14336_v23  ;;  %9861 = vtanh.f32 %v6021_v50  ;;  %v5818_v7 = vmul.f32 %v5690_v26, %v14302_v39 }
 0xad7   : > { %v16123_v29 = vpack.c.bf16 %v16121_v54, %v16122_v16  ;;  %v5572_v40 = vmul.f32 0.044715, %v14348_v0  ;;  %v6010_v1 = vmul.f32 0.7978846, %v5882_v62  ;;  %v6018_v61 = vmul.f32 0.7978846, %v5890_v9  ;;  %v14376_v38 = vpop.eup %9853 }
 0xad8   : > { %16124 = vst [vmem:[#allocation95_spill] sm:$0xff] %v14376_v38  ;;  %v5675_v21 = vmul.f32 %v14308_v19, %v14275_v18  ;;  %v5677_v30 = vmul.f32 %v14311_v12, %v14278_v44  ;;  %v6066_v17 = vmul.f32 0.7978846, %v5938_v6  ;;  %v5683_v26 = vmul.f32 %v14315_v11, %v14291_v13  ;;  %v9989_v62 = vld [vmem:[%s15586_s11 + $0x360] ss:$8 sps:$4 sm:$0xff]   ;;  %v5327_v19 = vpop.f32.mrf.mxu0  ;;  %v16134_v38 = vld [vmem:[#allocation118_spill] sm:$0xff] }
 0xad9   : > { %7718 = vmatmul.mubr.bf16.vlgmr.msra.gmra.mxu0 %v16123_v29  ;;  %v6068_v50 = vmul.f32 0.7978846, %v5940_v2  ;;  %v5557_v41 = vmul.f32 0.044715, %v14353_v45  ;;  %v14387_v57 = vadd.f32 %v14305_v59, %v13803_v28  ;;  %9025 = vmatpush1.bf16.msra.mxu1 %v9989_v62  ;;  %9863 = vtanh.f32 %v6010_v1  ;;  %v9990_v59 = vld [vmem:[%s15586_s11 + $0x354] ss:$8 sps:$4 sm:$0xff]   ;;  %v5218_v2 = vpop.f32.mrf.mxu1 }
 0xada   : > { %v5820_v12 = vmul.f32 %v5692_v53, %v14320_v15  ;;  %v14395_v6 = vadd.f32 %v14322_v32, %v13831_v63  ;;  %v14398_v11 = vadd.f32 %v5214_v24, %v13803_v28  ;;  %9010 = vmatprep.subr.bf16.mxu1 %v9990_v59  ;;  %9865 = vtanh.f32 %v6018_v61 }
 0xadb   : > { %9867 = vtanh.f32 %v6060_v58  ;;  %v5946_v9 = vadd.f32 %v5818_v7, %v14302_v39  ;;  %v5698_v54 = vmul.f32 %v5570_v36, %v14336_v23  ;;  %v5700_v53 = vmul.f32 %v5572_v40, %v14348_v0  ;;  %v5331_v7 = vpop.f32.mrf.mxu0  ;;  %v9991_v40 = vld [vmem:[%s15586_s11 + $0x350] ss:$8 sps:$4 sm:$0xff]  }
 0xadc   : > { %16125 = vst [vmem:[#allocation113_spill] sm:$0xff] %v14395_v6  ;;  %v14407_v32 = vmul.f32 %v5675_v21, %v14275_v18  ;;  %v14410_v24 = vmul.f32 %v5677_v30, %v14278_v44  ;;  %9869 = vtanh.f32 %v6066_v17  ;;  %v14413_v16 = vmul.f32 %v5683_v26, %v14291_v13  ;;  %v14439_v17 = vpop.f32.mrf.mxu1  ;;  %v9992_v26 = vld [vmem:[%s15586_s11 + $0x344] ss:$8 sps:$4 sm:$0xff]   ;;  %v16131_v39 = vld [vmem:[#allocation122_spill] sm:$0xff]  ;;  %v16135_v13 = vld [vmem:[#allocation115_spill] sm:$0xff] }
 0xadd   : > { %9871 = vtanh.f32 %v6068_v50  ;;  %v14416_v29 = vmul.f32 %v5557_v41, %v14353_v45  ;;  %v14419_v58 = vmul.f32 0.044715, %v14387_v57  ;;  %v14422_v36 = vadd.f32 %v5218_v2, %v13730_v20  ;;  %9026 = vmatpush1.bf16.msra.mxu1 %v9991_v40 }
 0xade   : > { %16126 = vst [vmem:[#allocation92_spill] sm:$0xff] %v14407_v32  ;;  %16127 = vst [vmem:[#allocation99_spill] sm:$0xff] %v14410_v24  ;;  %v14428_v1 = vadd.f32 %v5820_v12, %v14320_v15  ;;  %v14431_v61 = vmul.f32 0.044715, %v14395_v6  ;;  %v14434_v21 = vmul.f32 0.044715, %v14398_v11  ;;  %v14437_v30 = vadd.f32 %v5327_v19, %v13831_v63  ;;  %9011 = vmatprep.subr.bf16.mxu1 %v9992_v26  ;;  %v5222_v44 = vpop.f32.mrf.mxu1 }
 0xadf   : > { %16128 = vst [vmem:[#allocation112_spill] sm:$0xff] %v14413_v16  ;;  %16129 = vst [vmem:[#allocation100_spill] sm:$0xff] %v14422_v36  ;;  %v9856_v50 = vpop.eup %9855  ;;  %v14444_v41 = vmul.f32 0.7978846, %v5946_v9  ;;  %v14447_v62 = vmul.f32 %v5698_v54, %v14336_v23  ;;  %v14450_v12 = vmul.f32 %v5700_v53, %v14348_v0  ;;  %v5371_v59 = vmul.f32 0.5, %v13923_v34  ;;  %v14461_v53 = vpop.f32.mrf.mxu0 }
 0xae0   : > { %v9858_v19 = vpop.eup %9857  ;;  %v5379_v2 = vmul.f32 0.5, %v13969_v47  ;;  %v6267_v40 = vadd.f32 1.0, %v9856_v50  ;;  %v5373_v15 = vmul.f32 0.5, %v13929_v48  ;;  %v14456_v43 = vadd.f32 %v5331_v7, %v13690_v37  ;;  %v9993_v34 = vld [vmem:[%s15586_s11 + $0x340] ss:$8 sps:$4 sm:$0xff]   ;;  %v16132_v50 = vld [vmem:[#allocation114_spill] sm:$0xff] }
 0xae1   : > { %v6275_v26 = vadd.f32 1.0, %v9858_v19  ;;  %v5381_v9 = vmul.f32 0.5, %v16112_v49  ;;  %v5578_v54 = vmul.f32 0.044715, %v14422_v36  ;;  %v6276_v24 = vadd.f32 1.0, %v16131_v39  ;;  %9027 = vmatpush1.bf16.msra.mxu1 %v9993_v34  ;;  %v16133_v49 = vld [vmem:[#allocation123_spill] sm:$0xff] }
 0xae2   : > { %16130 = vst [vmem:[#allocation98_spill] sm:$0xff] %v14456_v43  ;;  %v9860_v47 = vpop.eup %9859  ;;  %v5370_v48 = vmul.f32 0.5, %v16116_v33  ;;  %v5378_v7 = vmul.f32 0.5, %v16118_v27  ;;  %v5380_v19 = vmul.f32 0.5, %v16132_v50  ;;  %v5899_v52 = vadd.f32 %v16134_v38, %v16133_v49  ;;  %v9994_v39 = vld [vmem:[%s15586_s11 + $0x334] ss:$8 sps:$4 sm:$0xff]  }
 0xae3   : > { %9012 = vmatprep.subr.bf16.mxu1 %v9994_v39  ;;  %v9862_v5 = vpop.eup %9861  ;;  %v6395_v35 = vmul.f32 %v6267_v40, %v5371_v59  ;;  %v6403_v16 = vmul.f32 %v6275_v26, %v5379_v2  ;;  %v6269_v34 = vadd.f32 1.0, %v9860_v47  ;;  %v6268_v32 = vadd.f32 1.0, %v16135_v13  ;;  %v14480_v39 = vpop.f32.mrf.mxu0  ;;  %v9995_v59 = vld [vmem:[%s15586_s11 + $0x330] ss:$8 sps:$4 sm:$0xff]   ;;  %v16138_v26 = vld [vmem:[#allocation105_spill] sm:$0xff] }
 0xae4   : > { %v6277_v33 = vadd.f32 1.0, %v9862_v5  ;;  %v5580_v27 = vmul.f32 0.044715, %v14456_v43  ;;  %v5907_v50 = vadd.f32 %v14248_v55, %v14111_v3  ;;  %v6027_v18 = vmul.f32 0.7978846, %v5899_v52  ;;  %v14485_v40 = vpop.f32.mrf.mxu1 }
 0xae5   : > { %v6515_v25 = vpack.c.bf16 %v6403_v16, %v6395_v35  ;;  %v5706_v38 = vmul.f32 %v5578_v54, %v14422_v36  ;;  %v5372_v46 = vmul.f32 0.5, %v16136_v31  ;;  %v6404_v56 = vmul.f32 %v6276_v24, %v5380_v19  ;;  %9028 = vmatpush1.bf16.msra.mxu1 %v9995_v59  ;;  %v9996_v52 = vld [vmem:[%s15586_s11 + $0x324] ss:$8 sps:$4 sm:$0xff]  }
 0xae6   : > { %v9864_v13 = vpop.eup %9863  ;;  %v6397_v5 = vmul.f32 %v6269_v34, %v5373_v15  ;;  %v6405_v2 = vmul.f32 %v6277_v33, %v5381_v9  ;;  %v6035_v55 = vmul.f32 0.7978846, %v5907_v50  ;;  %9873 = vtanh.f32 %v6027_v18  ;;  %9013 = vmatprep.subr.bf16.mxu1 %v9996_v52  ;;  %v16139_v54 = vld [vmem:[#allocation96_spill] sm:$0xff] }
 0xae7   : > { %v9866_v31 = vpop.eup %9865  ;;  %7614 = vmatprep.mubr.bf16.mxu1 %v6515_v25  ;;  %v6266_v35 = vadd.f32 1.0, %v9864_v13  ;;  %v6396_v24 = vmul.f32 %v6268_v32, %v5372_v46  ;;  %v14491_v16 = vadd.f32 %v5222_v44, %v13730_v20  ;;  %v5901_v15 = vadd.f32 %v16139_v54, %v16138_v26  ;;  %v14503_v44 = vpop.f32.mrf.mxu0  ;;  %v9997_v50 = vld [vmem:[%s15586_s11 + $0x320] ss:$8 sps:$4 sm:$0xff]  }
 0xae8   : > { %v14495_v9 = vpop.eup %9867  ;;  %v6517_v47 = vpack.c.bf16 %v6405_v2, %v6397_v5  ;;  %v6274_v19 = vadd.f32 1.0, %v9866_v31  ;;  %9875 = vtanh.f32 %v6035_v55  ;;  %v5909_v18 = vadd.f32 %v14254_v10, %v14115_v51  ;;  %v14512_v55 = vpop.f32.mrf.mxu1  ;;  %v16142_v31 = vld [vmem:[#allocation91_spill] sm:$0xff] }
 0xae9   : > { %16137 = vst [vmem:[#allocation122_spill] sm:$0xff] %v14491_v16  ;;  %16140 = vst [vmem:[#allocation114_spill] sm:$0xff] %v14495_v9  ;;  %v14499_v34 = vpop.eup %9869  ;;  %v5573_v25 = vmul.f32 0.044715, %v14437_v30  ;;  %v5708_v46 = vmul.f32 %v5580_v27, %v14456_v43  ;;  %v6516_v32 = vpack.c.bf16 %v6404_v56, %v6396_v24  ;;  %v6029_v33 = vmul.f32 0.7978846, %v5901_v15  ;;  %9029 = vmatpush1.bf16.msra.mxu1 %v9997_v50 }
 0xaea   : > { %v14508_v59 = vpop.eup %9871  ;;  %v5954_v10 = vadd.f32 %v14447_v62, %v14336_v23  ;;  %7727 = vmatprep.mubr.bf16.mxu0 %v6517_v47  ;;  %v6394_v13 = vmul.f32 %v6266_v35, %v5370_v48  ;;  %v6402_v5 = vmul.f32 %v6274_v19, %v5378_v7  ;;  %v6037_v2 = vmul.f32 0.7978846, %v5909_v18  ;;  %v9998_v56 = vld [vmem:[%s15586_s11 + $0x314] ss:$8 sps:$4 sm:$0xff]   ;;  %v16143_v62 = vld [vmem:[#allocation116_spill] sm:$0xff]  ;;  %v14534_v47 = vpop.f32.mrf.mxu0 }
 0xaeb   : > { %16141 = vst [vmem:[#allocation123_spill] sm:$0xff] %v14508_v59  ;;  %9014 = vmatprep.subr.bf16.mxu1 %v9998_v56  ;;  %v5956_v27 = vadd.f32 %v14450_v12, %v14348_v0  ;;  %7728 = vmatmul.mubr.bf16.gmra.mxu0 %v6516_v32  ;;  %v5586_v52 = vmul.f32 0.044715, %v14491_v16  ;;  %9877 = vtanh.f32 %v6029_v33  ;;  %v5898_v24 = vadd.f32 %v16143_v62, %v16142_v31  ;;  %v10002_v62 = vld [vmem:[%s15586_s11 + $0x3f4] ss:$8 sps:$4 sm:$0xff]  }
 0xaec   : > { %v5834_v48 = vmul.f32 %v5706_v38, %v14422_v36  ;;  %v6514_v7 = vpack.c.bf16 %v6402_v5, %v6394_v13  ;;  %9879 = vtanh.f32 %v6037_v2  ;;  %v5906_v35 = vadd.f32 %v14244_v4, %v14079_v42  ;;  %v9999_v38 = vld [vmem:[%s15586_s11 + $0x310] ss:$8 sps:$4 sm:$0xff]  }
 0xaed   : > { %v5836_v54 = vmul.f32 %v5708_v46, %v14456_v43  ;;  %v14528_v15 = vadd.f32 %v14439_v17, %v13803_v28  ;;  %v14532_v12 = vadd.f32 %v14461_v53, %v13831_v63  ;;  %v6026_v19 = vmul.f32 0.7978846, %v5898_v24  ;;  %9030 = vmatpush1.bf16.msra.mxu1 %v9999_v38  ;;  %v14543_v46 = vpop.f32.mrf.mxu1  ;;  %v10000_v53 = vld [vmem:[%s15586_s11 + $0x304] ss:$8 sps:$4 sm:$0xff]  }
 0xaee   : > { %9881 = vtanh.f32 %v14444_v41  ;;  %v6076_v4 = vmul.f32 0.7978846, %v14428_v1  ;;  %v5691_v17 = vmul.f32 %v14419_v58, %v14387_v57  ;;  %7615 = vmatmul.mubr.bf16.gmra.mxu1 %v6514_v7  ;;  %v6034_v18 = vmul.f32 0.7978846, %v5906_v35  ;;  %9015 = vmatprep.subr.bf16.mxu1 %v10000_v53  ;;  %v10003_v53 = vld [vmem:[%s15586_s11 + $0x3f0] ss:$8 sps:$4 sm:$0xff]  }
 0xaef   : > { %v5693_v32 = vmul.f32 %v14431_v61, %v14395_v6  ;;  %v6082_v33 = vmul.f32 0.7978846, %v5954_v10  ;;  %v5714_v41 = vmul.f32 %v5586_v52, %v14491_v16  ;;  %9883 = vtanh.f32 %v6026_v19  ;;  %v14558_v61 = vpop.f32.mrf.mxu0  ;;  %v10001_v10 = vld [vmem:[%s15586_s11 + $0x300] ss:$8 sps:$4 sm:$0xff]   ;;  %v14574_v52 = vpop.f32.mrf.mxu1 }
 0xaf0   : > { %v6084_v1 = vmul.f32 0.7978846, %v5956_v27  ;;  %v5699_v58 = vmul.f32 %v14434_v21, %v14398_v11  ;;  %v5701_v50 = vmul.f32 %v5573_v25, %v14437_v30  ;;  %9885 = vtanh.f32 %v6034_v18 }
 0xaf1   : > { %v5962_v13 = vadd.f32 %v5834_v48, %v14422_v36  ;;  %v5964_v5 = vadd.f32 %v5836_v54, %v14456_v43  ;;  %v5579_v2 = vmul.f32 0.044715, %v14528_v15  ;;  %v5581_v56 = vmul.f32 0.044715, %v14532_v12  ;;  %9031 = vmatpush1.bf16.msra.mxu1 %v10001_v10 }
 0xaf2   : > { %v14565_v21 = vmul.f32 %v14416_v29, %v14353_v45  ;;  %9887 = vtanh.f32 %v6076_v4  ;;  %v14568_v25 = vmul.f32 %v5691_v17, %v14387_v57  ;;  %v14572_v27 = vadd.f32 %v14480_v39, %v13690_v37  ;;  %9016 = vmatprep.subr.bf16.mxu1 %v10002_v62 }
 0xaf3   : > { %v9874_v24 = vpop.eup %9873  ;;  %v14580_v48 = vmul.f32 %v5693_v32, %v14395_v6  ;;  %9889 = vtanh.f32 %v6082_v33  ;;  %v5842_v29 = vmul.f32 %v5714_v41, %v14491_v16  ;;  %v14585_v7 = vadd.f32 %v14485_v40, %v13803_v28  ;;  %v14603_v40 = vpop.f32.mrf.mxu0  ;;  %v16153_v6 = vld [vmem:[#allocation108_spill] sm:$0xff] }
 0xaf4   : > { %9891 = vtanh.f32 %v6084_v1  ;;  %v14588_v39 = vmul.f32 %v5699_v58, %v14398_v11  ;;  %v14591_v35 = vmul.f32 %v5701_v50, %v14437_v30  ;;  %v6283_v54 = vadd.f32 1.0, %v9874_v24  ;;  %v14613_v58 = vpop.f32.mrf.mxu1  ;;  %v10004_v50 = vld [vmem:[%s15586_s11 + $0x3e4] ss:$8 sps:$4 sm:$0xff]  }
 0xaf5   : > { %16144 = vst [vmem:[#allocation118_spill] sm:$0xff] %v14580_v48  ;;  %v9876_v19 = vpop.eup %9875  ;;  %v14593_v38 = vmul.f32 0.7978846, %v5962_v13  ;;  %v14595_v4 = vmul.f32 0.7978846, %v5964_v5  ;;  %v14598_v17 = vmul.f32 %v5579_v2, %v14528_v15  ;;  %v14601_v18 = vmul.f32 %v5581_v56, %v14532_v12  ;;  %9032 = vmatpush2.bf16.msra.mxu1 %v10003_v53  ;;  %v14640_v0 = vpop.f32.mrf.mxu0 }
 0xaf6   : > { %v14609_v32 = vmul.f32 0.044715, %v14572_v27  ;;  %v5387_v33 = vmul.f32 0.5, %v16133_v49  ;;  %v5395_v41 = vmul.f32 0.5, %v14111_v3  ;;  %v6291_v1 = vadd.f32 1.0, %v9876_v19  ;;  %9017 = vmatprep.subr.bf16.mxu1 %v10004_v50  ;;  %v14632_v19 = vpop.f32.mrf.mxu1 }
 0xaf7   : > { %16145 = vst [vmem:[#allocation115_spill] sm:$0xff] %v14595_v4  ;;  %v14619_v13 = vadd.f32 %v5842_v29, %v14491_v16  ;;  %v14622_v5 = vmul.f32 0.044715, %v14585_v7  ;;  %v14626_v2 = vadd.f32 %v14503_v44, %v13831_v63  ;;  %v6292_v3 = vadd.f32 1.0, %v14340_v60  ;;  %16146 = vst [vmem:[#allocation117_spill] sm:$0xff] %v14632_v19  ;;  %v16147_v44 = vld [vmem:[#allocation94_spill] sm:$0xff] }
 0xaf8   : > { %v9878_v49 = vpop.eup %9877  ;;  %v6411_v56 = vmul.f32 %v6283_v54, %v5387_v33  ;;  %v6419_v10 = vmul.f32 %v6291_v1, %v5395_v41  ;;  %v5389_v62 = vmul.f32 0.5, %v16138_v26  ;;  %v5915_v24 = vadd.f32 %v14270_v14, %v14154_v22  ;;  %v10005_v26 = vld [vmem:[%s15586_s11 + $0x3e0] ss:$8 sps:$4 sm:$0xff]   ;;  %v16149_v1 = vld [vmem:[#allocation127_spill] sm:$0xff]  ;;  %v16150_v19 = vld [vmem:[#allocation126_spill] sm:$0xff]  ;;  %v14658_v36 = vpop.f32.mrf.mxu1 }
 0xaf9   : > { %v9880_v29 = vpop.eup %9879  ;;  %v6285_v53 = vadd.f32 1.0, %v9878_v49  ;;  %v14636_v50 = vadd.f32 %v14512_v55, %v13730_v20  ;;  %v5396_v43 = vmul.f32 0.5, %v16147_v44  ;;  %v6284_v60 = vadd.f32 1.0, %v14228_v8  ;;  %9033 = vmatpush2.bf16.msra.mxu1 %v10005_v26  ;;  %v16148_v41 = vld [vmem:[#allocation121_spill] sm:$0xff]  ;;  %v10006_v55 = vld [vmem:[%s15586_s11 + $0x3d4] ss:$8 sps:$4 sm:$0xff]  }
 0xafa   : > { %v6523_v14 = vpack.c.bf16 %v6419_v10, %v6411_v56  ;;  %v5397_v54 = vmul.f32 0.5, %v14115_v51  ;;  %v6293_v33 = vadd.f32 1.0, %v9880_v29  ;;  %v5923_v49 = vadd.f32 %v16149_v1, %v16148_v41  ;;  %9018 = vmatprep.subr.bf16.mxu1 %v10006_v55  ;;  %v14655_v56 = vpop.f32.mrf.mxu0  ;;  %16152 = vst [vmem:[#allocation96_spill] sm:$0xff] %v14658_v36 }
 0xafb   : > { %v14651_v8 = vpop.eup %9881  ;;  %v5386_v44 = vmul.f32 0.5, %v16142_v31  ;;  %v5388_v4 = vmul.f32 0.5, %v16150_v19  ;;  %v6420_v9 = vmul.f32 %v6292_v3, %v5396_v43  ;;  %v6043_v26 = vmul.f32 0.7978846, %v5915_v24  ;;  %16151 = vst [vmem:[#allocation105_spill] sm:$0xff] %v14655_v56  ;;  %v16154_v19 = vld [vmem:[#allocation90_spill] sm:$0xff] }
 0xafc   : > { %v9884_v51 = vpop.eup %9883  ;;  %7624 = vmatprep.mubr.bf16.mxu1 %v6523_v14  ;;  %v6413_v10 = vmul.f32 %v6285_v53, %v5389_v62  ;;  %v6421_v29 = vmul.f32 %v6293_v33, %v5397_v54  ;;  %v5394_v1 = vmul.f32 0.5, %v14079_v42  ;;  %v6051_v59 = vmul.f32 0.7978846, %v5923_v49  ;;  %v10007_v3 = vld [vmem:[%s15586_s11 + $0x3d0] ss:$8 sps:$4 sm:$0xff]   ;;  %v16156_v14 = vld [vmem:[#allocation129_spill] sm:$0xff] }
 0xafd   : > { %v9886_v55 = vpop.eup %9885  ;;  %v5594_v16 = vmul.f32 0.044715, %v14636_v50  ;;  %v6282_v48 = vadd.f32 1.0, %v9884_v51  ;;  %v6412_v31 = vmul.f32 %v6284_v60, %v5388_v4  ;;  %v5917_v43 = vadd.f32 %v16154_v19, %v16153_v6  ;;  %9034 = vmatpush2.bf16.msra.mxu1 %v10007_v3  ;;  %v16155_v53 = vld [vmem:[#allocation110_spill] sm:$0xff]  ;;  %v10008_v4 = vld [vmem:[%s15586_s11 + $0x3c4] ss:$8 sps:$4 sm:$0xff]   ;;  %v14685_v3 = vpop.f32.mrf.mxu1 }
 0xafe   : > { %v6525_v62 = vpack.c.bf16 %v6421_v29, %v6413_v10  ;;  %v6290_v24 = vadd.f32 1.0, %v9886_v55  ;;  %v14668_v42 = vadd.f32 %v14543_v46, %v13803_v28  ;;  %v5925_v54 = vadd.f32 %v16156_v14, %v16155_v53  ;;  %9019 = vmatprep.subr.bf16.mxu1 %v10008_v4  ;;  %v14681_v10 = vpop.f32.mrf.mxu0  ;;  %16159 = vst [vmem:[#allocation94_spill] sm:$0xff] %v14685_v3  ;;  %v16176_v56 = vld [vmem:[#allocation101_spill] sm:$0xff] }
 0xaff   : > { %v14675_v60 = vpop.eup %9887  ;;  %v6524_v33 = vpack.c.bf16 %v6420_v9, %v6412_v31  ;;  %v14679_v49 = vadd.f32 %v14574_v52, %v13730_v20  ;;  %9893 = vtanh.f32 %v6043_v26  ;;  %v6045_v51 = vmul.f32 0.7978846, %v5917_v43  ;;  %16158 = vst [vmem:[#allocation116_spill] sm:$0xff] %v14681_v10  ;;  %v16161_v20 = vld [vmem:[#allocation103_spill] sm:$0xff]  ;;  %v16162_v52 = vld [vmem:[#allocation102_spill] sm:$0xff]  ;;  %v16163_v31 = vld [vmem:[#allocation104_spill] sm:$0xff] }
 0xb00   : > { %16157 = vst [vmem:[#allocation91_spill] sm:$0xff] %v14675_v60  ;;  %v14683_v46 = vpop.eup %9889  ;;  %7737 = vmatprep.mubr.bf16.mxu0 %v6525_v62  ;;  %v6410_v29 = vmul.f32 %v6282_v48, %v5386_v44  ;;  %v6418_v55 = vmul.f32 %v6290_v24, %v5394_v1  ;;  %9895 = vtanh.f32 %v6051_v59  ;;  %v6053_v19 = vmul.f32 0.7978846, %v5925_v54  ;;  %v16164_v43 = vld [vmem:[#allocation97_spill] sm:$0xff] }
 0xb01   : > { %v14687_v14 = vpop.eup %9891  ;;  %v6098_v9 = vmul.f32 0.7978846, %v14619_v13  ;;  %7738 = vmatmul.mubr.bf16.gmra.mxu0 %v6524_v33  ;;  %9897 = vtanh.f32 %v6045_v51  ;;  %v5914_v26 = vadd.f32 %v16162_v52, %v16161_v20  ;;  %v5922_v4 = vadd.f32 %v16164_v43, %v16163_v31  ;;  %v10009_v48 = vld [vmem:[%s15586_s11 + $0x3c0] ss:$8 sps:$4 sm:$0xff]   ;;  %v10010_v13 = vld [vmem:[%s15586_s11 + $0x3b4] ss:$8 sps:$4 sm:$0xff]   ;;  %v14707_v51 = vpop.f32.mrf.mxu0 }
 0xb02   : > { %16160 = vst [vmem:[#allocation121_spill] sm:$0xff] %v14687_v14  ;;  %9035 = vmatpush2.bf16.msra.mxu1 %v10009_v48  ;;  %v6522_v59 = vpack.c.bf16 %v6418_v55, %v6410_v29  ;;  %v5595_v44 = vmul.f32 0.044715, %v14668_v42  ;;  %v14700_v1 = vadd.f32 %v14613_v58, %v13803_v28  ;;  %9899 = vtanh.f32 %v6053_v19  ;;  %16165 = vst [vmem:[#allocation127_spill] sm:$0xff] %v14707_v51  ;;  %v16166_v58 = vld [vmem:[#allocation109_spill] sm:$0xff]  ;;  %v16167_v29 = vld [vmem:[#allocation92_spill] sm:$0xff]  ;;  %v14716_v48 = vpop.f32.mrf.mxu1 }
 0xb03   : > { %9020 = vmatprep.subr.bf16.mxu1 %v10010_v13  ;;  %v5722_v62 = vmul.f32 %v5594_v16, %v14636_v50  ;;  %v5602_v24 = vmul.f32 0.044715, %v14679_v49  ;;  %v6042_v54 = vmul.f32 0.7978846, %v5914_v26  ;;  %v6050_v33 = vmul.f32 0.7978846, %v5922_v4 }
 0xb04   : > { %9901 = vtanh.f32 %v14593_v38  ;;  %v5715_v28 = vmul.f32 %v14622_v5, %v14585_v7  ;;  %7625 = vmatmul.mubr.bf16.gmra.mxu1 %v6522_v59  ;;  %v5931_v55 = vadd.f32 %v16167_v29, %v16166_v58  ;;  %v16168_v19 = vld [vmem:[#allocation128_spill] sm:$0xff]  ;;  %16170 = vst [vmem:[#allocation126_spill] sm:$0xff] %v14716_v48  ;;  %v5835_v16 = vmul.f32 %v14598_v17, %v14528_v15  ;;  %v10011_v5 = vld [vmem:[%s15586_s11 + $0x3b0] ss:$8 sps:$4 sm:$0xff]   ;;  %v16175_v10 = vld [vmem:[#allocation93_spill] sm:$0xff] }
 0xb05   : > { %v16169_v52 = vld [vmem:[#allocation112_spill] sm:$0xff]  ;;  %v5716_v26 = vmul.f32 %v14609_v32, %v14572_v27  ;;  %v5589_v38 = vmul.f32 0.044715, %v14626_v2  ;;  %9903 = vtanh.f32 %v6042_v54  ;;  %v5603_v4 = vmul.f32 0.044715, %v14700_v1  ;;  %v16174_v51 = vld [vmem:[#allocation106_spill] sm:$0xff] }
 0xb06   : > { %v5939_v43 = vadd.f32 %v16169_v52, %v16168_v19  ;;  %9036 = vmatpush2.bf16.msra.mxu1 %v10011_v5  ;;  %9905 = vtanh.f32 %v6050_v33  ;;  %v6059_v59 = vmul.f32 0.7978846, %v5931_v55  ;;  %v10012_v17 = vld [vmem:[%s15586_s11 + $0x3a4] ss:$8 sps:$4 sm:$0xff]   ;;  %v5850_v32 = vmul.f32 %v5722_v62, %v14636_v50  ;;  %v14733_v52 = vpop.f32.mrf.mxu0 }
 0xb07   : > { %9021 = vmatprep.subr.bf16.mxu1 %v10012_v17  ;;  %9907 = vtanh.f32 %v6098_v9  ;;  %v5723_v54 = vmul.f32 %v5595_v44, %v14668_v42  ;;  %v5730_v29 = vmul.f32 %v5602_v24, %v14679_v49  ;;  %16171 = vst [vmem:[#allocation108_spill] sm:$0xff] %v14733_v52  ;;  %v5843_v5 = vmul.f32 %v5715_v28, %v14585_v7 }
 0xb08   : > { %v6067_v13 = vmul.f32 0.7978846, %v5939_v43  ;;  %9909 = vtanh.f32 %v6059_v59  ;;  %v5947_v33 = vadd.f32 %v14568_v25, %v14387_v57  ;;  %v5955_v55 = vadd.f32 %v14588_v39, %v14398_v11  ;;  %v14740_v43 = vpop.f32.mrf.mxu1  ;;  %v10013_v25 = vld [vmem:[%s15586_s11 + $0x3a0] ss:$8 sps:$4 sm:$0xff]  }
 0xb09   : > { %v14743_v9 = vmul.f32 %v5716_v26, %v14572_v27  ;;  %v14746_v44 = vmul.f32 %v5589_v38, %v14626_v2  ;;  %v14750_v62 = vadd.f32 %v14534_v47, %v13690_v37  ;;  %v14757_v39 = vadd.f32 %v14558_v61, %v13831_v63  ;;  %v10014_v38 = vld [vmem:[%s15586_s11 + $0x394] ss:$8 sps:$4 sm:$0xff]  }
 0xb0a   : > { %9911 = vtanh.f32 %v6067_v13  ;;  %9037 = vmatpush2.bf16.msra.mxu1 %v10013_v25  ;;  %v5731_v24 = vmul.f32 %v5603_v4, %v14700_v1  ;;  %v6075_v28 = vmul.f32 0.7978846, %v5947_v33  ;;  %v6083_v26 = vmul.f32 0.7978846, %v5955_v55  ;;  %v14767_v25 = vpop.f32.mrf.mxu0  ;;  %v14772_v52 = vpop.f32.mrf.mxu1 }
 0xb0b   : > { %9022 = vmatprep.subr.bf16.mxu1 %v10014_v38  ;;  %v5978_v47 = vadd.f32 %v5850_v32, %v14636_v50  ;;  %v5851_v59 = vmul.f32 %v5723_v54, %v14668_v42  ;;  %v5858_v13 = vmul.f32 %v5730_v29, %v14679_v49  ;;  %v5963_v17 = vadd.f32 %v5835_v16, %v14528_v15  ;;  %v10015_v16 = vld [vmem:[%s15586_s11 + $0x390] ss:$8 sps:$4 sm:$0xff]  }
 0xb0c   : > { %16172 = vst [vmem:[#allocation90_spill] sm:$0xff] %v14767_v25  ;;  %v9894_v61 = vpop.eup %9893  ;;  %v5403_v4 = vmul.f32 0.5, %v14154_v22  ;;  %v5411_v33 = vmul.f32 0.5, %v16148_v41  ;;  %9913 = vtanh.f32 %v6075_v28  ;;  %v5971_v55 = vadd.f32 %v5843_v5, %v14585_v7  ;;  %16173 = vst [vmem:[#allocation110_spill] sm:$0xff] %v14772_v52  ;;  %v14786_v36 = vpop.f32.mrf.mxu0 }
 0xb0d   : > { %v9896_v38 = vpop.eup %9895  ;;  %v6299_v32 = vadd.f32 1.0, %v9894_v61  ;;  %v6308_v54 = vadd.f32 1.0, %v16174_v51  ;;  %9915 = vtanh.f32 %v6083_v26  ;;  %v6091_v29 = vmul.f32 0.7978846, %v5963_v17  ;;  %v10016_v61 = vld [vmem:[%s15586_s11 + $0x384] ss:$8 sps:$4 sm:$0xff]  }
 0xb0e   : > { %9038 = vmatpush2.bf16.msra.mxu1 %v10015_v16  ;;  %v9898_v48 = vpop.eup %9897  ;;  %v5859_v22 = vmul.f32 %v5731_v24, %v14700_v1  ;;  %v6307_v41 = vadd.f32 1.0, %v9896_v38  ;;  %v5405_v28 = vmul.f32 0.5, %v16153_v6  ;;  %v6099_v5 = vmul.f32 0.7978846, %v5971_v55  ;;  %v14788_v6 = vpop.f32.mrf.mxu1 }
 0xb0f   : > { %9023 = vmatprep.subr.bf16.mxu1 %v10016_v61  ;;  %v9900_v51 = vpop.eup %9899  ;;  %v5413_v26 = vmul.f32 0.5, %v16155_v53  ;;  %v6301_v17 = vadd.f32 1.0, %v9898_v48  ;;  %v5412_v3 = vmul.f32 0.5, %v16175_v10  ;;  %v6300_v16 = vadd.f32 1.0, %v16176_v56  ;;  %v16177_v61 = vld [vmem:[#allocation119_spill] sm:$0xff] }
 0xb10   : > { %v6427_v24 = vmul.f32 %v6299_v32, %v5403_v4  ;;  %v6435_v38 = vmul.f32 %v6307_v41, %v5411_v33  ;;  %v6309_v60 = vadd.f32 1.0, %v9900_v51  ;;  %9917 = vtanh.f32 %v6099_v5  ;;  %v10017_v53 = vld [vmem:[%s15586_s11 + $0x380] ss:$8 sps:$4 sm:$0xff]  }
 0xb11   : > { %v14790_v55 = vpop.eup %9901  ;;  %v6106_v14 = vmul.f32 0.7978846, %v5978_v47  ;;  %v5404_v25 = vmul.f32 0.5, %v16177_v61  ;;  %v6436_v52 = vmul.f32 %v6308_v54, %v5412_v3  ;;  %9919 = vtanh.f32 %v6091_v29  ;;  %v14799_v3 = vpop.f32.mrf.mxu0 }
 0xb12   : > { %9039 = vmatpush2.bf16.msra.mxu1 %v10017_v53  ;;  %v9904_v56 = vpop.eup %9903  ;;  %v6531_v10 = vpack.c.bf16 %v6435_v38, %v6427_v24  ;;  %v6429_v48 = vmul.f32 %v6301_v17, %v5405_v28  ;;  %v6437_v4 = vmul.f32 %v6309_v60, %v5413_v26  ;;  %v5979_v33 = vadd.f32 %v5851_v59, %v14668_v42  ;;  %v14805_v26 = vpop.f32.mrf.mxu1 }
 0xb13   : > { %v9906_v32 = vpop.eup %9905  ;;  %v5986_v41 = vadd.f32 %v5858_v13, %v14679_v49  ;;  %v6298_v5 = vadd.f32 1.0, %v9904_v56  ;;  %v6428_v47 = vmul.f32 %v6300_v16, %v5404_v25  ;;  %v5987_v51 = vadd.f32 %v5859_v22, %v14700_v1 }
 0xb14   : > { %v14801_v54 = vpop.eup %9907  ;;  %7634 = vmatprep.mubr.bf16.mxu1 %v6531_v10  ;;  %v6533_v29 = vpack.c.bf16 %v6437_v4, %v6429_v48  ;;  %v5402_v61 = vmul.f32 0.5, %v16161_v20  ;;  %v5410_v28 = vmul.f32 0.5, %v16163_v31  ;;  %v6306_v60 = vadd.f32 1.0, %v9906_v32  ;;  %v14814_v48 = vpop.f32.mrf.mxu0 }
 0xb15   : > { %v9910_v59 = vpop.eup %9909  ;;  %v5597_v13 = vmul.f32 0.044715, %v14757_v39  ;;  %v6532_v17 = vpack.c.bf16 %v6436_v52, %v6428_v47  ;;  %v6107_v25 = vmul.f32 0.7978846, %v5979_v33  ;;  %v6115_v16 = vmul.f32 0.7978846, %v5987_v51 }
 0xb16   : > { %v14810_v24 = vadd.f32 %v14603_v40, %v13690_v37  ;;  %7747 = vmatprep.mubr.bf16.mxu0 %v6533_v29  ;;  %v6426_v38 = vmul.f32 %v6298_v5, %v5402_v61  ;;  %v6434_v53 = vmul.f32 %v6306_v60, %v5410_v28  ;;  %v6315_v20 = vadd.f32 1.0, %v9910_v59  ;;  %v14817_v37 = vpop.f32.mrf.mxu1  ;;  %v16179_v29 = vld [vmem:[#allocation95_spill] sm:$0xff]  ;;  %v16180_v59 = vld [vmem:[#allocation125_spill] sm:$0xff] }
 0xb17   : > { %v9912_v22 = vpop.eup %9911  ;;  %7748 = vmatmul.mubr.bf16.gmra.mxu0 %v6532_v17  ;;  %v5419_v31 = vmul.f32 0.5, %v16166_v58  ;;  %v5427_v56 = vmul.f32 0.5, %v16168_v19  ;;  %9921 = vtanh.f32 %v6115_v16  ;;  %v6114_v52 = vmul.f32 0.7978846, %v5986_v41  ;;  %v16178_v19 = vld [vmem:[#allocation111_spill] sm:$0xff] }
 0xb18   : > { %v6323_v10 = vadd.f32 1.0, %v9912_v22  ;;  %9923 = vtanh.f32 %v6106_v14  ;;  %v6530_v4 = vpack.c.bf16 %v6434_v53, %v6426_v38  ;;  %v6322_v33 = vadd.f32 1.0, %v14499_v34  ;;  %v16181_v17 = vld [vmem:[#allocation99_spill] sm:$0xff]  ;;  %v16182_v22 = vld [vmem:[#allocation120_spill] sm:$0xff] }
 0xb19   : > { %v9914_v40 = vpop.eup %9913  ;;  %v6443_v32 = vmul.f32 %v6315_v20, %v5419_v31  ;;  %9925 = vtanh.f32 %v6107_v25  ;;  %v5941_v58 = vadd.f32 %v14565_v21, %v14353_v45  ;;  %v5426_v51 = vmul.f32 0.5, %v16178_v19  ;;  %v14827_v25 = vpop.f32.mrf.mxu0 }
 0xb1a   : > { %v6451_v5 = vmul.f32 %v6323_v10, %v5427_v56  ;;  %v9916_v47 = vpop.eup %9915  ;;  %7635 = vmatmul.mubr.bf16.gmra.mxu1 %v6530_v4  ;;  %v6314_v61 = vadd.f32 1.0, %v16179_v29  ;;  %v5435_v14 = vmul.f32 0.5, %v14387_v57  ;;  %v6331_v41 = vadd.f32 1.0, %v9914_v40  ;;  %v14834_v20 = vpop.f32.mrf.mxu1 }
 0xb1b   : > { %v5443_v34 = vmul.f32 0.5, %v14398_v11  ;;  %v6339_v60 = vadd.f32 1.0, %v9916_v47  ;;  %v5933_v16 = vadd.f32 %v16181_v17, %v16180_v59  ;;  %9927 = vtanh.f32 %v6114_v52  ;;  %v16184_v17 = vld [vmem:[#allocation118_spill] sm:$0xff] }
 0xb1c   : > { %v6539_v28 = vpack.c.bf16 %v6451_v5, %v6443_v32  ;;  %v14831_v21 = vadd.f32 %v14640_v0, %v13831_v63  ;;  %v5418_v38 = vmul.f32 0.5, %v16182_v22  ;;  %v6450_v53 = vmul.f32 %v6322_v33, %v5426_v51  ;;  %v14849_v29 = vpop.f32.mrf.mxu1 }
 0xb1d   : > { %v9918_v57 = vpop.eup %9917  ;;  %v5837_v11 = vmul.f32 %v14601_v18, %v14532_v12  ;;  %v6459_v31 = vmul.f32 %v6331_v41, %v5435_v14  ;;  %v6467_v56 = vmul.f32 %v6339_v60, %v5443_v34  ;;  %v6069_v10 = vmul.f32 0.7978846, %v5941_v58  ;;  %v14844_v18 = vpop.f32.mrf.mxu0 }
 0xb1e   : > { %7644 = vmatprep.mubr.bf16.mxu1 %v6539_v28  ;;  %v9920_v4 = vpop.eup %9919  ;;  %v5972_v52 = vadd.f32 %v14743_v9, %v14572_v27  ;;  %v5845_v63 = vmul.f32 %v14746_v44, %v14626_v2  ;;  %v5596_v0 = vmul.f32 0.044715, %v14750_v62  ;;  %v6442_v33 = vmul.f32 %v6314_v61, %v5418_v38 }
 0xb1f   : > { %v5725_v40 = vmul.f32 %v5597_v13, %v14757_v39  ;;  %v6547_v32 = vpack.c.bf16 %v6467_v56, %v6459_v31  ;;  %v6355_v5 = vadd.f32 1.0, %v9918_v57  ;;  %v6061_v47 = vmul.f32 0.7978846, %v5933_v16  ;;  %v14864_v22 = vpop.f32.mrf.mxu0  ;;  %v14869_v56 = vpop.f32.mrf.mxu1 }
 0xb20   : > { %v5604_v19 = vmul.f32 0.044715, %v14810_v24  ;;  %v5605_v58 = vmul.f32 0.044715, %v14831_v21  ;;  %v6538_v51 = vpack.c.bf16 %v6450_v53, %v6442_v33  ;;  %v6338_v9 = vadd.f32 1.0, %v14683_v46  ;;  %v16185_v53 = vld [vmem:[#allocation130_spill] sm:$0xff] }
 0xb21   : > { %v5459_v44 = vmul.f32 0.5, %v14585_v7  ;;  %v6347_v14 = vadd.f32 1.0, %v9920_v4  ;;  %9929 = vtanh.f32 %v6069_v10  ;;  %v5957_v13 = vadd.f32 %v14591_v35, %v14437_v30  ;;  %v16183_v7 = vld [vmem:[#allocation113_spill] sm:$0xff] }
 0xb22   : > { %v14854_v61 = vmul.f32 0.7978846, %v5972_v52  ;;  %v14857_v41 = vmul.f32 %v5596_v0, %v14750_v62  ;;  %7645 = vmatmul.mubr.bf16.gmra.mxu1 %v6538_v51  ;;  %v5442_v28 = vmul.f32 0.5, %v14336_v23  ;;  %v6330_v34 = vadd.f32 1.0, %v14651_v8 }
 0xb23   : > { %7654 = vmatprep.mubr.bf16.mxu1 %v6547_v32  ;;  %v5451_v46 = vmul.f32 0.5, %v14528_v15  ;;  %v6483_v60 = vmul.f32 %v6355_v5, %v5459_v44  ;;  %9931 = vtanh.f32 %v6061_v47  ;;  %v5949_v16 = vadd.f32 %v16184_v17, %v16183_v7  ;;  %v16186_v32 = vld [vmem:[#allocation122_spill] sm:$0xff] }
 0xb24   : > { %v9922_v35 = vpop.eup %9921  ;;  %v5732_v38 = vmul.f32 %v5604_v19, %v14810_v24  ;;  %v5434_v57 = vmul.f32 0.5, %v16185_v53  ;;  %v6466_v31 = vmul.f32 %v6338_v9, %v5442_v28  ;;  %v6354_v23 = vadd.f32 1.0, %v14801_v54  ;;  %v14877_v28 = vpop.f32.mrf.mxu0 }
 0xb25   : > { %v9924_v8 = vpop.eup %9923  ;;  %v5853_v15 = vmul.f32 %v5725_v40, %v14757_v39  ;;  %v5733_v10 = vmul.f32 %v5605_v58, %v14831_v21  ;;  %v6475_v4 = vmul.f32 %v6347_v14, %v5451_v46  ;;  %v6085_v52 = vmul.f32 0.7978846, %v5957_v13  ;;  %v16187_v14 = vld [vmem:[#allocation100_spill] sm:$0xff] }
 0xb26   : > { %v9926_v0 = vpop.eup %9925  ;;  %v6458_v33 = vmul.f32 %v6330_v34, %v5434_v57  ;;  %v5458_v5 = vmul.f32 0.5, %v16186_v32  ;;  %v6346_v47 = vadd.f32 1.0, %v14790_v55  ;;  %v5965_v19 = vadd.f32 %v5837_v11, %v14532_v12 }
 0xb27   : > { %v6555_v51 = vpack.c.bf16 %v6483_v60, %v6475_v4  ;;  %v6371_v9 = vadd.f32 1.0, %v9922_v35  ;;  %v6077_v54 = vmul.f32 0.7978846, %v5949_v16  ;;  %v5973_v44 = vadd.f32 %v5845_v63, %v14626_v2  ;;  %v6694_v63 = vld [vmem:[%s16188_s15] sm:$0x3] }
 0xb28   : > { %v14880_v40 = vmul.f32 %v5732_v38, %v14810_v24  ;;  %v6546_v58 = vpack.c.bf16 %v6466_v31, %v6458_v33  ;;  %v5450_v13 = vmul.f32 0.5, %v16187_v14  ;;  %v6482_v34 = vmul.f32 %v6354_v23, %v5458_v5  ;;  %v7410_v46 = vpop.f32.mrf.mxu1  ;;  %v9928_v17 = vpop.eup %9927  ;;  %v16189_v33 = vld [vmem:[#allocation56_spill] sm:$0xff] }
 0xb29   : > { %v5861_v55 = vmul.f32 %v5733_v10, %v14831_v21  ;;  %v5475_v11 = vmul.f32 0.5, %v14700_v1  ;;  %v6363_v60 = vadd.f32 1.0, %v9926_v0  ;;  %9933 = vtanh.f32 %v6085_v52 }
 0xb2a   : > { %7655 = vmatmul.mubr.bf16.gmra.mxu1 %v6546_v58  ;;  %v6474_v16 = vmul.f32 %v6346_v47, %v5450_v13  ;;  %v5467_v35 = vmul.f32 0.5, %v14668_v42  ;;  %v5466_v38 = vmul.f32 0.5, %v14636_v50  ;;  %v6093_v53 = vmul.f32 0.7978846, %v5965_v19  ;;  %v7412_v57 = vpop.f32.mrf.mxu1  ;;  %v16190_v47 = vld [vmem:[#allocation57_spill] sm:$0xff] }
 0xb2b   : > { %7664 = vmatprep.mubr.bf16.mxu1 %v6555_v51  ;;  %v6499_v31 = vmul.f32 %v6371_v9, %v5475_v11  ;;  %v5474_v23 = vmul.f32 0.5, %v14679_v49  ;;  %9935 = vtanh.f32 %v6077_v54  ;;  %v6101_v1 = vmul.f32 0.7978846, %v5973_v44 }
 0xb2c   : > { %v7523_v10 = vpop.f32.mrf.mxu0  ;;  %v6554_v4 = vpack.c.bf16 %v6482_v34, %v6474_v16  ;;  %v6362_v52 = vadd.f32 1.0, %v9924_v8  ;;  %v6370_v0 = vadd.f32 1.0, %v9928_v17  ;;  %v14892_v32 = vrot.slane %v6694_v63, %v16189_v33  ;;  %v7414_v9 = vpop.f32.mrf.mxu1  ;;  %v16192_v34 = vld [vmem:[#allocation90_spill] sm:$0xff] }
 0xb2d   : > { %v6491_v5 = vmul.f32 %v6363_v60, %v5467_v35  ;;  %v5421_v42 = vmul.f32 0.5, %v16180_v59  ;;  %v5429_v50 = vmul.f32 0.5, %v14353_v45  ;;  %v14897_v19 = vrot.slane %v6694_v63, %v16190_v47  ;;  %v16191_v59 = vld [vmem:[#allocation110_spill] sm:$0xff] }
 0xb2e   : > { %v7525_v51 = vpop.f32.mrf.mxu0  ;;  %v9930_v49 = vpop.eup %9929  ;;  %9937 = vtanh.f32 %v6093_v53  ;;  %v5981_v54 = vadd.f32 %v5853_v15, %v14757_v39  ;;  %v5989_v8 = vadd.f32 %v5861_v55, %v14831_v21  ;;  %v7391_v44 = vadd.f32 %v14740_v43, %v14892_v32 }
 0xb2f   : > { %v6563_v58 = vpack.c.bf16 %v6499_v31, %v6491_v5  ;;  %9939 = vtanh.f32 %v6101_v1  ;;  %v7393_v14 = vadd.f32 %v16191_v59, %v14897_v19  ;;  %v7395_v45 = vadd.f32 %v14788_v6, %v14892_v32  ;;  %v7416_v35 = vpop.f32.mrf.mxu1  ;;  %v16193_v59 = vld [vmem:[#allocation123_spill] sm:$0xff] }
 0xb30   : > { %v9932_v13 = vpop.eup %9931  ;;  %v14908_v17 = vadd.f32 %v16192_v34, %v7391_v44  ;;  %v7397_v15 = vadd.f32 %v14805_v26, %v14897_v19  ;;  %v7401_v55 = vadd.f32 %v14817_v37, %v14892_v32  ;;  %v7403_v43 = vadd.f32 %v14834_v20, %v14897_v19  ;;  %v7527_v16 = vpop.f32.mrf.mxu0 }
 0xb31   : > { %v6325_v11 = vadd.f32 1.0, %v9930_v49  ;;  %v14917_v60 = vadd.f32 %v14786_v36, %v7393_v14  ;;  %v14920_v63 = vadd.f32 %v14799_v3, %v7395_v45  ;;  %v7405_v6 = vadd.f32 %v14849_v29, %v14892_v32 }
 0xb32   : > { %7665 = vmatmul.mubr.bf16.gmra.mxu1 %v6554_v4  ;;  %v14925_v26 = vadd.f32 %v14814_v48, %v7397_v15  ;;  %v14928_v37 = vadd.f32 %v14827_v25, %v7401_v55  ;;  %v14931_v20 = vadd.f32 %v14844_v18, %v7403_v43  ;;  %v7407_v36 = vadd.f32 %v14869_v56, %v14897_v19  ;;  %v16197_v15 = vld [vmem:[#allocation107_spill] sm:$0xff] }
 0xb33   : > { %7674 = vmatprep.mubr.bf16.mxu1 %v6563_v58  ;;  %v6317_v3 = vadd.f32 1.0, %v9932_v13  ;;  %v14936_v53 = vadd.f32 %v14864_v22, %v7405_v6  ;;  %v7411_v29 = vadd.f32 %v7410_v46, %v14892_v32  ;;  %v7413_v31 = vadd.f32 %v7412_v57, %v14897_v19  ;;  %v7529_v22 = vpop.f32.mrf.mxu0  ;;  %v16196_v13 = vld [vmem:[#allocation115_spill] sm:$0xff] }
 0xb34   : > { %v6498_v48 = vmul.f32 %v6370_v0, %v5474_v23  ;;  %v14941_v1 = vadd.f32 %v14877_v28, %v7407_v36  ;;  %v7415_v25 = vadd.f32 %v7414_v9, %v14892_v32  ;;  %v7417_v18 = vadd.f32 %v7416_v35, %v14897_v19 }
 0xb35   : > { %v6453_v4 = vmul.f32 %v6325_v11, %v5429_v50  ;;  %v6117_v5 = vmul.f32 0.7978846, %v5989_v8  ;;  %v14945_v56 = vadd.f32 %v7523_v10, %v7411_v29  ;;  %v14947_v49 = vadd.f32 %v7525_v51, %v7413_v31  ;;  %v16198_v31 = vld [vmem:[#allocation121_spill] sm:$0xff] }
 0xb36   : > { %v9934_v44 = vpop.eup %9933  ;;  %v5852_v46 = vmul.f32 %v14857_v41, %v14750_v62  ;;  %v6490_v57 = vmul.f32 %v6362_v52, %v5466_v38  ;;  %v14951_v23 = vadd.f32 %v7527_v16, %v7415_v25  ;;  %v14953_v28 = vadd.f32 %v7529_v22, %v7417_v18  ;;  %v16194_v41 = vld [vmem:[#allocation114_spill] sm:$0xff]  ;;  %v16195_v52 = vld [vmem:[#allocation55_spill] sm:$0xff] }
 0xb37   : > { %v6445_v0 = vmul.f32 %v6317_v3, %v5421_v42  ;;  %v6109_v9 = vmul.f32 0.7978846, %v5981_v54  ;;  %v6324_v50 = vadd.f32 1.0, %v16193_v59  ;;  %9941 = vtanh.f32 %v14854_v61  ;;  %v16200_v22 = vld [vmem:[#allocation91_spill] sm:$0xff] }
 0xb38   : > { %v9936_v58 = vpop.eup %9935  ;;  %v5988_v10 = vadd.f32 %v14880_v40, %v14810_v24  ;;  %v6562_v51 = vpack.c.bf16 %v6498_v48, %v6490_v57  ;;  %v6341_v14 = vadd.f32 1.0, %v9934_v44  ;;  %9943 = vtanh.f32 %v6117_v5 }
 0xb39   : > { %v6541_v8 = vpack.c.bf16 %v6453_v4, %v6445_v0  ;;  %v6316_v38 = vadd.f32 1.0, %v16194_v41  ;;  %v5428_v45 = vmul.f32 0.5, %v16195_v52  ;;  %9945 = vtanh.f32 %v16196_v13  ;;  %v16199_v4 = vld [vmem:[#allocation124_spill] sm:$0xff] }
 0xb3a   : > { %v5980_v42 = vadd.f32 %v5852_v46, %v14750_v62  ;;  %7675 = vmatmul.mubr.bf16.gmra.mxu1 %v6562_v51  ;;  %v5445_v61 = vmul.f32 0.5, %v14437_v30  ;;  %v6333_v34 = vadd.f32 1.0, %v9936_v58  ;;  %9947 = vtanh.f32 %v6109_v9  ;;  %v16201_v9 = vld [vmem:[#allocation131_spill] sm:$0xff] }
 0xb3b   : > { %v9938_v54 = vpop.eup %9937  ;;  %7757 = vmatprep.mubr.bf16.mxu1 %v6541_v8  ;;  %v5420_v55 = vmul.f32 0.5, %v16197_v15  ;;  %v6452_v43 = vmul.f32 %v6324_v50, %v5428_v45  ;;  %v6116_v11 = vmul.f32 0.7978846, %v5988_v10  ;;  %v5437_v6 = vmul.f32 0.5, %v16183_v7 }
 0xb3c   : > { %v9940_v40 = vpop.eup %9939  ;;  %v6469_v16 = vmul.f32 %v6341_v14, %v5445_v61  ;;  %v6108_v36 = vmul.f32 0.7978846, %v5980_v42  ;;  %v6340_v48 = vadd.f32 1.0, %v16198_v31  ;;  %v5444_v5 = vmul.f32 0.5, %v16199_v4 }
 0xb3d   : > { %v6444_v35 = vmul.f32 %v6316_v38, %v5420_v55  ;;  %v6461_v3 = vmul.f32 %v6333_v34, %v5437_v6  ;;  %9949 = vtanh.f32 %v6116_v11  ;;  %v6357_v30 = vadd.f32 1.0, %v9940_v40 }
 0xb3e   : > { %9951 = vtanh.f32 %v6108_v36  ;;  %v6332_v44 = vadd.f32 1.0, %v16200_v22  ;;  %v5461_v7 = vmul.f32 0.5, %v14626_v2  ;;  %v6349_v46 = vadd.f32 1.0, %v9938_v54 }
 0xb3f   : > { %v6540_v29 = vpack.c.bf16 %v6452_v43, %v6444_v35  ;;  %v6549_v18 = vpack.c.bf16 %v6469_v16, %v6461_v3  ;;  %v5436_v58 = vmul.f32 0.5, %v16201_v9  ;;  %v6468_v59 = vmul.f32 %v6340_v48, %v5444_v5  ;;  %v16202_v48 = vld [vmem:[#allocation98_spill] sm:$0xff] }
 0xb40   : > { %v7533_v25 = vpop.f32.mrf.mxu0  ;;  %v5453_v51 = vmul.f32 0.5, %v14532_v12  ;;  %v6485_v8 = vmul.f32 %v6357_v30, %v5461_v7  ;;  %v5460_v6 = vmul.f32 0.5, %v14572_v27  ;;  %v5477_v3 = vmul.f32 0.5, %v14831_v21 }
 0xb41   : > { %v6460_v38 = vmul.f32 %v6332_v44, %v5436_v58  ;;  %v5469_v5 = vmul.f32 0.5, %v14757_v39  ;;  %v5476_v21 = vmul.f32 0.5, %v14810_v24  ;;  %v5468_v58 = vmul.f32 0.5, %v14750_v62 }
 0xb42   : > { %7758 = vmatmul.mubr.bf16.vlgmr.msra.gmra.mxu1 %v6540_v29  ;;  %v7535_v0 = vpop.f32.mrf.mxu0  ;;  %v6477_v13 = vmul.f32 %v6349_v46, %v5453_v51 }
 0xb43   : > { %7767 = vmatprep.mubr.bf16.mxu1 %v6549_v18  ;;  %v7420_v57 = vpop.f32.mrf.mxu1  ;;  %v6548_v34 = vpack.c.bf16 %v6468_v59, %v6460_v38 }
 0xb44   : > { %v7421_v50 = vadd.f32 %v7420_v57, %v14892_v32  ;;  %v9942_v10 = vpop.eup %9941  ;;  %v7537_v54 = vpop.f32.mrf.mxu0  ;;  %v6557_v12 = vpack.c.bf16 %v6485_v8, %v6477_v13 }
 0xb45   : > { %v7422_v14 = vpop.f32.mrf.mxu1  ;;  %v9944_v41 = vpop.eup %9943  ;;  %v6356_v40 = vadd.f32 1.0, %v9942_v10 }
 0xb46   : > { %v14973_v52 = vadd.f32 %v7533_v25, %v7421_v50  ;;  %v7423_v45 = vadd.f32 %v7422_v14, %v14897_v19  ;;  %v9946_v2 = vpop.eup %9945  ;;  %v6373_v43 = vadd.f32 1.0, %v9944_v41  ;;  %v7539_v31 = vpop.f32.mrf.mxu0  ;;  %v5452_v25 = vmul.f32 0.5, %v16202_v48 }
 0xb47   : > { %v7424_v42 = vpop.f32.mrf.mxu1  ;;  %v9948_v61 = vpop.eup %9947  ;;  %v6348_v16 = vadd.f32 1.0, %v9946_v2  ;;  %v6484_v18 = vmul.f32 %v6356_v40, %v5460_v6 }
 0xb48   : > { %v14976_v15 = vadd.f32 %v7535_v0, %v7423_v45  ;;  %v7425_v55 = vadd.f32 %v7424_v42, %v14892_v32  ;;  %v6365_v29 = vadd.f32 1.0, %v9948_v61  ;;  %v6501_v22 = vmul.f32 %v6373_v43, %v5477_v3 }
 0xb49   : > { %v7426_v11 = vpop.f32.mrf.mxu1  ;;  %v6476_v27 = vmul.f32 %v6348_v16, %v5452_v25 }
 0xb4a   : > { %7768 = vmatmul.mubr.bf16.gmra.mxu1 %v6548_v34  ;;  %v14980_v35 = vadd.f32 %v7537_v54, %v7425_v55  ;;  %v7427_v36 = vadd.f32 %v7426_v11, %v14897_v19  ;;  %v9950_v4 = vpop.eup %9949  ;;  %v6493_v7 = vmul.f32 %v6365_v29, %v5469_v5 }
 0xb4b   : > { %7777 = vmatprep.mubr.bf16.mxu1 %v6557_v12  ;;  %v9952_v44 = vpop.eup %9951  ;;  %v6556_v46 = vpack.c.bf16 %v6484_v18, %v6476_v27  ;;  %v6372_v57 = vadd.f32 1.0, %v9950_v4 }
 0xb4c   : > { %v14985_v30 = vadd.f32 %v7539_v31, %v7427_v36  ;;  %v6565_v0 = vpack.c.bf16 %v6501_v22, %v6493_v7  ;;  %v6364_v9 = vadd.f32 1.0, %v9952_v44 }
 0xb4d   : > { %v6500_v59 = vmul.f32 %v6372_v57, %v5476_v21 }
 0xb4e   : > { %v6492_v10 = vmul.f32 %v6364_v9, %v5468_v58 }
 0xb50   : > { %v6564_v51 = vpack.c.bf16 %v6500_v59, %v6492_v10 }
 0xb52   : > { %7778 = vmatmul.mubr.bf16.gmra.mxu1 %v6556_v46 }
 0xb53   : > { %7787 = vmatprep.mubr.bf16.mxu1 %v6565_v0 }
 0xb55   : > { %v7543_v50 = vpop.f32.mrf.mxu0 }
 0xb57   : > { %v7545_v39 = vpop.f32.mrf.mxu0 }
 0xb59   : > { %v7430_v8 = vpop.f32.mrf.mxu1  ;;  %v7547_v24 = vpop.f32.mrf.mxu0 }
 0xb5a   : > { %7788 = vmatmul.mubr.bf16.gmra.mxu1 %v6564_v51  ;;  %v7431_v14 = vadd.f32 %v7430_v8, %v14892_v32 }
 0xb5b   : > { %v7432_v41 = vpop.f32.mrf.mxu1  ;;  %v7549_v34 = vpop.f32.mrf.mxu0 }
 0xb5c   : > { %v14991_v38 = vadd.f32 %v7543_v50, %v7431_v14  ;;  %v7433_v45 = vadd.f32 %v7432_v41, %v14897_v19  ;;  %v16203_v41 = vld [vmem:[#allocation117_spill] sm:$0xff] }
 0xb5d   : > { %v7434_v2 = vpop.f32.mrf.mxu1 }
 0xb5e   : > { %v14994_v13 = vadd.f32 %v7545_v39, %v7433_v45  ;;  %v7435_v62 = vadd.f32 %v7434_v2, %v14892_v32  ;;  %v7381_v45 = vadd.f32 %v16203_v41, %v14892_v32  ;;  %v16204_v2 = vld [vmem:[#allocation96_spill] sm:$0xff] }
 0xb5f   : > { %v7436_v42 = vpop.f32.mrf.mxu1 }
 0xb60   : > { %v14997_v54 = vadd.f32 %v7547_v24, %v7435_v62  ;;  %v7437_v61 = vadd.f32 %v7436_v42, %v14897_v19  ;;  %v7383_v24 = vadd.f32 %v16204_v2, %v14897_v19  ;;  %v16205_v62 = vld [vmem:[#allocation105_spill] sm:$0xff] }
 0xb61   : > { %v7494_v42 = vadd.f32 %v16205_v62, %v7381_v45 }
 0xb62   : > { %v15000_v40 = vadd.f32 %v7549_v34, %v7437_v61  ;;  %v16206_v61 = vld [vmem:[#allocation94_spill] sm:$0xff] }
 0xb63   : > { %v7385_v34 = vadd.f32 %v16206_v61, %v14892_v32 }
 0xb6a   : > { %v7553_v55 = vpop.f32.mrf.mxu0 }
 0xb6c   : > { %v7555_v43 = vpop.f32.mrf.mxu0 }
 0xb6e   : > { %v7440_v12 = vpop.f32.mrf.mxu1  ;;  %v7557_v29 = vpop.f32.mrf.mxu0 }
 0xb6f   : > { %v7441_v11 = vadd.f32 %v7440_v12, %v14892_v32  ;;  %v16207_v12 = vld [vmem:[#allocation116_spill] sm:$0xff] }
 0xb70   : > { %v7442_v6 = vpop.f32.mrf.mxu1  ;;  %v7559_v5 = vpop.f32.mrf.mxu0 }
 0xb71   : > { %v15003_v16 = vadd.f32 %v7553_v55, %v7441_v11  ;;  %v7443_v36 = vadd.f32 %v7442_v6, %v14897_v19  ;;  %v16208_v11 = vld [vmem:[#allocation126_spill] sm:$0xff] }
 0xb72   : > { %v7444_v3 = vpop.f32.mrf.mxu1  ;;  %v7387_v6 = vadd.f32 %v16208_v11, %v14897_v19 }
 0xb73   : > { %v15006_v31 = vadd.f32 %v7555_v43, %v7443_v36  ;;  %v7445_v48 = vadd.f32 %v7444_v3, %v14892_v32  ;;  %v7496_v43 = vadd.f32 %v16207_v12, %v7383_v24  ;;  %v16213_v24 = vld [vmem:[#allocation61_spill] sm:$0xff] }
 0xb74   : > { %v7446_v25 = vpop.f32.mrf.mxu1 }
 0xb75   : > { %v15009_v18 = vadd.f32 %v7557_v29, %v7445_v48  ;;  %v7447_v4 = vadd.f32 %v7446_v25, %v14897_v19  ;;  %v16209_v29 = vld [vmem:[#allocation127_spill] sm:$0xff] }
 0xb76   : > { %v7498_v48 = vadd.f32 %v16209_v29, %v7385_v34 }
 0xb77   : > { %v15012_v22 = vadd.f32 %v7559_v5, %v7447_v4 }
 0xb7f   : > { %v7563_v27 = vpop.f32.mrf.mxu0 }
 0xb81   : > { %v7565_v7 = vpop.f32.mrf.mxu0 }
 0xb83   : > { %v7567_v58 = vpop.f32.mrf.mxu0 }
 0xb84   : > { %v7450_v44 = vpop.f32.mrf.mxu1 }
 0xb85   : > { %v7451_v46 = vadd.f32 %v7450_v44, %v14892_v32  ;;  %v7569_v39 = vpop.f32.mrf.mxu0  ;;  %v16210_v44 = vld [vmem:[#allocation108_spill] sm:$0xff] }
 0xb86   : > { %v7452_v57 = vpop.f32.mrf.mxu1 }
 0xb87   : > { %v15015_v0 = vadd.f32 %v7563_v27, %v7451_v46  ;;  %v7453_v21 = vadd.f32 %v7452_v57, %v14897_v19 }
 0xb88   : > { %v7454_v9 = vpop.f32.mrf.mxu1 }
 0xb89   : > { %v15018_v59 = vadd.f32 %v7565_v7, %v7453_v21  ;;  %v7455_v50 = vadd.f32 %v7454_v9, %v14892_v32  ;;  %v7500_v7 = vadd.f32 %v16210_v44, %v7387_v6 }
 0xb8a   : > { %v7456_v10 = vpop.f32.mrf.mxu1 }
 0xb8b   : > { %v15021_v51 = vadd.f32 %v7567_v58, %v7455_v50  ;;  %v7457_v8 = vadd.f32 %v7456_v10, %v14897_v19  ;;  %v16211_v50 = vld [vmem:[#allocation59_spill] sm:$0xff]  ;;  %v16212_v19 = vld [vmem:[#allocation58_spill] sm:$0xff] }
 0xb8d   : > { %v15024_v14 = vadd.f32 %v7569_v39, %v7457_v8 }
 0xb94   : > { %v7606_v55 = vpop.f32.mrf.mxu1 }
 0xb95   : > { %v7607_v36 = vadd.f32 %v7606_v55, %v7494_v42  ;;  %v16214_v42 = vld [vmem:[#allocation60_spill] sm:$0xff] }
 0xb96   : > { %v7608_v3 = vpop.f32.mrf.mxu1 }
 0xb97   : > { %v7609_v4 = vadd.f32 %v7608_v3, %v7496_v43 }
 0xb98   : > { %v7610_v27 = vpop.f32.mrf.mxu1 }
 0xb99   : > { %v7719_v25 = vpop.f32.mrf.mxu0  ;;  %v7611_v57 = vadd.f32 %v7610_v27, %v7498_v48  ;;  %v16215_v27 = vld [vmem:[#allocation63_spill] sm:$0xff] }
 0xb9a   : > { %v7720_v5 = vadd.f32 %v7719_v25, %v7607_v36  ;;  %v7612_v32 = vpop.f32.mrf.mxu1 }
 0xb9b   : > { %v7721_v46 = vpop.f32.mrf.mxu0  ;;  %v7613_v58 = vadd.f32 %v7612_v32, %v7500_v7  ;;  %v16216_v7 = vld [vmem:[#allocation62_spill] sm:$0xff] }
 0xb9c   : > { %v7722_v21 = vadd.f32 %v7721_v46, %v7609_v4  ;;  %v15039_v10 = vadd.f32 %v7720_v5, %v16211_v50  ;;  %v16218_v50 = vld [vmem:[#allocation64_spill] sm:$0xff] }
 0xb9d   : > { %v7723_v9 = vpop.f32.mrf.mxu0 }
 0xb9e   : > { %v15042_v8 = vadd.f32 %v7722_v21, %v16212_v19  ;;  %v7724_v39 = vadd.f32 %v7723_v9, %v7611_v57  ;;  %v16217_v9 = vld [vmem:[#allocation65_spill] sm:$0xff] }
 0xb9f   : > { %v7725_v41 = vpop.f32.mrf.mxu0 }
 0xba0   : > { %v7726_v45 = vadd.f32 %v7725_v41, %v7613_v58  ;;  %v7832_v2 = vadd.f32 %v15042_v8, %v15039_v10  ;;  %v15047_v62 = vadd.f32 %v7724_v39, %v16213_v24 }
 0xba2   : > { %v15050_v61 = vadd.f32 %v7726_v45, %v16214_v42  ;;  %7833 = vadd.xlane.f32.xlu1 %v7832_v2 }
 0xba4   : > { %v7835_v34 = vadd.f32 %v15050_v61, %v15047_v62 }
 0xba6   : > { %7836 = vadd.xlane.f32.xlu0 %v7835_v34 }
 0xbab   : > { %v7729_v55 = vpop.f32.mrf.mxu0 }
 0xbad   : > { %v7731_v43 = vpop.f32.mrf.mxu0 }
 0xbae   : > { %v7616_v12 = vpop.f32.mrf.mxu1 }
 0xbaf   : > { %v7617_v11 = vadd.f32 %v7616_v12, %v14908_v17  ;;  %v7733_v48 = vpop.f32.mrf.mxu0 }
 0xbb0   : > { %v7618_v6 = vpop.f32.mrf.mxu1 }
 0xbb1   : > { %v7730_v36 = vadd.f32 %v7729_v55, %v7617_v11  ;;  %v7619_v3 = vadd.f32 %v7618_v6, %v14917_v60  ;;  %v7735_v17 = vpop.f32.mrf.mxu0  ;;  %v16219_v6 = vld [vmem:[#allocation67_spill] sm:$0xff] }
 0xbb2   : > { %v7620_v29 = vpop.f32.mrf.mxu1 }
 0xbb3   : > { %v7732_v25 = vadd.f32 %v7731_v43, %v7619_v3  ;;  %v7621_v4 = vadd.f32 %v7620_v29, %v14920_v63  ;;  %v15058_v44 = vadd.f32 %v7730_v36, %v16215_v27  ;;  %v16220_v3 = vld [vmem:[#allocation66_spill] sm:$0xff] }
 0xbb4   : > { %v7622_v5 = vpop.f32.mrf.mxu1 }
 0xbb5   : > { %v15061_v46 = vadd.f32 %v7732_v25, %v16216_v7  ;;  %v7734_v57 = vadd.f32 %v7733_v48, %v7621_v4  ;;  %v7623_v21 = vadd.f32 %v7622_v5, %v14925_v26  ;;  %v16221_v5 = vld [vmem:[#allocation69_spill] sm:$0xff]  ;;  %v16222_v7 = vld [vmem:[#allocation68_spill] sm:$0xff] }
 0xbb7   : > { %v7736_v32 = vadd.f32 %v7735_v17, %v7623_v21  ;;  %v7838_v60 = vadd.f32 %v15061_v46, %v15058_v44  ;;  %v15067_v58 = vadd.f32 %v7734_v57, %v16217_v9 }
 0xbb9   : > { %v15070_v63 = vadd.f32 %v7736_v32, %v16218_v50  ;;  %7839 = vadd.xlane.f32.xlu1 %v7838_v60 }
 0xbbb   : > { %v7841_v19 = vadd.f32 %v15070_v63, %v15067_v58 }
 0xbbd   : > { %7842 = vadd.xlane.f32.xlu0 %v7841_v19 }
 0xbc1   : > { %v7739_v39 = vpop.f32.mrf.mxu0 }
 0xbc3   : > { %v7741_v45 = vpop.f32.mrf.mxu0 }
 0xbc4   : > { %v7626_v41 = vpop.f32.mrf.mxu1 }
 0xbc5   : > { %v7627_v26 = vadd.f32 %v7626_v41, %v14928_v37  ;;  %v7743_v55 = vpop.f32.mrf.mxu0 }
 0xbc6   : > { %v7628_v2 = vpop.f32.mrf.mxu1 }
 0xbc7   : > { %v7740_v24 = vadd.f32 %v7739_v39, %v7627_v26  ;;  %v7629_v42 = vadd.f32 %v7628_v2, %v14931_v20  ;;  %v7745_v37 = vpop.f32.mrf.mxu0  ;;  %v16223_v2 = vld [vmem:[#allocation71_spill] sm:$0xff] }
 0xbc8   : > { %v7630_v34 = vpop.f32.mrf.mxu1 }
 0xbc9   : > { %v7742_v12 = vadd.f32 %v7741_v45, %v7629_v42  ;;  %v7631_v43 = vadd.f32 %v7630_v34, %v14936_v53  ;;  %v15078_v36 = vadd.f32 %v7740_v24, %v16219_v6  ;;  %v16224_v42 = vld [vmem:[#allocation70_spill] sm:$0xff] }
 0xbca   : > { %v7632_v11 = vpop.f32.mrf.mxu1 }
 0xbcb   : > { %v15081_v29 = vadd.f32 %v7742_v12, %v16220_v3  ;;  %v7744_v48 = vadd.f32 %v7743_v55, %v7631_v43  ;;  %v7633_v25 = vadd.f32 %v7632_v11, %v14941_v1  ;;  %v16225_v3 = vld [vmem:[#allocation73_spill] sm:$0xff] }
 0xbcd   : > { %v7746_v4 = vadd.f32 %v7745_v37, %v7633_v25  ;;  %v7844_v20 = vadd.f32 %v15081_v29, %v15078_v36  ;;  %v15087_v27 = vadd.f32 %v7744_v48, %v16221_v5 }
 0xbcf   : > { %v15090_v53 = vadd.f32 %v7746_v4, %v16222_v7  ;;  %7845 = vadd.xlane.f32.xlu1 %v7844_v20 }
 0xbd1   : > { %v7847_v57 = vadd.f32 %v15090_v53, %v15087_v27 }
 0xbd3   : > { %7848 = vadd.xlane.f32.xlu0 %v7847_v57 }
 0xbd7   : > { %v7749_v21 = vpop.f32.mrf.mxu0 }
 0xbd9   : > { %v7751_v32 = vpop.f32.mrf.mxu0 }
 0xbda   : > { %v7636_v17 = vpop.f32.mrf.mxu1 }
 0xbdb   : > { %v7637_v1 = vadd.f32 %v7636_v17, %v14945_v56  ;;  %v7753_v39 = vpop.f32.mrf.mxu0 }
 0xbdc   : > { %v7638_v60 = vpop.f32.mrf.mxu1 }
 0xbdd   : > { %v7750_v9 = vadd.f32 %v7749_v21, %v7637_v1  ;;  %v7639_v50 = vadd.f32 %v7638_v60, %v14947_v49  ;;  %v7755_v56 = vpop.f32.mrf.mxu0 }
 0xbde   : > { %v7640_v19 = vpop.f32.mrf.mxu1 }
 0xbdf   : > { %v7752_v41 = vadd.f32 %v7751_v32, %v7639_v50  ;;  %v7641_v45 = vadd.f32 %v7640_v19, %v14951_v23  ;;  %v15098_v24 = vadd.f32 %v7750_v9, %v16223_v2  ;;  %v16226_v23 = vld [vmem:[#allocation72_spill] sm:$0xff] }
 0xbe0   : > { %v7642_v26 = vpop.f32.mrf.mxu1 }
 0xbe1   : > { %v15101_v34 = vadd.f32 %v7752_v41, %v16224_v42  ;;  %v7754_v55 = vadd.f32 %v7753_v39, %v7641_v45  ;;  %v7643_v12 = vadd.f32 %v7642_v26, %v14953_v28 }
 0xbe2   : > { %v7646_v43 = vpop.f32.mrf.mxu1 }
 0xbe3   : > { %v7756_v11 = vadd.f32 %v7755_v56, %v7643_v12  ;;  %v7850_v49 = vadd.f32 %v15101_v34, %v15098_v24  ;;  %v15107_v48 = vadd.f32 %v7754_v55, %v16225_v3  ;;  %v7647_v39 = vadd.f32 %v7646_v43, %v14973_v52  ;;  %v16228_v3 = vld [vmem:[#allocation74_spill] sm:$0xff] }
 0xbe4   : > { %v7648_v6 = vpop.f32.mrf.mxu1 }
 0xbe5   : > { %v15110_v25 = vadd.f32 %v7756_v11, %v16226_v23  ;;  %7851 = vadd.xlane.f32.xlu1 %v7850_v49  ;;  %v7649_v45 = vadd.f32 %v7648_v6, %v14976_v15  ;;  %v16227_v11 = vld [vmem:[#allocation75_spill] sm:$0xff] }
 0xbe6   : > { %v7650_v37 = vpop.f32.mrf.mxu1 }
 0xbe7   : > { %v7853_v4 = vadd.f32 %v15110_v25, %v15107_v48  ;;  %v7651_v42 = vadd.f32 %v7650_v37, %v14980_v35  ;;  %v16229_v37 = vld [vmem:[#allocation77_spill] sm:$0xff] }
 0xbe8   : > { %v7652_v20 = vpop.f32.mrf.mxu1 }
 0xbe9   : > { %7854 = vadd.xlane.f32.xlu0 %v7853_v4  ;;  %v7653_v56 = vadd.f32 %v7652_v20, %v14985_v30  ;;  %v16230_v30 = vld [vmem:[#allocation76_spill] sm:$0xff] }
 0xbea   : > { %v7656_v28 = vpop.f32.mrf.mxu1 }
 0xbeb   : > { %v7657_v52 = vadd.f32 %v7656_v28, %v14991_v38 }
 0xbec   : > { %v7658_v5 = vpop.f32.mrf.mxu1 }
 0xbed   : > { %v7659_v35 = vadd.f32 %v7658_v5, %v14994_v13  ;;  %v16232_v5 = vld [vmem:[#allocation78_spill] sm:$0xff] }
 0xbee   : > { %v7660_v7 = vpop.f32.mrf.mxu1 }
 0xbf0   : > { %v7662_v57 = vpop.f32.mrf.mxu1 }
 0xbf1   : > { %v7663_v28 = vadd.f32 %v7662_v57, %v15000_v40  ;;  %v16234_v57 = vld [vmem:[#allocation80_spill] sm:$0xff] }
 0xbf2   : > { %v7666_v21 = vpop.f32.mrf.mxu1 }
 0xbf4   : > { %v7668_v17 = vpop.f32.mrf.mxu1 }
 0xbf6   : > { %v7670_v32 = vpop.f32.mrf.mxu1 }
 0xbf8   : > { %v7672_v1 = vpop.f32.mrf.mxu1 }
 0xbfa   : > { %v7676_v60 = vpop.f32.mrf.mxu1 }
 0xbfc   : > { %v7678_v9 = vpop.f32.mrf.mxu1 }
 0xbfe   : > { %v15114_v50 = vpop.f32.mrf.mxu1 }
 0xc00   : > { %v15116_v19 = vpop.f32.mrf.mxu1 }
 0xc02   : > { %v7759_v41 = vpop.f32.mrf.mxu1 }
 0xc03   : > { %v7760_v26 = vadd.f32 %v7759_v41, %v7647_v39 }
 0xc04   : > { %v7761_v2 = vpop.f32.mrf.mxu1 }
 0xc05   : > { %v7762_v55 = vadd.f32 %v7761_v2, %v7649_v45  ;;  %v15123_v49 = vadd.f32 %v7760_v26, %v16227_v11  ;;  %v7661_v26 = vadd.f32 %v7660_v7, %v14997_v54  ;;  %v7667_v11 = vadd.f32 %v7666_v21, %v15003_v16 }
 0xc06   : > { %v7763_v12 = vpop.f32.mrf.mxu1 }
 0xc07   : > { %v15126_v23 = vadd.f32 %v7762_v55, %v16228_v3  ;;  %v7764_v4 = vadd.f32 %v7763_v12, %v7651_v42  ;;  %v16231_v42 = vld [vmem:[#allocation79_spill] sm:$0xff] }
 0xc08   : > { %v7765_v47 = vpop.f32.mrf.mxu1 }
 0xc09   : > { %v7766_v43 = vadd.f32 %v7765_v47, %v7653_v56  ;;  %v7856_v15 = vadd.f32 %v15126_v23, %v15123_v49  ;;  %v15133_v39 = vadd.f32 %v7764_v4, %v16229_v37  ;;  %v7669_v4 = vadd.f32 %v7668_v17, %v15006_v31  ;;  %v16236_v17 = vld [vmem:[#allocation82_spill] sm:$0xff] }
 0xc0a   : > { %v7769_v6 = vpop.f32.mrf.mxu1 }
 0xc0b   : > { %v15136_v20 = vadd.f32 %v7766_v43, %v16230_v30  ;;  %v7770_v41 = vadd.f32 %v7769_v6, %v7657_v52  ;;  %7857 = vadd.xlane.f32.xlu1 %v7856_v15  ;;  %v16233_v52 = vld [vmem:[#allocation81_spill] sm:$0xff]  ;;  %v7673_v30 = vadd.f32 %v7672_v1, %v15012_v22  ;;  %v16238_v1 = vld [vmem:[#allocation84_spill] sm:$0xff] }
 0xc0c   : > { %v7771_v45 = vpop.f32.mrf.mxu1 }
 0xc0d   : > { %v7772_v2 = vadd.f32 %v7771_v45, %v7659_v35  ;;  %v7859_v47 = vadd.f32 %v15136_v20, %v15133_v39  ;;  %v15143_v13 = vadd.f32 %v7770_v41, %v16231_v42  ;;  %v7671_v35 = vadd.f32 %v7670_v32, %v15009_v18  ;;  %v16235_v41 = vld [vmem:[#allocation83_spill] sm:$0xff]  ;;  %v16237_v42 = vld [vmem:[#allocation85_spill] sm:$0xff] }
 0xc0e   : > { %v7773_v38 = vpop.f32.mrf.mxu1 }
 0xc0f   : > { %v15146_v55 = vadd.f32 %v7772_v2, %v16232_v5  ;;  %v7774_v12 = vadd.f32 %v7773_v38, %v7661_v26  ;;  %7860 = vadd.xlane.f32.xlu0 %v7859_v47  ;;  %v7677_v47 = vadd.f32 %v7676_v60, %v15015_v0 }
 0xc10   : > { %v7775_v56 = vpop.f32.mrf.mxu1 }
 0xc11   : > { %v7776_v3 = vadd.f32 %v7775_v56, %v7663_v28  ;;  %v7862_v54 = vadd.f32 %v15146_v55, %v15143_v13  ;;  %v15153_v40 = vadd.f32 %v7774_v12, %v16233_v52  ;;  %v7679_v28 = vadd.f32 %v7678_v9, %v15018_v59  ;;  %v16239_v9 = vld [vmem:[#allocation88_spill] sm:$0xff] }
 0xc12   : > { %v7779_v7 = vpop.f32.mrf.mxu1  ;;  %v7683_v59 = vadd.f32 %v15116_v19, %v15024_v14 }
 0xc13   : > { %v15156_v43 = vadd.f32 %v7776_v3, %v16234_v57  ;;  %v7780_v15 = vadd.f32 %v7779_v7, %v7667_v11  ;;  %7863 = vadd.xlane.f32.xlu1 %v7862_v54  ;;  %v7681_v11 = vadd.f32 %v15114_v50, %v15021_v51  ;;  %v16240_v7 = vld [vmem:[#allocation86_spill] sm:$0xff]  ;;  %v16241_v50 = vld [vmem:[#allocation89_spill] sm:$0xff] }
 0xc14   : > { %v7781_v6 = vpop.f32.mrf.mxu1 }
 0xc15   : > { %v7782_v37 = vadd.f32 %v7781_v6, %v7669_v4  ;;  %v7865_v16 = vadd.f32 %v15156_v43, %v15153_v40  ;;  %v15163_v31 = vadd.f32 %v7780_v15, %v16235_v41 }
 0xc16   : > { %v7783_v21 = vpop.f32.mrf.mxu1 }
 0xc17   : > { %v15166_v45 = vadd.f32 %v7782_v37, %v16236_v17  ;;  %v7784_v26 = vadd.f32 %v7783_v21, %v7671_v35  ;;  %7866 = vadd.xlane.f32.xlu0 %v7865_v16  ;;  %v16242_v35 = vld [vmem:[#allocation87_spill] sm:$0xff] }
 0xc18   : > { %v7785_v2 = vpop.f32.mrf.mxu1 }
 0xc19   : > { %v7786_v38 = vadd.f32 %v7785_v2, %v7673_v30  ;;  %v7868_v18 = vadd.f32 %v15166_v45, %v15163_v31  ;;  %v15173_v22 = vadd.f32 %v7784_v26, %v16237_v42 }
 0xc1a   : > { %v7789_v32 = vpop.f32.mrf.mxu1 }
 0xc1b   : > { %v15176_v5 = vadd.f32 %v7786_v38, %v16238_v1  ;;  %v7790_v12 = vadd.f32 %v7789_v32, %v7677_v47  ;;  %7869 = vadd.xlane.f32.xlu1 %v7868_v18 }
 0xc1c   : > { %v7791_v56 = vpop.f32.mrf.mxu1 }
 0xc1d   : > { %v7792_v0 = vadd.f32 %v7791_v56, %v7679_v28  ;;  %v7871_v60 = vadd.f32 %v15176_v5, %v15173_v22  ;;  %v15185_v54 = vadd.f32 %v7790_v12, %v16239_v9 }
 0xc1e   : > { %v7793_v3 = vpop.f32.mrf.mxu1 }
 0xc1f   : > { %v15188_v4 = vadd.f32 %v7792_v0, %v16240_v7  ;;  %v7794_v52 = vadd.f32 %v7793_v3, %v7681_v11  ;;  %7872 = vadd.xlane.f32.xlu0 %v7871_v60 }
 0xc20   : > { %v7795_v57 = vpop.f32.mrf.mxu1 }
 0xc21   : > { %v7796_v15 = vadd.f32 %v7795_v57, %v7683_v59  ;;  %v7874_v51 = vadd.f32 %v15188_v4, %v15185_v54  ;;  %v15193_v6 = vadd.f32 %v7794_v52, %v16241_v50 }
 0xc23   : > { %v15196_v37 = vadd.f32 %v7796_v15, %v16242_v35  ;;  %7875 = vadd.xlane.f32.xlu1 %v7874_v51 }
 0xc25   : > { %v7877_v14 = vadd.f32 %v15196_v37, %v15193_v6 }
 0xc27   : > { %7878 = vadd.xlane.f32.xlu0 %v7877_v14 }
 0xc2b   : > { %v7834_v19 = vpop.xlane.xlu1 %7833 }
 0xc2c   : > { %v7880_v16 = vmul.f32 0.00390625, %v7834_v19 }
 0xc2e   : > { %v15201_v21 = vsub.f32 %v15039_v10, %v7880_v16  ;;  %v15204_v30 = vsub.f32 %v15042_v8, %v7880_v16 }
 0xc2f   : > { %v7837_v41 = vpop.xlane.xlu0 %7836 }
 0xc30   : > { %v7881_v17 = vmul.f32 0.00390625, %v7837_v41  ;;  %v7928_v26 = vmul.f32 %v15201_v21, %v15201_v21  ;;  %v7929_v2 = vmul.f32 %v15204_v30, %v15204_v30 }
 0xc32   : > { %v15211_v47 = vsub.f32 %v15047_v62, %v7881_v17  ;;  %v15214_v38 = vsub.f32 %v15050_v61, %v7881_v17  ;;  %v7960_v18 = vadd.f32 %v7929_v2, %v7928_v26 }
 0xc34   : > { %7961 = vadd.xlane.f32.xlu1 %v7960_v18  ;;  %v7930_v10 = vmul.f32 %v15211_v47, %v15211_v47  ;;  %v7931_v8 = vmul.f32 %v15214_v38, %v15214_v38 }
 0xc36   : > { %v7963_v32 = vadd.f32 %v7931_v8, %v7930_v10 }
 0xc38   : > { %7964 = vadd.xlane.f32.xlu0 %v7963_v32 }
 0xc42   : > { %v7840_v28 = vpop.xlane.xlu1 %7839 }
 0xc43   : > { %v7882_v42 = vmul.f32 0.00390625, %v7840_v28 }
 0xc45   : > { %v15221_v1 = vsub.f32 %v15058_v44, %v7882_v42  ;;  %v15224_v62 = vsub.f32 %v15061_v46, %v7882_v42 }
 0xc46   : > { %v7843_v61 = vpop.xlane.xlu0 %7842 }
 0xc47   : > { %v7883_v12 = vmul.f32 0.00390625, %v7843_v61  ;;  %v7932_v56 = vmul.f32 %v15221_v1, %v15221_v1  ;;  %v7933_v11 = vmul.f32 %v15224_v62, %v15224_v62 }
 0xc49   : > { %v15231_v0 = vsub.f32 %v15067_v58, %v7883_v12  ;;  %v15234_v60 = vsub.f32 %v15070_v63, %v7883_v12  ;;  %v7966_v3 = vadd.f32 %v7933_v11, %v7932_v56 }
 0xc4b   : > { %7967 = vadd.xlane.f32.xlu1 %v7966_v3  ;;  %v7934_v44 = vmul.f32 %v15231_v0, %v15231_v0  ;;  %v7935_v46 = vmul.f32 %v15234_v60, %v15234_v60 }
 0xc4d   : > { %v7969_v59 = vadd.f32 %v7935_v46, %v7934_v44 }
 0xc4f   : > { %7970 = vadd.xlane.f32.xlu0 %v7969_v59 }
 0xc58   : > { %v7846_v9 = vpop.xlane.xlu1 %7845 }
 0xc59   : > { %v7884_v7 = vmul.f32 0.00390625, %v7846_v9 }
 0xc5b   : > { %v15241_v52 = vsub.f32 %v15078_v36, %v7884_v7  ;;  %v15244_v58 = vsub.f32 %v15081_v29, %v7884_v7 }
 0xc5c   : > { %v7849_v63 = vpop.xlane.xlu0 %7848 }
 0xc5d   : > { %v7885_v57 = vmul.f32 0.00390625, %v7849_v63  ;;  %v7936_v15 = vmul.f32 %v15241_v52, %v15241_v52  ;;  %v7937_v51 = vmul.f32 %v15244_v58, %v15244_v58 }
 0xc5f   : > { %v15251_v50 = vsub.f32 %v15087_v27, %v7885_v57  ;;  %v15254_v35 = vsub.f32 %v15090_v53, %v7885_v57  ;;  %v7972_v14 = vadd.f32 %v7937_v51, %v7936_v15 }
 0xc61   : > { %7973 = vadd.xlane.f32.xlu1 %v7972_v14  ;;  %v7938_v36 = vmul.f32 %v15251_v50, %v15251_v50  ;;  %v7939_v29 = vmul.f32 %v15254_v35, %v15254_v35 }
 0xc63   : > { %v7975_v19 = vadd.f32 %v7939_v29, %v7938_v36 }
 0xc65   : > { %7976 = vadd.xlane.f32.xlu0 %v7975_v19 }
 0xc6e   : > { %v7852_v16 = vpop.xlane.xlu1 %7851 }
 0xc6f   : > { %v7886_v41 = vmul.f32 0.00390625, %v7852_v16 }
 0xc71   : > { %v15261_v17 = vsub.f32 %v15098_v24, %v7886_v41  ;;  %v15264_v27 = vsub.f32 %v15101_v34, %v7886_v41 }
 0xc72   : > { %v7855_v53 = vpop.xlane.xlu0 %7854 }
 0xc73   : > { %v7887_v26 = vmul.f32 0.00390625, %v7855_v53  ;;  %v7940_v2 = vmul.f32 %v15261_v17, %v15261_v17  ;;  %v7941_v18 = vmul.f32 %v15264_v27, %v15264_v27 }
 0xc75   : > { %v15271_v10 = vsub.f32 %v15107_v48, %v7887_v26  ;;  %v15274_v8 = vsub.f32 %v15110_v25, %v7887_v26  ;;  %v7978_v32 = vadd.f32 %v7941_v18, %v7940_v2 }
 0xc77   : > { %7979 = vadd.xlane.f32.xlu1 %v7978_v32  ;;  %v7942_v24 = vmul.f32 %v15271_v10, %v15271_v10  ;;  %v7943_v34 = vmul.f32 %v15274_v8, %v15274_v8 }
 0xc79   : > { %v7981_v28 = vadd.f32 %v7943_v34, %v7942_v24 }
 0xc7b   : > { %7982 = vadd.xlane.f32.xlu0 %v7981_v28 }
 0xc94   : > { %v7858_v42 = vpop.xlane.xlu1 %7857 }
 0xc95   : > { %v7888_v61 = vmul.f32 0.00390625, %v7858_v42 }
 0xc97   : > { %v15281_v12 = vsub.f32 %v15123_v49, %v7888_v61  ;;  %v15284_v48 = vsub.f32 %v15126_v23, %v7888_v61 }
 0xc98   : > { %v7861_v25 = vpop.xlane.xlu0 %7860 }
 0xc99   : > { %v7889_v56 = vmul.f32 0.00390625, %v7861_v25  ;;  %v7944_v11 = vmul.f32 %v15281_v12, %v15281_v12  ;;  %v7945_v3 = vmul.f32 %v15284_v48, %v15284_v48 }
 0xc9b   : > { %v15291_v44 = vsub.f32 %v15133_v39, %v7889_v56  ;;  %v15294_v46 = vsub.f32 %v15136_v20, %v7889_v56  ;;  %v7984_v59 = vadd.f32 %v7945_v3, %v7944_v11 }
 0xc9c   : > { %v7864_v49 = vpop.xlane.xlu1 %7863 }
 0xc9d   : > { %v7890_v9 = vmul.f32 0.00390625, %v7864_v49  ;;  %7985 = vadd.xlane.f32.xlu1 %v7984_v59  ;;  %v7946_v23 = vmul.f32 %v15291_v44, %v15291_v44  ;;  %v7947_v7 = vmul.f32 %v15294_v46, %v15294_v46 }
 0xc9f   : > { %v15301_v63 = vsub.f32 %v15143_v13, %v7890_v9  ;;  %v15304_v57 = vsub.f32 %v15146_v55, %v7890_v9  ;;  %v7987_v39 = vadd.f32 %v7947_v7, %v7946_v23 }
 0xca0   : > { %v7867_v15 = vpop.xlane.xlu0 %7866 }
 0xca1   : > { %v7891_v20 = vmul.f32 0.00390625, %v7867_v15  ;;  %7988 = vadd.xlane.f32.xlu0 %v7987_v39  ;;  %v7948_v51 = vmul.f32 %v15301_v63, %v15301_v63  ;;  %v7949_v14 = vmul.f32 %v15304_v57, %v15304_v57 }
 0xca3   : > { %v15311_v36 = vsub.f32 %v15153_v40, %v7891_v20  ;;  %v15314_v29 = vsub.f32 %v15156_v43, %v7891_v20  ;;  %v7990_v13 = vadd.f32 %v7949_v14, %v7948_v51 }
 0xca4   : > { %v7870_v19 = vpop.xlane.xlu1 %7869 }
 0xca5   : > { %v7892_v55 = vmul.f32 0.00390625, %v7870_v19  ;;  %7991 = vadd.xlane.f32.xlu1 %v7990_v13  ;;  %v7950_v16 = vmul.f32 %v15311_v36, %v15311_v36  ;;  %v7951_v41 = vmul.f32 %v15314_v29, %v15314_v29  ;;  %v7831_v13 = vld [vmem:[%s16244_s12] sm:$0x3] }
 0xca7   : > { %v15321_v53 = vsub.f32 %v15163_v31, %v7892_v55  ;;  %v15324_v26 = vsub.f32 %v15166_v45, %v7892_v55  ;;  %v7993_v40 = vadd.f32 %v7951_v41, %v7950_v16  ;;  %v16245_v55 = vld [vmem:[#allocation57_spill] sm:$0xff] }
 0xca8   : > { %v7873_v2 = vpop.xlane.xlu0 %7872 }
 0xca9   : > { %v7893_v43 = vmul.f32 0.00390625, %v7873_v2  ;;  %7994 = vadd.xlane.f32.xlu0 %v7993_v40  ;;  %v7952_v18 = vmul.f32 %v15321_v53, %v15321_v53  ;;  %v7953_v32 = vmul.f32 %v15324_v26, %v15324_v26  ;;  %v15373_v40 = vrot.slane %v7831_v13, %v16189_v33 }
 0xcaa   : > { %v15376_v2 = vrot.slane %v7831_v13, %v16245_v55 }
 0xcab   : > { %v15331_v24 = vsub.f32 %v15173_v22, %v7893_v43  ;;  %v15334_v34 = vsub.f32 %v15176_v5, %v7893_v43  ;;  %v7996_v31 = vadd.f32 %v7953_v32, %v7952_v18 }
 0xcac   : > { %v7876_v28 = vpop.xlane.xlu1 %7875 }
 0xcad   : > { %v7894_v45 = vmul.f32 0.00390625, %v7876_v28  ;;  %7997 = vadd.xlane.f32.xlu1 %v7996_v31  ;;  %v7954_v42 = vmul.f32 %v15331_v24, %v15331_v24  ;;  %v7955_v61 = vmul.f32 %v15334_v34, %v15334_v34 }
 0xcaf   : > { %v15341_v25 = vsub.f32 %v15185_v54, %v7894_v45  ;;  %v15344_v56 = vsub.f32 %v15188_v4, %v7894_v45  ;;  %v7999_v22 = vadd.f32 %v7955_v61, %v7954_v42 }
 0xcb0   : > { %v7879_v11 = vpop.xlane.xlu0 %7878 }
 0xcb1   : > { %v7895_v5 = vmul.f32 0.00390625, %v7879_v11  ;;  %8000 = vadd.xlane.f32.xlu0 %v7999_v22  ;;  %v7956_v3 = vmul.f32 %v15341_v25, %v15341_v25  ;;  %v7957_v59 = vmul.f32 %v15344_v56, %v15344_v56 }
 0xcb3   : > { %v15351_v49 = vsub.f32 %v15193_v6, %v7895_v5  ;;  %v15354_v9 = vsub.f32 %v15196_v37, %v7895_v5  ;;  %v8002_v54 = vadd.f32 %v7957_v59, %v7956_v3  ;;  %v7830_v37 = vld [vmem:[%s16243_s22] sm:$0x3] }
 0xcb4   : > { %v15367_v19 = vrot.slane %v7830_v37, %v16189_v33  ;;  %v15370_v16 = vrot.slane %v7830_v37, %v16245_v55 }
 0xcb5   : > { %8003 = vadd.xlane.f32.xlu1 %v8002_v54  ;;  %v7958_v4 = vmul.f32 %v15351_v49, %v15351_v49  ;;  %v7959_v23 = vmul.f32 %v15354_v9, %v15354_v9 }
 0xcb7   : > { %v8005_v7 = vadd.f32 %v7959_v23, %v7958_v4 }
 0xcb9   : > { %8006 = vadd.xlane.f32.xlu0 %v8005_v7 }
 0xcbd   : > { %v7962_v39 = vpop.xlane.xlu1 %7961 }
 0xcbe   : > { %v8008_v15 = vmul.f32 0.00390625, %v7962_v39 }
 0xcc0   : > { %v8024_v20 = vadd.f32 1e-05, %v8008_v15 }
 0xcc1   : > { %v7965_v51 = vpop.xlane.xlu0 %7964 }
 0xcc2   : > { %9953 = vrsqrt.f32 %v8024_v20  ;;  %v8009_v6 = vmul.f32 0.00390625, %v7965_v51 }
 0xcc4   : > { %v8025_v14 = vadd.f32 1e-05, %v8009_v6 }
 0xcc6   : > { %9955 = vrsqrt.f32 %v8025_v14 }
 0xccf   : > { %v9954_v41 = vpop.eup %9953 }
 0xcd0   : > { %v8056_v43 = vmul.f32 %v9954_v41, %v15201_v21  ;;  %v8057_v18 = vmul.f32 %v9954_v41, %v15204_v30 }
 0xcd2   : > { %v8099_v32 = vmul.f32 %v15367_v19, %v8056_v43  ;;  %v8100_v31 = vmul.f32 %v15370_v16, %v8057_v18 }
 0xcd3   : > { %v9956_v28 = vpop.eup %9955 }
 0xcd4   : > { %v8142_v45 = vadd.f32 %v15373_v40, %v8099_v32  ;;  %v8143_v42 = vadd.f32 %v15376_v2, %v8100_v31  ;;  %v8058_v33 = vmul.f32 %v9956_v28, %v15211_v47  ;;  %v8059_v61 = vmul.f32 %v9956_v28, %v15214_v38  ;;  %v7968_v22 = vpop.xlane.xlu1 %7967 }
 0xcd5   : > { %v8010_v11 = vmul.f32 0.00390625, %v7968_v22 }
 0xcd6   : > { %8174 = vst [vmem:[%s10322_s30] sm:$0xff] %v8142_v45  ;;  %8175 = vst [vmem:[%s10322_s30 + $0x8] sm:$0xff] %v8143_v42  ;;  %v8101_v21 = vmul.f32 %v15367_v19, %v8058_v33  ;;  %v8102_v30 = vmul.f32 %v15370_v16, %v8059_v61 }
 0xcd7   : > { %v8026_v59 = vadd.f32 1e-05, %v8010_v11 }
 0xcd8   : > { %v8144_v5 = vadd.f32 %v15373_v40, %v8101_v21  ;;  %v8145_v3 = vadd.f32 %v15376_v2, %v8102_v30  ;;  %v7971_v54 = vpop.xlane.xlu0 %7970 }
 0xcd9   : > { %9957 = vrsqrt.f32 %v8026_v59  ;;  %v8011_v47 = vmul.f32 0.00390625, %v7971_v54 }
 0xcda   : > { %8176 = vst [vmem:[%s10322_s30 + $0x10] sm:$0xff] %v8144_v5  ;;  %8177 = vst [vmem:[%s10322_s30 + $0x18] sm:$0xff] %v8145_v3 }
 0xcdb   : > { %v8027_v38 = vadd.f32 1e-05, %v8011_v47 }
 0xcdd   : > { %9959 = vrsqrt.f32 %v8027_v38 }
 0xce6   : > { %v9958_v4 = vpop.eup %9957 }
 0xce7   : > { %v8060_v23 = vmul.f32 %v9958_v4, %v15221_v1  ;;  %v8061_v7 = vmul.f32 %v9958_v4, %v15224_v62 }
 0xce9   : > { %v8103_v39 = vmul.f32 %v15367_v19, %v8060_v23  ;;  %v8104_v15 = vmul.f32 %v15370_v16, %v8061_v7 }
 0xcea   : > { %v9960_v20 = vpop.eup %9959  ;;  %v7974_v51 = vpop.xlane.xlu1 %7973 }
 0xceb   : > { %v8146_v6 = vadd.f32 %v15373_v40, %v8103_v39  ;;  %v8147_v14 = vadd.f32 %v15376_v2, %v8104_v15  ;;  %v8062_v37 = vmul.f32 %v9960_v20, %v15231_v0  ;;  %v8063_v13 = vmul.f32 %v9960_v20, %v15234_v60 }
 0xcec   : > { %v8012_v55 = vmul.f32 0.00390625, %v7974_v51 }
 0xced   : > { %8178 = vst [vmem:[%s10322_s30 + $0x20] sm:$0xff] %v8146_v6  ;;  %8179 = vst [vmem:[%s10322_s30 + $0x28] sm:$0xff] %v8147_v14  ;;  %v8105_v1 = vmul.f32 %v15367_v19, %v8062_v37  ;;  %v8106_v62 = vmul.f32 %v15370_v16, %v8063_v13 }
 0xcee   : > { %v8028_v41 = vadd.f32 1e-05, %v8012_v55  ;;  %v7977_v43 = vpop.xlane.xlu0 %7976 }
 0xcef   : > { %v8148_v18 = vadd.f32 %v15373_v40, %v8105_v1  ;;  %v8149_v32 = vadd.f32 %v15376_v2, %v8106_v62  ;;  %v8013_v31 = vmul.f32 0.00390625, %v7977_v43 }
 0xcf0   : > { %9961 = vrsqrt.f32 %v8028_v41 }
 0xcf1   : > { %8180 = vst [vmem:[%s10322_s30 + $0x30] sm:$0xff] %v8148_v18  ;;  %8181 = vst [vmem:[%s10322_s30 + $0x38] sm:$0xff] %v8149_v32  ;;  %v8029_v0 = vadd.f32 1e-05, %v8013_v31 }
 0xcf3   : > { %9963 = vrsqrt.f32 %v8029_v0 }
 0xcfd   : > { %v9962_v60 = vpop.eup %9961 }
 0xcfe   : > { %v8064_v28 = vmul.f32 %v9962_v60, %v15241_v52  ;;  %v8065_v45 = vmul.f32 %v9962_v60, %v15244_v58 }
 0xd00   : > { %v9964_v42 = vpop.eup %9963  ;;  %v8107_v33 = vmul.f32 %v15367_v19, %v8064_v28  ;;  %v8108_v61 = vmul.f32 %v15370_v16, %v8065_v45  ;;  %v7980_v21 = vpop.xlane.xlu1 %7979 }
 0xd01   : > { %v8066_v30 = vmul.f32 %v9964_v42, %v15251_v50  ;;  %v8067_v22 = vmul.f32 %v9964_v42, %v15254_v35  ;;  %v8014_v11 = vmul.f32 0.00390625, %v7980_v21 }
 0xd02   : > { %v8150_v5 = vadd.f32 %v15373_v40, %v8107_v33  ;;  %v8151_v3 = vadd.f32 %v15376_v2, %v8108_v61 }
 0xd03   : > { %v8109_v52 = vmul.f32 %v15367_v19, %v8066_v30  ;;  %v8110_v58 = vmul.f32 %v15370_v16, %v8067_v22  ;;  %v8030_v59 = vadd.f32 1e-05, %v8014_v11 }
 0xd04   : > { %8182 = vst [vmem:[%s10322_s30 + $0x40] sm:$0xff] %v8150_v5  ;;  %8183 = vst [vmem:[%s10322_s30 + $0x48] sm:$0xff] %v8151_v3  ;;  %v7983_v54 = vpop.xlane.xlu0 %7982 }
 0xd05   : > { %v8152_v47 = vadd.f32 %v15373_v40, %v8109_v52  ;;  %v8153_v50 = vadd.f32 %v15376_v2, %v8110_v58  ;;  %9965 = vrsqrt.f32 %v8030_v59  ;;  %v8015_v35 = vmul.f32 0.00390625, %v7983_v54 }
 0xd07   : > { %8184 = vst [vmem:[%s10322_s30 + $0x50] sm:$0xff] %v8152_v47  ;;  %8185 = vst [vmem:[%s10322_s30 + $0x58] sm:$0xff] %v8153_v50  ;;  %v8031_v38 = vadd.f32 1e-05, %v8015_v35 }
 0xd09   : > { %9967 = vrsqrt.f32 %v8031_v38 }
 0xd12   : > { %v9966_v4 = vpop.eup %9965 }
 0xd13   : > { %v8068_v23 = vmul.f32 %v9966_v4, %v15261_v17  ;;  %v8069_v7 = vmul.f32 %v9966_v4, %v15264_v27 }
 0xd15   : > { %v8111_v39 = vmul.f32 %v15367_v19, %v8068_v23  ;;  %v8112_v15 = vmul.f32 %v15370_v16, %v8069_v7 }
 0xd16   : > { %v9968_v20 = vpop.eup %9967 }
 0xd17   : > { %v8154_v51 = vadd.f32 %v15373_v40, %v8111_v39  ;;  %v8155_v6 = vadd.f32 %v15376_v2, %v8112_v15  ;;  %v8070_v14 = vmul.f32 %v9968_v20, %v15271_v10  ;;  %v8071_v37 = vmul.f32 %v9968_v20, %v15274_v8 }
 0xd19   : > { %8186 = vst [vmem:[%s10322_s30 + $0x60] sm:$0xff] %v8154_v51  ;;  %8187 = vst [vmem:[%s10322_s30 + $0x68] sm:$0xff] %v8155_v6  ;;  %v8113_v17 = vmul.f32 %v15367_v19, %v8070_v14  ;;  %v8114_v13 = vmul.f32 %v15370_v16, %v8071_v37 }
 0xd1b   : > { %v8156_v27 = vadd.f32 %v15373_v40, %v8113_v17  ;;  %v8157_v55 = vadd.f32 %v15376_v2, %v8114_v13 }
 0xd1d   : > { %8188 = vst [vmem:[%s10322_s30 + $0x70] sm:$0xff] %v8156_v27  ;;  %8189 = vst [vmem:[%s10322_s30 + $0x78] sm:$0xff] %v8157_v55 }
 0xd26   : > { %v7986_v1 = vpop.xlane.xlu1 %7985 }
 0xd27   : > { %v8016_v62 = vmul.f32 0.00390625, %v7986_v1 }
 0xd29   : > { %v8032_v41 = vadd.f32 1e-05, %v8016_v62 }
 0xd2a   : > { %v7989_v43 = vpop.xlane.xlu0 %7988 }
 0xd2b   : > { %9969 = vrsqrt.f32 %v8032_v41  ;;  %v8017_v10 = vmul.f32 0.00390625, %v7989_v43 }
 0xd2d   : > { %v8033_v18 = vadd.f32 1e-05, %v8017_v10 }
 0xd2e   : > { %v7992_v8 = vpop.xlane.xlu1 %7991 }
 0xd2f   : > { %9971 = vrsqrt.f32 %v8033_v18  ;;  %v8018_v32 = vmul.f32 0.00390625, %v7992_v8 }
 0xd31   : > { %v8034_v31 = vadd.f32 1e-05, %v8018_v32 }
 0xd32   : > { %v7995_v0 = vpop.xlane.xlu0 %7994 }
 0xd33   : > { %9973 = vrsqrt.f32 %v8034_v31  ;;  %v8019_v60 = vmul.f32 0.00390625, %v7995_v0 }
 0xd35   : > { %v8035_v28 = vadd.f32 1e-05, %v8019_v60 }
 0xd36   : > { %v7998_v45 = vpop.xlane.xlu1 %7997 }
 0xd37   : > { %9975 = vrsqrt.f32 %v8035_v28  ;;  %v8020_v42 = vmul.f32 0.00390625, %v7998_v45 }
 0xd38   : > { %v9970_v33 = vpop.eup %9969 }
 0xd39   : > { %v8072_v61 = vmul.f32 %v9970_v33, %v15281_v12  ;;  %v8073_v21 = vmul.f32 %v9970_v33, %v15284_v48  ;;  %v8036_v30 = vadd.f32 1e-05, %v8020_v42 }
 0xd3a   : > { %v8001_v22 = vpop.xlane.xlu0 %8000 }
 0xd3b   : > { %v8115_v11 = vmul.f32 %v15367_v19, %v8072_v61  ;;  %v8116_v5 = vmul.f32 %v15370_v16, %v8073_v21  ;;  %9977 = vrsqrt.f32 %v8036_v30  ;;  %v8021_v3 = vmul.f32 0.00390625, %v8001_v22 }
 0xd3c   : > { %v9972_v52 = vpop.eup %9971 }
 0xd3d   : > { %v8158_v58 = vadd.f32 %v15373_v40, %v8115_v11  ;;  %v8159_v59 = vadd.f32 %v15376_v2, %v8116_v5  ;;  %v8074_v54 = vmul.f32 %v9972_v52, %v15291_v44  ;;  %v8075_v12 = vmul.f32 %v9972_v52, %v15294_v46 }
 0xd3e   : > { %v8037_v47 = vadd.f32 1e-05, %v8021_v3  ;;  %v8004_v48 = vpop.xlane.xlu1 %8003 }
 0xd3f   : > { %8190 = vst [vmem:[%s10322_s30 + $0x80] sm:$0xff] %v8158_v58  ;;  %8191 = vst [vmem:[%s10322_s30 + $0x88] sm:$0xff] %v8159_v59  ;;  %v8117_v50 = vmul.f32 %v15367_v19, %v8074_v54  ;;  %v8118_v35 = vmul.f32 %v15370_v16, %v8075_v12  ;;  %v8022_v38 = vmul.f32 0.00390625, %v8004_v48 }
 0xd40   : > { %v9974_v4 = vpop.eup %9973  ;;  %9979 = vrsqrt.f32 %v8037_v47 }
 0xd41   : > { %v8160_v23 = vadd.f32 %v15373_v40, %v8117_v50  ;;  %v8161_v7 = vadd.f32 %v15376_v2, %v8118_v35  ;;  %v8076_v44 = vmul.f32 %v9974_v4, %v15301_v63  ;;  %v8077_v46 = vmul.f32 %v9974_v4, %v15304_v57 }
 0xd42   : > { %v8038_v39 = vadd.f32 1e-05, %v8022_v38  ;;  %v8007_v15 = vpop.xlane.xlu0 %8006 }
 0xd43   : > { %8192 = vst [vmem:[%s10322_s30 + $0x90] sm:$0xff] %v8160_v23  ;;  %8193 = vst [vmem:[%s10322_s30 + $0x98] sm:$0xff] %v8161_v7  ;;  %v8119_v20 = vmul.f32 %v15367_v19, %v8076_v44  ;;  %v8120_v51 = vmul.f32 %v15370_v16, %v8077_v46  ;;  %v8023_v6 = vmul.f32 0.00390625, %v8007_v15 }
 0xd44   : > { %v9976_v14 = vpop.eup %9975  ;;  %9981 = vrsqrt.f32 %v8038_v39 }
 0xd45   : > { %v8162_v37 = vadd.f32 %v15373_v40, %v8119_v20  ;;  %v8163_v63 = vadd.f32 %v15376_v2, %v8120_v51  ;;  %v8078_v57 = vmul.f32 %v9976_v14, %v15311_v36  ;;  %v8079_v17 = vmul.f32 %v9976_v14, %v15314_v29 }
 0xd46   : > { %v8039_v13 = vadd.f32 1e-05, %v8023_v6 }
 0xd47   : > { %8194 = vst [vmem:[%s10322_s30 + $0xa0] sm:$0xff] %v8162_v37  ;;  %8195 = vst [vmem:[%s10322_s30 + $0xa8] sm:$0xff] %v8163_v63  ;;  %v8121_v27 = vmul.f32 %v15367_v19, %v8078_v57  ;;  %v8122_v55 = vmul.f32 %v15370_v16, %v8079_v17 }
 0xd48   : > { %v9978_v1 = vpop.eup %9977  ;;  %9983 = vrsqrt.f32 %v8039_v13 }
 0xd49   : > { %v8164_v62 = vadd.f32 %v15373_v40, %v8121_v27  ;;  %v8165_v41 = vadd.f32 %v15376_v2, %v8122_v55  ;;  %v8080_v43 = vmul.f32 %v9978_v1, %v15321_v53  ;;  %v8081_v36 = vmul.f32 %v9978_v1, %v15324_v26 }
 0xd4b   : > { %8196 = vst [vmem:[%s10322_s30 + $0xb0] sm:$0xff] %v8164_v62  ;;  %8197 = vst [vmem:[%s10322_s30 + $0xb8] sm:$0xff] %v8165_v41  ;;  %v8123_v29 = vmul.f32 %v15367_v19, %v8080_v43  ;;  %v8124_v10 = vmul.f32 %v15370_v16, %v8081_v36 }
 0xd4d   : > { %v9980_v18 = vpop.eup %9979  ;;  %v8166_v8 = vadd.f32 %v15373_v40, %v8123_v29  ;;  %v8167_v32 = vadd.f32 %v15376_v2, %v8124_v10 }
 0xd4e   : > { %v8082_v31 = vmul.f32 %v9980_v18, %v15331_v24  ;;  %v8083_v0 = vmul.f32 %v9980_v18, %v15334_v34 }
 0xd4f   : > { %8198 = vst [vmem:[%s10322_s30 + $0xc0] sm:$0xff] %v8166_v8  ;;  %8199 = vst [vmem:[%s10322_s30 + $0xc8] sm:$0xff] %v8167_v32 }
 0xd50   : > { %v8125_v53 = vmul.f32 %v15367_v19, %v8082_v31  ;;  %v8126_v26 = vmul.f32 %v15370_v16, %v8083_v0 }
 0xd51   : > { %v9982_v60 = vpop.eup %9981 }
 0xd52   : > { %v8168_v28 = vadd.f32 %v15373_v40, %v8125_v53  ;;  %v8169_v45 = vadd.f32 %v15376_v2, %v8126_v26  ;;  %v8084_v42 = vmul.f32 %v9982_v60, %v15341_v25  ;;  %v8085_v33 = vmul.f32 %v9982_v60, %v15344_v56 }
 0xd54   : > { %8200 = vst [vmem:[%s10322_s30 + $0xd0] sm:$0xff] %v8168_v28  ;;  %8201 = vst [vmem:[%s10322_s30 + $0xd8] sm:$0xff] %v8169_v45  ;;  %v8127_v24 = vmul.f32 %v15367_v19, %v8084_v42  ;;  %v8128_v34 = vmul.f32 %v15370_v16, %v8085_v33 }
 0xd55   : > { %v9984_v61 = vpop.eup %9983 }
 0xd56   : > { %v8170_v21 = vadd.f32 %v15373_v40, %v8127_v24  ;;  %v8171_v30 = vadd.f32 %v15376_v2, %v8128_v34  ;;  %v8086_v22 = vmul.f32 %v9984_v61, %v15351_v49  ;;  %v8087_v11 = vmul.f32 %v9984_v61, %v15354_v9 }
 0xd58   : > { %8202 = vst [vmem:[%s10322_s30 + $0xe0] sm:$0xff] %v8170_v21  ;;  %8203 = vst [vmem:[%s10322_s30 + $0xe8] sm:$0xff] %v8171_v30  ;;  %v8129_v25 = vmul.f32 %v15367_v19, %v8086_v22  ;;  %v8130_v56 = vmul.f32 %v15370_v16, %v8087_v11 }
 0xd5a   : > { %v8172_v5 = vadd.f32 %v15373_v40, %v8129_v25  ;;  %v8173_v3 = vadd.f32 %v15376_v2, %v8130_v56 }
 0xd5c   : > { %8204 = vst [vmem:[%s10322_s30 + $0xf0] sm:$0xff] %v8172_v5  ;;  %8205 = vst [vmem:[%s10322_s30 + $0xf8] sm:$0xff] %v8173_v3 }
 0xd5d PF: > { %s16246_s19 = sld [smem:[#allocation12_spill]]  ;;  %s8223_s27 = sshll.u32 %s10322_s30, 4  ;;  %s15509_s27 = int_to_ptr.vmem [resolvable:$true] %s8223_s27 }
 0xd5e   : > { %s16247_s16 = sld [smem:[#allocation13_spill]]  ;;  %s10018_s13 = scalar_lea.vmem %s15509_s27, 4096 }
 0xd5f   : > { %s16248_s17 = sld [smem:[#allocation10_spill]]  ;;  %p10019_p4 = scmp.ne.s32.totalorder %s15509_s27, %s10018_s13 }
 0xd60   : > { %s16250_s15 = sld [smem:[#allocation135_spill]]  ;;  %s10132_s30 = smov [#allocation6]  }
 0xd61   : > { %p10020_p5 = pnand %p10019_p4, %p10277_p6  ;;  %s10022_s24 = sshll.u32 %s10132_s30, 4  ;;  %s10023_s24 = int_to_ptr.vmem [resolvable:$false] %s10022_s24 }
 0xd62   : > { %s10024_s12 = scalar_lea.vmem %s10023_s24, 8192  ;;  %p10025_p9 = scmp.lt.s32.totalorder %s15509_s27, %s10023_s24 }
 0xd63   : > { %s8783_s20 = sshll.u32 %s16246_s19, 5  ;;  %p10021_p8 = pneg %p10020_p5 }
 0xd64   : > { %s8763_s23 = sshll.u32 %s16247_s16, 6  ;;  %p10026_p10 = scmp.lt.s32.totalorder %s10024_s12, %s10018_s13 }
 0xd65   : > { %s8220_s28 = sadd.s32 %s8783_s20, %s8763_s23  ;;  %s16251_s14 = sand.u32 1, %s16248_s17  }
 0xd66   : > { %s8764_s29 = sshll.u32 %s8220_s28, 7  ;;  %s15518_s22 = scalar_lea.sflag [#allocation7], %s16251_s14 }
 0xd67   : > { %s15514_s26 = scalar_lea.hbm %s16250_s15, %s8764_s29  ;;  %p10027_p11 = por %p10026_p10, %p10025_p9 }
 0xd69   : > { %p10028_p12 = pnand %p10027_p11, %p10021_p8 }
 0xd6b   : > { %10031 = shalt.err (!%p10028_p12)
}
 0xd6c   : > { %s10032_s19 = scalar_lea.hbm %s15514_s26, 4096  ;;  %s10036_s20 = scalar_lea.hbm %s16250_s15, 16384 }
 0xd6d   : > { %p10033_p13 = scmp.ne.s32.totalorder %s15514_s26, %s10032_s19  ;;  %p10037_p2 = scmp.lt.s32.totalorder %s15514_s26, %s16250_s15 }
 0xd6e   : > { %p10038_p3 = scmp.lt.s32.totalorder %s10036_s20, %s10032_s19 }
 0xd6f   : > { %p10034_p0 = pnand %p10033_p13, %p10277_p6 }
 0xd70   : > { %p10039_p4 = por %p10038_p3, %p10037_p2 }
 0xd71   : > { %p10035_p1 = pneg %p10034_p0 }
 0xd73   : > { %p10040_p5 = pnand %p10039_p4, %p10035_p1 }
 0xd75   : > { %10043 = shalt.err (!%p10040_p5)
}
 0xd76   : > { %s10133_s29 = smov 256   ;;  %s10134_s18 = smov 16  }
 0xd77   : > { %9040 = dma.vmem_to_hbm [thread:$0]  (%p10277_p6), %s15509_s27, 4096, %s15514_s26, %s15518_s22, %s10133_s29, %s10133_s29, %s10134_s18  }
 0xd78 PF: > { %s16252_s25 = sld [smem:[#allocation17_spill]] }
 0xd79   : > { %s16253_s14 = sld [smem:[#allocation9_spill]] }
 0xd7e   : > { %p9046_p8 = scmp.ge.s32.totalorder %s16252_s25, 2 }
 0xd7f   : > { %s8238_s30 = sand.u32 1, %s16253_s14  }
 0xd80   : > { %p9043_p9 = pnand %p9046_p8, %p10284_p7  ;;  %s8239_s24 = scalar_lea.sflag [#allocation7], %s8238_s30 }
 0xd82   : > { %p9044_p10 = pneg %p9043_p9 }
 0xd84   : > { %10085 = dma.done.wait (%p9044_p10), %s8239_s24, 4096  }
 0xd85   : > { %10087 = vsyncadd (%p9044_p10), %s8239_s24, 4294963200  ;;  %s28_s27 = sadd.s32 1, %s16252_s25   ;;  %s16255_s18 = sld [smem:[#allocation10_spill]] }
 0xd86   : > { %p25_p11 = scmp.ge.s32.totalorder %s28_s27, 10   ;;  %s16256_s19 = sld [smem:[#allocation11_spill]] }
 0xd87   : > { %s16257_s20 = sld [smem:[#allocation23_spill]] }
 0xd88   : > { %s16258_s21 = sld [smem:[#allocation14_spill]] }
 0xd89   : > { %s16259_s22 = sld [smem:[#allocation15_spill]]  ;;  %27 = sbr.rel (!%p25_p11) target bundleno = 11 (0xb), region = 131 }
 0xd8a   : > { %s16260_s23 = sld [smem:[#allocation16_spill]] }
 0xd8b   : > { %s16261_s24 = sld [smem:[#allocation18_spill]] }
 0xd8c   : > { %s16262_s25 = sld [smem:[#allocation20_spill]] }
 0xd8d   : > { %s16263_s26 = sld [smem:[#allocation22_spill]] }
 0xd8e   :  { %8244 = vsyncpa [#allocation7], 1 }
 0xd8f   :  { %8246 = vsyncpa [#allocation7 + $0x1], 1 }

</bundles_post_ra>
